<compile_context>
chip_gen: v5e
topology: v5e:2x2
jax: 0.10.0
libtpu: 0.0.40
codegen_flags: <defaults>
</compile_context>

<pallas_src>
import functools
import math

import jax
import jax.numpy as jnp
from jax import lax
from jax.experimental import pallas as pl
from jax.experimental.pallas import tpu as pltpu  # noqa: F401

# ------------------------- config -------------------------
HID = 32
N_HEADS = 4
HEAD_DIM = HID // N_HEADS
PF_DIM = 64
N_LAYERS = 2
INPUT_DIM = 20      # src vocab size
OUTPUT_DIM = 22     # trg vocab size
EMB_PAD = 32        # padded vocab rows (tile-aligned one-hot matmul)
MAX_LEN = 16
SRC_PAD_IDX = 0
TRG_PAD_IDX = 0
LN_EPS = 1e-5
FC_PAD = 128                            # lane-dense padded fc_out width
EMB_SCALE = math.sqrt(HID)              # embedding scale (sqrt(hid_dim))
INV_SCALE = 1.0 / math.sqrt(HEAD_DIM)   # attention scale, folded into Q weights
NEG_INF = -1e10


# ------------------------- in-kernel building blocks -------------------------
def _layernorm(h, g, b):
    mean = jnp.mean(h, axis=-1, keepdims=True)
    var = jnp.mean(jnp.square(h - mean), axis=-1, keepdims=True)
    return (h - mean) * lax.rsqrt(var + LN_EPS) * g + b


def _softmax_rows(e):
    e = e - jnp.max(e, axis=-1, keepdims=True)
    p = jnp.exp(e)
    return p / jnp.sum(p, axis=-1, keepdims=True)   # exact divide (probs are an output)


def _embed(ids_col, emb_pad, pos_emb, B, L):
    # ids_col: [B*L, 1] int32; emb_pad: [EMB_PAD, HID]; pos_emb: [MAX_LEN, HID]
    iota = lax.broadcasted_iota(jnp.int32, (B * L, EMB_PAD), 1)
    onehot = (ids_col == iota).astype(jnp.float32)          # [B*L, EMB_PAD]
    tok = jnp.dot(onehot, emb_pad, preferred_element_type=jnp.float32)  # [B*L, HID]
    pos = pos_emb[0:L, :]                                    # static slice
    x3 = tok.reshape(B, L, HID) * EMB_SCALE + pos[None, :, :]
    return x3.reshape(B * L, HID)                            # dropout = identity (eval)


def _attention(q2d, k2d, v2d, wo, bo, mask_add, B, Lq, Lk, need_probs):
    # q2d: [B*Lq, HID], k2d/v2d: [B*Lk, HID]; 1/sqrt(d) already folded into Q.
    # Head concat folded into W_o row-slices (no lane-concatenate).
    q3 = q2d.reshape(B, Lq, HID)
    k3 = k2d.reshape(B, Lk, HID)
    v3 = v2d.reshape(B, Lk, HID)
    out = jnp.zeros((B * Lq, HID), jnp.float32)
    probs = []
    for h in range(N_HEADS):
        lo, hi = h * HEAD_DIM, (h + 1) * HEAD_DIM
        e = jnp.einsum("bqd,bkd->bqk", q3[:, :, lo:hi], k3[:, :, lo:hi],
                       preferred_element_type=jnp.float32) + mask_add
        p = _softmax_rows(e)
        ctx = jnp.einsum("bqk,bkd->bqd", p, v3[:, :, lo:hi],
                         preferred_element_type=jnp.float32)
        out = out + jnp.dot(ctx.reshape(B * Lq, HEAD_DIM), wo[lo:hi, :],
                            preferred_element_type=jnp.float32)
        if need_probs:
            probs.append(p)
    return out + bo, probs


def _ffn(x, w1, b1, w2, b2):
    h = jnp.maximum(jnp.dot(x, w1, preferred_element_type=jnp.float32) + b1, 0.0)
    return jnp.dot(h, w2, preferred_element_type=jnp.float32) + b2


# ------------------------- the single fused kernel -------------------------
def _transformer_kernel(
        src_col_ref, trg_col_ref, src_ids_ref, trg_ids_ref,
        # encoder
        e_tok_ref, e_pos_ref,
        e_wqkv_ref, e_bqkv_ref, e_wo_ref, e_bo_ref, e_ln1g_ref, e_ln1b_ref,
        e_w1_ref, e_b1_ref, e_w2_ref, e_b2_ref, e_ln2g_ref, e_ln2b_ref,
        # decoder
        d_tok_ref, d_pos_ref,
        d_swqkv_ref, d_sbqkv_ref, d_swo_ref, d_sbo_ref, d_ln1g_ref, d_ln1b_ref,
        d_cqw_ref, d_cqb_ref, d_ckvw_ref, d_ckvb_ref, d_cwo_ref, d_cbo_ref,
        d_ln2g_ref, d_ln2b_ref,
        d_w1_ref, d_b1_ref, d_w2_ref, d_b2_ref, d_ln3g_ref, d_ln3b_ref,
        d_fcw_ref, d_fcb_ref,
        # outputs
        logits_ref, attn_ref,
        *, B, Ls, Lt):
    # ---- additive masks, built in-kernel from the int32 ids ----
    src_keep = src_ids_ref[...] != SRC_PAD_IDX                           # [B, Ls]
    src_mask = jnp.where(src_keep, 0.0, NEG_INF).astype(jnp.float32)[:, None, :]  # [B,1,Ls]
    trg_keep = trg_ids_ref[...] != TRG_PAD_IDX                           # [B, Lt]
    row = lax.broadcasted_iota(jnp.int32, (Lt, Lt), 0)
    col = lax.broadcasted_iota(jnp.int32, (Lt, Lt), 1)
    causal = (col <= row)[None, :, :]                                     # [1, Lt, Lt]
    trg_mask = jnp.where(trg_keep[:, None, :] & causal,
                         0.0, NEG_INF).astype(jnp.float32)               # [B, Lt, Lt]

    # ---- encoder ----
    x = _embed(src_col_ref[...], e_tok_ref[...], e_pos_ref[...], B, Ls)
    for l in range(N_LAYERS):
        qkv = jnp.dot(x, e_wqkv_ref[l],
                      preferred_element_type=jnp.float32) + e_bqkv_ref[l]
        h, _ = _attention(qkv[:, :HID], qkv[:, HID:2 * HID], qkv[:, 2 * HID:],
                          e_wo_ref[l], e_bo_ref[l], src_mask, B, Ls, Ls, False)
        x = _layernorm(x + h, e_ln1g_ref[l], e_ln1b_ref[l])
        h = _ffn(x, e_w1_ref[l], e_b1_ref[l], e_w2_ref[l], e_b2_ref[l])
        x = _layernorm(x + h, e_ln2g_ref[l], e_ln2b_ref[l])
    enc = x                                                               # [B*Ls, HID]

    # ---- decoder ----
    # cross-attention K/V of enc are layer-invariant: both layers in ONE matmul
    enc_kv = jnp.dot(enc, d_ckvw_ref[...],
                     preferred_element_type=jnp.float32) + d_ckvb_ref[...]  # [B*Ls, 4*HID]
    y = _embed(trg_col_ref[...], d_tok_ref[...], d_pos_ref[...], B, Lt)
    attn_probs = None
    for l in range(N_LAYERS):
        # masked self-attention
        qkv = jnp.dot(y, d_swqkv_ref[l],
                      preferred_element_type=jnp.float32) + d_sbqkv_ref[l]
        h, _ = _attention(qkv[:, :HID], qkv[:, HID:2 * HID], qkv[:, 2 * HID:],
                          d_swo_ref[l], d_sbo_ref[l], trg_mask, B, Lt, Lt, False)
        y = _layernorm(y + h, d_ln1g_ref[l], d_ln1b_ref[l])
        # cross-attention (last layer's probabilities are the model output)
        q = jnp.dot(y, d_cqw_ref[l],
                    preferred_element_type=jnp.float32) + d_cqb_ref[l]
        k = enc_kv[:, l * 2 * HID: l * 2 * HID + HID]
        v = enc_kv[:, l * 2 * HID + HID: (l + 1) * 2 * HID]
        last = (l == N_LAYERS - 1)
        h, probs = _attention(q, k, v, d_cwo_ref[l], d_cbo_ref[l], src_mask,
                              B, Lt, Ls, last)
        if last:
            attn_probs = probs
        y = _layernorm(y + h, d_ln2g_ref[l], d_ln2b_ref[l])
        # position-wise feed-forward
        h = _ffn(y, d_w1_ref[l], d_b1_ref[l], d_w2_ref[l], d_b2_ref[l])
        y = _layernorm(y + h, d_ln3g_ref[l], d_ln3b_ref[l])

    # ---- fc_out, zero-padded to FC_PAD lanes (dense store) ----
    logits_ref[...] = jnp.dot(y, d_fcw_ref[...],
                              preferred_element_type=jnp.float32) + d_fcb_ref[...]

    # ---- final cross-attention probabilities: contiguous leading-axis stores ----
    for h_idx in range(N_HEADS):
        attn_ref[h_idx] = attn_probs[h_idx]


# ------------------------- wrapper (one pallas_call) -------------------------
def transformer_forward(params, src, trg):
    B, Ls = src.shape
    Lt = trg.shape[1]
    e = params["encoder"]
    d = params["decoder"]
    es = e["stacked"]
    ds = d["stacked"]

    src_col = src.reshape(B * Ls, 1).astype(jnp.int32)   # tokens along sublanes
    trg_col = trg.reshape(B * Lt, 1).astype(jnp.int32)

    logits_pad, attn = pl.pallas_call(
        functools.partial(_transformer_kernel, B=B, Ls=Ls, Lt=Lt),
        out_shape=(jax.ShapeDtypeStruct((B * Lt, FC_PAD), jnp.float32),
                   jax.ShapeDtypeStruct((N_HEADS, B, Lt, Ls), jnp.float32)),
    )(src_col, trg_col, src.astype(jnp.int32), trg.astype(jnp.int32),
      e["tok_emb"], e["pos_emb"],
      es["wqkv"], es["bqkv"], es["wo"], es["bo"], es["ln1_g"], es["ln1_b"],
      es["w1"], es["b1"], es["w2"], es["b2"], es["ln2_g"], es["ln2_b"],
      d["tok_emb"], d["pos_emb"],
      ds["swqkv"], ds["sbqkv"], ds["swo"], ds["sbo"], ds["ln1_g"], ds["ln1_b"],
      ds["cq_w"], ds["cq_b"], d["ckv_w"], d["ckv_b"], ds["cwo"], ds["cbo"],
      ds["ln2_g"], ds["ln2_b"],
      ds["w1"], ds["b1"], ds["w2"], ds["b2"], ds["ln3_g"], ds["ln3_b"],
      d["fc_out_w"], d["fc_out_b"])

    output = logits_pad[:, :OUTPUT_DIM].reshape(B, Lt, OUTPUT_DIM)
    attention = jnp.transpose(attn, (1, 0, 2, 3))         # -> (B, H, Lt, Ls)
    return output, attention


# ------------------------- deterministic parameter init -------------------------
def init_linear(key, fan_in, fan_out):
    kw, kb = jax.random.split(key)
    bound = 1.0 / math.sqrt(fan_in)
    w = jax.random.uniform(kw, (fan_in, fan_out), jnp.float32, -bound, bound)
    b = jax.random.uniform(kb, (fan_out,), jnp.float32, -bound, bound)
    return w, b


def init_mha(key):
    kq, kk, kv, ko = jax.random.split(key, 4)
    wq, bq = init_linear(kq, HID, HID)
    wk, bk = init_linear(kk, HID, HID)
    wv, bv = init_linear(kv, HID, HID)
    wo, bo = init_linear(ko, HID, HID)
    # fold the 1/sqrt(head_dim) attention scale into the Q projection
    # TODO(synk): this model's tutorial lineage scales by sqrt(head_dim); swap
    # INV_SCALE to 1/sqrt(HID) here if matching a hid_dim-scaled variant.
    wq = wq * INV_SCALE
    bq = bq * INV_SCALE
    return {"wq": wq, "bq": bq, "wk": wk, "bk": bk, "wv": wv, "bv": bv,
            "wo": wo, "bo": bo}


def _ln_params():
    return jnp.ones((1, HID), jnp.float32), jnp.zeros((1, HID), jnp.float32)


def init_encoder_layer(key):
    ka, kf1, kf2 = jax.random.split(key, 3)
    a = init_mha(ka)
    w1, b1 = init_linear(kf1, HID, PF_DIM)
    w2, b2 = init_linear(kf2, PF_DIM, HID)
    g1, be1 = _ln_params()
    g2, be2 = _ln_params()
    return {
        "wqkv": jnp.concatenate([a["wq"], a["wk"], a["wv"]], axis=1),
        "bqkv": jnp.concatenate([a["bq"], a["bk"], a["bv"]]).reshape(1, 3 * HID),
        "wo": a["wo"], "bo": a["bo"].reshape(1, HID),
        "ln1_g": g1, "ln1_b": be1,
        "w1": w1, "b1": b1.reshape(1, PF_DIM),
        "w2": w2, "b2": b2.reshape(1, HID),
        "ln2_g": g2, "ln2_b": be2,
    }


def init_decoder_layer(key):
    ks, kc, kf1, kf2 = jax.random.split(key, 4)
    sa = init_mha(ks)
    ca = init_mha(kc)
    w1, b1 = init_linear(kf1, HID, PF_DIM)
    w2, b2 = init_linear(kf2, PF_DIM, HID)
    g1, be1 = _ln_params()
    g2, be2 = _ln_params()
    g3, be3 = _ln_params()
    return {
        "swqkv": jnp.concatenate([sa["wq"], sa["wk"], sa["wv"]], axis=1),
        "sbqkv": jnp.concatenate([sa["bq"], sa["bk"], sa["bv"]]).reshape(1, 3 * HID),
        "swo": sa["wo"], "sbo": sa["bo"].reshape(1, HID),
        "ln1_g": g1, "ln1_b": be1,
        "cq_w": ca["wq"], "cq_b": ca["bq"].reshape(1, HID),
        "ckv_w": jnp.concatenate([ca["wk"], ca["wv"]], axis=1),          # (HID, 2*HID)
        "ckv_b": jnp.concatenate([ca["bk"], ca["bv"]]).reshape(1, 2 * HID),
        "cwo": ca["wo"], "cbo": ca["bo"].reshape(1, HID),
        "ln2_g": g2, "ln2_b": be2,
        "w1": w1, "b1": b1.reshape(1, PF_DIM),
        "w2": w2, "b2": b2.reshape(1, HID),
        "ln3_g": g3, "ln3_b": be3,
    }


def stack_layers(layers, keys):
    return {k: jnp.stack([lp[k] for lp in layers], axis=0) for k in keys}


def _pad_vocab(emb, vocab):
    return jnp.zeros((EMB_PAD, HID), jnp.float32).at[:vocab].set(emb)


def init_params(key):
    ke, kd = jax.random.split(key)
    ke_tok, ke_pos, *ke_layers = jax.random.split(ke, 2 + N_LAYERS)
    kd_tok, kd_pos, kd_fc, *kd_layers = jax.random.split(kd, 3 + N_LAYERS)

    enc_layers = [init_encoder_layer(k) for k in ke_layers]
    dec_layers = [init_decoder_layer(k) for k in kd_layers]

    fc_w, fc_b = init_linear(kd_fc, HID, OUTPUT_DIM)
    fc_w_pad = jnp.zeros((HID, FC_PAD), jnp.float32).at[:, :OUTPUT_DIM].set(fc_w)
    fc_b_pad = jnp.zeros((1, FC_PAD), jnp.float32).at[0, :OUTPUT_DIM].set(fc_b)

    # fuse both decoder layers' cross-attention K/V projections -> one matmul
    ckv_w = jnp.concatenate([lp["ckv_w"] for lp in dec_layers], axis=1)   # (HID, N_LAYERS*2*HID)
    ckv_b = jnp.concatenate([lp["ckv_b"] for lp in dec_layers], axis=1)   # (1,   N_LAYERS*2*HID)

    enc_keys = list(enc_layers[0].keys())
    dec_keys = [k for k in dec_layers[0].keys() if k not in ("ckv_w", "ckv_b")]

    enc = {
        "tok_emb": _pad_vocab(jax.random.normal(ke_tok, (INPUT_DIM, HID), jnp.float32),
                              INPUT_DIM),
        "pos_emb": jax.random.normal(ke_pos, (MAX_LEN, HID), jnp.float32),
        "stacked": stack_layers(enc_layers, enc_keys),
    }
    dec = {
        "tok_emb": _pad_vocab(jax.random.normal(kd_tok, (OUTPUT_DIM, HID), jnp.float32),
                              OUTPUT_DIM),
        "pos_emb": jax.random.normal(kd_pos, (MAX_LEN, HID), jnp.float32),
        "stacked": stack_layers(dec_layers, dec_keys),
        "ckv_w": ckv_w, "ckv_b": ckv_b,
        "fc_out_w": fc_w_pad, "fc_out_b": fc_b_pad,
    }
    return {"encoder": enc, "decoder": dec}


# ------------------------- main -------------------------
if __name__ == "__main__":
    params = init_params(jax.random.PRNGKey(42))

    key = jax.random.PRNGKey(0)
    ks, kt = jax.random.split(key)
    B, SRC_LEN, TRG_LEN = 2, 8, 8
    src = jax.random.randint(ks, (B, SRC_LEN), 1, INPUT_DIM, dtype=jnp.int32)
    trg = jax.random.randint(kt, (B, TRG_LEN), 1, OUTPUT_DIM, dtype=jnp.int32)
    # add some padding so the masks actually do something
    src = src.at[1, 6:].set(SRC_PAD_IDX)
    trg = trg.at[0, 5:].set(TRG_PAD_IDX)

    output, attention = jax.jit(transformer_forward)(params, src, trg)
    jax.block_until_ready((output, attention))

    assert output.shape == (B, TRG_LEN, OUTPUT_DIM)
    assert attention.shape == (B, N_HEADS, TRG_LEN, SRC_LEN)
    assert bool(jnp.all(jnp.isfinite(output)))
    assert bool(jnp.all(jnp.isfinite(attention)))
    # TODO(synk): dropout layers are identity (eval mode); no Pallas RNG dropout emitted.
    print("KERNEL_OK")
</pallas_src>

<mosaic_0001>
module attributes {stable_mosaic.version = 11 : i64} {
  func.func @_transformer_kernel(%arg0: memref<16x1xi32, #tpu.memory_space<vmem>>, %arg1: memref<16x1xi32, #tpu.memory_space<vmem>>, %arg2: memref<2x8xi32, #tpu.memory_space<vmem>>, %arg3: memref<2x8xi32, #tpu.memory_space<vmem>>, %arg4: memref<32x32xf32, #tpu.memory_space<vmem>>, %arg5: memref<16x32xf32, #tpu.memory_space<vmem>>, %arg6: memref<2x32x96xf32, #tpu.memory_space<vmem>>, %arg7: memref<2x1x96xf32, #tpu.memory_space<vmem>>, %arg8: memref<2x32x32xf32, #tpu.memory_space<vmem>>, %arg9: memref<2x1x32xf32, #tpu.memory_space<vmem>>, %arg10: memref<2x1x32xf32, #tpu.memory_space<vmem>>, %arg11: memref<2x1x32xf32, #tpu.memory_space<vmem>>, %arg12: memref<2x32x64xf32, #tpu.memory_space<vmem>>, %arg13: memref<2x1x64xf32, #tpu.memory_space<vmem>>, %arg14: memref<2x64x32xf32, #tpu.memory_space<vmem>>, %arg15: memref<2x1x32xf32, #tpu.memory_space<vmem>>, %arg16: memref<2x1x32xf32, #tpu.memory_space<vmem>>, %arg17: memref<2x1x32xf32, #tpu.memory_space<vmem>>, %arg18: memref<32x32xf32, #tpu.memory_space<vmem>>, %arg19: memref<16x32xf32, #tpu.memory_space<vmem>>, %arg20: memref<2x32x96xf32, #tpu.memory_space<vmem>>, %arg21: memref<2x1x96xf32, #tpu.memory_space<vmem>>, %arg22: memref<2x32x32xf32, #tpu.memory_space<vmem>>, %arg23: memref<2x1x32xf32, #tpu.memory_space<vmem>>, %arg24: memref<2x1x32xf32, #tpu.memory_space<vmem>>, %arg25: memref<2x1x32xf32, #tpu.memory_space<vmem>>, %arg26: memref<2x32x32xf32, #tpu.memory_space<vmem>>, %arg27: memref<2x1x32xf32, #tpu.memory_space<vmem>>, %arg28: memref<32x128xf32, #tpu.memory_space<vmem>>, %arg29: memref<1x128xf32, #tpu.memory_space<vmem>>, %arg30: memref<2x32x32xf32, #tpu.memory_space<vmem>>, %arg31: memref<2x1x32xf32, #tpu.memory_space<vmem>>, %arg32: memref<2x1x32xf32, #tpu.memory_space<vmem>>, %arg33: memref<2x1x32xf32, #tpu.memory_space<vmem>>, %arg34: memref<2x32x64xf32, #tpu.memory_space<vmem>>, %arg35: memref<2x1x64xf32, #tpu.memory_space<vmem>>, %arg36: memref<2x64x32xf32, #tpu.memory_space<vmem>>, %arg37: memref<2x1x32xf32, #tpu.memory_space<vmem>>, %arg38: memref<2x1x32xf32, #tpu.memory_space<vmem>>, %arg39: memref<2x1x32xf32, #tpu.memory_space<vmem>>, %arg40: memref<32x128xf32, #tpu.memory_space<vmem>>, %arg41: memref<1x128xf32, #tpu.memory_space<vmem>>, %arg42: memref<16x128xf32, #tpu.memory_space<vmem>>, %arg43: memref<4x2x8x8xf32, #tpu.memory_space<vmem>>) attributes {dimension_semantics = [], scalar_prefetch = 0 : i64, scratch_operands = 0 : i64, tpu.core_type = #tpu.core_type<tc>} {
    %c0 = arith.constant 0 : index
    %c0_0 = arith.constant 0 : index
    %0 = vector.load %arg2[%c0, %c0_0] : memref<2x8xi32, #tpu.memory_space<vmem>>, vector<2x8xi32>
    %c0_i32 = arith.constant 0 : i32
    %1 = vector.broadcast %c0_i32 : i32 to vector<2x8xi32>
    %2 = arith.cmpi ne, %0, %1 : vector<2x8xi32>
    %cst = arith.constant 0.000000e+00 : f32
    %cst_1 = arith.constant -1.000000e+10 : f32
    %3 = vector.broadcast %cst : f32 to vector<2x8xf32>
    %4 = vector.broadcast %cst_1 : f32 to vector<2x8xf32>
    %5 = arith.select %2, %3, %4 : vector<2x8xi1>, vector<2x8xf32>
    %6 = vector.shape_cast %5 : vector<2x8xf32> to vector<2x1x8xf32>
    %c0_2 = arith.constant 0 : index
    %c0_3 = arith.constant 0 : index
    %7 = vector.load %arg3[%c0_2, %c0_3] : memref<2x8xi32, #tpu.memory_space<vmem>>, vector<2x8xi32>
    %c0_i32_4 = arith.constant 0 : i32
    %8 = vector.broadcast %c0_i32_4 : i32 to vector<2x8xi32>
    %9 = arith.cmpi ne, %7, %8 : vector<2x8xi32>
    %10 = tpu.iota {dimensions = array<i32: 0>} : vector<8x8xi32>
    %11 = tpu.iota {dimensions = array<i32: 1>} : vector<8x8xi32>
    %12 = arith.cmpi sle, %11, %10 : vector<8x8xi32>
    %13 = vector.shape_cast %12 : vector<8x8xi1> to vector<1x8x8xi1>
    %14 = vector.shape_cast %9 : vector<2x8xi1> to vector<2x1x8xi1>
    %15 = vector.broadcast %14 : vector<2x1x8xi1> to vector<2x8x8xi1>
    %16 = vector.broadcast %13 : vector<1x8x8xi1> to vector<2x8x8xi1>
    %17 = arith.andi %15, %16 : vector<2x8x8xi1>
    %cst_5 = arith.constant 0.000000e+00 : f32
    %cst_6 = arith.constant -1.000000e+10 : f32
    %18 = vector.broadcast %cst_5 : f32 to vector<2x8x8xf32>
    %19 = vector.broadcast %cst_6 : f32 to vector<2x8x8xf32>
    %20 = arith.select %17, %18, %19 : vector<2x8x8xi1>, vector<2x8x8xf32>
    %c0_7 = arith.constant 0 : index
    %c0_8 = arith.constant 0 : index
    %21 = vector.load %arg0[%c0_7, %c0_8] : memref<16x1xi32, #tpu.memory_space<vmem>>, vector<16x1xi32>
    %c0_9 = arith.constant 0 : index
    %c0_10 = arith.constant 0 : index
    %22 = vector.load %arg4[%c0_9, %c0_10] : memref<32x32xf32, #tpu.memory_space<vmem>>, vector<32x32xf32>
    %c0_11 = arith.constant 0 : index
    %c0_12 = arith.constant 0 : index
    %23 = vector.load %arg5[%c0_11, %c0_12] : memref<16x32xf32, #tpu.memory_space<vmem>>, vector<16x32xf32>
    %24 = tpu.iota {dimensions = array<i32: 1>} : vector<16x32xi32>
    %25 = vector.broadcast %21 : vector<16x1xi32> to vector<16x32xi32>
    %26 = arith.cmpi eq, %25, %24 : vector<16x32xi32>
    %27 = arith.extui %26 : vector<16x32xi1> to vector<16x32xi32>
    %28 = arith.sitofp %27 : vector<16x32xi32> to vector<16x32xf32>
    %cst_13 = arith.constant dense<0.000000e+00> : vector<16x32xf32>
    %29 = tpu.matmul %28, %22, %cst_13 {dimension_numbers = #tpu.dot_dimension_numbers<[1], [0], [0], [1], [0, 0, 1, 1], [], []>} : vector<16x32xf32>, vector<32x32xf32>, vector<16x32xf32> -> vector<16x32xf32>
    %30 = vector.extract_strided_slice %23 {offsets = [0, 0], sizes = [8, 32], strides = [1, 1]} : vector<16x32xf32> to vector<8x32xf32>
    %31 = vector.shape_cast %29 : vector<16x32xf32> to vector<2x8x32xf32>
    %cst_14 = arith.constant 5.65685415 : f32
    %32 = vector.broadcast %cst_14 : f32 to vector<2x8x32xf32>
    %33 = arith.mulf %31, %32 : vector<2x8x32xf32>
    %34 = vector.shape_cast %30 : vector<8x32xf32> to vector<1x8x32xf32>
    %35 = vector.broadcast %34 : vector<1x8x32xf32> to vector<2x8x32xf32>
    %36 = arith.addf %33, %35 : vector<2x8x32xf32>
    %37 = vector.shape_cast %36 : vector<2x8x32xf32> to vector<16x32xf32>
    %c0_15 = arith.constant 0 : index
    %c0_16 = arith.constant 0 : index
    %c0_17 = arith.constant 0 : index
    %38 = vector.load %arg6[%c0_15, %c0_16, %c0_17] : memref<2x32x96xf32, #tpu.memory_space<vmem>>, vector<1x32x96xf32>
    %39 = vector.shape_cast %38 : vector<1x32x96xf32> to vector<32x96xf32>
    %cst_18 = arith.constant dense<0.000000e+00> : vector<16x96xf32>
    %40 = tpu.matmul %37, %39, %cst_18 {dimension_numbers = #tpu.dot_dimension_numbers<[1], [0], [0], [1], [0, 0, 1, 1], [], []>} : vector<16x32xf32>, vector<32x96xf32>, vector<16x96xf32> -> vector<16x96xf32>
    %c0_19 = arith.constant 0 : index
    %c0_20 = arith.constant 0 : index
    %c0_21 = arith.constant 0 : index
    %41 = vector.load %arg7[%c0_19, %c0_20, %c0_21] : memref<2x1x96xf32, #tpu.memory_space<vmem>>, vector<1x1x96xf32>
    %42 = vector.shape_cast %41 : vector<1x1x96xf32> to vector<1x96xf32>
    %43 = vector.broadcast %42 : vector<1x96xf32> to vector<16x96xf32>
    %44 = arith.addf %40, %43 : vector<16x96xf32>
    %45 = vector.extract_strided_slice %44 {offsets = [0, 0], sizes = [16, 32], strides = [1, 1]} : vector<16x96xf32> to vector<16x32xf32>
    %46 = vector.extract_strided_slice %44 {offsets = [0, 32], sizes = [16, 32], strides = [1, 1]} : vector<16x96xf32> to vector<16x32xf32>
    %47 = vector.extract_strided_slice %44 {offsets = [0, 64], sizes = [16, 32], strides = [1, 1]} : vector<16x96xf32> to vector<16x32xf32>
    %c0_22 = arith.constant 0 : index
    %c0_23 = arith.constant 0 : index
    %c0_24 = arith.constant 0 : index
    %48 = vector.load %arg8[%c0_22, %c0_23, %c0_24] : memref<2x32x32xf32, #tpu.memory_space<vmem>>, vector<1x32x32xf32>
    %49 = vector.shape_cast %48 : vector<1x32x32xf32> to vector<32x32xf32>
    %c0_25 = arith.constant 0 : index
    %c0_26 = arith.constant 0 : index
    %c0_27 = arith.constant 0 : index
    %50 = vector.load %arg9[%c0_25, %c0_26, %c0_27] : memref<2x1x32xf32, #tpu.memory_space<vmem>>, vector<1x1x32xf32>
    %51 = vector.shape_cast %50 : vector<1x1x32xf32> to vector<1x32xf32>
    %52 = vector.shape_cast %45 : vector<16x32xf32> to vector<2x8x32xf32>
    %53 = vector.shape_cast %46 : vector<16x32xf32> to vector<2x8x32xf32>
    %54 = vector.shape_cast %47 : vector<16x32xf32> to vector<2x8x32xf32>
    %cst_28 = arith.constant 0.000000e+00 : f32
    %55 = vector.broadcast %cst_28 : f32 to vector<16x32xf32>
    %56 = vector.extract_strided_slice %52 {offsets = [0, 0, 0], sizes = [2, 8, 8], strides = [1, 1, 1]} : vector<2x8x32xf32> to vector<2x8x8xf32>
    %57 = vector.extract_strided_slice %53 {offsets = [0, 0, 0], sizes = [2, 8, 8], strides = [1, 1, 1]} : vector<2x8x32xf32> to vector<2x8x8xf32>
    "tpu.trace_start"() <{level = 10 : i32, message = "bqd,bkd->bqk"}> : () -> ()
    %cst_29 = arith.constant dense<0.000000e+00> : vector<2x8x8xf32>
    %58 = tpu.matmul %56, %57, %cst_29 {dimension_numbers = #tpu.dot_dimension_numbers<[2], [2], [1], [1], [0, 0, 0, 1, 1, 1], [0], [0]>} : vector<2x8x8xf32>, vector<2x8x8xf32>, vector<2x8x8xf32> -> vector<2x8x8xf32>
    "tpu.trace_stop"() : () -> ()
    %59 = vector.broadcast %6 : vector<2x1x8xf32> to vector<2x8x8xf32>
    %60 = arith.addf %58, %59 : vector<2x8x8xf32>
    %cst_30 = arith.constant dense<0xFF800000> : vector<2x8xf32>
    %61 = vector.multi_reduction <maximumf>, %60, %cst_30 [2] : vector<2x8x8xf32> to vector<2x8xf32>
    %62 = vector.shape_cast %61 : vector<2x8xf32> to vector<2x8x1xf32>
    %63 = vector.broadcast %62 : vector<2x8x1xf32> to vector<2x8x8xf32>
    %64 = arith.subf %60, %63 : vector<2x8x8xf32>
    %65 = math.exp %64 : vector<2x8x8xf32>
    %cst_31 = arith.constant dense<0.000000e+00> : vector<2x8xf32>
    %66 = vector.multi_reduction <add>, %65, %cst_31 [2] : vector<2x8x8xf32> to vector<2x8xf32>
    %67 = vector.shape_cast %66 : vector<2x8xf32> to vector<2x8x1xf32>
    %68 = vector.broadcast %67 : vector<2x8x1xf32> to vector<2x8x8xf32>
    %69 = arith.divf %65, %68 : vector<2x8x8xf32>
    %70 = vector.extract_strided_slice %54 {offsets = [0, 0, 0], sizes = [2, 8, 8], strides = [1, 1, 1]} : vector<2x8x32xf32> to vector<2x8x8xf32>
    "tpu.trace_start"() <{level = 10 : i32, message = "bqk,bkd->bqd"}> : () -> ()
    %cst_32 = arith.constant dense<0.000000e+00> : vector<2x8x8xf32>
    %71 = tpu.matmul %69, %70, %cst_32 {dimension_numbers = #tpu.dot_dimension_numbers<[2], [1], [1], [2], [0, 0, 0, 1, 1, 2], [0], [0]>} : vector<2x8x8xf32>, vector<2x8x8xf32>, vector<2x8x8xf32> -> vector<2x8x8xf32>
    "tpu.trace_stop"() : () -> ()
    %72 = vector.shape_cast %71 : vector<2x8x8xf32> to vector<16x8xf32>
    %73 = vector.extract_strided_slice %49 {offsets = [0, 0], sizes = [8, 32], strides = [1, 1]} : vector<32x32xf32> to vector<8x32xf32>
    %cst_33 = arith.constant dense<0.000000e+00> : vector<16x32xf32>
    %74 = tpu.matmul %72, %73, %cst_33 {dimension_numbers = #tpu.dot_dimension_numbers<[1], [0], [0], [1], [0, 0, 1, 1], [], []>} : vector<16x8xf32>, vector<8x32xf32>, vector<16x32xf32> -> vector<16x32xf32>
    %75 = arith.addf %55, %74 : vector<16x32xf32>
    %76 = vector.extract_strided_slice %52 {offsets = [0, 0, 8], sizes = [2, 8, 8], strides = [1, 1, 1]} : vector<2x8x32xf32> to vector<2x8x8xf32>
    %77 = vector.extract_strided_slice %53 {offsets = [0, 0, 8], sizes = [2, 8, 8], strides = [1, 1, 1]} : vector<2x8x32xf32> to vector<2x8x8xf32>
    "tpu.trace_start"() <{level = 10 : i32, message = "bqd,bkd->bqk"}> : () -> ()
    %cst_34 = arith.constant dense<0.000000e+00> : vector<2x8x8xf32>
    %78 = tpu.matmul %76, %77, %cst_34 {dimension_numbers = #tpu.dot_dimension_numbers<[2], [2], [1], [1], [0, 0, 0, 1, 1, 1], [0], [0]>} : vector<2x8x8xf32>, vector<2x8x8xf32>, vector<2x8x8xf32> -> vector<2x8x8xf32>
    "tpu.trace_stop"() : () -> ()
    %79 = vector.broadcast %6 : vector<2x1x8xf32> to vector<2x8x8xf32>
    %80 = arith.addf %78, %79 : vector<2x8x8xf32>
    %cst_35 = arith.constant dense<0xFF800000> : vector<2x8xf32>
    %81 = vector.multi_reduction <maximumf>, %80, %cst_35 [2] : vector<2x8x8xf32> to vector<2x8xf32>
    %82 = vector.shape_cast %81 : vector<2x8xf32> to vector<2x8x1xf32>
    %83 = vector.broadcast %82 : vector<2x8x1xf32> to vector<2x8x8xf32>
    %84 = arith.subf %80, %83 : vector<2x8x8xf32>
    %85 = math.exp %84 : vector<2x8x8xf32>
    %cst_36 = arith.constant dense<0.000000e+00> : vector<2x8xf32>
    %86 = vector.multi_reduction <add>, %85, %cst_36 [2] : vector<2x8x8xf32> to vector<2x8xf32>
    %87 = vector.shape_cast %86 : vector<2x8xf32> to vector<2x8x1xf32>
    %88 = vector.broadcast %87 : vector<2x8x1xf32> to vector<2x8x8xf32>
    %89 = arith.divf %85, %88 : vector<2x8x8xf32>
    %90 = vector.extract_strided_slice %54 {offsets = [0, 0, 8], sizes = [2, 8, 8], strides = [1, 1, 1]} : vector<2x8x32xf32> to vector<2x8x8xf32>
    "tpu.trace_start"() <{level = 10 : i32, message = "bqk,bkd->bqd"}> : () -> ()
    %cst_37 = arith.constant dense<0.000000e+00> : vector<2x8x8xf32>
    %91 = tpu.matmul %89, %90, %cst_37 {dimension_numbers = #tpu.dot_dimension_numbers<[2], [1], [1], [2], [0, 0, 0, 1, 1, 2], [0], [0]>} : vector<2x8x8xf32>, vector<2x8x8xf32>, vector<2x8x8xf32> -> vector<2x8x8xf32>
    "tpu.trace_stop"() : () -> ()
    %92 = vector.shape_cast %91 : vector<2x8x8xf32> to vector<16x8xf32>
    %93 = vector.extract_strided_slice %49 {offsets = [8, 0], sizes = [8, 32], strides = [1, 1]} : vector<32x32xf32> to vector<8x32xf32>
    %cst_38 = arith.constant dense<0.000000e+00> : vector<16x32xf32>
    %94 = tpu.matmul %92, %93, %cst_38 {dimension_numbers = #tpu.dot_dimension_numbers<[1], [0], [0], [1], [0, 0, 1, 1], [], []>} : vector<16x8xf32>, vector<8x32xf32>, vector<16x32xf32> -> vector<16x32xf32>
    %95 = arith.addf %75, %94 : vector<16x32xf32>
    %96 = vector.extract_strided_slice %52 {offsets = [0, 0, 16], sizes = [2, 8, 8], strides = [1, 1, 1]} : vector<2x8x32xf32> to vector<2x8x8xf32>
    %97 = vector.extract_strided_slice %53 {offsets = [0, 0, 16], sizes = [2, 8, 8], strides = [1, 1, 1]} : vector<2x8x32xf32> to vector<2x8x8xf32>
    "tpu.trace_start"() <{level = 10 : i32, message = "bqd,bkd->bqk"}> : () -> ()
    %cst_39 = arith.constant dense<0.000000e+00> : vector<2x8x8xf32>
    %98 = tpu.matmul %96, %97, %cst_39 {dimension_numbers = #tpu.dot_dimension_numbers<[2], [2], [1], [1], [0, 0, 0, 1, 1, 1], [0], [0]>} : vector<2x8x8xf32>, vector<2x8x8xf32>, vector<2x8x8xf32> -> vector<2x8x8xf32>
    "tpu.trace_stop"() : () -> ()
    %99 = vector.broadcast %6 : vector<2x1x8xf32> to vector<2x8x8xf32>
    %100 = arith.addf %98, %99 : vector<2x8x8xf32>
    %cst_40 = arith.constant dense<0xFF800000> : vector<2x8xf32>
    %101 = vector.multi_reduction <maximumf>, %100, %cst_40 [2] : vector<2x8x8xf32> to vector<2x8xf32>
    %102 = vector.shape_cast %101 : vector<2x8xf32> to vector<2x8x1xf32>
    %103 = vector.broadcast %102 : vector<2x8x1xf32> to vector<2x8x8xf32>
    %104 = arith.subf %100, %103 : vector<2x8x8xf32>
    %105 = math.exp %104 : vector<2x8x8xf32>
    %cst_41 = arith.constant dense<0.000000e+00> : vector<2x8xf32>
    %106 = vector.multi_reduction <add>, %105, %cst_41 [2] : vector<2x8x8xf32> to vector<2x8xf32>
    %107 = vector.shape_cast %106 : vector<2x8xf32> to vector<2x8x1xf32>
    %108 = vector.broadcast %107 : vector<2x8x1xf32> to vector<2x8x8xf32>
    %109 = arith.divf %105, %108 : vector<2x8x8xf32>
    %110 = vector.extract_strided_slice %54 {offsets = [0, 0, 16], sizes = [2, 8, 8], strides = [1, 1, 1]} : vector<2x8x32xf32> to vector<2x8x8xf32>
    "tpu.trace_start"() <{level = 10 : i32, message = "bqk,bkd->bqd"}> : () -> ()
    %cst_42 = arith.constant dense<0.000000e+00> : vector<2x8x8xf32>
    %111 = tpu.matmul %109, %110, %cst_42 {dimension_numbers = #tpu.dot_dimension_numbers<[2], [1], [1], [2], [0, 0, 0, 1, 1, 2], [0], [0]>} : vector<2x8x8xf32>, vector<2x8x8xf32>, vector<2x8x8xf32> -> vector<2x8x8xf32>
    "tpu.trace_stop"() : () -> ()
    %112 = vector.shape_cast %111 : vector<2x8x8xf32> to vector<16x8xf32>
    %113 = vector.extract_strided_slice %49 {offsets = [16, 0], sizes = [8, 32], strides = [1, 1]} : vector<32x32xf32> to vector<8x32xf32>
    %cst_43 = arith.constant dense<0.000000e+00> : vector<16x32xf32>
    %114 = tpu.matmul %112, %113, %cst_43 {dimension_numbers = #tpu.dot_dimension_numbers<[1], [0], [0], [1], [0, 0, 1, 1], [], []>} : vector<16x8xf32>, vector<8x32xf32>, vector<16x32xf32> -> vector<16x32xf32>
    %115 = arith.addf %95, %114 : vector<16x32xf32>
    %116 = vector.extract_strided_slice %52 {offsets = [0, 0, 24], sizes = [2, 8, 8], strides = [1, 1, 1]} : vector<2x8x32xf32> to vector<2x8x8xf32>
    %117 = vector.extract_strided_slice %53 {offsets = [0, 0, 24], sizes = [2, 8, 8], strides = [1, 1, 1]} : vector<2x8x32xf32> to vector<2x8x8xf32>
    "tpu.trace_start"() <{level = 10 : i32, message = "bqd,bkd->bqk"}> : () -> ()
    %cst_44 = arith.constant dense<0.000000e+00> : vector<2x8x8xf32>
    %118 = tpu.matmul %116, %117, %cst_44 {dimension_numbers = #tpu.dot_dimension_numbers<[2], [2], [1], [1], [0, 0, 0, 1, 1, 1], [0], [0]>} : vector<2x8x8xf32>, vector<2x8x8xf32>, vector<2x8x8xf32> -> vector<2x8x8xf32>
    "tpu.trace_stop"() : () -> ()
    %119 = vector.broadcast %6 : vector<2x1x8xf32> to vector<2x8x8xf32>
    %120 = arith.addf %118, %119 : vector<2x8x8xf32>
    %cst_45 = arith.constant dense<0xFF800000> : vector<2x8xf32>
    %121 = vector.multi_reduction <maximumf>, %120, %cst_45 [2] : vector<2x8x8xf32> to vector<2x8xf32>
    %122 = vector.shape_cast %121 : vector<2x8xf32> to vector<2x8x1xf32>
    %123 = vector.broadcast %122 : vector<2x8x1xf32> to vector<2x8x8xf32>
    %124 = arith.subf %120, %123 : vector<2x8x8xf32>
    %125 = math.exp %124 : vector<2x8x8xf32>
    %cst_46 = arith.constant dense<0.000000e+00> : vector<2x8xf32>
    %126 = vector.multi_reduction <add>, %125, %cst_46 [2] : vector<2x8x8xf32> to vector<2x8xf32>
    %127 = vector.shape_cast %126 : vector<2x8xf32> to vector<2x8x1xf32>
    %128 = vector.broadcast %127 : vector<2x8x1xf32> to vector<2x8x8xf32>
    %129 = arith.divf %125, %128 : vector<2x8x8xf32>
    %130 = vector.extract_strided_slice %54 {offsets = [0, 0, 24], sizes = [2, 8, 8], strides = [1, 1, 1]} : vector<2x8x32xf32> to vector<2x8x8xf32>
    "tpu.trace_start"() <{level = 10 : i32, message = "bqk,bkd->bqd"}> : () -> ()
    %cst_47 = arith.constant dense<0.000000e+00> : vector<2x8x8xf32>
    %131 = tpu.matmul %129, %130, %cst_47 {dimension_numbers = #tpu.dot_dimension_numbers<[2], [1], [1], [2], [0, 0, 0, 1, 1, 2], [0], [0]>} : vector<2x8x8xf32>, vector<2x8x8xf32>, vector<2x8x8xf32> -> vector<2x8x8xf32>
    "tpu.trace_stop"() : () -> ()
    %132 = vector.shape_cast %131 : vector<2x8x8xf32> to vector<16x8xf32>
    %133 = vector.extract_strided_slice %49 {offsets = [24, 0], sizes = [8, 32], strides = [1, 1]} : vector<32x32xf32> to vector<8x32xf32>
    %cst_48 = arith.constant dense<0.000000e+00> : vector<16x32xf32>
    %134 = tpu.matmul %132, %133, %cst_48 {dimension_numbers = #tpu.dot_dimension_numbers<[1], [0], [0], [1], [0, 0, 1, 1], [], []>} : vector<16x8xf32>, vector<8x32xf32>, vector<16x32xf32> -> vector<16x32xf32>
    %135 = arith.addf %115, %134 : vector<16x32xf32>
    %136 = vector.broadcast %51 : vector<1x32xf32> to vector<16x32xf32>
    %137 = arith.addf %135, %136 : vector<16x32xf32>
    %138 = arith.addf %37, %137 : vector<16x32xf32>
    %c0_49 = arith.constant 0 : index
    %c0_50 = arith.constant 0 : index
    %c0_51 = arith.constant 0 : index
    %139 = vector.load %arg10[%c0_49, %c0_50, %c0_51] : memref<2x1x32xf32, #tpu.memory_space<vmem>>, vector<1x1x32xf32>
    %140 = vector.shape_cast %139 : vector<1x1x32xf32> to vector<1x32xf32>
    %c0_52 = arith.constant 0 : index
    %c0_53 = arith.constant 0 : index
    %c0_54 = arith.constant 0 : index
    %141 = vector.load %arg11[%c0_52, %c0_53, %c0_54] : memref<2x1x32xf32, #tpu.memory_space<vmem>>, vector<1x1x32xf32>
    %142 = vector.shape_cast %141 : vector<1x1x32xf32> to vector<1x32xf32>
    %cst_55 = arith.constant dense<0.000000e+00> : vector<16xf32>
    %143 = vector.multi_reduction <add>, %138, %cst_55 [1] : vector<16x32xf32> to vector<16xf32>
    %144 = vector.shape_cast %143 : vector<16xf32> to vector<16x1xf32>
    %cst_56 = arith.constant 3.200000e+01 : f32
    %145 = vector.broadcast %cst_56 : f32 to vector<16x1xf32>
    %146 = arith.divf %144, %145 : vector<16x1xf32>
    %147 = vector.broadcast %146 : vector<16x1xf32> to vector<16x32xf32>
    %148 = arith.subf %138, %147 : vector<16x32xf32>
    %149 = arith.mulf %148, %148 : vector<16x32xf32>
    %cst_57 = arith.constant dense<0.000000e+00> : vector<16xf32>
    %150 = vector.multi_reduction <add>, %149, %cst_57 [1] : vector<16x32xf32> to vector<16xf32>
    %151 = vector.shape_cast %150 : vector<16xf32> to vector<16x1xf32>
    %cst_58 = arith.constant 3.200000e+01 : f32
    %152 = vector.broadcast %cst_58 : f32 to vector<16x1xf32>
    %153 = arith.divf %151, %152 : vector<16x1xf32>
    %154 = vector.broadcast %146 : vector<16x1xf32> to vector<16x32xf32>
    %155 = arith.subf %138, %154 : vector<16x32xf32>
    %cst_59 = arith.constant 9.99999974E-6 : f32
    %156 = vector.broadcast %cst_59 : f32 to vector<16x1xf32>
    %157 = arith.addf %153, %156 : vector<16x1xf32>
    %158 = math.rsqrt %157 : vector<16x1xf32>
    %159 = vector.broadcast %158 : vector<16x1xf32> to vector<16x32xf32>
    %160 = arith.mulf %155, %159 : vector<16x32xf32>
    %161 = vector.broadcast %140 : vector<1x32xf32> to vector<16x32xf32>
    %162 = arith.mulf %160, %161 : vector<16x32xf32>
    %163 = vector.broadcast %142 : vector<1x32xf32> to vector<16x32xf32>
    %164 = arith.addf %162, %163 : vector<16x32xf32>
    %c0_60 = arith.constant 0 : index
    %c0_61 = arith.constant 0 : index
    %c0_62 = arith.constant 0 : index
    %165 = vector.load %arg12[%c0_60, %c0_61, %c0_62] : memref<2x32x64xf32, #tpu.memory_space<vmem>>, vector<1x32x64xf32>
    %166 = vector.shape_cast %165 : vector<1x32x64xf32> to vector<32x64xf32>
    %c0_63 = arith.constant 0 : index
    %c0_64 = arith.constant 0 : index
    %c0_65 = arith.constant 0 : index
    %167 = vector.load %arg13[%c0_63, %c0_64, %c0_65] : memref<2x1x64xf32, #tpu.memory_space<vmem>>, vector<1x1x64xf32>
    %168 = vector.shape_cast %167 : vector<1x1x64xf32> to vector<1x64xf32>
    %c0_66 = arith.constant 0 : index
    %c0_67 = arith.constant 0 : index
    %c0_68 = arith.constant 0 : index
    %169 = vector.load %arg14[%c0_66, %c0_67, %c0_68] : memref<2x64x32xf32, #tpu.memory_space<vmem>>, vector<1x64x32xf32>
    %170 = vector.shape_cast %169 : vector<1x64x32xf32> to vector<64x32xf32>
    %c0_69 = arith.constant 0 : index
    %c0_70 = arith.constant 0 : index
    %c0_71 = arith.constant 0 : index
    %171 = vector.load %arg15[%c0_69, %c0_70, %c0_71] : memref<2x1x32xf32, #tpu.memory_space<vmem>>, vector<1x1x32xf32>
    %172 = vector.shape_cast %171 : vector<1x1x32xf32> to vector<1x32xf32>
    %cst_72 = arith.constant dense<0.000000e+00> : vector<16x64xf32>
    %173 = tpu.matmul %164, %166, %cst_72 {dimension_numbers = #tpu.dot_dimension_numbers<[1], [0], [0], [1], [0, 0, 1, 1], [], []>} : vector<16x32xf32>, vector<32x64xf32>, vector<16x64xf32> -> vector<16x64xf32>
    %174 = vector.broadcast %168 : vector<1x64xf32> to vector<16x64xf32>
    %175 = arith.addf %173, %174 : vector<16x64xf32>
    %cst_73 = arith.constant 0.000000e+00 : f32
    %176 = vector.broadcast %cst_73 : f32 to vector<16x64xf32>
    %177 = arith.maximumf %175, %176 : vector<16x64xf32>
    %cst_74 = arith.constant dense<0.000000e+00> : vector<16x32xf32>
    %178 = tpu.matmul %177, %170, %cst_74 {dimension_numbers = #tpu.dot_dimension_numbers<[1], [0], [0], [1], [0, 0, 1, 1], [], []>} : vector<16x64xf32>, vector<64x32xf32>, vector<16x32xf32> -> vector<16x32xf32>
    %179 = vector.broadcast %172 : vector<1x32xf32> to vector<16x32xf32>
    %180 = arith.addf %178, %179 : vector<16x32xf32>
    %181 = arith.addf %164, %180 : vector<16x32xf32>
    %c0_75 = arith.constant 0 : index
    %c0_76 = arith.constant 0 : index
    %c0_77 = arith.constant 0 : index
    %182 = vector.load %arg16[%c0_75, %c0_76, %c0_77] : memref<2x1x32xf32, #tpu.memory_space<vmem>>, vector<1x1x32xf32>
    %183 = vector.shape_cast %182 : vector<1x1x32xf32> to vector<1x32xf32>
    %c0_78 = arith.constant 0 : index
    %c0_79 = arith.constant 0 : index
    %c0_80 = arith.constant 0 : index
    %184 = vector.load %arg17[%c0_78, %c0_79, %c0_80] : memref<2x1x32xf32, #tpu.memory_space<vmem>>, vector<1x1x32xf32>
    %185 = vector.shape_cast %184 : vector<1x1x32xf32> to vector<1x32xf32>
    %cst_81 = arith.constant dense<0.000000e+00> : vector<16xf32>
    %186 = vector.multi_reduction <add>, %181, %cst_81 [1] : vector<16x32xf32> to vector<16xf32>
    %187 = vector.shape_cast %186 : vector<16xf32> to vector<16x1xf32>
    %cst_82 = arith.constant 3.200000e+01 : f32
    %188 = vector.broadcast %cst_82 : f32 to vector<16x1xf32>
    %189 = arith.divf %187, %188 : vector<16x1xf32>
    %190 = vector.broadcast %189 : vector<16x1xf32> to vector<16x32xf32>
    %191 = arith.subf %181, %190 : vector<16x32xf32>
    %192 = arith.mulf %191, %191 : vector<16x32xf32>
    %cst_83 = arith.constant dense<0.000000e+00> : vector<16xf32>
    %193 = vector.multi_reduction <add>, %192, %cst_83 [1] : vector<16x32xf32> to vector<16xf32>
    %194 = vector.shape_cast %193 : vector<16xf32> to vector<16x1xf32>
    %cst_84 = arith.constant 3.200000e+01 : f32
    %195 = vector.broadcast %cst_84 : f32 to vector<16x1xf32>
    %196 = arith.divf %194, %195 : vector<16x1xf32>
    %197 = vector.broadcast %189 : vector<16x1xf32> to vector<16x32xf32>
    %198 = arith.subf %181, %197 : vector<16x32xf32>
    %cst_85 = arith.constant 9.99999974E-6 : f32
    %199 = vector.broadcast %cst_85 : f32 to vector<16x1xf32>
    %200 = arith.addf %196, %199 : vector<16x1xf32>
    %201 = math.rsqrt %200 : vector<16x1xf32>
    %202 = vector.broadcast %201 : vector<16x1xf32> to vector<16x32xf32>
    %203 = arith.mulf %198, %202 : vector<16x32xf32>
    %204 = vector.broadcast %183 : vector<1x32xf32> to vector<16x32xf32>
    %205 = arith.mulf %203, %204 : vector<16x32xf32>
    %206 = vector.broadcast %185 : vector<1x32xf32> to vector<16x32xf32>
    %207 = arith.addf %205, %206 : vector<16x32xf32>
    %c1 = arith.constant 1 : index
    %c0_86 = arith.constant 0 : index
    %c0_87 = arith.constant 0 : index
    %208 = vector.load %arg6[%c1, %c0_86, %c0_87] : memref<2x32x96xf32, #tpu.memory_space<vmem>>, vector<1x32x96xf32>
    %209 = vector.shape_cast %208 : vector<1x32x96xf32> to vector<32x96xf32>
    %cst_88 = arith.constant dense<0.000000e+00> : vector<16x96xf32>
    %210 = tpu.matmul %207, %209, %cst_88 {dimension_numbers = #tpu.dot_dimension_numbers<[1], [0], [0], [1], [0, 0, 1, 1], [], []>} : vector<16x32xf32>, vector<32x96xf32>, vector<16x96xf32> -> vector<16x96xf32>
    %c1_89 = arith.constant 1 : index
    %c0_90 = arith.constant 0 : index
    %c0_91 = arith.constant 0 : index
    %211 = vector.load %arg7[%c1_89, %c0_90, %c0_91] : memref<2x1x96xf32, #tpu.memory_space<vmem>>, vector<1x1x96xf32>
    %212 = vector.shape_cast %211 : vector<1x1x96xf32> to vector<1x96xf32>
    %213 = vector.broadcast %212 : vector<1x96xf32> to vector<16x96xf32>
    %214 = arith.addf %210, %213 : vector<16x96xf32>
    %215 = vector.extract_strided_slice %214 {offsets = [0, 0], sizes = [16, 32], strides = [1, 1]} : vector<16x96xf32> to vector<16x32xf32>
    %216 = vector.extract_strided_slice %214 {offsets = [0, 32], sizes = [16, 32], strides = [1, 1]} : vector<16x96xf32> to vector<16x32xf32>
    %217 = vector.extract_strided_slice %214 {offsets = [0, 64], sizes = [16, 32], strides = [1, 1]} : vector<16x96xf32> to vector<16x32xf32>
    %c1_92 = arith.constant 1 : index
    %c0_93 = arith.constant 0 : index
    %c0_94 = arith.constant 0 : index
    %218 = vector.load %arg8[%c1_92, %c0_93, %c0_94] : memref<2x32x32xf32, #tpu.memory_space<vmem>>, vector<1x32x32xf32>
    %219 = vector.shape_cast %218 : vector<1x32x32xf32> to vector<32x32xf32>
    %c1_95 = arith.constant 1 : index
    %c0_96 = arith.constant 0 : index
    %c0_97 = arith.constant 0 : index
    %220 = vector.load %arg9[%c1_95, %c0_96, %c0_97] : memref<2x1x32xf32, #tpu.memory_space<vmem>>, vector<1x1x32xf32>
    %221 = vector.shape_cast %220 : vector<1x1x32xf32> to vector<1x32xf32>
    %222 = vector.shape_cast %215 : vector<16x32xf32> to vector<2x8x32xf32>
    %223 = vector.shape_cast %216 : vector<16x32xf32> to vector<2x8x32xf32>
    %224 = vector.shape_cast %217 : vector<16x32xf32> to vector<2x8x32xf32>
    %cst_98 = arith.constant 0.000000e+00 : f32
    %225 = vector.broadcast %cst_98 : f32 to vector<16x32xf32>
    %226 = vector.extract_strided_slice %222 {offsets = [0, 0, 0], sizes = [2, 8, 8], strides = [1, 1, 1]} : vector<2x8x32xf32> to vector<2x8x8xf32>
    %227 = vector.extract_strided_slice %223 {offsets = [0, 0, 0], sizes = [2, 8, 8], strides = [1, 1, 1]} : vector<2x8x32xf32> to vector<2x8x8xf32>
    "tpu.trace_start"() <{level = 10 : i32, message = "bqd,bkd->bqk"}> : () -> ()
    %cst_99 = arith.constant dense<0.000000e+00> : vector<2x8x8xf32>
    %228 = tpu.matmul %226, %227, %cst_99 {dimension_numbers = #tpu.dot_dimension_numbers<[2], [2], [1], [1], [0, 0, 0, 1, 1, 1], [0], [0]>} : vector<2x8x8xf32>, vector<2x8x8xf32>, vector<2x8x8xf32> -> vector<2x8x8xf32>
    "tpu.trace_stop"() : () -> ()
    %229 = vector.broadcast %6 : vector<2x1x8xf32> to vector<2x8x8xf32>
    %230 = arith.addf %228, %229 : vector<2x8x8xf32>
    %cst_100 = arith.constant dense<0xFF800000> : vector<2x8xf32>
    %231 = vector.multi_reduction <maximumf>, %230, %cst_100 [2] : vector<2x8x8xf32> to vector<2x8xf32>
    %232 = vector.shape_cast %231 : vector<2x8xf32> to vector<2x8x1xf32>
    %233 = vector.broadcast %232 : vector<2x8x1xf32> to vector<2x8x8xf32>
    %234 = arith.subf %230, %233 : vector<2x8x8xf32>
    %235 = math.exp %234 : vector<2x8x8xf32>
    %cst_101 = arith.constant dense<0.000000e+00> : vector<2x8xf32>
    %236 = vector.multi_reduction <add>, %235, %cst_101 [2] : vector<2x8x8xf32> to vector<2x8xf32>
    %237 = vector.shape_cast %236 : vector<2x8xf32> to vector<2x8x1xf32>
    %238 = vector.broadcast %237 : vector<2x8x1xf32> to vector<2x8x8xf32>
    %239 = arith.divf %235, %238 : vector<2x8x8xf32>
    %240 = vector.extract_strided_slice %224 {offsets = [0, 0, 0], sizes = [2, 8, 8], strides = [1, 1, 1]} : vector<2x8x32xf32> to vector<2x8x8xf32>
    "tpu.trace_start"() <{level = 10 : i32, message = "bqk,bkd->bqd"}> : () -> ()
    %cst_102 = arith.constant dense<0.000000e+00> : vector<2x8x8xf32>
    %241 = tpu.matmul %239, %240, %cst_102 {dimension_numbers = #tpu.dot_dimension_numbers<[2], [1], [1], [2], [0, 0, 0, 1, 1, 2], [0], [0]>} : vector<2x8x8xf32>, vector<2x8x8xf32>, vector<2x8x8xf32> -> vector<2x8x8xf32>
    "tpu.trace_stop"() : () -> ()
    %242 = vector.shape_cast %241 : vector<2x8x8xf32> to vector<16x8xf32>
    %243 = vector.extract_strided_slice %219 {offsets = [0, 0], sizes = [8, 32], strides = [1, 1]} : vector<32x32xf32> to vector<8x32xf32>
    %cst_103 = arith.constant dense<0.000000e+00> : vector<16x32xf32>
    %244 = tpu.matmul %242, %243, %cst_103 {dimension_numbers = #tpu.dot_dimension_numbers<[1], [0], [0], [1], [0, 0, 1, 1], [], []>} : vector<16x8xf32>, vector<8x32xf32>, vector<16x32xf32> -> vector<16x32xf32>
    %245 = arith.addf %225, %244 : vector<16x32xf32>
    %246 = vector.extract_strided_slice %222 {offsets = [0, 0, 8], sizes = [2, 8, 8], strides = [1, 1, 1]} : vector<2x8x32xf32> to vector<2x8x8xf32>
    %247 = vector.extract_strided_slice %223 {offsets = [0, 0, 8], sizes = [2, 8, 8], strides = [1, 1, 1]} : vector<2x8x32xf32> to vector<2x8x8xf32>
    "tpu.trace_start"() <{level = 10 : i32, message = "bqd,bkd->bqk"}> : () -> ()
    %cst_104 = arith.constant dense<0.000000e+00> : vector<2x8x8xf32>
    %248 = tpu.matmul %246, %247, %cst_104 {dimension_numbers = #tpu.dot_dimension_numbers<[2], [2], [1], [1], [0, 0, 0, 1, 1, 1], [0], [0]>} : vector<2x8x8xf32>, vector<2x8x8xf32>, vector<2x8x8xf32> -> vector<2x8x8xf32>
    "tpu.trace_stop"() : () -> ()
    %249 = vector.broadcast %6 : vector<2x1x8xf32> to vector<2x8x8xf32>
    %250 = arith.addf %248, %249 : vector<2x8x8xf32>
    %cst_105 = arith.constant dense<0xFF800000> : vector<2x8xf32>
    %251 = vector.multi_reduction <maximumf>, %250, %cst_105 [2] : vector<2x8x8xf32> to vector<2x8xf32>
    %252 = vector.shape_cast %251 : vector<2x8xf32> to vector<2x8x1xf32>
    %253 = vector.broadcast %252 : vector<2x8x1xf32> to vector<2x8x8xf32>
    %254 = arith.subf %250, %253 : vector<2x8x8xf32>
    %255 = math.exp %254 : vector<2x8x8xf32>
    %cst_106 = arith.constant dense<0.000000e+00> : vector<2x8xf32>
    %256 = vector.multi_reduction <add>, %255, %cst_106 [2] : vector<2x8x8xf32> to vector<2x8xf32>
    %257 = vector.shape_cast %256 : vector<2x8xf32> to vector<2x8x1xf32>
    %258 = vector.broadcast %257 : vector<2x8x1xf32> to vector<2x8x8xf32>
    %259 = arith.divf %255, %258 : vector<2x8x8xf32>
    %260 = vector.extract_strided_slice %224 {offsets = [0, 0, 8], sizes = [2, 8, 8], strides = [1, 1, 1]} : vector<2x8x32xf32> to vector<2x8x8xf32>
    "tpu.trace_start"() <{level = 10 : i32, message = "bqk,bkd->bqd"}> : () -> ()
    %cst_107 = arith.constant dense<0.000000e+00> : vector<2x8x8xf32>
    %261 = tpu.matmul %259, %260, %cst_107 {dimension_numbers = #tpu.dot_dimension_numbers<[2], [1], [1], [2], [0, 0, 0, 1, 1, 2], [0], [0]>} : vector<2x8x8xf32>, vector<2x8x8xf32>, vector<2x8x8xf32> -> vector<2x8x8xf32>
    "tpu.trace_stop"() : () -> ()
    %262 = vector.shape_cast %261 : vector<2x8x8xf32> to vector<16x8xf32>
    %263 = vector.extract_strided_slice %219 {offsets = [8, 0], sizes = [8, 32], strides = [1, 1]} : vector<32x32xf32> to vector<8x32xf32>
    %cst_108 = arith.constant dense<0.000000e+00> : vector<16x32xf32>
    %264 = tpu.matmul %262, %263, %cst_108 {dimension_numbers = #tpu.dot_dimension_numbers<[1], [0], [0], [1], [0, 0, 1, 1], [], []>} : vector<16x8xf32>, vector<8x32xf32>, vector<16x32xf32> -> vector<16x32xf32>
    %265 = arith.addf %245, %264 : vector<16x32xf32>
    %266 = vector.extract_strided_slice %222 {offsets = [0, 0, 16], sizes = [2, 8, 8], strides = [1, 1, 1]} : vector<2x8x32xf32> to vector<2x8x8xf32>
    %267 = vector.extract_strided_slice %223 {offsets = [0, 0, 16], sizes = [2, 8, 8], strides = [1, 1, 1]} : vector<2x8x32xf32> to vector<2x8x8xf32>
    "tpu.trace_start"() <{level = 10 : i32, message = "bqd,bkd->bqk"}> : () -> ()
    %cst_109 = arith.constant dense<0.000000e+00> : vector<2x8x8xf32>
    %268 = tpu.matmul %266, %267, %cst_109 {dimension_numbers = #tpu.dot_dimension_numbers<[2], [2], [1], [1], [0, 0, 0, 1, 1, 1], [0], [0]>} : vector<2x8x8xf32>, vector<2x8x8xf32>, vector<2x8x8xf32> -> vector<2x8x8xf32>
    "tpu.trace_stop"() : () -> ()
    %269 = vector.broadcast %6 : vector<2x1x8xf32> to vector<2x8x8xf32>
    %270 = arith.addf %268, %269 : vector<2x8x8xf32>
    %cst_110 = arith.constant dense<0xFF800000> : vector<2x8xf32>
    %271 = vector.multi_reduction <maximumf>, %270, %cst_110 [2] : vector<2x8x8xf32> to vector<2x8xf32>
    %272 = vector.shape_cast %271 : vector<2x8xf32> to vector<2x8x1xf32>
    %273 = vector.broadcast %272 : vector<2x8x1xf32> to vector<2x8x8xf32>
    %274 = arith.subf %270, %273 : vector<2x8x8xf32>
    %275 = math.exp %274 : vector<2x8x8xf32>
    %cst_111 = arith.constant dense<0.000000e+00> : vector<2x8xf32>
    %276 = vector.multi_reduction <add>, %275, %cst_111 [2] : vector<2x8x8xf32> to vector<2x8xf32>
    %277 = vector.shape_cast %276 : vector<2x8xf32> to vector<2x8x1xf32>
    %278 = vector.broadcast %277 : vector<2x8x1xf32> to vector<2x8x8xf32>
    %279 = arith.divf %275, %278 : vector<2x8x8xf32>
    %280 = vector.extract_strided_slice %224 {offsets = [0, 0, 16], sizes = [2, 8, 8], strides = [1, 1, 1]} : vector<2x8x32xf32> to vector<2x8x8xf32>
    "tpu.trace_start"() <{level = 10 : i32, message = "bqk,bkd->bqd"}> : () -> ()
    %cst_112 = arith.constant dense<0.000000e+00> : vector<2x8x8xf32>
    %281 = tpu.matmul %279, %280, %cst_112 {dimension_numbers = #tpu.dot_dimension_numbers<[2], [1], [1], [2], [0, 0, 0, 1, 1, 2], [0], [0]>} : vector<2x8x8xf32>, vector<2x8x8xf32>, vector<2x8x8xf32> -> vector<2x8x8xf32>
    "tpu.trace_stop"() : () -> ()
    %282 = vector.shape_cast %281 : vector<2x8x8xf32> to vector<16x8xf32>
    %283 = vector.extract_strided_slice %219 {offsets = [16, 0], sizes = [8, 32], strides = [1, 1]} : vector<32x32xf32> to vector<8x32xf32>
    %cst_113 = arith.constant dense<0.000000e+00> : vector<16x32xf32>
    %284 = tpu.matmul %282, %283, %cst_113 {dimension_numbers = #tpu.dot_dimension_numbers<[1], [0], [0], [1], [0, 0, 1, 1], [], []>} : vector<16x8xf32>, vector<8x32xf32>, vector<16x32xf32> -> vector<16x32xf32>
    %285 = arith.addf %265, %284 : vector<16x32xf32>
    %286 = vector.extract_strided_slice %222 {offsets = [0, 0, 24], sizes = [2, 8, 8], strides = [1, 1, 1]} : vector<2x8x32xf32> to vector<2x8x8xf32>
    %287 = vector.extract_strided_slice %223 {offsets = [0, 0, 24], sizes = [2, 8, 8], strides = [1, 1, 1]} : vector<2x8x32xf32> to vector<2x8x8xf32>
    "tpu.trace_start"() <{level = 10 : i32, message = "bqd,bkd->bqk"}> : () -> ()
    %cst_114 = arith.constant dense<0.000000e+00> : vector<2x8x8xf32>
    %288 = tpu.matmul %286, %287, %cst_114 {dimension_numbers = #tpu.dot_dimension_numbers<[2], [2], [1], [1], [0, 0, 0, 1, 1, 1], [0], [0]>} : vector<2x8x8xf32>, vector<2x8x8xf32>, vector<2x8x8xf32> -> vector<2x8x8xf32>
    "tpu.trace_stop"() : () -> ()
    %289 = vector.broadcast %6 : vector<2x1x8xf32> to vector<2x8x8xf32>
    %290 = arith.addf %288, %289 : vector<2x8x8xf32>
    %cst_115 = arith.constant dense<0xFF800000> : vector<2x8xf32>
    %291 = vector.multi_reduction <maximumf>, %290, %cst_115 [2] : vector<2x8x8xf32> to vector<2x8xf32>
    %292 = vector.shape_cast %291 : vector<2x8xf32> to vector<2x8x1xf32>
    %293 = vector.broadcast %292 : vector<2x8x1xf32> to vector<2x8x8xf32>
    %294 = arith.subf %290, %293 : vector<2x8x8xf32>
    %295 = math.exp %294 : vector<2x8x8xf32>
    %cst_116 = arith.constant dense<0.000000e+00> : vector<2x8xf32>
    %296 = vector.multi_reduction <add>, %295, %cst_116 [2] : vector<2x8x8xf32> to vector<2x8xf32>
    %297 = vector.shape_cast %296 : vector<2x8xf32> to vector<2x8x1xf32>
    %298 = vector.broadcast %297 : vector<2x8x1xf32> to vector<2x8x8xf32>
    %299 = arith.divf %295, %298 : vector<2x8x8xf32>
    %300 = vector.extract_strided_slice %224 {offsets = [0, 0, 24], sizes = [2, 8, 8], strides = [1, 1, 1]} : vector<2x8x32xf32> to vector<2x8x8xf32>
    "tpu.trace_start"() <{level = 10 : i32, message = "bqk,bkd->bqd"}> : () -> ()
    %cst_117 = arith.constant dense<0.000000e+00> : vector<2x8x8xf32>
    %301 = tpu.matmul %299, %300, %cst_117 {dimension_numbers = #tpu.dot_dimension_numbers<[2], [1], [1], [2], [0, 0, 0, 1, 1, 2], [0], [0]>} : vector<2x8x8xf32>, vector<2x8x8xf32>, vector<2x8x8xf32> -> vector<2x8x8xf32>
    "tpu.trace_stop"() : () -> ()
    %302 = vector.shape_cast %301 : vector<2x8x8xf32> to vector<16x8xf32>
    %303 = vector.extract_strided_slice %219 {offsets = [24, 0], sizes = [8, 32], strides = [1, 1]} : vector<32x32xf32> to vector<8x32xf32>
    %cst_118 = arith.constant dense<0.000000e+00> : vector<16x32xf32>
    %304 = tpu.matmul %302, %303, %cst_118 {dimension_numbers = #tpu.dot_dimension_numbers<[1], [0], [0], [1], [0, 0, 1, 1], [], []>} : vector<16x8xf32>, vector<8x32xf32>, vector<16x32xf32> -> vector<16x32xf32>
    %305 = arith.addf %285, %304 : vector<16x32xf32>
    %306 = vector.broadcast %221 : vector<1x32xf32> to vector<16x32xf32>
    %307 = arith.addf %305, %306 : vector<16x32xf32>
    %308 = arith.addf %207, %307 : vector<16x32xf32>
    %c1_119 = arith.constant 1 : index
    %c0_120 = arith.constant 0 : index
    %c0_121 = arith.constant 0 : index
    %309 = vector.load %arg10[%c1_119, %c0_120, %c0_121] : memref<2x1x32xf32, #tpu.memory_space<vmem>>, vector<1x1x32xf32>
    %310 = vector.shape_cast %309 : vector<1x1x32xf32> to vector<1x32xf32>
    %c1_122 = arith.constant 1 : index
    %c0_123 = arith.constant 0 : index
    %c0_124 = arith.constant 0 : index
    %311 = vector.load %arg11[%c1_122, %c0_123, %c0_124] : memref<2x1x32xf32, #tpu.memory_space<vmem>>, vector<1x1x32xf32>
    %312 = vector.shape_cast %311 : vector<1x1x32xf32> to vector<1x32xf32>
    %cst_125 = arith.constant dense<0.000000e+00> : vector<16xf32>
    %313 = vector.multi_reduction <add>, %308, %cst_125 [1] : vector<16x32xf32> to vector<16xf32>
    %314 = vector.shape_cast %313 : vector<16xf32> to vector<16x1xf32>
    %cst_126 = arith.constant 3.200000e+01 : f32
    %315 = vector.broadcast %cst_126 : f32 to vector<16x1xf32>
    %316 = arith.divf %314, %315 : vector<16x1xf32>
    %317 = vector.broadcast %316 : vector<16x1xf32> to vector<16x32xf32>
    %318 = arith.subf %308, %317 : vector<16x32xf32>
    %319 = arith.mulf %318, %318 : vector<16x32xf32>
    %cst_127 = arith.constant dense<0.000000e+00> : vector<16xf32>
    %320 = vector.multi_reduction <add>, %319, %cst_127 [1] : vector<16x32xf32> to vector<16xf32>
    %321 = vector.shape_cast %320 : vector<16xf32> to vector<16x1xf32>
    %cst_128 = arith.constant 3.200000e+01 : f32
    %322 = vector.broadcast %cst_128 : f32 to vector<16x1xf32>
    %323 = arith.divf %321, %322 : vector<16x1xf32>
    %324 = vector.broadcast %316 : vector<16x1xf32> to vector<16x32xf32>
    %325 = arith.subf %308, %324 : vector<16x32xf32>
    %cst_129 = arith.constant 9.99999974E-6 : f32
    %326 = vector.broadcast %cst_129 : f32 to vector<16x1xf32>
    %327 = arith.addf %323, %326 : vector<16x1xf32>
    %328 = math.rsqrt %327 : vector<16x1xf32>
    %329 = vector.broadcast %328 : vector<16x1xf32> to vector<16x32xf32>
    %330 = arith.mulf %325, %329 : vector<16x32xf32>
    %331 = vector.broadcast %310 : vector<1x32xf32> to vector<16x32xf32>
    %332 = arith.mulf %330, %331 : vector<16x32xf32>
    %333 = vector.broadcast %312 : vector<1x32xf32> to vector<16x32xf32>
    %334 = arith.addf %332, %333 : vector<16x32xf32>
    %c1_130 = arith.constant 1 : index
    %c0_131 = arith.constant 0 : index
    %c0_132 = arith.constant 0 : index
    %335 = vector.load %arg12[%c1_130, %c0_131, %c0_132] : memref<2x32x64xf32, #tpu.memory_space<vmem>>, vector<1x32x64xf32>
    %336 = vector.shape_cast %335 : vector<1x32x64xf32> to vector<32x64xf32>
    %c1_133 = arith.constant 1 : index
    %c0_134 = arith.constant 0 : index
    %c0_135 = arith.constant 0 : index
    %337 = vector.load %arg13[%c1_133, %c0_134, %c0_135] : memref<2x1x64xf32, #tpu.memory_space<vmem>>, vector<1x1x64xf32>
    %338 = vector.shape_cast %337 : vector<1x1x64xf32> to vector<1x64xf32>
    %c1_136 = arith.constant 1 : index
    %c0_137 = arith.constant 0 : index
    %c0_138 = arith.constant 0 : index
    %339 = vector.load %arg14[%c1_136, %c0_137, %c0_138] : memref<2x64x32xf32, #tpu.memory_space<vmem>>, vector<1x64x32xf32>
    %340 = vector.shape_cast %339 : vector<1x64x32xf32> to vector<64x32xf32>
    %c1_139 = arith.constant 1 : index
    %c0_140 = arith.constant 0 : index
    %c0_141 = arith.constant 0 : index
    %341 = vector.load %arg15[%c1_139, %c0_140, %c0_141] : memref<2x1x32xf32, #tpu.memory_space<vmem>>, vector<1x1x32xf32>
    %342 = vector.shape_cast %341 : vector<1x1x32xf32> to vector<1x32xf32>
    %cst_142 = arith.constant dense<0.000000e+00> : vector<16x64xf32>
    %343 = tpu.matmul %334, %336, %cst_142 {dimension_numbers = #tpu.dot_dimension_numbers<[1], [0], [0], [1], [0, 0, 1, 1], [], []>} : vector<16x32xf32>, vector<32x64xf32>, vector<16x64xf32> -> vector<16x64xf32>
    %344 = vector.broadcast %338 : vector<1x64xf32> to vector<16x64xf32>
    %345 = arith.addf %343, %344 : vector<16x64xf32>
    %cst_143 = arith.constant 0.000000e+00 : f32
    %346 = vector.broadcast %cst_143 : f32 to vector<16x64xf32>
    %347 = arith.maximumf %345, %346 : vector<16x64xf32>
    %cst_144 = arith.constant dense<0.000000e+00> : vector<16x32xf32>
    %348 = tpu.matmul %347, %340, %cst_144 {dimension_numbers = #tpu.dot_dimension_numbers<[1], [0], [0], [1], [0, 0, 1, 1], [], []>} : vector<16x64xf32>, vector<64x32xf32>, vector<16x32xf32> -> vector<16x32xf32>
    %349 = vector.broadcast %342 : vector<1x32xf32> to vector<16x32xf32>
    %350 = arith.addf %348, %349 : vector<16x32xf32>
    %351 = arith.addf %334, %350 : vector<16x32xf32>
    %c1_145 = arith.constant 1 : index
    %c0_146 = arith.constant 0 : index
    %c0_147 = arith.constant 0 : index
    %352 = vector.load %arg16[%c1_145, %c0_146, %c0_147] : memref<2x1x32xf32, #tpu.memory_space<vmem>>, vector<1x1x32xf32>
    %353 = vector.shape_cast %352 : vector<1x1x32xf32> to vector<1x32xf32>
    %c1_148 = arith.constant 1 : index
    %c0_149 = arith.constant 0 : index
    %c0_150 = arith.constant 0 : index
    %354 = vector.load %arg17[%c1_148, %c0_149, %c0_150] : memref<2x1x32xf32, #tpu.memory_space<vmem>>, vector<1x1x32xf32>
    %355 = vector.shape_cast %354 : vector<1x1x32xf32> to vector<1x32xf32>
    %cst_151 = arith.constant dense<0.000000e+00> : vector<16xf32>
    %356 = vector.multi_reduction <add>, %351, %cst_151 [1] : vector<16x32xf32> to vector<16xf32>
    %357 = vector.shape_cast %356 : vector<16xf32> to vector<16x1xf32>
    %cst_152 = arith.constant 3.200000e+01 : f32
    %358 = vector.broadcast %cst_152 : f32 to vector<16x1xf32>
    %359 = arith.divf %357, %358 : vector<16x1xf32>
    %360 = vector.broadcast %359 : vector<16x1xf32> to vector<16x32xf32>
    %361 = arith.subf %351, %360 : vector<16x32xf32>
    %362 = arith.mulf %361, %361 : vector<16x32xf32>
    %cst_153 = arith.constant dense<0.000000e+00> : vector<16xf32>
    %363 = vector.multi_reduction <add>, %362, %cst_153 [1] : vector<16x32xf32> to vector<16xf32>
    %364 = vector.shape_cast %363 : vector<16xf32> to vector<16x1xf32>
    %cst_154 = arith.constant 3.200000e+01 : f32
    %365 = vector.broadcast %cst_154 : f32 to vector<16x1xf32>
    %366 = arith.divf %364, %365 : vector<16x1xf32>
    %367 = vector.broadcast %359 : vector<16x1xf32> to vector<16x32xf32>
    %368 = arith.subf %351, %367 : vector<16x32xf32>
    %cst_155 = arith.constant 9.99999974E-6 : f32
    %369 = vector.broadcast %cst_155 : f32 to vector<16x1xf32>
    %370 = arith.addf %366, %369 : vector<16x1xf32>
    %371 = math.rsqrt %370 : vector<16x1xf32>
    %372 = vector.broadcast %371 : vector<16x1xf32> to vector<16x32xf32>
    %373 = arith.mulf %368, %372 : vector<16x32xf32>
    %374 = vector.broadcast %353 : vector<1x32xf32> to vector<16x32xf32>
    %375 = arith.mulf %373, %374 : vector<16x32xf32>
    %376 = vector.broadcast %355 : vector<1x32xf32> to vector<16x32xf32>
    %377 = arith.addf %375, %376 : vector<16x32xf32>
    %c0_156 = arith.constant 0 : index
    %c0_157 = arith.constant 0 : index
    %378 = vector.load %arg28[%c0_156, %c0_157] : memref<32x128xf32, #tpu.memory_space<vmem>>, vector<32x128xf32>
    %cst_158 = arith.constant dense<0.000000e+00> : vector<16x128xf32>
    %379 = tpu.matmul %377, %378, %cst_158 {dimension_numbers = #tpu.dot_dimension_numbers<[1], [0], [0], [1], [0, 0, 1, 1], [], []>} : vector<16x32xf32>, vector<32x128xf32>, vector<16x128xf32> -> vector<16x128xf32>
    %c0_159 = arith.constant 0 : index
    %c0_160 = arith.constant 0 : index
    %380 = vector.load %arg29[%c0_159, %c0_160] : memref<1x128xf32, #tpu.memory_space<vmem>>, vector<1x128xf32>
    %381 = vector.broadcast %380 : vector<1x128xf32> to vector<16x128xf32>
    %382 = arith.addf %379, %381 : vector<16x128xf32>
    %c0_161 = arith.constant 0 : index
    %c0_162 = arith.constant 0 : index
    %383 = vector.load %arg1[%c0_161, %c0_162] : memref<16x1xi32, #tpu.memory_space<vmem>>, vector<16x1xi32>
    %c0_163 = arith.constant 0 : index
    %c0_164 = arith.constant 0 : index
    %384 = vector.load %arg18[%c0_163, %c0_164] : memref<32x32xf32, #tpu.memory_space<vmem>>, vector<32x32xf32>
    %c0_165 = arith.constant 0 : index
    %c0_166 = arith.constant 0 : index
    %385 = vector.load %arg19[%c0_165, %c0_166] : memref<16x32xf32, #tpu.memory_space<vmem>>, vector<16x32xf32>
    %386 = tpu.iota {dimensions = array<i32: 1>} : vector<16x32xi32>
    %387 = vector.broadcast %383 : vector<16x1xi32> to vector<16x32xi32>
    %388 = arith.cmpi eq, %387, %386 : vector<16x32xi32>
    %389 = arith.extui %388 : vector<16x32xi1> to vector<16x32xi32>
    %390 = arith.sitofp %389 : vector<16x32xi32> to vector<16x32xf32>
    %cst_167 = arith.constant dense<0.000000e+00> : vector<16x32xf32>
    %391 = tpu.matmul %390, %384, %cst_167 {dimension_numbers = #tpu.dot_dimension_numbers<[1], [0], [0], [1], [0, 0, 1, 1], [], []>} : vector<16x32xf32>, vector<32x32xf32>, vector<16x32xf32> -> vector<16x32xf32>
    %392 = vector.extract_strided_slice %385 {offsets = [0, 0], sizes = [8, 32], strides = [1, 1]} : vector<16x32xf32> to vector<8x32xf32>
    %393 = vector.shape_cast %391 : vector<16x32xf32> to vector<2x8x32xf32>
    %cst_168 = arith.constant 5.65685415 : f32
    %394 = vector.broadcast %cst_168 : f32 to vector<2x8x32xf32>
    %395 = arith.mulf %393, %394 : vector<2x8x32xf32>
    %396 = vector.shape_cast %392 : vector<8x32xf32> to vector<1x8x32xf32>
    %397 = vector.broadcast %396 : vector<1x8x32xf32> to vector<2x8x32xf32>
    %398 = arith.addf %395, %397 : vector<2x8x32xf32>
    %399 = vector.shape_cast %398 : vector<2x8x32xf32> to vector<16x32xf32>
    %c0_169 = arith.constant 0 : index
    %c0_170 = arith.constant 0 : index
    %c0_171 = arith.constant 0 : index
    %400 = vector.load %arg20[%c0_169, %c0_170, %c0_171] : memref<2x32x96xf32, #tpu.memory_space<vmem>>, vector<1x32x96xf32>
    %401 = vector.shape_cast %400 : vector<1x32x96xf32> to vector<32x96xf32>
    %cst_172 = arith.constant dense<0.000000e+00> : vector<16x96xf32>
    %402 = tpu.matmul %399, %401, %cst_172 {dimension_numbers = #tpu.dot_dimension_numbers<[1], [0], [0], [1], [0, 0, 1, 1], [], []>} : vector<16x32xf32>, vector<32x96xf32>, vector<16x96xf32> -> vector<16x96xf32>
    %c0_173 = arith.constant 0 : index
    %c0_174 = arith.constant 0 : index
    %c0_175 = arith.constant 0 : index
    %403 = vector.load %arg21[%c0_173, %c0_174, %c0_175] : memref<2x1x96xf32, #tpu.memory_space<vmem>>, vector<1x1x96xf32>
    %404 = vector.shape_cast %403 : vector<1x1x96xf32> to vector<1x96xf32>
    %405 = vector.broadcast %404 : vector<1x96xf32> to vector<16x96xf32>
    %406 = arith.addf %402, %405 : vector<16x96xf32>
    %407 = vector.extract_strided_slice %406 {offsets = [0, 0], sizes = [16, 32], strides = [1, 1]} : vector<16x96xf32> to vector<16x32xf32>
    %408 = vector.extract_strided_slice %406 {offsets = [0, 32], sizes = [16, 32], strides = [1, 1]} : vector<16x96xf32> to vector<16x32xf32>
    %409 = vector.extract_strided_slice %406 {offsets = [0, 64], sizes = [16, 32], strides = [1, 1]} : vector<16x96xf32> to vector<16x32xf32>
    %c0_176 = arith.constant 0 : index
    %c0_177 = arith.constant 0 : index
    %c0_178 = arith.constant 0 : index
    %410 = vector.load %arg22[%c0_176, %c0_177, %c0_178] : memref<2x32x32xf32, #tpu.memory_space<vmem>>, vector<1x32x32xf32>
    %411 = vector.shape_cast %410 : vector<1x32x32xf32> to vector<32x32xf32>
    %c0_179 = arith.constant 0 : index
    %c0_180 = arith.constant 0 : index
    %c0_181 = arith.constant 0 : index
    %412 = vector.load %arg23[%c0_179, %c0_180, %c0_181] : memref<2x1x32xf32, #tpu.memory_space<vmem>>, vector<1x1x32xf32>
    %413 = vector.shape_cast %412 : vector<1x1x32xf32> to vector<1x32xf32>
    %414 = vector.shape_cast %407 : vector<16x32xf32> to vector<2x8x32xf32>
    %415 = vector.shape_cast %408 : vector<16x32xf32> to vector<2x8x32xf32>
    %416 = vector.shape_cast %409 : vector<16x32xf32> to vector<2x8x32xf32>
    %cst_182 = arith.constant 0.000000e+00 : f32
    %417 = vector.broadcast %cst_182 : f32 to vector<16x32xf32>
    %418 = vector.extract_strided_slice %414 {offsets = [0, 0, 0], sizes = [2, 8, 8], strides = [1, 1, 1]} : vector<2x8x32xf32> to vector<2x8x8xf32>
    %419 = vector.extract_strided_slice %415 {offsets = [0, 0, 0], sizes = [2, 8, 8], strides = [1, 1, 1]} : vector<2x8x32xf32> to vector<2x8x8xf32>
    "tpu.trace_start"() <{level = 10 : i32, message = "bqd,bkd->bqk"}> : () -> ()
    %cst_183 = arith.constant dense<0.000000e+00> : vector<2x8x8xf32>
    %420 = tpu.matmul %418, %419, %cst_183 {dimension_numbers = #tpu.dot_dimension_numbers<[2], [2], [1], [1], [0, 0, 0, 1, 1, 1], [0], [0]>} : vector<2x8x8xf32>, vector<2x8x8xf32>, vector<2x8x8xf32> -> vector<2x8x8xf32>
    "tpu.trace_stop"() : () -> ()
    %421 = arith.addf %420, %20 : vector<2x8x8xf32>
    %cst_184 = arith.constant dense<0xFF800000> : vector<2x8xf32>
    %422 = vector.multi_reduction <maximumf>, %421, %cst_184 [2] : vector<2x8x8xf32> to vector<2x8xf32>
    %423 = vector.shape_cast %422 : vector<2x8xf32> to vector<2x8x1xf32>
    %424 = vector.broadcast %423 : vector<2x8x1xf32> to vector<2x8x8xf32>
    %425 = arith.subf %421, %424 : vector<2x8x8xf32>
    %426 = math.exp %425 : vector<2x8x8xf32>
    %cst_185 = arith.constant dense<0.000000e+00> : vector<2x8xf32>
    %427 = vector.multi_reduction <add>, %426, %cst_185 [2] : vector<2x8x8xf32> to vector<2x8xf32>
    %428 = vector.shape_cast %427 : vector<2x8xf32> to vector<2x8x1xf32>
    %429 = vector.broadcast %428 : vector<2x8x1xf32> to vector<2x8x8xf32>
    %430 = arith.divf %426, %429 : vector<2x8x8xf32>
    %431 = vector.extract_strided_slice %416 {offsets = [0, 0, 0], sizes = [2, 8, 8], strides = [1, 1, 1]} : vector<2x8x32xf32> to vector<2x8x8xf32>
    "tpu.trace_start"() <{level = 10 : i32, message = "bqk,bkd->bqd"}> : () -> ()
    %cst_186 = arith.constant dense<0.000000e+00> : vector<2x8x8xf32>
    %432 = tpu.matmul %430, %431, %cst_186 {dimension_numbers = #tpu.dot_dimension_numbers<[2], [1], [1], [2], [0, 0, 0, 1, 1, 2], [0], [0]>} : vector<2x8x8xf32>, vector<2x8x8xf32>, vector<2x8x8xf32> -> vector<2x8x8xf32>
    "tpu.trace_stop"() : () -> ()
    %433 = vector.shape_cast %432 : vector<2x8x8xf32> to vector<16x8xf32>
    %434 = vector.extract_strided_slice %411 {offsets = [0, 0], sizes = [8, 32], strides = [1, 1]} : vector<32x32xf32> to vector<8x32xf32>
    %cst_187 = arith.constant dense<0.000000e+00> : vector<16x32xf32>
    %435 = tpu.matmul %433, %434, %cst_187 {dimension_numbers = #tpu.dot_dimension_numbers<[1], [0], [0], [1], [0, 0, 1, 1], [], []>} : vector<16x8xf32>, vector<8x32xf32>, vector<16x32xf32> -> vector<16x32xf32>
    %436 = arith.addf %417, %435 : vector<16x32xf32>
    %437 = vector.extract_strided_slice %414 {offsets = [0, 0, 8], sizes = [2, 8, 8], strides = [1, 1, 1]} : vector<2x8x32xf32> to vector<2x8x8xf32>
    %438 = vector.extract_strided_slice %415 {offsets = [0, 0, 8], sizes = [2, 8, 8], strides = [1, 1, 1]} : vector<2x8x32xf32> to vector<2x8x8xf32>
    "tpu.trace_start"() <{level = 10 : i32, message = "bqd,bkd->bqk"}> : () -> ()
    %cst_188 = arith.constant dense<0.000000e+00> : vector<2x8x8xf32>
    %439 = tpu.matmul %437, %438, %cst_188 {dimension_numbers = #tpu.dot_dimension_numbers<[2], [2], [1], [1], [0, 0, 0, 1, 1, 1], [0], [0]>} : vector<2x8x8xf32>, vector<2x8x8xf32>, vector<2x8x8xf32> -> vector<2x8x8xf32>
    "tpu.trace_stop"() : () -> ()
    %440 = arith.addf %439, %20 : vector<2x8x8xf32>
    %cst_189 = arith.constant dense<0xFF800000> : vector<2x8xf32>
    %441 = vector.multi_reduction <maximumf>, %440, %cst_189 [2] : vector<2x8x8xf32> to vector<2x8xf32>
    %442 = vector.shape_cast %441 : vector<2x8xf32> to vector<2x8x1xf32>
    %443 = vector.broadcast %442 : vector<2x8x1xf32> to vector<2x8x8xf32>
    %444 = arith.subf %440, %443 : vector<2x8x8xf32>
    %445 = math.exp %444 : vector<2x8x8xf32>
    %cst_190 = arith.constant dense<0.000000e+00> : vector<2x8xf32>
    %446 = vector.multi_reduction <add>, %445, %cst_190 [2] : vector<2x8x8xf32> to vector<2x8xf32>
    %447 = vector.shape_cast %446 : vector<2x8xf32> to vector<2x8x1xf32>
    %448 = vector.broadcast %447 : vector<2x8x1xf32> to vector<2x8x8xf32>
    %449 = arith.divf %445, %448 : vector<2x8x8xf32>
    %450 = vector.extract_strided_slice %416 {offsets = [0, 0, 8], sizes = [2, 8, 8], strides = [1, 1, 1]} : vector<2x8x32xf32> to vector<2x8x8xf32>
    "tpu.trace_start"() <{level = 10 : i32, message = "bqk,bkd->bqd"}> : () -> ()
    %cst_191 = arith.constant dense<0.000000e+00> : vector<2x8x8xf32>
    %451 = tpu.matmul %449, %450, %cst_191 {dimension_numbers = #tpu.dot_dimension_numbers<[2], [1], [1], [2], [0, 0, 0, 1, 1, 2], [0], [0]>} : vector<2x8x8xf32>, vector<2x8x8xf32>, vector<2x8x8xf32> -> vector<2x8x8xf32>
    "tpu.trace_stop"() : () -> ()
    %452 = vector.shape_cast %451 : vector<2x8x8xf32> to vector<16x8xf32>
    %453 = vector.extract_strided_slice %411 {offsets = [8, 0], sizes = [8, 32], strides = [1, 1]} : vector<32x32xf32> to vector<8x32xf32>
    %cst_192 = arith.constant dense<0.000000e+00> : vector<16x32xf32>
    %454 = tpu.matmul %452, %453, %cst_192 {dimension_numbers = #tpu.dot_dimension_numbers<[1], [0], [0], [1], [0, 0, 1, 1], [], []>} : vector<16x8xf32>, vector<8x32xf32>, vector<16x32xf32> -> vector<16x32xf32>
    %455 = arith.addf %436, %454 : vector<16x32xf32>
    %456 = vector.extract_strided_slice %414 {offsets = [0, 0, 16], sizes = [2, 8, 8], strides = [1, 1, 1]} : vector<2x8x32xf32> to vector<2x8x8xf32>
    %457 = vector.extract_strided_slice %415 {offsets = [0, 0, 16], sizes = [2, 8, 8], strides = [1, 1, 1]} : vector<2x8x32xf32> to vector<2x8x8xf32>
    "tpu.trace_start"() <{level = 10 : i32, message = "bqd,bkd->bqk"}> : () -> ()
    %cst_193 = arith.constant dense<0.000000e+00> : vector<2x8x8xf32>
    %458 = tpu.matmul %456, %457, %cst_193 {dimension_numbers = #tpu.dot_dimension_numbers<[2], [2], [1], [1], [0, 0, 0, 1, 1, 1], [0], [0]>} : vector<2x8x8xf32>, vector<2x8x8xf32>, vector<2x8x8xf32> -> vector<2x8x8xf32>
    "tpu.trace_stop"() : () -> ()
    %459 = arith.addf %458, %20 : vector<2x8x8xf32>
    %cst_194 = arith.constant dense<0xFF800000> : vector<2x8xf32>
    %460 = vector.multi_reduction <maximumf>, %459, %cst_194 [2] : vector<2x8x8xf32> to vector<2x8xf32>
    %461 = vector.shape_cast %460 : vector<2x8xf32> to vector<2x8x1xf32>
    %462 = vector.broadcast %461 : vector<2x8x1xf32> to vector<2x8x8xf32>
    %463 = arith.subf %459, %462 : vector<2x8x8xf32>
    %464 = math.exp %463 : vector<2x8x8xf32>
    %cst_195 = arith.constant dense<0.000000e+00> : vector<2x8xf32>
    %465 = vector.multi_reduction <add>, %464, %cst_195 [2] : vector<2x8x8xf32> to vector<2x8xf32>
    %466 = vector.shape_cast %465 : vector<2x8xf32> to vector<2x8x1xf32>
    %467 = vector.broadcast %466 : vector<2x8x1xf32> to vector<2x8x8xf32>
    %468 = arith.divf %464, %467 : vector<2x8x8xf32>
    %469 = vector.extract_strided_slice %416 {offsets = [0, 0, 16], sizes = [2, 8, 8], strides = [1, 1, 1]} : vector<2x8x32xf32> to vector<2x8x8xf32>
    "tpu.trace_start"() <{level = 10 : i32, message = "bqk,bkd->bqd"}> : () -> ()
    %cst_196 = arith.constant dense<0.000000e+00> : vector<2x8x8xf32>
    %470 = tpu.matmul %468, %469, %cst_196 {dimension_numbers = #tpu.dot_dimension_numbers<[2], [1], [1], [2], [0, 0, 0, 1, 1, 2], [0], [0]>} : vector<2x8x8xf32>, vector<2x8x8xf32>, vector<2x8x8xf32> -> vector<2x8x8xf32>
    "tpu.trace_stop"() : () -> ()
    %471 = vector.shape_cast %470 : vector<2x8x8xf32> to vector<16x8xf32>
    %472 = vector.extract_strided_slice %411 {offsets = [16, 0], sizes = [8, 32], strides = [1, 1]} : vector<32x32xf32> to vector<8x32xf32>
    %cst_197 = arith.constant dense<0.000000e+00> : vector<16x32xf32>
    %473 = tpu.matmul %471, %472, %cst_197 {dimension_numbers = #tpu.dot_dimension_numbers<[1], [0], [0], [1], [0, 0, 1, 1], [], []>} : vector<16x8xf32>, vector<8x32xf32>, vector<16x32xf32> -> vector<16x32xf32>
    %474 = arith.addf %455, %473 : vector<16x32xf32>
    %475 = vector.extract_strided_slice %414 {offsets = [0, 0, 24], sizes = [2, 8, 8], strides = [1, 1, 1]} : vector<2x8x32xf32> to vector<2x8x8xf32>
    %476 = vector.extract_strided_slice %415 {offsets = [0, 0, 24], sizes = [2, 8, 8], strides = [1, 1, 1]} : vector<2x8x32xf32> to vector<2x8x8xf32>
    "tpu.trace_start"() <{level = 10 : i32, message = "bqd,bkd->bqk"}> : () -> ()
    %cst_198 = arith.constant dense<0.000000e+00> : vector<2x8x8xf32>
    %477 = tpu.matmul %475, %476, %cst_198 {dimension_numbers = #tpu.dot_dimension_numbers<[2], [2], [1], [1], [0, 0, 0, 1, 1, 1], [0], [0]>} : vector<2x8x8xf32>, vector<2x8x8xf32>, vector<2x8x8xf32> -> vector<2x8x8xf32>
    "tpu.trace_stop"() : () -> ()
    %478 = arith.addf %477, %20 : vector<2x8x8xf32>
    %cst_199 = arith.constant dense<0xFF800000> : vector<2x8xf32>
    %479 = vector.multi_reduction <maximumf>, %478, %cst_199 [2] : vector<2x8x8xf32> to vector<2x8xf32>
    %480 = vector.shape_cast %479 : vector<2x8xf32> to vector<2x8x1xf32>
    %481 = vector.broadcast %480 : vector<2x8x1xf32> to vector<2x8x8xf32>
    %482 = arith.subf %478, %481 : vector<2x8x8xf32>
    %483 = math.exp %482 : vector<2x8x8xf32>
    %cst_200 = arith.constant dense<0.000000e+00> : vector<2x8xf32>
    %484 = vector.multi_reduction <add>, %483, %cst_200 [2] : vector<2x8x8xf32> to vector<2x8xf32>
    %485 = vector.shape_cast %484 : vector<2x8xf32> to vector<2x8x1xf32>
    %486 = vector.broadcast %485 : vector<2x8x1xf32> to vector<2x8x8xf32>
    %487 = arith.divf %483, %486 : vector<2x8x8xf32>
    %488 = vector.extract_strided_slice %416 {offsets = [0, 0, 24], sizes = [2, 8, 8], strides = [1, 1, 1]} : vector<2x8x32xf32> to vector<2x8x8xf32>
    "tpu.trace_start"() <{level = 10 : i32, message = "bqk,bkd->bqd"}> : () -> ()
    %cst_201 = arith.constant dense<0.000000e+00> : vector<2x8x8xf32>
    %489 = tpu.matmul %487, %488, %cst_201 {dimension_numbers = #tpu.dot_dimension_numbers<[2], [1], [1], [2], [0, 0, 0, 1, 1, 2], [0], [0]>} : vector<2x8x8xf32>, vector<2x8x8xf32>, vector<2x8x8xf32> -> vector<2x8x8xf32>
    "tpu.trace_stop"() : () -> ()
    %490 = vector.shape_cast %489 : vector<2x8x8xf32> to vector<16x8xf32>
    %491 = vector.extract_strided_slice %411 {offsets = [24, 0], sizes = [8, 32], strides = [1, 1]} : vector<32x32xf32> to vector<8x32xf32>
    %cst_202 = arith.constant dense<0.000000e+00> : vector<16x32xf32>
    %492 = tpu.matmul %490, %491, %cst_202 {dimension_numbers = #tpu.dot_dimension_numbers<[1], [0], [0], [1], [0, 0, 1, 1], [], []>} : vector<16x8xf32>, vector<8x32xf32>, vector<16x32xf32> -> vector<16x32xf32>
    %493 = arith.addf %474, %492 : vector<16x32xf32>
    %494 = vector.broadcast %413 : vector<1x32xf32> to vector<16x32xf32>
    %495 = arith.addf %493, %494 : vector<16x32xf32>
    %496 = arith.addf %399, %495 : vector<16x32xf32>
    %c0_203 = arith.constant 0 : index
    %c0_204 = arith.constant 0 : index
    %c0_205 = arith.constant 0 : index
    %497 = vector.load %arg24[%c0_203, %c0_204, %c0_205] : memref<2x1x32xf32, #tpu.memory_space<vmem>>, vector<1x1x32xf32>
    %498 = vector.shape_cast %497 : vector<1x1x32xf32> to vector<1x32xf32>
    %c0_206 = arith.constant 0 : index
    %c0_207 = arith.constant 0 : index
    %c0_208 = arith.constant 0 : index
    %499 = vector.load %arg25[%c0_206, %c0_207, %c0_208] : memref<2x1x32xf32, #tpu.memory_space<vmem>>, vector<1x1x32xf32>
    %500 = vector.shape_cast %499 : vector<1x1x32xf32> to vector<1x32xf32>
    %cst_209 = arith.constant dense<0.000000e+00> : vector<16xf32>
    %501 = vector.multi_reduction <add>, %496, %cst_209 [1] : vector<16x32xf32> to vector<16xf32>
    %502 = vector.shape_cast %501 : vector<16xf32> to vector<16x1xf32>
    %cst_210 = arith.constant 3.200000e+01 : f32
    %503 = vector.broadcast %cst_210 : f32 to vector<16x1xf32>
    %504 = arith.divf %502, %503 : vector<16x1xf32>
    %505 = vector.broadcast %504 : vector<16x1xf32> to vector<16x32xf32>
    %506 = arith.subf %496, %505 : vector<16x32xf32>
    %507 = arith.mulf %506, %506 : vector<16x32xf32>
    %cst_211 = arith.constant dense<0.000000e+00> : vector<16xf32>
    %508 = vector.multi_reduction <add>, %507, %cst_211 [1] : vector<16x32xf32> to vector<16xf32>
    %509 = vector.shape_cast %508 : vector<16xf32> to vector<16x1xf32>
    %cst_212 = arith.constant 3.200000e+01 : f32
    %510 = vector.broadcast %cst_212 : f32 to vector<16x1xf32>
    %511 = arith.divf %509, %510 : vector<16x1xf32>
    %512 = vector.broadcast %504 : vector<16x1xf32> to vector<16x32xf32>
    %513 = arith.subf %496, %512 : vector<16x32xf32>
    %cst_213 = arith.constant 9.99999974E-6 : f32
    %514 = vector.broadcast %cst_213 : f32 to vector<16x1xf32>
    %515 = arith.addf %511, %514 : vector<16x1xf32>
    %516 = math.rsqrt %515 : vector<16x1xf32>
    %517 = vector.broadcast %516 : vector<16x1xf32> to vector<16x32xf32>
    %518 = arith.mulf %513, %517 : vector<16x32xf32>
    %519 = vector.broadcast %498 : vector<1x32xf32> to vector<16x32xf32>
    %520 = arith.mulf %518, %519 : vector<16x32xf32>
    %521 = vector.broadcast %500 : vector<1x32xf32> to vector<16x32xf32>
    %522 = arith.addf %520, %521 : vector<16x32xf32>
    %c0_214 = arith.constant 0 : index
    %c0_215 = arith.constant 0 : index
    %c0_216 = arith.constant 0 : index
    %523 = vector.load %arg26[%c0_214, %c0_215, %c0_216] : memref<2x32x32xf32, #tpu.memory_space<vmem>>, vector<1x32x32xf32>
    %524 = vector.shape_cast %523 : vector<1x32x32xf32> to vector<32x32xf32>
    %cst_217 = arith.constant dense<0.000000e+00> : vector<16x32xf32>
    %525 = tpu.matmul %522, %524, %cst_217 {dimension_numbers = #tpu.dot_dimension_numbers<[1], [0], [0], [1], [0, 0, 1, 1], [], []>} : vector<16x32xf32>, vector<32x32xf32>, vector<16x32xf32> -> vector<16x32xf32>
    %c0_218 = arith.constant 0 : index
    %c0_219 = arith.constant 0 : index
    %c0_220 = arith.constant 0 : index
    %526 = vector.load %arg27[%c0_218, %c0_219, %c0_220] : memref<2x1x32xf32, #tpu.memory_space<vmem>>, vector<1x1x32xf32>
    %527 = vector.shape_cast %526 : vector<1x1x32xf32> to vector<1x32xf32>
    %528 = vector.broadcast %527 : vector<1x32xf32> to vector<16x32xf32>
    %529 = arith.addf %525, %528 : vector<16x32xf32>
    %530 = vector.extract_strided_slice %382 {offsets = [0, 0], sizes = [16, 32], strides = [1, 1]} : vector<16x128xf32> to vector<16x32xf32>
    %531 = vector.extract_strided_slice %382 {offsets = [0, 32], sizes = [16, 32], strides = [1, 1]} : vector<16x128xf32> to vector<16x32xf32>
    %c0_221 = arith.constant 0 : index
    %c0_222 = arith.constant 0 : index
    %c0_223 = arith.constant 0 : index
    %532 = vector.load %arg30[%c0_221, %c0_222, %c0_223] : memref<2x32x32xf32, #tpu.memory_space<vmem>>, vector<1x32x32xf32>
    %533 = vector.shape_cast %532 : vector<1x32x32xf32> to vector<32x32xf32>
    %c0_224 = arith.constant 0 : index
    %c0_225 = arith.constant 0 : index
    %c0_226 = arith.constant 0 : index
    %534 = vector.load %arg31[%c0_224, %c0_225, %c0_226] : memref<2x1x32xf32, #tpu.memory_space<vmem>>, vector<1x1x32xf32>
    %535 = vector.shape_cast %534 : vector<1x1x32xf32> to vector<1x32xf32>
    %536 = vector.shape_cast %529 : vector<16x32xf32> to vector<2x8x32xf32>
    %537 = vector.shape_cast %530 : vector<16x32xf32> to vector<2x8x32xf32>
    %538 = vector.shape_cast %531 : vector<16x32xf32> to vector<2x8x32xf32>
    %cst_227 = arith.constant 0.000000e+00 : f32
    %539 = vector.broadcast %cst_227 : f32 to vector<16x32xf32>
    %540 = vector.extract_strided_slice %536 {offsets = [0, 0, 0], sizes = [2, 8, 8], strides = [1, 1, 1]} : vector<2x8x32xf32> to vector<2x8x8xf32>
    %541 = vector.extract_strided_slice %537 {offsets = [0, 0, 0], sizes = [2, 8, 8], strides = [1, 1, 1]} : vector<2x8x32xf32> to vector<2x8x8xf32>
    "tpu.trace_start"() <{level = 10 : i32, message = "bqd,bkd->bqk"}> : () -> ()
    %cst_228 = arith.constant dense<0.000000e+00> : vector<2x8x8xf32>
    %542 = tpu.matmul %540, %541, %cst_228 {dimension_numbers = #tpu.dot_dimension_numbers<[2], [2], [1], [1], [0, 0, 0, 1, 1, 1], [0], [0]>} : vector<2x8x8xf32>, vector<2x8x8xf32>, vector<2x8x8xf32> -> vector<2x8x8xf32>
    "tpu.trace_stop"() : () -> ()
    %543 = vector.broadcast %6 : vector<2x1x8xf32> to vector<2x8x8xf32>
    %544 = arith.addf %542, %543 : vector<2x8x8xf32>
    %cst_229 = arith.constant dense<0xFF800000> : vector<2x8xf32>
    %545 = vector.multi_reduction <maximumf>, %544, %cst_229 [2] : vector<2x8x8xf32> to vector<2x8xf32>
    %546 = vector.shape_cast %545 : vector<2x8xf32> to vector<2x8x1xf32>
    %547 = vector.broadcast %546 : vector<2x8x1xf32> to vector<2x8x8xf32>
    %548 = arith.subf %544, %547 : vector<2x8x8xf32>
    %549 = math.exp %548 : vector<2x8x8xf32>
    %cst_230 = arith.constant dense<0.000000e+00> : vector<2x8xf32>
    %550 = vector.multi_reduction <add>, %549, %cst_230 [2] : vector<2x8x8xf32> to vector<2x8xf32>
    %551 = vector.shape_cast %550 : vector<2x8xf32> to vector<2x8x1xf32>
    %552 = vector.broadcast %551 : vector<2x8x1xf32> to vector<2x8x8xf32>
    %553 = arith.divf %549, %552 : vector<2x8x8xf32>
    %554 = vector.extract_strided_slice %538 {offsets = [0, 0, 0], sizes = [2, 8, 8], strides = [1, 1, 1]} : vector<2x8x32xf32> to vector<2x8x8xf32>
    "tpu.trace_start"() <{level = 10 : i32, message = "bqk,bkd->bqd"}> : () -> ()
    %cst_231 = arith.constant dense<0.000000e+00> : vector<2x8x8xf32>
    %555 = tpu.matmul %553, %554, %cst_231 {dimension_numbers = #tpu.dot_dimension_numbers<[2], [1], [1], [2], [0, 0, 0, 1, 1, 2], [0], [0]>} : vector<2x8x8xf32>, vector<2x8x8xf32>, vector<2x8x8xf32> -> vector<2x8x8xf32>
    "tpu.trace_stop"() : () -> ()
    %556 = vector.shape_cast %555 : vector<2x8x8xf32> to vector<16x8xf32>
    %557 = vector.extract_strided_slice %533 {offsets = [0, 0], sizes = [8, 32], strides = [1, 1]} : vector<32x32xf32> to vector<8x32xf32>
    %cst_232 = arith.constant dense<0.000000e+00> : vector<16x32xf32>
    %558 = tpu.matmul %556, %557, %cst_232 {dimension_numbers = #tpu.dot_dimension_numbers<[1], [0], [0], [1], [0, 0, 1, 1], [], []>} : vector<16x8xf32>, vector<8x32xf32>, vector<16x32xf32> -> vector<16x32xf32>
    %559 = arith.addf %539, %558 : vector<16x32xf32>
    %560 = vector.extract_strided_slice %536 {offsets = [0, 0, 8], sizes = [2, 8, 8], strides = [1, 1, 1]} : vector<2x8x32xf32> to vector<2x8x8xf32>
    %561 = vector.extract_strided_slice %537 {offsets = [0, 0, 8], sizes = [2, 8, 8], strides = [1, 1, 1]} : vector<2x8x32xf32> to vector<2x8x8xf32>
    "tpu.trace_start"() <{level = 10 : i32, message = "bqd,bkd->bqk"}> : () -> ()
    %cst_233 = arith.constant dense<0.000000e+00> : vector<2x8x8xf32>
    %562 = tpu.matmul %560, %561, %cst_233 {dimension_numbers = #tpu.dot_dimension_numbers<[2], [2], [1], [1], [0, 0, 0, 1, 1, 1], [0], [0]>} : vector<2x8x8xf32>, vector<2x8x8xf32>, vector<2x8x8xf32> -> vector<2x8x8xf32>
    "tpu.trace_stop"() : () -> ()
    %563 = vector.broadcast %6 : vector<2x1x8xf32> to vector<2x8x8xf32>
    %564 = arith.addf %562, %563 : vector<2x8x8xf32>
    %cst_234 = arith.constant dense<0xFF800000> : vector<2x8xf32>
    %565 = vector.multi_reduction <maximumf>, %564, %cst_234 [2] : vector<2x8x8xf32> to vector<2x8xf32>
    %566 = vector.shape_cast %565 : vector<2x8xf32> to vector<2x8x1xf32>
    %567 = vector.broadcast %566 : vector<2x8x1xf32> to vector<2x8x8xf32>
    %568 = arith.subf %564, %567 : vector<2x8x8xf32>
    %569 = math.exp %568 : vector<2x8x8xf32>
    %cst_235 = arith.constant dense<0.000000e+00> : vector<2x8xf32>
    %570 = vector.multi_reduction <add>, %569, %cst_235 [2] : vector<2x8x8xf32> to vector<2x8xf32>
    %571 = vector.shape_cast %570 : vector<2x8xf32> to vector<2x8x1xf32>
    %572 = vector.broadcast %571 : vector<2x8x1xf32> to vector<2x8x8xf32>
    %573 = arith.divf %569, %572 : vector<2x8x8xf32>
    %574 = vector.extract_strided_slice %538 {offsets = [0, 0, 8], sizes = [2, 8, 8], strides = [1, 1, 1]} : vector<2x8x32xf32> to vector<2x8x8xf32>
    "tpu.trace_start"() <{level = 10 : i32, message = "bqk,bkd->bqd"}> : () -> ()
    %cst_236 = arith.constant dense<0.000000e+00> : vector<2x8x8xf32>
    %575 = tpu.matmul %573, %574, %cst_236 {dimension_numbers = #tpu.dot_dimension_numbers<[2], [1], [1], [2], [0, 0, 0, 1, 1, 2], [0], [0]>} : vector<2x8x8xf32>, vector<2x8x8xf32>, vector<2x8x8xf32> -> vector<2x8x8xf32>
    "tpu.trace_stop"() : () -> ()
    %576 = vector.shape_cast %575 : vector<2x8x8xf32> to vector<16x8xf32>
    %577 = vector.extract_strided_slice %533 {offsets = [8, 0], sizes = [8, 32], strides = [1, 1]} : vector<32x32xf32> to vector<8x32xf32>
    %cst_237 = arith.constant dense<0.000000e+00> : vector<16x32xf32>
    %578 = tpu.matmul %576, %577, %cst_237 {dimension_numbers = #tpu.dot_dimension_numbers<[1], [0], [0], [1], [0, 0, 1, 1], [], []>} : vector<16x8xf32>, vector<8x32xf32>, vector<16x32xf32> -> vector<16x32xf32>
    %579 = arith.addf %559, %578 : vector<16x32xf32>
    %580 = vector.extract_strided_slice %536 {offsets = [0, 0, 16], sizes = [2, 8, 8], strides = [1, 1, 1]} : vector<2x8x32xf32> to vector<2x8x8xf32>
    %581 = vector.extract_strided_slice %537 {offsets = [0, 0, 16], sizes = [2, 8, 8], strides = [1, 1, 1]} : vector<2x8x32xf32> to vector<2x8x8xf32>
    "tpu.trace_start"() <{level = 10 : i32, message = "bqd,bkd->bqk"}> : () -> ()
    %cst_238 = arith.constant dense<0.000000e+00> : vector<2x8x8xf32>
    %582 = tpu.matmul %580, %581, %cst_238 {dimension_numbers = #tpu.dot_dimension_numbers<[2], [2], [1], [1], [0, 0, 0, 1, 1, 1], [0], [0]>} : vector<2x8x8xf32>, vector<2x8x8xf32>, vector<2x8x8xf32> -> vector<2x8x8xf32>
    "tpu.trace_stop"() : () -> ()
    %583 = vector.broadcast %6 : vector<2x1x8xf32> to vector<2x8x8xf32>
    %584 = arith.addf %582, %583 : vector<2x8x8xf32>
    %cst_239 = arith.constant dense<0xFF800000> : vector<2x8xf32>
    %585 = vector.multi_reduction <maximumf>, %584, %cst_239 [2] : vector<2x8x8xf32> to vector<2x8xf32>
    %586 = vector.shape_cast %585 : vector<2x8xf32> to vector<2x8x1xf32>
    %587 = vector.broadcast %586 : vector<2x8x1xf32> to vector<2x8x8xf32>
    %588 = arith.subf %584, %587 : vector<2x8x8xf32>
    %589 = math.exp %588 : vector<2x8x8xf32>
    %cst_240 = arith.constant dense<0.000000e+00> : vector<2x8xf32>
    %590 = vector.multi_reduction <add>, %589, %cst_240 [2] : vector<2x8x8xf32> to vector<2x8xf32>
    %591 = vector.shape_cast %590 : vector<2x8xf32> to vector<2x8x1xf32>
    %592 = vector.broadcast %591 : vector<2x8x1xf32> to vector<2x8x8xf32>
    %593 = arith.divf %589, %592 : vector<2x8x8xf32>
    %594 = vector.extract_strided_slice %538 {offsets = [0, 0, 16], sizes = [2, 8, 8], strides = [1, 1, 1]} : vector<2x8x32xf32> to vector<2x8x8xf32>
    "tpu.trace_start"() <{level = 10 : i32, message = "bqk,bkd->bqd"}> : () -> ()
    %cst_241 = arith.constant dense<0.000000e+00> : vector<2x8x8xf32>
    %595 = tpu.matmul %593, %594, %cst_241 {dimension_numbers = #tpu.dot_dimension_numbers<[2], [1], [1], [2], [0, 0, 0, 1, 1, 2], [0], [0]>} : vector<2x8x8xf32>, vector<2x8x8xf32>, vector<2x8x8xf32> -> vector<2x8x8xf32>
    "tpu.trace_stop"() : () -> ()
    %596 = vector.shape_cast %595 : vector<2x8x8xf32> to vector<16x8xf32>
    %597 = vector.extract_strided_slice %533 {offsets = [16, 0], sizes = [8, 32], strides = [1, 1]} : vector<32x32xf32> to vector<8x32xf32>
    %cst_242 = arith.constant dense<0.000000e+00> : vector<16x32xf32>
    %598 = tpu.matmul %596, %597, %cst_242 {dimension_numbers = #tpu.dot_dimension_numbers<[1], [0], [0], [1], [0, 0, 1, 1], [], []>} : vector<16x8xf32>, vector<8x32xf32>, vector<16x32xf32> -> vector<16x32xf32>
    %599 = arith.addf %579, %598 : vector<16x32xf32>
    %600 = vector.extract_strided_slice %536 {offsets = [0, 0, 24], sizes = [2, 8, 8], strides = [1, 1, 1]} : vector<2x8x32xf32> to vector<2x8x8xf32>
    %601 = vector.extract_strided_slice %537 {offsets = [0, 0, 24], sizes = [2, 8, 8], strides = [1, 1, 1]} : vector<2x8x32xf32> to vector<2x8x8xf32>
    "tpu.trace_start"() <{level = 10 : i32, message = "bqd,bkd->bqk"}> : () -> ()
    %cst_243 = arith.constant dense<0.000000e+00> : vector<2x8x8xf32>
    %602 = tpu.matmul %600, %601, %cst_243 {dimension_numbers = #tpu.dot_dimension_numbers<[2], [2], [1], [1], [0, 0, 0, 1, 1, 1], [0], [0]>} : vector<2x8x8xf32>, vector<2x8x8xf32>, vector<2x8x8xf32> -> vector<2x8x8xf32>
    "tpu.trace_stop"() : () -> ()
    %603 = vector.broadcast %6 : vector<2x1x8xf32> to vector<2x8x8xf32>
    %604 = arith.addf %602, %603 : vector<2x8x8xf32>
    %cst_244 = arith.constant dense<0xFF800000> : vector<2x8xf32>
    %605 = vector.multi_reduction <maximumf>, %604, %cst_244 [2] : vector<2x8x8xf32> to vector<2x8xf32>
    %606 = vector.shape_cast %605 : vector<2x8xf32> to vector<2x8x1xf32>
    %607 = vector.broadcast %606 : vector<2x8x1xf32> to vector<2x8x8xf32>
    %608 = arith.subf %604, %607 : vector<2x8x8xf32>
    %609 = math.exp %608 : vector<2x8x8xf32>
    %cst_245 = arith.constant dense<0.000000e+00> : vector<2x8xf32>
    %610 = vector.multi_reduction <add>, %609, %cst_245 [2] : vector<2x8x8xf32> to vector<2x8xf32>
    %611 = vector.shape_cast %610 : vector<2x8xf32> to vector<2x8x1xf32>
    %612 = vector.broadcast %611 : vector<2x8x1xf32> to vector<2x8x8xf32>
    %613 = arith.divf %609, %612 : vector<2x8x8xf32>
    %614 = vector.extract_strided_slice %538 {offsets = [0, 0, 24], sizes = [2, 8, 8], strides = [1, 1, 1]} : vector<2x8x32xf32> to vector<2x8x8xf32>
    "tpu.trace_start"() <{level = 10 : i32, message = "bqk,bkd->bqd"}> : () -> ()
    %cst_246 = arith.constant dense<0.000000e+00> : vector<2x8x8xf32>
    %615 = tpu.matmul %613, %614, %cst_246 {dimension_numbers = #tpu.dot_dimension_numbers<[2], [1], [1], [2], [0, 0, 0, 1, 1, 2], [0], [0]>} : vector<2x8x8xf32>, vector<2x8x8xf32>, vector<2x8x8xf32> -> vector<2x8x8xf32>
    "tpu.trace_stop"() : () -> ()
    %616 = vector.shape_cast %615 : vector<2x8x8xf32> to vector<16x8xf32>
    %617 = vector.extract_strided_slice %533 {offsets = [24, 0], sizes = [8, 32], strides = [1, 1]} : vector<32x32xf32> to vector<8x32xf32>
    %cst_247 = arith.constant dense<0.000000e+00> : vector<16x32xf32>
    %618 = tpu.matmul %616, %617, %cst_247 {dimension_numbers = #tpu.dot_dimension_numbers<[1], [0], [0], [1], [0, 0, 1, 1], [], []>} : vector<16x8xf32>, vector<8x32xf32>, vector<16x32xf32> -> vector<16x32xf32>
    %619 = arith.addf %599, %618 : vector<16x32xf32>
    %620 = vector.broadcast %535 : vector<1x32xf32> to vector<16x32xf32>
    %621 = arith.addf %619, %620 : vector<16x32xf32>
    %622 = arith.addf %522, %621 : vector<16x32xf32>
    %c0_248 = arith.constant 0 : index
    %c0_249 = arith.constant 0 : index
    %c0_250 = arith.constant 0 : index
    %623 = vector.load %arg32[%c0_248, %c0_249, %c0_250] : memref<2x1x32xf32, #tpu.memory_space<vmem>>, vector<1x1x32xf32>
    %624 = vector.shape_cast %623 : vector<1x1x32xf32> to vector<1x32xf32>
    %c0_251 = arith.constant 0 : index
    %c0_252 = arith.constant 0 : index
    %c0_253 = arith.constant 0 : index
    %625 = vector.load %arg33[%c0_251, %c0_252, %c0_253] : memref<2x1x32xf32, #tpu.memory_space<vmem>>, vector<1x1x32xf32>
    %626 = vector.shape_cast %625 : vector<1x1x32xf32> to vector<1x32xf32>
    %cst_254 = arith.constant dense<0.000000e+00> : vector<16xf32>
    %627 = vector.multi_reduction <add>, %622, %cst_254 [1] : vector<16x32xf32> to vector<16xf32>
    %628 = vector.shape_cast %627 : vector<16xf32> to vector<16x1xf32>
    %cst_255 = arith.constant 3.200000e+01 : f32
    %629 = vector.broadcast %cst_255 : f32 to vector<16x1xf32>
    %630 = arith.divf %628, %629 : vector<16x1xf32>
    %631 = vector.broadcast %630 : vector<16x1xf32> to vector<16x32xf32>
    %632 = arith.subf %622, %631 : vector<16x32xf32>
    %633 = arith.mulf %632, %632 : vector<16x32xf32>
    %cst_256 = arith.constant dense<0.000000e+00> : vector<16xf32>
    %634 = vector.multi_reduction <add>, %633, %cst_256 [1] : vector<16x32xf32> to vector<16xf32>
    %635 = vector.shape_cast %634 : vector<16xf32> to vector<16x1xf32>
    %cst_257 = arith.constant 3.200000e+01 : f32
    %636 = vector.broadcast %cst_257 : f32 to vector<16x1xf32>
    %637 = arith.divf %635, %636 : vector<16x1xf32>
    %638 = vector.broadcast %630 : vector<16x1xf32> to vector<16x32xf32>
    %639 = arith.subf %622, %638 : vector<16x32xf32>
    %cst_258 = arith.constant 9.99999974E-6 : f32
    %640 = vector.broadcast %cst_258 : f32 to vector<16x1xf32>
    %641 = arith.addf %637, %640 : vector<16x1xf32>
    %642 = math.rsqrt %641 : vector<16x1xf32>
    %643 = vector.broadcast %642 : vector<16x1xf32> to vector<16x32xf32>
    %644 = arith.mulf %639, %643 : vector<16x32xf32>
    %645 = vector.broadcast %624 : vector<1x32xf32> to vector<16x32xf32>
    %646 = arith.mulf %644, %645 : vector<16x32xf32>
    %647 = vector.broadcast %626 : vector<1x32xf32> to vector<16x32xf32>
    %648 = arith.addf %646, %647 : vector<16x32xf32>
    %c0_259 = arith.constant 0 : index
    %c0_260 = arith.constant 0 : index
    %c0_261 = arith.constant 0 : index
    %649 = vector.load %arg34[%c0_259, %c0_260, %c0_261] : memref<2x32x64xf32, #tpu.memory_space<vmem>>, vector<1x32x64xf32>
    %650 = vector.shape_cast %649 : vector<1x32x64xf32> to vector<32x64xf32>
    %c0_262 = arith.constant 0 : index
    %c0_263 = arith.constant 0 : index
    %c0_264 = arith.constant 0 : index
    %651 = vector.load %arg35[%c0_262, %c0_263, %c0_264] : memref<2x1x64xf32, #tpu.memory_space<vmem>>, vector<1x1x64xf32>
    %652 = vector.shape_cast %651 : vector<1x1x64xf32> to vector<1x64xf32>
    %c0_265 = arith.constant 0 : index
    %c0_266 = arith.constant 0 : index
    %c0_267 = arith.constant 0 : index
    %653 = vector.load %arg36[%c0_265, %c0_266, %c0_267] : memref<2x64x32xf32, #tpu.memory_space<vmem>>, vector<1x64x32xf32>
    %654 = vector.shape_cast %653 : vector<1x64x32xf32> to vector<64x32xf32>
    %c0_268 = arith.constant 0 : index
    %c0_269 = arith.constant 0 : index
    %c0_270 = arith.constant 0 : index
    %655 = vector.load %arg37[%c0_268, %c0_269, %c0_270] : memref<2x1x32xf32, #tpu.memory_space<vmem>>, vector<1x1x32xf32>
    %656 = vector.shape_cast %655 : vector<1x1x32xf32> to vector<1x32xf32>
    %cst_271 = arith.constant dense<0.000000e+00> : vector<16x64xf32>
    %657 = tpu.matmul %648, %650, %cst_271 {dimension_numbers = #tpu.dot_dimension_numbers<[1], [0], [0], [1], [0, 0, 1, 1], [], []>} : vector<16x32xf32>, vector<32x64xf32>, vector<16x64xf32> -> vector<16x64xf32>
    %658 = vector.broadcast %652 : vector<1x64xf32> to vector<16x64xf32>
    %659 = arith.addf %657, %658 : vector<16x64xf32>
    %cst_272 = arith.constant 0.000000e+00 : f32
    %660 = vector.broadcast %cst_272 : f32 to vector<16x64xf32>
    %661 = arith.maximumf %659, %660 : vector<16x64xf32>
    %cst_273 = arith.constant dense<0.000000e+00> : vector<16x32xf32>
    %662 = tpu.matmul %661, %654, %cst_273 {dimension_numbers = #tpu.dot_dimension_numbers<[1], [0], [0], [1], [0, 0, 1, 1], [], []>} : vector<16x64xf32>, vector<64x32xf32>, vector<16x32xf32> -> vector<16x32xf32>
    %663 = vector.broadcast %656 : vector<1x32xf32> to vector<16x32xf32>
    %664 = arith.addf %662, %663 : vector<16x32xf32>
    %665 = arith.addf %648, %664 : vector<16x32xf32>
    %c0_274 = arith.constant 0 : index
    %c0_275 = arith.constant 0 : index
    %c0_276 = arith.constant 0 : index
    %666 = vector.load %arg38[%c0_274, %c0_275, %c0_276] : memref<2x1x32xf32, #tpu.memory_space<vmem>>, vector<1x1x32xf32>
    %667 = vector.shape_cast %666 : vector<1x1x32xf32> to vector<1x32xf32>
    %c0_277 = arith.constant 0 : index
    %c0_278 = arith.constant 0 : index
    %c0_279 = arith.constant 0 : index
    %668 = vector.load %arg39[%c0_277, %c0_278, %c0_279] : memref<2x1x32xf32, #tpu.memory_space<vmem>>, vector<1x1x32xf32>
    %669 = vector.shape_cast %668 : vector<1x1x32xf32> to vector<1x32xf32>
    %cst_280 = arith.constant dense<0.000000e+00> : vector<16xf32>
    %670 = vector.multi_reduction <add>, %665, %cst_280 [1] : vector<16x32xf32> to vector<16xf32>
    %671 = vector.shape_cast %670 : vector<16xf32> to vector<16x1xf32>
    %cst_281 = arith.constant 3.200000e+01 : f32
    %672 = vector.broadcast %cst_281 : f32 to vector<16x1xf32>
    %673 = arith.divf %671, %672 : vector<16x1xf32>
    %674 = vector.broadcast %673 : vector<16x1xf32> to vector<16x32xf32>
    %675 = arith.subf %665, %674 : vector<16x32xf32>
    %676 = arith.mulf %675, %675 : vector<16x32xf32>
    %cst_282 = arith.constant dense<0.000000e+00> : vector<16xf32>
    %677 = vector.multi_reduction <add>, %676, %cst_282 [1] : vector<16x32xf32> to vector<16xf32>
    %678 = vector.shape_cast %677 : vector<16xf32> to vector<16x1xf32>
    %cst_283 = arith.constant 3.200000e+01 : f32
    %679 = vector.broadcast %cst_283 : f32 to vector<16x1xf32>
    %680 = arith.divf %678, %679 : vector<16x1xf32>
    %681 = vector.broadcast %673 : vector<16x1xf32> to vector<16x32xf32>
    %682 = arith.subf %665, %681 : vector<16x32xf32>
    %cst_284 = arith.constant 9.99999974E-6 : f32
    %683 = vector.broadcast %cst_284 : f32 to vector<16x1xf32>
    %684 = arith.addf %680, %683 : vector<16x1xf32>
    %685 = math.rsqrt %684 : vector<16x1xf32>
    %686 = vector.broadcast %685 : vector<16x1xf32> to vector<16x32xf32>
    %687 = arith.mulf %682, %686 : vector<16x32xf32>
    %688 = vector.broadcast %667 : vector<1x32xf32> to vector<16x32xf32>
    %689 = arith.mulf %687, %688 : vector<16x32xf32>
    %690 = vector.broadcast %669 : vector<1x32xf32> to vector<16x32xf32>
    %691 = arith.addf %689, %690 : vector<16x32xf32>
    %c1_285 = arith.constant 1 : index
    %c0_286 = arith.constant 0 : index
    %c0_287 = arith.constant 0 : index
    %692 = vector.load %arg20[%c1_285, %c0_286, %c0_287] : memref<2x32x96xf32, #tpu.memory_space<vmem>>, vector<1x32x96xf32>
    %693 = vector.shape_cast %692 : vector<1x32x96xf32> to vector<32x96xf32>
    %cst_288 = arith.constant dense<0.000000e+00> : vector<16x96xf32>
    %694 = tpu.matmul %691, %693, %cst_288 {dimension_numbers = #tpu.dot_dimension_numbers<[1], [0], [0], [1], [0, 0, 1, 1], [], []>} : vector<16x32xf32>, vector<32x96xf32>, vector<16x96xf32> -> vector<16x96xf32>
    %c1_289 = arith.constant 1 : index
    %c0_290 = arith.constant 0 : index
    %c0_291 = arith.constant 0 : index
    %695 = vector.load %arg21[%c1_289, %c0_290, %c0_291] : memref<2x1x96xf32, #tpu.memory_space<vmem>>, vector<1x1x96xf32>
    %696 = vector.shape_cast %695 : vector<1x1x96xf32> to vector<1x96xf32>
    %697 = vector.broadcast %696 : vector<1x96xf32> to vector<16x96xf32>
    %698 = arith.addf %694, %697 : vector<16x96xf32>
    %699 = vector.extract_strided_slice %698 {offsets = [0, 0], sizes = [16, 32], strides = [1, 1]} : vector<16x96xf32> to vector<16x32xf32>
    %700 = vector.extract_strided_slice %698 {offsets = [0, 32], sizes = [16, 32], strides = [1, 1]} : vector<16x96xf32> to vector<16x32xf32>
    %701 = vector.extract_strided_slice %698 {offsets = [0, 64], sizes = [16, 32], strides = [1, 1]} : vector<16x96xf32> to vector<16x32xf32>
    %c1_292 = arith.constant 1 : index
    %c0_293 = arith.constant 0 : index
    %c0_294 = arith.constant 0 : index
    %702 = vector.load %arg22[%c1_292, %c0_293, %c0_294] : memref<2x32x32xf32, #tpu.memory_space<vmem>>, vector<1x32x32xf32>
    %703 = vector.shape_cast %702 : vector<1x32x32xf32> to vector<32x32xf32>
    %c1_295 = arith.constant 1 : index
    %c0_296 = arith.constant 0 : index
    %c0_297 = arith.constant 0 : index
    %704 = vector.load %arg23[%c1_295, %c0_296, %c0_297] : memref<2x1x32xf32, #tpu.memory_space<vmem>>, vector<1x1x32xf32>
    %705 = vector.shape_cast %704 : vector<1x1x32xf32> to vector<1x32xf32>
    %706 = vector.shape_cast %699 : vector<16x32xf32> to vector<2x8x32xf32>
    %707 = vector.shape_cast %700 : vector<16x32xf32> to vector<2x8x32xf32>
    %708 = vector.shape_cast %701 : vector<16x32xf32> to vector<2x8x32xf32>
    %cst_298 = arith.constant 0.000000e+00 : f32
    %709 = vector.broadcast %cst_298 : f32 to vector<16x32xf32>
    %710 = vector.extract_strided_slice %706 {offsets = [0, 0, 0], sizes = [2, 8, 8], strides = [1, 1, 1]} : vector<2x8x32xf32> to vector<2x8x8xf32>
    %711 = vector.extract_strided_slice %707 {offsets = [0, 0, 0], sizes = [2, 8, 8], strides = [1, 1, 1]} : vector<2x8x32xf32> to vector<2x8x8xf32>
    "tpu.trace_start"() <{level = 10 : i32, message = "bqd,bkd->bqk"}> : () -> ()
    %cst_299 = arith.constant dense<0.000000e+00> : vector<2x8x8xf32>
    %712 = tpu.matmul %710, %711, %cst_299 {dimension_numbers = #tpu.dot_dimension_numbers<[2], [2], [1], [1], [0, 0, 0, 1, 1, 1], [0], [0]>} : vector<2x8x8xf32>, vector<2x8x8xf32>, vector<2x8x8xf32> -> vector<2x8x8xf32>
    "tpu.trace_stop"() : () -> ()
    %713 = arith.addf %712, %20 : vector<2x8x8xf32>
    %cst_300 = arith.constant dense<0xFF800000> : vector<2x8xf32>
    %714 = vector.multi_reduction <maximumf>, %713, %cst_300 [2] : vector<2x8x8xf32> to vector<2x8xf32>
    %715 = vector.shape_cast %714 : vector<2x8xf32> to vector<2x8x1xf32>
    %716 = vector.broadcast %715 : vector<2x8x1xf32> to vector<2x8x8xf32>
    %717 = arith.subf %713, %716 : vector<2x8x8xf32>
    %718 = math.exp %717 : vector<2x8x8xf32>
    %cst_301 = arith.constant dense<0.000000e+00> : vector<2x8xf32>
    %719 = vector.multi_reduction <add>, %718, %cst_301 [2] : vector<2x8x8xf32> to vector<2x8xf32>
    %720 = vector.shape_cast %719 : vector<2x8xf32> to vector<2x8x1xf32>
    %721 = vector.broadcast %720 : vector<2x8x1xf32> to vector<2x8x8xf32>
    %722 = arith.divf %718, %721 : vector<2x8x8xf32>
    %723 = vector.extract_strided_slice %708 {offsets = [0, 0, 0], sizes = [2, 8, 8], strides = [1, 1, 1]} : vector<2x8x32xf32> to vector<2x8x8xf32>
    "tpu.trace_start"() <{level = 10 : i32, message = "bqk,bkd->bqd"}> : () -> ()
    %cst_302 = arith.constant dense<0.000000e+00> : vector<2x8x8xf32>
    %724 = tpu.matmul %722, %723, %cst_302 {dimension_numbers = #tpu.dot_dimension_numbers<[2], [1], [1], [2], [0, 0, 0, 1, 1, 2], [0], [0]>} : vector<2x8x8xf32>, vector<2x8x8xf32>, vector<2x8x8xf32> -> vector<2x8x8xf32>
    "tpu.trace_stop"() : () -> ()
    %725 = vector.shape_cast %724 : vector<2x8x8xf32> to vector<16x8xf32>
    %726 = vector.extract_strided_slice %703 {offsets = [0, 0], sizes = [8, 32], strides = [1, 1]} : vector<32x32xf32> to vector<8x32xf32>
    %cst_303 = arith.constant dense<0.000000e+00> : vector<16x32xf32>
    %727 = tpu.matmul %725, %726, %cst_303 {dimension_numbers = #tpu.dot_dimension_numbers<[1], [0], [0], [1], [0, 0, 1, 1], [], []>} : vector<16x8xf32>, vector<8x32xf32>, vector<16x32xf32> -> vector<16x32xf32>
    %728 = arith.addf %709, %727 : vector<16x32xf32>
    %729 = vector.extract_strided_slice %706 {offsets = [0, 0, 8], sizes = [2, 8, 8], strides = [1, 1, 1]} : vector<2x8x32xf32> to vector<2x8x8xf32>
    %730 = vector.extract_strided_slice %707 {offsets = [0, 0, 8], sizes = [2, 8, 8], strides = [1, 1, 1]} : vector<2x8x32xf32> to vector<2x8x8xf32>
    "tpu.trace_start"() <{level = 10 : i32, message = "bqd,bkd->bqk"}> : () -> ()
    %cst_304 = arith.constant dense<0.000000e+00> : vector<2x8x8xf32>
    %731 = tpu.matmul %729, %730, %cst_304 {dimension_numbers = #tpu.dot_dimension_numbers<[2], [2], [1], [1], [0, 0, 0, 1, 1, 1], [0], [0]>} : vector<2x8x8xf32>, vector<2x8x8xf32>, vector<2x8x8xf32> -> vector<2x8x8xf32>
    "tpu.trace_stop"() : () -> ()
    %732 = arith.addf %731, %20 : vector<2x8x8xf32>
    %cst_305 = arith.constant dense<0xFF800000> : vector<2x8xf32>
    %733 = vector.multi_reduction <maximumf>, %732, %cst_305 [2] : vector<2x8x8xf32> to vector<2x8xf32>
    %734 = vector.shape_cast %733 : vector<2x8xf32> to vector<2x8x1xf32>
    %735 = vector.broadcast %734 : vector<2x8x1xf32> to vector<2x8x8xf32>
    %736 = arith.subf %732, %735 : vector<2x8x8xf32>
    %737 = math.exp %736 : vector<2x8x8xf32>
    %cst_306 = arith.constant dense<0.000000e+00> : vector<2x8xf32>
    %738 = vector.multi_reduction <add>, %737, %cst_306 [2] : vector<2x8x8xf32> to vector<2x8xf32>
    %739 = vector.shape_cast %738 : vector<2x8xf32> to vector<2x8x1xf32>
    %740 = vector.broadcast %739 : vector<2x8x1xf32> to vector<2x8x8xf32>
    %741 = arith.divf %737, %740 : vector<2x8x8xf32>
    %742 = vector.extract_strided_slice %708 {offsets = [0, 0, 8], sizes = [2, 8, 8], strides = [1, 1, 1]} : vector<2x8x32xf32> to vector<2x8x8xf32>
    "tpu.trace_start"() <{level = 10 : i32, message = "bqk,bkd->bqd"}> : () -> ()
    %cst_307 = arith.constant dense<0.000000e+00> : vector<2x8x8xf32>
    %743 = tpu.matmul %741, %742, %cst_307 {dimension_numbers = #tpu.dot_dimension_numbers<[2], [1], [1], [2], [0, 0, 0, 1, 1, 2], [0], [0]>} : vector<2x8x8xf32>, vector<2x8x8xf32>, vector<2x8x8xf32> -> vector<2x8x8xf32>
    "tpu.trace_stop"() : () -> ()
    %744 = vector.shape_cast %743 : vector<2x8x8xf32> to vector<16x8xf32>
    %745 = vector.extract_strided_slice %703 {offsets = [8, 0], sizes = [8, 32], strides = [1, 1]} : vector<32x32xf32> to vector<8x32xf32>
    %cst_308 = arith.constant dense<0.000000e+00> : vector<16x32xf32>
    %746 = tpu.matmul %744, %745, %cst_308 {dimension_numbers = #tpu.dot_dimension_numbers<[1], [0], [0], [1], [0, 0, 1, 1], [], []>} : vector<16x8xf32>, vector<8x32xf32>, vector<16x32xf32> -> vector<16x32xf32>
    %747 = arith.addf %728, %746 : vector<16x32xf32>
    %748 = vector.extract_strided_slice %706 {offsets = [0, 0, 16], sizes = [2, 8, 8], strides = [1, 1, 1]} : vector<2x8x32xf32> to vector<2x8x8xf32>
    %749 = vector.extract_strided_slice %707 {offsets = [0, 0, 16], sizes = [2, 8, 8], strides = [1, 1, 1]} : vector<2x8x32xf32> to vector<2x8x8xf32>
    "tpu.trace_start"() <{level = 10 : i32, message = "bqd,bkd->bqk"}> : () -> ()
    %cst_309 = arith.constant dense<0.000000e+00> : vector<2x8x8xf32>
    %750 = tpu.matmul %748, %749, %cst_309 {dimension_numbers = #tpu.dot_dimension_numbers<[2], [2], [1], [1], [0, 0, 0, 1, 1, 1], [0], [0]>} : vector<2x8x8xf32>, vector<2x8x8xf32>, vector<2x8x8xf32> -> vector<2x8x8xf32>
    "tpu.trace_stop"() : () -> ()
    %751 = arith.addf %750, %20 : vector<2x8x8xf32>
    %cst_310 = arith.constant dense<0xFF800000> : vector<2x8xf32>
    %752 = vector.multi_reduction <maximumf>, %751, %cst_310 [2] : vector<2x8x8xf32> to vector<2x8xf32>
    %753 = vector.shape_cast %752 : vector<2x8xf32> to vector<2x8x1xf32>
    %754 = vector.broadcast %753 : vector<2x8x1xf32> to vector<2x8x8xf32>
    %755 = arith.subf %751, %754 : vector<2x8x8xf32>
    %756 = math.exp %755 : vector<2x8x8xf32>
    %cst_311 = arith.constant dense<0.000000e+00> : vector<2x8xf32>
    %757 = vector.multi_reduction <add>, %756, %cst_311 [2] : vector<2x8x8xf32> to vector<2x8xf32>
    %758 = vector.shape_cast %757 : vector<2x8xf32> to vector<2x8x1xf32>
    %759 = vector.broadcast %758 : vector<2x8x1xf32> to vector<2x8x8xf32>
    %760 = arith.divf %756, %759 : vector<2x8x8xf32>
    %761 = vector.extract_strided_slice %708 {offsets = [0, 0, 16], sizes = [2, 8, 8], strides = [1, 1, 1]} : vector<2x8x32xf32> to vector<2x8x8xf32>
    "tpu.trace_start"() <{level = 10 : i32, message = "bqk,bkd->bqd"}> : () -> ()
    %cst_312 = arith.constant dense<0.000000e+00> : vector<2x8x8xf32>
    %762 = tpu.matmul %760, %761, %cst_312 {dimension_numbers = #tpu.dot_dimension_numbers<[2], [1], [1], [2], [0, 0, 0, 1, 1, 2], [0], [0]>} : vector<2x8x8xf32>, vector<2x8x8xf32>, vector<2x8x8xf32> -> vector<2x8x8xf32>
    "tpu.trace_stop"() : () -> ()
    %763 = vector.shape_cast %762 : vector<2x8x8xf32> to vector<16x8xf32>
    %764 = vector.extract_strided_slice %703 {offsets = [16, 0], sizes = [8, 32], strides = [1, 1]} : vector<32x32xf32> to vector<8x32xf32>
    %cst_313 = arith.constant dense<0.000000e+00> : vector<16x32xf32>
    %765 = tpu.matmul %763, %764, %cst_313 {dimension_numbers = #tpu.dot_dimension_numbers<[1], [0], [0], [1], [0, 0, 1, 1], [], []>} : vector<16x8xf32>, vector<8x32xf32>, vector<16x32xf32> -> vector<16x32xf32>
    %766 = arith.addf %747, %765 : vector<16x32xf32>
    %767 = vector.extract_strided_slice %706 {offsets = [0, 0, 24], sizes = [2, 8, 8], strides = [1, 1, 1]} : vector<2x8x32xf32> to vector<2x8x8xf32>
    %768 = vector.extract_strided_slice %707 {offsets = [0, 0, 24], sizes = [2, 8, 8], strides = [1, 1, 1]} : vector<2x8x32xf32> to vector<2x8x8xf32>
    "tpu.trace_start"() <{level = 10 : i32, message = "bqd,bkd->bqk"}> : () -> ()
    %cst_314 = arith.constant dense<0.000000e+00> : vector<2x8x8xf32>
    %769 = tpu.matmul %767, %768, %cst_314 {dimension_numbers = #tpu.dot_dimension_numbers<[2], [2], [1], [1], [0, 0, 0, 1, 1, 1], [0], [0]>} : vector<2x8x8xf32>, vector<2x8x8xf32>, vector<2x8x8xf32> -> vector<2x8x8xf32>
    "tpu.trace_stop"() : () -> ()
    %770 = arith.addf %769, %20 : vector<2x8x8xf32>
    %cst_315 = arith.constant dense<0xFF800000> : vector<2x8xf32>
    %771 = vector.multi_reduction <maximumf>, %770, %cst_315 [2] : vector<2x8x8xf32> to vector<2x8xf32>
    %772 = vector.shape_cast %771 : vector<2x8xf32> to vector<2x8x1xf32>
    %773 = vector.broadcast %772 : vector<2x8x1xf32> to vector<2x8x8xf32>
    %774 = arith.subf %770, %773 : vector<2x8x8xf32>
    %775 = math.exp %774 : vector<2x8x8xf32>
    %cst_316 = arith.constant dense<0.000000e+00> : vector<2x8xf32>
    %776 = vector.multi_reduction <add>, %775, %cst_316 [2] : vector<2x8x8xf32> to vector<2x8xf32>
    %777 = vector.shape_cast %776 : vector<2x8xf32> to vector<2x8x1xf32>
    %778 = vector.broadcast %777 : vector<2x8x1xf32> to vector<2x8x8xf32>
    %779 = arith.divf %775, %778 : vector<2x8x8xf32>
    %780 = vector.extract_strided_slice %708 {offsets = [0, 0, 24], sizes = [2, 8, 8], strides = [1, 1, 1]} : vector<2x8x32xf32> to vector<2x8x8xf32>
    "tpu.trace_start"() <{level = 10 : i32, message = "bqk,bkd->bqd"}> : () -> ()
    %cst_317 = arith.constant dense<0.000000e+00> : vector<2x8x8xf32>
    %781 = tpu.matmul %779, %780, %cst_317 {dimension_numbers = #tpu.dot_dimension_numbers<[2], [1], [1], [2], [0, 0, 0, 1, 1, 2], [0], [0]>} : vector<2x8x8xf32>, vector<2x8x8xf32>, vector<2x8x8xf32> -> vector<2x8x8xf32>
    "tpu.trace_stop"() : () -> ()
    %782 = vector.shape_cast %781 : vector<2x8x8xf32> to vector<16x8xf32>
    %783 = vector.extract_strided_slice %703 {offsets = [24, 0], sizes = [8, 32], strides = [1, 1]} : vector<32x32xf32> to vector<8x32xf32>
    %cst_318 = arith.constant dense<0.000000e+00> : vector<16x32xf32>
    %784 = tpu.matmul %782, %783, %cst_318 {dimension_numbers = #tpu.dot_dimension_numbers<[1], [0], [0], [1], [0, 0, 1, 1], [], []>} : vector<16x8xf32>, vector<8x32xf32>, vector<16x32xf32> -> vector<16x32xf32>
    %785 = arith.addf %766, %784 : vector<16x32xf32>
    %786 = vector.broadcast %705 : vector<1x32xf32> to vector<16x32xf32>
    %787 = arith.addf %785, %786 : vector<16x32xf32>
    %788 = arith.addf %691, %787 : vector<16x32xf32>
    %c1_319 = arith.constant 1 : index
    %c0_320 = arith.constant 0 : index
    %c0_321 = arith.constant 0 : index
    %789 = vector.load %arg24[%c1_319, %c0_320, %c0_321] : memref<2x1x32xf32, #tpu.memory_space<vmem>>, vector<1x1x32xf32>
    %790 = vector.shape_cast %789 : vector<1x1x32xf32> to vector<1x32xf32>
    %c1_322 = arith.constant 1 : index
    %c0_323 = arith.constant 0 : index
    %c0_324 = arith.constant 0 : index
    %791 = vector.load %arg25[%c1_322, %c0_323, %c0_324] : memref<2x1x32xf32, #tpu.memory_space<vmem>>, vector<1x1x32xf32>
    %792 = vector.shape_cast %791 : vector<1x1x32xf32> to vector<1x32xf32>
    %cst_325 = arith.constant dense<0.000000e+00> : vector<16xf32>
    %793 = vector.multi_reduction <add>, %788, %cst_325 [1] : vector<16x32xf32> to vector<16xf32>
    %794 = vector.shape_cast %793 : vector<16xf32> to vector<16x1xf32>
    %cst_326 = arith.constant 3.200000e+01 : f32
    %795 = vector.broadcast %cst_326 : f32 to vector<16x1xf32>
    %796 = arith.divf %794, %795 : vector<16x1xf32>
    %797 = vector.broadcast %796 : vector<16x1xf32> to vector<16x32xf32>
    %798 = arith.subf %788, %797 : vector<16x32xf32>
    %799 = arith.mulf %798, %798 : vector<16x32xf32>
    %cst_327 = arith.constant dense<0.000000e+00> : vector<16xf32>
    %800 = vector.multi_reduction <add>, %799, %cst_327 [1] : vector<16x32xf32> to vector<16xf32>
    %801 = vector.shape_cast %800 : vector<16xf32> to vector<16x1xf32>
    %cst_328 = arith.constant 3.200000e+01 : f32
    %802 = vector.broadcast %cst_328 : f32 to vector<16x1xf32>
    %803 = arith.divf %801, %802 : vector<16x1xf32>
    %804 = vector.broadcast %796 : vector<16x1xf32> to vector<16x32xf32>
    %805 = arith.subf %788, %804 : vector<16x32xf32>
    %cst_329 = arith.constant 9.99999974E-6 : f32
    %806 = vector.broadcast %cst_329 : f32 to vector<16x1xf32>
    %807 = arith.addf %803, %806 : vector<16x1xf32>
    %808 = math.rsqrt %807 : vector<16x1xf32>
    %809 = vector.broadcast %808 : vector<16x1xf32> to vector<16x32xf32>
    %810 = arith.mulf %805, %809 : vector<16x32xf32>
    %811 = vector.broadcast %790 : vector<1x32xf32> to vector<16x32xf32>
    %812 = arith.mulf %810, %811 : vector<16x32xf32>
    %813 = vector.broadcast %792 : vector<1x32xf32> to vector<16x32xf32>
    %814 = arith.addf %812, %813 : vector<16x32xf32>
    %c1_330 = arith.constant 1 : index
    %c0_331 = arith.constant 0 : index
    %c0_332 = arith.constant 0 : index
    %815 = vector.load %arg26[%c1_330, %c0_331, %c0_332] : memref<2x32x32xf32, #tpu.memory_space<vmem>>, vector<1x32x32xf32>
    %816 = vector.shape_cast %815 : vector<1x32x32xf32> to vector<32x32xf32>
    %cst_333 = arith.constant dense<0.000000e+00> : vector<16x32xf32>
    %817 = tpu.matmul %814, %816, %cst_333 {dimension_numbers = #tpu.dot_dimension_numbers<[1], [0], [0], [1], [0, 0, 1, 1], [], []>} : vector<16x32xf32>, vector<32x32xf32>, vector<16x32xf32> -> vector<16x32xf32>
    %c1_334 = arith.constant 1 : index
    %c0_335 = arith.constant 0 : index
    %c0_336 = arith.constant 0 : index
    %818 = vector.load %arg27[%c1_334, %c0_335, %c0_336] : memref<2x1x32xf32, #tpu.memory_space<vmem>>, vector<1x1x32xf32>
    %819 = vector.shape_cast %818 : vector<1x1x32xf32> to vector<1x32xf32>
    %820 = vector.broadcast %819 : vector<1x32xf32> to vector<16x32xf32>
    %821 = arith.addf %817, %820 : vector<16x32xf32>
    %822 = vector.extract_strided_slice %382 {offsets = [0, 64], sizes = [16, 32], strides = [1, 1]} : vector<16x128xf32> to vector<16x32xf32>
    %823 = vector.extract_strided_slice %382 {offsets = [0, 96], sizes = [16, 32], strides = [1, 1]} : vector<16x128xf32> to vector<16x32xf32>
    %c1_337 = arith.constant 1 : index
    %c0_338 = arith.constant 0 : index
    %c0_339 = arith.constant 0 : index
    %824 = vector.load %arg30[%c1_337, %c0_338, %c0_339] : memref<2x32x32xf32, #tpu.memory_space<vmem>>, vector<1x32x32xf32>
    %825 = vector.shape_cast %824 : vector<1x32x32xf32> to vector<32x32xf32>
    %c1_340 = arith.constant 1 : index
    %c0_341 = arith.constant 0 : index
    %c0_342 = arith.constant 0 : index
    %826 = vector.load %arg31[%c1_340, %c0_341, %c0_342] : memref<2x1x32xf32, #tpu.memory_space<vmem>>, vector<1x1x32xf32>
    %827 = vector.shape_cast %826 : vector<1x1x32xf32> to vector<1x32xf32>
    %828 = vector.shape_cast %821 : vector<16x32xf32> to vector<2x8x32xf32>
    %829 = vector.shape_cast %822 : vector<16x32xf32> to vector<2x8x32xf32>
    %830 = vector.shape_cast %823 : vector<16x32xf32> to vector<2x8x32xf32>
    %cst_343 = arith.constant 0.000000e+00 : f32
    %831 = vector.broadcast %cst_343 : f32 to vector<16x32xf32>
    %832 = vector.extract_strided_slice %828 {offsets = [0, 0, 0], sizes = [2, 8, 8], strides = [1, 1, 1]} : vector<2x8x32xf32> to vector<2x8x8xf32>
    %833 = vector.extract_strided_slice %829 {offsets = [0, 0, 0], sizes = [2, 8, 8], strides = [1, 1, 1]} : vector<2x8x32xf32> to vector<2x8x8xf32>
    "tpu.trace_start"() <{level = 10 : i32, message = "bqd,bkd->bqk"}> : () -> ()
    %cst_344 = arith.constant dense<0.000000e+00> : vector<2x8x8xf32>
    %834 = tpu.matmul %832, %833, %cst_344 {dimension_numbers = #tpu.dot_dimension_numbers<[2], [2], [1], [1], [0, 0, 0, 1, 1, 1], [0], [0]>} : vector<2x8x8xf32>, vector<2x8x8xf32>, vector<2x8x8xf32> -> vector<2x8x8xf32>
    "tpu.trace_stop"() : () -> ()
    %835 = vector.broadcast %6 : vector<2x1x8xf32> to vector<2x8x8xf32>
    %836 = arith.addf %834, %835 : vector<2x8x8xf32>
    %cst_345 = arith.constant dense<0xFF800000> : vector<2x8xf32>
    %837 = vector.multi_reduction <maximumf>, %836, %cst_345 [2] : vector<2x8x8xf32> to vector<2x8xf32>
    %838 = vector.shape_cast %837 : vector<2x8xf32> to vector<2x8x1xf32>
    %839 = vector.broadcast %838 : vector<2x8x1xf32> to vector<2x8x8xf32>
    %840 = arith.subf %836, %839 : vector<2x8x8xf32>
    %841 = math.exp %840 : vector<2x8x8xf32>
    %cst_346 = arith.constant dense<0.000000e+00> : vector<2x8xf32>
    %842 = vector.multi_reduction <add>, %841, %cst_346 [2] : vector<2x8x8xf32> to vector<2x8xf32>
    %843 = vector.shape_cast %842 : vector<2x8xf32> to vector<2x8x1xf32>
    %844 = vector.broadcast %843 : vector<2x8x1xf32> to vector<2x8x8xf32>
    %845 = arith.divf %841, %844 : vector<2x8x8xf32>
    %846 = vector.extract_strided_slice %830 {offsets = [0, 0, 0], sizes = [2, 8, 8], strides = [1, 1, 1]} : vector<2x8x32xf32> to vector<2x8x8xf32>
    "tpu.trace_start"() <{level = 10 : i32, message = "bqk,bkd->bqd"}> : () -> ()
    %cst_347 = arith.constant dense<0.000000e+00> : vector<2x8x8xf32>
    %847 = tpu.matmul %845, %846, %cst_347 {dimension_numbers = #tpu.dot_dimension_numbers<[2], [1], [1], [2], [0, 0, 0, 1, 1, 2], [0], [0]>} : vector<2x8x8xf32>, vector<2x8x8xf32>, vector<2x8x8xf32> -> vector<2x8x8xf32>
    "tpu.trace_stop"() : () -> ()
    %848 = vector.shape_cast %847 : vector<2x8x8xf32> to vector<16x8xf32>
    %849 = vector.extract_strided_slice %825 {offsets = [0, 0], sizes = [8, 32], strides = [1, 1]} : vector<32x32xf32> to vector<8x32xf32>
    %cst_348 = arith.constant dense<0.000000e+00> : vector<16x32xf32>
    %850 = tpu.matmul %848, %849, %cst_348 {dimension_numbers = #tpu.dot_dimension_numbers<[1], [0], [0], [1], [0, 0, 1, 1], [], []>} : vector<16x8xf32>, vector<8x32xf32>, vector<16x32xf32> -> vector<16x32xf32>
    %851 = arith.addf %831, %850 : vector<16x32xf32>
    %852 = vector.extract_strided_slice %828 {offsets = [0, 0, 8], sizes = [2, 8, 8], strides = [1, 1, 1]} : vector<2x8x32xf32> to vector<2x8x8xf32>
    %853 = vector.extract_strided_slice %829 {offsets = [0, 0, 8], sizes = [2, 8, 8], strides = [1, 1, 1]} : vector<2x8x32xf32> to vector<2x8x8xf32>
    "tpu.trace_start"() <{level = 10 : i32, message = "bqd,bkd->bqk"}> : () -> ()
    %cst_349 = arith.constant dense<0.000000e+00> : vector<2x8x8xf32>
    %854 = tpu.matmul %852, %853, %cst_349 {dimension_numbers = #tpu.dot_dimension_numbers<[2], [2], [1], [1], [0, 0, 0, 1, 1, 1], [0], [0]>} : vector<2x8x8xf32>, vector<2x8x8xf32>, vector<2x8x8xf32> -> vector<2x8x8xf32>
    "tpu.trace_stop"() : () -> ()
    %855 = vector.broadcast %6 : vector<2x1x8xf32> to vector<2x8x8xf32>
    %856 = arith.addf %854, %855 : vector<2x8x8xf32>
    %cst_350 = arith.constant dense<0xFF800000> : vector<2x8xf32>
    %857 = vector.multi_reduction <maximumf>, %856, %cst_350 [2] : vector<2x8x8xf32> to vector<2x8xf32>
    %858 = vector.shape_cast %857 : vector<2x8xf32> to vector<2x8x1xf32>
    %859 = vector.broadcast %858 : vector<2x8x1xf32> to vector<2x8x8xf32>
    %860 = arith.subf %856, %859 : vector<2x8x8xf32>
    %861 = math.exp %860 : vector<2x8x8xf32>
    %cst_351 = arith.constant dense<0.000000e+00> : vector<2x8xf32>
    %862 = vector.multi_reduction <add>, %861, %cst_351 [2] : vector<2x8x8xf32> to vector<2x8xf32>
    %863 = vector.shape_cast %862 : vector<2x8xf32> to vector<2x8x1xf32>
    %864 = vector.broadcast %863 : vector<2x8x1xf32> to vector<2x8x8xf32>
    %865 = arith.divf %861, %864 : vector<2x8x8xf32>
    %866 = vector.extract_strided_slice %830 {offsets = [0, 0, 8], sizes = [2, 8, 8], strides = [1, 1, 1]} : vector<2x8x32xf32> to vector<2x8x8xf32>
    "tpu.trace_start"() <{level = 10 : i32, message = "bqk,bkd->bqd"}> : () -> ()
    %cst_352 = arith.constant dense<0.000000e+00> : vector<2x8x8xf32>
    %867 = tpu.matmul %865, %866, %cst_352 {dimension_numbers = #tpu.dot_dimension_numbers<[2], [1], [1], [2], [0, 0, 0, 1, 1, 2], [0], [0]>} : vector<2x8x8xf32>, vector<2x8x8xf32>, vector<2x8x8xf32> -> vector<2x8x8xf32>
    "tpu.trace_stop"() : () -> ()
    %868 = vector.shape_cast %867 : vector<2x8x8xf32> to vector<16x8xf32>
    %869 = vector.extract_strided_slice %825 {offsets = [8, 0], sizes = [8, 32], strides = [1, 1]} : vector<32x32xf32> to vector<8x32xf32>
    %cst_353 = arith.constant dense<0.000000e+00> : vector<16x32xf32>
    %870 = tpu.matmul %868, %869, %cst_353 {dimension_numbers = #tpu.dot_dimension_numbers<[1], [0], [0], [1], [0, 0, 1, 1], [], []>} : vector<16x8xf32>, vector<8x32xf32>, vector<16x32xf32> -> vector<16x32xf32>
    %871 = arith.addf %851, %870 : vector<16x32xf32>
    %872 = vector.extract_strided_slice %828 {offsets = [0, 0, 16], sizes = [2, 8, 8], strides = [1, 1, 1]} : vector<2x8x32xf32> to vector<2x8x8xf32>
    %873 = vector.extract_strided_slice %829 {offsets = [0, 0, 16], sizes = [2, 8, 8], strides = [1, 1, 1]} : vector<2x8x32xf32> to vector<2x8x8xf32>
    "tpu.trace_start"() <{level = 10 : i32, message = "bqd,bkd->bqk"}> : () -> ()
    %cst_354 = arith.constant dense<0.000000e+00> : vector<2x8x8xf32>
    %874 = tpu.matmul %872, %873, %cst_354 {dimension_numbers = #tpu.dot_dimension_numbers<[2], [2], [1], [1], [0, 0, 0, 1, 1, 1], [0], [0]>} : vector<2x8x8xf32>, vector<2x8x8xf32>, vector<2x8x8xf32> -> vector<2x8x8xf32>
    "tpu.trace_stop"() : () -> ()
    %875 = vector.broadcast %6 : vector<2x1x8xf32> to vector<2x8x8xf32>
    %876 = arith.addf %874, %875 : vector<2x8x8xf32>
    %cst_355 = arith.constant dense<0xFF800000> : vector<2x8xf32>
    %877 = vector.multi_reduction <maximumf>, %876, %cst_355 [2] : vector<2x8x8xf32> to vector<2x8xf32>
    %878 = vector.shape_cast %877 : vector<2x8xf32> to vector<2x8x1xf32>
    %879 = vector.broadcast %878 : vector<2x8x1xf32> to vector<2x8x8xf32>
    %880 = arith.subf %876, %879 : vector<2x8x8xf32>
    %881 = math.exp %880 : vector<2x8x8xf32>
    %cst_356 = arith.constant dense<0.000000e+00> : vector<2x8xf32>
    %882 = vector.multi_reduction <add>, %881, %cst_356 [2] : vector<2x8x8xf32> to vector<2x8xf32>
    %883 = vector.shape_cast %882 : vector<2x8xf32> to vector<2x8x1xf32>
    %884 = vector.broadcast %883 : vector<2x8x1xf32> to vector<2x8x8xf32>
    %885 = arith.divf %881, %884 : vector<2x8x8xf32>
    %886 = vector.extract_strided_slice %830 {offsets = [0, 0, 16], sizes = [2, 8, 8], strides = [1, 1, 1]} : vector<2x8x32xf32> to vector<2x8x8xf32>
    "tpu.trace_start"() <{level = 10 : i32, message = "bqk,bkd->bqd"}> : () -> ()
    %cst_357 = arith.constant dense<0.000000e+00> : vector<2x8x8xf32>
    %887 = tpu.matmul %885, %886, %cst_357 {dimension_numbers = #tpu.dot_dimension_numbers<[2], [1], [1], [2], [0, 0, 0, 1, 1, 2], [0], [0]>} : vector<2x8x8xf32>, vector<2x8x8xf32>, vector<2x8x8xf32> -> vector<2x8x8xf32>
    "tpu.trace_stop"() : () -> ()
    %888 = vector.shape_cast %887 : vector<2x8x8xf32> to vector<16x8xf32>
    %889 = vector.extract_strided_slice %825 {offsets = [16, 0], sizes = [8, 32], strides = [1, 1]} : vector<32x32xf32> to vector<8x32xf32>
    %cst_358 = arith.constant dense<0.000000e+00> : vector<16x32xf32>
    %890 = tpu.matmul %888, %889, %cst_358 {dimension_numbers = #tpu.dot_dimension_numbers<[1], [0], [0], [1], [0, 0, 1, 1], [], []>} : vector<16x8xf32>, vector<8x32xf32>, vector<16x32xf32> -> vector<16x32xf32>
    %891 = arith.addf %871, %890 : vector<16x32xf32>
    %892 = vector.extract_strided_slice %828 {offsets = [0, 0, 24], sizes = [2, 8, 8], strides = [1, 1, 1]} : vector<2x8x32xf32> to vector<2x8x8xf32>
    %893 = vector.extract_strided_slice %829 {offsets = [0, 0, 24], sizes = [2, 8, 8], strides = [1, 1, 1]} : vector<2x8x32xf32> to vector<2x8x8xf32>
    "tpu.trace_start"() <{level = 10 : i32, message = "bqd,bkd->bqk"}> : () -> ()
    %cst_359 = arith.constant dense<0.000000e+00> : vector<2x8x8xf32>
    %894 = tpu.matmul %892, %893, %cst_359 {dimension_numbers = #tpu.dot_dimension_numbers<[2], [2], [1], [1], [0, 0, 0, 1, 1, 1], [0], [0]>} : vector<2x8x8xf32>, vector<2x8x8xf32>, vector<2x8x8xf32> -> vector<2x8x8xf32>
    "tpu.trace_stop"() : () -> ()
    %895 = vector.broadcast %6 : vector<2x1x8xf32> to vector<2x8x8xf32>
    %896 = arith.addf %894, %895 : vector<2x8x8xf32>
    %cst_360 = arith.constant dense<0xFF800000> : vector<2x8xf32>
    %897 = vector.multi_reduction <maximumf>, %896, %cst_360 [2] : vector<2x8x8xf32> to vector<2x8xf32>
    %898 = vector.shape_cast %897 : vector<2x8xf32> to vector<2x8x1xf32>
    %899 = vector.broadcast %898 : vector<2x8x1xf32> to vector<2x8x8xf32>
    %900 = arith.subf %896, %899 : vector<2x8x8xf32>
    %901 = math.exp %900 : vector<2x8x8xf32>
    %cst_361 = arith.constant dense<0.000000e+00> : vector<2x8xf32>
    %902 = vector.multi_reduction <add>, %901, %cst_361 [2] : vector<2x8x8xf32> to vector<2x8xf32>
    %903 = vector.shape_cast %902 : vector<2x8xf32> to vector<2x8x1xf32>
    %904 = vector.broadcast %903 : vector<2x8x1xf32> to vector<2x8x8xf32>
    %905 = arith.divf %901, %904 : vector<2x8x8xf32>
    %906 = vector.extract_strided_slice %830 {offsets = [0, 0, 24], sizes = [2, 8, 8], strides = [1, 1, 1]} : vector<2x8x32xf32> to vector<2x8x8xf32>
    "tpu.trace_start"() <{level = 10 : i32, message = "bqk,bkd->bqd"}> : () -> ()
    %cst_362 = arith.constant dense<0.000000e+00> : vector<2x8x8xf32>
    %907 = tpu.matmul %905, %906, %cst_362 {dimension_numbers = #tpu.dot_dimension_numbers<[2], [1], [1], [2], [0, 0, 0, 1, 1, 2], [0], [0]>} : vector<2x8x8xf32>, vector<2x8x8xf32>, vector<2x8x8xf32> -> vector<2x8x8xf32>
    "tpu.trace_stop"() : () -> ()
    %908 = vector.shape_cast %907 : vector<2x8x8xf32> to vector<16x8xf32>
    %909 = vector.extract_strided_slice %825 {offsets = [24, 0], sizes = [8, 32], strides = [1, 1]} : vector<32x32xf32> to vector<8x32xf32>
    %cst_363 = arith.constant dense<0.000000e+00> : vector<16x32xf32>
    %910 = tpu.matmul %908, %909, %cst_363 {dimension_numbers = #tpu.dot_dimension_numbers<[1], [0], [0], [1], [0, 0, 1, 1], [], []>} : vector<16x8xf32>, vector<8x32xf32>, vector<16x32xf32> -> vector<16x32xf32>
    %911 = arith.addf %891, %910 : vector<16x32xf32>
    %912 = vector.broadcast %827 : vector<1x32xf32> to vector<16x32xf32>
    %913 = arith.addf %911, %912 : vector<16x32xf32>
    %914 = arith.addf %814, %913 : vector<16x32xf32>
    %c1_364 = arith.constant 1 : index
    %c0_365 = arith.constant 0 : index
    %c0_366 = arith.constant 0 : index
    %915 = vector.load %arg32[%c1_364, %c0_365, %c0_366] : memref<2x1x32xf32, #tpu.memory_space<vmem>>, vector<1x1x32xf32>
    %916 = vector.shape_cast %915 : vector<1x1x32xf32> to vector<1x32xf32>
    %c1_367 = arith.constant 1 : index
    %c0_368 = arith.constant 0 : index
    %c0_369 = arith.constant 0 : index
    %917 = vector.load %arg33[%c1_367, %c0_368, %c0_369] : memref<2x1x32xf32, #tpu.memory_space<vmem>>, vector<1x1x32xf32>
    %918 = vector.shape_cast %917 : vector<1x1x32xf32> to vector<1x32xf32>
    %cst_370 = arith.constant dense<0.000000e+00> : vector<16xf32>
    %919 = vector.multi_reduction <add>, %914, %cst_370 [1] : vector<16x32xf32> to vector<16xf32>
    %920 = vector.shape_cast %919 : vector<16xf32> to vector<16x1xf32>
    %cst_371 = arith.constant 3.200000e+01 : f32
    %921 = vector.broadcast %cst_371 : f32 to vector<16x1xf32>
    %922 = arith.divf %920, %921 : vector<16x1xf32>
    %923 = vector.broadcast %922 : vector<16x1xf32> to vector<16x32xf32>
    %924 = arith.subf %914, %923 : vector<16x32xf32>
    %925 = arith.mulf %924, %924 : vector<16x32xf32>
    %cst_372 = arith.constant dense<0.000000e+00> : vector<16xf32>
    %926 = vector.multi_reduction <add>, %925, %cst_372 [1] : vector<16x32xf32> to vector<16xf32>
    %927 = vector.shape_cast %926 : vector<16xf32> to vector<16x1xf32>
    %cst_373 = arith.constant 3.200000e+01 : f32
    %928 = vector.broadcast %cst_373 : f32 to vector<16x1xf32>
    %929 = arith.divf %927, %928 : vector<16x1xf32>
    %930 = vector.broadcast %922 : vector<16x1xf32> to vector<16x32xf32>
    %931 = arith.subf %914, %930 : vector<16x32xf32>
    %cst_374 = arith.constant 9.99999974E-6 : f32
    %932 = vector.broadcast %cst_374 : f32 to vector<16x1xf32>
    %933 = arith.addf %929, %932 : vector<16x1xf32>
    %934 = math.rsqrt %933 : vector<16x1xf32>
    %935 = vector.broadcast %934 : vector<16x1xf32> to vector<16x32xf32>
    %936 = arith.mulf %931, %935 : vector<16x32xf32>
    %937 = vector.broadcast %916 : vector<1x32xf32> to vector<16x32xf32>
    %938 = arith.mulf %936, %937 : vector<16x32xf32>
    %939 = vector.broadcast %918 : vector<1x32xf32> to vector<16x32xf32>
    %940 = arith.addf %938, %939 : vector<16x32xf32>
    %c1_375 = arith.constant 1 : index
    %c0_376 = arith.constant 0 : index
    %c0_377 = arith.constant 0 : index
    %941 = vector.load %arg34[%c1_375, %c0_376, %c0_377] : memref<2x32x64xf32, #tpu.memory_space<vmem>>, vector<1x32x64xf32>
    %942 = vector.shape_cast %941 : vector<1x32x64xf32> to vector<32x64xf32>
    %c1_378 = arith.constant 1 : index
    %c0_379 = arith.constant 0 : index
    %c0_380 = arith.constant 0 : index
    %943 = vector.load %arg35[%c1_378, %c0_379, %c0_380] : memref<2x1x64xf32, #tpu.memory_space<vmem>>, vector<1x1x64xf32>
    %944 = vector.shape_cast %943 : vector<1x1x64xf32> to vector<1x64xf32>
    %c1_381 = arith.constant 1 : index
    %c0_382 = arith.constant 0 : index
    %c0_383 = arith.constant 0 : index
    %945 = vector.load %arg36[%c1_381, %c0_382, %c0_383] : memref<2x64x32xf32, #tpu.memory_space<vmem>>, vector<1x64x32xf32>
    %946 = vector.shape_cast %945 : vector<1x64x32xf32> to vector<64x32xf32>
    %c1_384 = arith.constant 1 : index
    %c0_385 = arith.constant 0 : index
    %c0_386 = arith.constant 0 : index
    %947 = vector.load %arg37[%c1_384, %c0_385, %c0_386] : memref<2x1x32xf32, #tpu.memory_space<vmem>>, vector<1x1x32xf32>
    %948 = vector.shape_cast %947 : vector<1x1x32xf32> to vector<1x32xf32>
    %cst_387 = arith.constant dense<0.000000e+00> : vector<16x64xf32>
    %949 = tpu.matmul %940, %942, %cst_387 {dimension_numbers = #tpu.dot_dimension_numbers<[1], [0], [0], [1], [0, 0, 1, 1], [], []>} : vector<16x32xf32>, vector<32x64xf32>, vector<16x64xf32> -> vector<16x64xf32>
    %950 = vector.broadcast %944 : vector<1x64xf32> to vector<16x64xf32>
    %951 = arith.addf %949, %950 : vector<16x64xf32>
    %cst_388 = arith.constant 0.000000e+00 : f32
    %952 = vector.broadcast %cst_388 : f32 to vector<16x64xf32>
    %953 = arith.maximumf %951, %952 : vector<16x64xf32>
    %cst_389 = arith.constant dense<0.000000e+00> : vector<16x32xf32>
    %954 = tpu.matmul %953, %946, %cst_389 {dimension_numbers = #tpu.dot_dimension_numbers<[1], [0], [0], [1], [0, 0, 1, 1], [], []>} : vector<16x64xf32>, vector<64x32xf32>, vector<16x32xf32> -> vector<16x32xf32>
    %955 = vector.broadcast %948 : vector<1x32xf32> to vector<16x32xf32>
    %956 = arith.addf %954, %955 : vector<16x32xf32>
    %957 = arith.addf %940, %956 : vector<16x32xf32>
    %c1_390 = arith.constant 1 : index
    %c0_391 = arith.constant 0 : index
    %c0_392 = arith.constant 0 : index
    %958 = vector.load %arg38[%c1_390, %c0_391, %c0_392] : memref<2x1x32xf32, #tpu.memory_space<vmem>>, vector<1x1x32xf32>
    %959 = vector.shape_cast %958 : vector<1x1x32xf32> to vector<1x32xf32>
    %c1_393 = arith.constant 1 : index
    %c0_394 = arith.constant 0 : index
    %c0_395 = arith.constant 0 : index
    %960 = vector.load %arg39[%c1_393, %c0_394, %c0_395] : memref<2x1x32xf32, #tpu.memory_space<vmem>>, vector<1x1x32xf32>
    %961 = vector.shape_cast %960 : vector<1x1x32xf32> to vector<1x32xf32>
    %cst_396 = arith.constant dense<0.000000e+00> : vector<16xf32>
    %962 = vector.multi_reduction <add>, %957, %cst_396 [1] : vector<16x32xf32> to vector<16xf32>
    %963 = vector.shape_cast %962 : vector<16xf32> to vector<16x1xf32>
    %cst_397 = arith.constant 3.200000e+01 : f32
    %964 = vector.broadcast %cst_397 : f32 to vector<16x1xf32>
    %965 = arith.divf %963, %964 : vector<16x1xf32>
    %966 = vector.broadcast %965 : vector<16x1xf32> to vector<16x32xf32>
    %967 = arith.subf %957, %966 : vector<16x32xf32>
    %968 = arith.mulf %967, %967 : vector<16x32xf32>
    %cst_398 = arith.constant dense<0.000000e+00> : vector<16xf32>
    %969 = vector.multi_reduction <add>, %968, %cst_398 [1] : vector<16x32xf32> to vector<16xf32>
    %970 = vector.shape_cast %969 : vector<16xf32> to vector<16x1xf32>
    %cst_399 = arith.constant 3.200000e+01 : f32
    %971 = vector.broadcast %cst_399 : f32 to vector<16x1xf32>
    %972 = arith.divf %970, %971 : vector<16x1xf32>
    %973 = vector.broadcast %965 : vector<16x1xf32> to vector<16x32xf32>
    %974 = arith.subf %957, %973 : vector<16x32xf32>
    %cst_400 = arith.constant 9.99999974E-6 : f32
    %975 = vector.broadcast %cst_400 : f32 to vector<16x1xf32>
    %976 = arith.addf %972, %975 : vector<16x1xf32>
    %977 = math.rsqrt %976 : vector<16x1xf32>
    %978 = vector.broadcast %977 : vector<16x1xf32> to vector<16x32xf32>
    %979 = arith.mulf %974, %978 : vector<16x32xf32>
    %980 = vector.broadcast %959 : vector<1x32xf32> to vector<16x32xf32>
    %981 = arith.mulf %979, %980 : vector<16x32xf32>
    %982 = vector.broadcast %961 : vector<1x32xf32> to vector<16x32xf32>
    %983 = arith.addf %981, %982 : vector<16x32xf32>
    %c0_401 = arith.constant 0 : index
    %c0_402 = arith.constant 0 : index
    %984 = vector.load %arg40[%c0_401, %c0_402] : memref<32x128xf32, #tpu.memory_space<vmem>>, vector<32x128xf32>
    %cst_403 = arith.constant dense<0.000000e+00> : vector<16x128xf32>
    %985 = tpu.matmul %983, %984, %cst_403 {dimension_numbers = #tpu.dot_dimension_numbers<[1], [0], [0], [1], [0, 0, 1, 1], [], []>} : vector<16x32xf32>, vector<32x128xf32>, vector<16x128xf32> -> vector<16x128xf32>
    %c0_404 = arith.constant 0 : index
    %c0_405 = arith.constant 0 : index
    %986 = vector.load %arg41[%c0_404, %c0_405] : memref<1x128xf32, #tpu.memory_space<vmem>>, vector<1x128xf32>
    %987 = vector.broadcast %986 : vector<1x128xf32> to vector<16x128xf32>
    %988 = arith.addf %985, %987 : vector<16x128xf32>
    %c0_406 = arith.constant 0 : index
    %c0_407 = arith.constant 0 : index
    %989 = vector.load %arg42[%c0_406, %c0_407] : memref<16x128xf32, #tpu.memory_space<vmem>>, vector<16x128xf32>
    tpu.vector_store %arg42[%c0_406, %c0_407], %988 {strides = array<i32>} : memref<16x128xf32, #tpu.memory_space<vmem>>, vector<16x128xf32>,
    %c0_408 = arith.constant 0 : index
    %c0_409 = arith.constant 0 : index
    %c0_410 = arith.constant 0 : index
    %c0_411 = arith.constant 0 : index
    %990 = vector.load %arg43[%c0_408, %c0_409, %c0_410, %c0_411] : memref<4x2x8x8xf32, #tpu.memory_space<vmem>>, vector<1x2x8x8xf32>
    %991 = vector.shape_cast %990 : vector<1x2x8x8xf32> to vector<2x8x8xf32>
    %992 = vector.shape_cast %845 : vector<2x8x8xf32> to vector<1x2x8x8xf32>
    tpu.vector_store %arg43[%c0_408, %c0_409, %c0_410, %c0_411], %992 {strides = array<i32>} : memref<4x2x8x8xf32, #tpu.memory_space<vmem>>, vector<1x2x8x8xf32>,
    %c1_412 = arith.constant 1 : index
    %c0_413 = arith.constant 0 : index
    %c0_414 = arith.constant 0 : index
    %c0_415 = arith.constant 0 : index
    %993 = vector.load %arg43[%c1_412, %c0_413, %c0_414, %c0_415] : memref<4x2x8x8xf32, #tpu.memory_space<vmem>>, vector<1x2x8x8xf32>
    %994 = vector.shape_cast %993 : vector<1x2x8x8xf32> to vector<2x8x8xf32>
    %995 = vector.shape_cast %865 : vector<2x8x8xf32> to vector<1x2x8x8xf32>
    tpu.vector_store %arg43[%c1_412, %c0_413, %c0_414, %c0_415], %995 {strides = array<i32>} : memref<4x2x8x8xf32, #tpu.memory_space<vmem>>, vector<1x2x8x8xf32>,
    %c2 = arith.constant 2 : index
    %c0_416 = arith.constant 0 : index
    %c0_417 = arith.constant 0 : index
    %c0_418 = arith.constant 0 : index
    %996 = vector.load %arg43[%c2, %c0_416, %c0_417, %c0_418] : memref<4x2x8x8xf32, #tpu.memory_space<vmem>>, vector<1x2x8x8xf32>
    %997 = vector.shape_cast %996 : vector<1x2x8x8xf32> to vector<2x8x8xf32>
    %998 = vector.shape_cast %885 : vector<2x8x8xf32> to vector<1x2x8x8xf32>
    tpu.vector_store %arg43[%c2, %c0_416, %c0_417, %c0_418], %998 {strides = array<i32>} : memref<4x2x8x8xf32, #tpu.memory_space<vmem>>, vector<1x2x8x8xf32>,
    %c3 = arith.constant 3 : index
    %c0_419 = arith.constant 0 : index
    %c0_420 = arith.constant 0 : index
    %c0_421 = arith.constant 0 : index
    %999 = vector.load %arg43[%c3, %c0_419, %c0_420, %c0_421] : memref<4x2x8x8xf32, #tpu.memory_space<vmem>>, vector<1x2x8x8xf32>
    %1000 = vector.shape_cast %999 : vector<1x2x8x8xf32> to vector<2x8x8xf32>
    %1001 = vector.shape_cast %905 : vector<2x8x8xf32> to vector<1x2x8x8xf32>
    tpu.vector_store %arg43[%c3, %c0_419, %c0_420, %c0_421], %1001 {strides = array<i32>} : memref<4x2x8x8xf32, #tpu.memory_space<vmem>>, vector<1x2x8x8xf32>,
    return
  }
}

</mosaic_0001>

<bundles_post_ra>
// kernel: transformer_forward.1
= control target key start
LH: loop header
LB: loop body
LE: loop exit
PB: predicated region body
PF: predicated region fallthrough
CT: control target
= control target key end

     0   :  { %s7717_s6 = smov 1   ;;  %s7718_s10 = smov 2   ;;  %s9283_s0 = inlined_call_operand.smem [shape: u32[44], index: -1, kind: input, shape index: {}] }
   0x1   :  { %s7812_s5 = sld [smem:[%s9283_s0]]   ;;  %s7719_s14 = smov 3  }
   0x2   :  { %s7817_s9 = sld [smem:[%s9283_s0 + %s7717_s6]]   ;;  %s7720_s18 = smov 4  }
   0x3   :  { %s7822_s13 = sld [smem:[%s9283_s0 + %s7718_s10]]   ;;  %s7721_s22 = smov 5  }
   0x4   :  { %s7827_s17 = sld [smem:[%s9283_s0 + %s7719_s14]]   ;;  %s7722_s26 = smov 6  }
   0x5   :  { %s7832_s21 = sld [smem:[%s9283_s0 + %s7720_s18]]   ;;  %s7723_s30 = smov 7  }
   0x6   :  { %s7837_s25 = sld [smem:[%s9283_s0 + %s7721_s22]]   ;;  %s7724_s4 = smov 8  }
   0x7   :  { %9307 = sst [smem:[#allocation49_spill]] %s7812_s5  ;;  %s7725_s10 = smov 9  }
   0x8   :  { %9308 = sst [smem:[#allocation50_spill]] %s7817_s9  ;;  %s7726_s15 = smov 10  }
   0x9   :  { %9309 = sst [smem:[#allocation51_spill]] %s7822_s13  ;;  %s7727_s20 = smov 11  }
   0xa   :  { %9310 = sst [smem:[#allocation52_spill]] %s7827_s17  ;;  %s7729_s1 = smov 13  }
   0xb   :  { %9311 = sst [smem:[#allocation53_spill]] %s7832_s21  ;;  %s7730_s7 = smov 14  }
   0xc   :  { %9312 = sst [smem:[#allocation54_spill]] %s7837_s25  ;;  %s7732_s22 = smov 16  }
   0xd   :  { %s7842_s29 = sld [smem:[%s9283_s0 + %s7722_s26]]   ;;  %s7728_s26 = smov 12  }
   0xe   :  { %s7847_s3 = sld [smem:[%s9283_s0 + %s7723_s30]]   ;;  %s7733_s28 = smov 17  }
   0xf   :  { %s7852_s8 = sld [smem:[%s9283_s0 + %s7724_s4]]  }
  0x10   :  { %s7857_s14 = sld [smem:[%s9283_s0 + %s7725_s10]]  }
  0x11   :  { %s7862_s19 = sld [smem:[%s9283_s0 + %s7726_s15]]   ;;  %s7731_s15 = smov 15  }
  0x12   :  { %s7867_s24 = sld [smem:[%s9283_s0 + %s7727_s20]]  }
  0x13   :  { %9313 = sst [smem:[#allocation55_spill]] %s7842_s29 }
  0x14   :  { %9314 = sst [smem:[#allocation56_spill]] %s7847_s3 }
  0x15   :  { %9315 = sst [smem:[#allocation57_spill]] %s7852_s8 }
  0x16   :  { %9316 = sst [smem:[#allocation58_spill]] %s7857_s14 }
  0x17   :  { %9317 = sst [smem:[#allocation59_spill]] %s7862_s19 }
  0x18   :  { %9318 = sst [smem:[#allocation60_spill]] %s7867_s24 }
  0x19   :  { %s7872_s30 = sld [smem:[%s9283_s0 + %s7728_s26]]  }
  0x1a   :  { %s7877_s6 = sld [smem:[%s9283_s0 + %s7729_s1]]  }
  0x1b   :  { %s7882_s12 = sld [smem:[%s9283_s0 + %s7730_s7]]   ;;  %s7734_s7 = smov 18  }
  0x1c   :  { %s7887_s20 = sld [smem:[%s9283_s0 + %s7731_s15]]   ;;  %s7735_s15 = smov 19  }
  0x1d   :  { %s7892_s27 = sld [smem:[%s9283_s0 + %s7732_s22]]   ;;  %s7736_s22 = smov 20  }
  0x1e   :  { %s7897_s4 = sld [smem:[%s9283_s0 + %s7733_s28]]   ;;  %s7737_s28 = smov 21  }
  0x1f   :  { %9319 = sst [smem:[#allocation61_spill]] %s7872_s30 }
  0x20   :  { %s7902_s9 = sld [smem:[%s9283_s0 + %s7734_s7]]   ;;  %s7738_s7 = smov 22  }
  0x21   :  { %9320 = sst [smem:[#allocation62_spill]] %s7882_s12 }
  0x22   :  { %s7907_s12 = sld [smem:[%s9283_s0 + %s7735_s15]]   ;;  %s7739_s15 = smov 23  }
  0x23   :  { %9321 = sst [smem:[#allocation63_spill]] %s7892_s27 }
  0x24   :  { %9322 = sst [smem:[#allocation64_spill]] %s7897_s4 }
  0x25   :  { %s7912_s27 = sld [smem:[%s9283_s0 + %s7736_s22]]   ;;  %s7740_s22 = smov 24  }
  0x26   :  { %s7917_s4 = sld [smem:[%s9283_s0 + %s7737_s28]]   ;;  %s7741_s28 = smov 25  }
  0x27   :  { %s7922_s24 = sld [smem:[%s9283_s0 + %s7738_s7]]   ;;  %s7742_s7 = smov 26  }
  0x28   :  { %s7927_s19 = sld [smem:[%s9283_s0 + %s7739_s15]]   ;;  %s7743_s15 = smov 27  }
  0x29   :  { %s7937_s30 = sld [smem:[%s9283_s0 + %s7741_s28]]   ;;  %s7745_s28 = smov 29  }
  0x2a   :  { %s7947_s14 = sld [smem:[%s9283_s0 + %s7743_s15]]   ;;  %s7747_s15 = smov 31  }
  0x2b   :  { %9323 = sst [smem:[#allocation65_spill]] %s7912_s27 }
  0x2c   :  { %s7932_s27 = sld [smem:[%s9283_s0 + %s7740_s22]]   ;;  %s7744_s22 = smov 28  }
  0x2d   :  { %9324 = sst [smem:[#allocation66_spill]] %s7922_s24 }
  0x2e   :  { %s7942_s24 = sld [smem:[%s9283_s0 + %s7742_s7]]   ;;  %s7746_s7 = smov 30  }
  0x2f   :  { %s7952_s8 = sld [smem:[%s9283_s0 + %s7744_s22]]   ;;  %s7748_s22 = smov 32  }
  0x30   :  { %s7957_s13 = sld [smem:[%s9283_s0 + %s7745_s28]]   ;;  %s7749_s28 = smov 33  }
  0x31   :  { %s7962_s3 = sld [smem:[%s9283_s0 + %s7746_s7]]   ;;  %s7750_s7 = smov 34  }
  0x32   :  { %s7967_s25 = sld [smem:[%s9283_s0 + %s7747_s15]]   ;;  %s7751_s15 = smov 35  }
  0x33   :  { %s7972_s29 = sld [smem:[%s9283_s0 + %s7748_s22]]   ;;  %s7752_s22 = smov 36  }
  0x34   :  { %9325 = sst [smem:[#allocation67_spill]] %s7942_s24 }
  0x35   :  { %9326 = sst [smem:[#allocation68_spill]] %s7952_s8 }
  0x36   :  { %s7977_s21 = sld [smem:[%s9283_s0 + %s7749_s28]]   ;;  %s7753_s28 = smov 37  }
  0x37   :  { %9327 = sst [smem:[#allocation69_spill]] %s7962_s3 }
  0x38   :  { %s7982_s5 = sld [smem:[%s9283_s0 + %s7750_s7]]   ;;  %s7754_s7 = smov 38  }
  0x39   :  { %9328 = sst [smem:[#allocation70_spill]] %s7972_s29 }
  0x3a   :  { %s7987_s17 = sld [smem:[%s9283_s0 + %s7751_s15]]   ;;  %s7755_s15 = smov 39  }
  0x3b   :  { %s7992_s29 = sld [smem:[%s9283_s0 + %s7752_s22]]   ;;  %s7756_s22 = smov 40  }
  0x3c   :  { %s7997_s3 = sld [smem:[%s9283_s0 + %s7753_s28]]   ;;  %s7757_s28 = smov 41  }
  0x3d   :  { %s8007_s8 = sld [smem:[%s9283_s0 + %s7755_s15]]   ;;  %s7759_s15 = smov 43  }
  0x3e   :  { %9329 = sst [smem:[#allocation71_spill]] %s7982_s5 }
  0x3f   :  { %s8002_s5 = sld [smem:[%s9283_s0 + %s7754_s7]]   ;;  %s7758_s7 = smov 42  }
  0x40   :  { %s8022_s24 = sld [smem:[%s9283_s0 + %s7758_s7]]  }
  0x41   :  { %9330 = sst [smem:[#allocation72_spill]] %s7992_s29 }
  0x42   :  { %9331 = sst [smem:[#allocation73_spill]] %s7997_s3 }
  0x43   :  { %9332 = sst [smem:[#allocation74_spill]] %s8007_s8 }
  0x44   :  { %s8012_s29 = sld [smem:[%s9283_s0 + %s7756_s22]]  }
  0x45   :  { %s8017_s3 = sld [smem:[%s9283_s0 + %s7757_s28]]  }
  0x46   :  { %s8027_s8 = sld [smem:[%s9283_s0 + %s7759_s15]]  }
  0x47   :  { %93 = vsyncpa [#allocation3], 0 }
  0x48   :  { %94 = vsyncpa [#allocation5], 0 }
  0x49   :  { %95 = vsyncpa [#allocation8], 0 }
  0x4a   :  { %96 = vsyncpa [#allocation11], 0 }
  0x4b   :  { %97 = vsyncpa [#allocation14], 0 }
  0x4c   :  { %98 = vsyncpa [#allocation17], 0 }
  0x4d   :  { %99 = vsyncpa [#allocation20], 0 }
  0x4e   :  { %100 = vsyncpa [#allocation23], 0 }
  0x4f   :  { %101 = vsyncpa [#allocation26], 0 }
  0x50   :  { %102 = vsyncpa [#allocation29], 0 }
  0x51   :  { %103 = vsyncpa [#allocation32], 0 }
  0x52   :  { %104 = vsyncpa [#allocation35], 0  ;;  %s150_s22 = sshll.u32 %s7887_s20, 4  ;;  %s7760_s23 = smov [#allocation4]   ;;  %s151_s22 = int_to_ptr.hbm [resolvable:$true] %s150_s22 }
  0x53   :  { %s152_s0 = sshll.u32 %s7760_s23, 4  ;;  %s7141_s26 = sshra.s32 %s151_s22, 4  ;;  %s153_s0 = int_to_ptr.vmem [resolvable:$true] %s152_s0  ;;  %s7142_s26 = int_to_ptr.hbm [resolvable:$true] %s7141_s26 }
  0x54   :  { %s7143_s28 = scalar_lea.hbm %s7142_s26, 2  ;;  %s7145_s1 = scalar_lea.hbm %s7887_s20, 2 }
  0x55   :  { %p7144_p0 = scmp.ne.s32.totalorder %s7142_s26, %s7143_s28  ;;  %p7146_p1 = scmp.lt.s32.totalorder %s7142_s26, %s7887_s20 }
  0x56   :  { %p7147_p2 = scmp.lt.s32.totalorder %s7145_s1, %s7143_s28 }
  0x58   :  { %p7148_p3 = por %p7147_p2, %p7146_p1 }
  0x5a   :  { %p7149_p4 = pnand %p7148_p3, %p7144_p0 }
  0x5c   :  { %7152 = shalt.err (!%p7149_p4)
}
  0x5d   :  { %s7761_s2 = smov 16   ;;  %s7762_s7 = smov 1  }
  0x5e   :  { %158 = dma.hbm_to_vmem [thread:$0]  %s151_s22, 32, %s153_s0, [#allocation5], %s7761_s2, %s7761_s2, %s7762_s7  }
  0x5f   :  { %s180_s10 = sshll.u32 %s7907_s12, 4  ;;  %s7763_s11 = smov [#allocation7]   ;;  %s181_s10 = int_to_ptr.hbm [resolvable:$true] %s180_s10 }
  0x60   :  { %s182_s15 = sshll.u32 %s7763_s11, 4  ;;  %s210_s16 = sshll.u32 %s7927_s19, 4  ;;  %s183_s15 = int_to_ptr.vmem [resolvable:$true] %s182_s15  ;;  %s8037_s16 = int_to_ptr.hbm [resolvable:$true] %s210_s16 }
  0x61   :  { %s7165_s20 = sshra.s32 %s181_s10, 4  ;;  %s7169_s23 = scalar_lea.hbm %s7907_s12, 16  ;;  %s7166_s20 = int_to_ptr.hbm [resolvable:$true] %s7165_s20 }
  0x62   :  { %s7167_s18 = scalar_lea.hbm %s7166_s20, 16  ;;  %p7170_p6 = scmp.lt.s32.totalorder %s7166_s20, %s7907_s12 }
  0x63   :  { %p7168_p5 = scmp.ne.s32.totalorder %s7166_s20, %s7167_s18  ;;  %p7171_p7 = scmp.lt.s32.totalorder %s7169_s23, %s7167_s18 }
  0x65   :  { %p7172_p8 = por %p7171_p7, %p7170_p6 }
  0x67   :  { %p7173_p9 = pnand %p7172_p8, %p7168_p5 }
  0x69   :  { %7176 = shalt.err (!%p7173_p9)
}
  0x6a   :  { %s7764_s26 = smov 128   ;;  %s7765_s22 = smov 8  }
  0x6b   :  { %188 = dma.hbm_to_vmem [thread:$0]  %s181_s10, 256, %s183_s15, [#allocation8], %s7764_s26, %s7764_s26, %s7765_s22  }
  0x6c   :  { %s236_s0 = sshll.u32 %s7937_s30, 4  ;;  %s7766_s28 = smov [#allocation10]   ;;  %s8045_s0 = int_to_ptr.hbm [resolvable:$true] %s236_s0 }
  0x6d   :  { %s212_s1 = sshll.u32 %s7766_s28, 4  ;;  %s7189_s12 = sshra.s32 %s8037_s16, 4  ;;  %s213_s1 = int_to_ptr.vmem [resolvable:$true] %s212_s1  ;;  %s7190_s12 = int_to_ptr.hbm [resolvable:$true] %s7189_s12 }
  0x6e   :  { %s7191_s11 = scalar_lea.hbm %s7190_s12, 2  ;;  %s7193_s20 = scalar_lea.hbm %s7927_s19, 2 }
  0x6f   :  { %p7192_p10 = scmp.ne.s32.totalorder %s7190_s12, %s7191_s11  ;;  %p7194_p11 = scmp.lt.s32.totalorder %s7190_s12, %s7927_s19 }
  0x70   :  { %p7195_p12 = scmp.lt.s32.totalorder %s7193_s20, %s7191_s11 }
  0x72   :  { %p7196_p13 = por %p7195_p12, %p7194_p11 }
  0x74   :  { %p7197_p0 = pnand %p7196_p13, %p7192_p10 }
  0x76   :  { %7200 = shalt.err (!%p7197_p0)
}
  0x77   :  { %218 = dma.hbm_to_vmem [thread:$0]  %s8037_s16, 32, %s213_s1, [#allocation11], %s7761_s2, %s7761_s2, %s7762_s7  }
  0x78   :  { %s7767_s10 = smov [#allocation13]   ;;  %s262_s18 = sshll.u32 %s7947_s14, 4  ;;  %s8055_s18 = int_to_ptr.hbm [resolvable:$true] %s262_s18 }
  0x79   :  { %s238_s15 = sshll.u32 %s7767_s10, 4  ;;  %s7213_s19 = sshra.s32 %s8045_s0, 4  ;;  %s239_s15 = int_to_ptr.vmem [resolvable:$true] %s238_s15  ;;  %s7214_s19 = int_to_ptr.hbm [resolvable:$true] %s7213_s19 }
  0x7a   :  { %s7215_s23 = scalar_lea.hbm %s7214_s19, 2  ;;  %s7217_s28 = scalar_lea.hbm %s7937_s30, 2 }
  0x7b   :  { %p7216_p1 = scmp.ne.s32.totalorder %s7214_s19, %s7215_s23  ;;  %p7218_p2 = scmp.lt.s32.totalorder %s7214_s19, %s7937_s30 }
  0x7c   :  { %p7219_p3 = scmp.lt.s32.totalorder %s7217_s28, %s7215_s23 }
  0x7e   :  { %p7220_p4 = por %p7219_p3, %p7218_p2 }
  0x80   :  { %p7221_p5 = pnand %p7220_p4, %p7216_p1 }
  0x82   :  { %7224 = shalt.err (!%p7221_p5)
}
  0x83   :  { %244 = dma.hbm_to_vmem [thread:$0]  %s8045_s0, 32, %s239_s15, [#allocation14], %s7761_s2, %s7761_s2, %s7762_s7  }
  0x84   :  { %s289_s16 = sshll.u32 %s7957_s13, 4  ;;  %s7768_s1 = smov [#allocation16]   ;;  %s290_s16 = int_to_ptr.hbm [resolvable:$true] %s289_s16 }
  0x85   :  { %s264_s12 = sshll.u32 %s7768_s1, 4  ;;  %s7237_s11 = sshra.s32 %s8055_s18, 4  ;;  %s265_s12 = int_to_ptr.vmem [resolvable:$true] %s264_s12  ;;  %s7238_s11 = int_to_ptr.hbm [resolvable:$true] %s7237_s11 }
  0x86   :  { %s7239_s30 = scalar_lea.hbm %s7238_s11, 2  ;;  %s7241_s20 = scalar_lea.hbm %s7947_s14, 2 }
  0x87   :  { %p7240_p6 = scmp.ne.s32.totalorder %s7238_s11, %s7239_s30  ;;  %p7242_p7 = scmp.lt.s32.totalorder %s7238_s11, %s7947_s14 }
  0x88   :  { %p7243_p8 = scmp.lt.s32.totalorder %s7241_s20, %s7239_s30 }
  0x8a   :  { %p7244_p9 = por %p7243_p8, %p7242_p7 }
  0x8c   :  { %p7245_p10 = pnand %p7244_p9, %p7240_p6 }
  0x8e   :  { %7248 = shalt.err (!%p7245_p10)
}
  0x8f   :  { %270 = dma.hbm_to_vmem [thread:$0]  %s8055_s18, 32, %s265_s12, [#allocation17], %s7761_s2, %s7761_s2, %s7762_s7  }
  0x90   :  { %s7769_s0 = smov [#allocation19]   ;;  %s312_s15 = sshll.u32 %s7967_s25, 4  ;;  %s8073_s15 = int_to_ptr.hbm [resolvable:$true] %s312_s15 }
  0x91   :  { %s291_s10 = sshll.u32 %s7769_s0, 4  ;;  %s7261_s19 = sshra.s32 %s290_s16, 4  ;;  %s292_s10 = int_to_ptr.vmem [resolvable:$true] %s291_s10  ;;  %s7262_s19 = int_to_ptr.hbm [resolvable:$true] %s7261_s19 }
  0x92   :  { %s7263_s14 = scalar_lea.hbm %s7262_s19, 1  ;;  %s7265_s23 = scalar_lea.hbm %s7957_s13, 1 }
  0x93   :  { %p7264_p11 = scmp.ne.s32.totalorder %s7262_s19, %s7263_s14  ;;  %p7266_p12 = scmp.lt.s32.totalorder %s7262_s19, %s7957_s13 }
  0x94   :  { %p7267_p13 = scmp.lt.s32.totalorder %s7265_s23, %s7263_s14 }
  0x96   :  { %p7268_p0 = por %p7267_p13, %p7266_p12 }
  0x98   :  { %p7269_p1 = pnand %p7268_p0, %p7264_p11 }
  0x9a   :  { %7272 = shalt.err (!%p7269_p1)
}
  0x9b   :  { %294 = dma.hbm_to_vmem [thread:$0]  %s290_s16, 16, %s292_s10, [#allocation20]  }
  0x9c   :  { %s338_s18 = sshll.u32 %s7977_s21, 4  ;;  %s7770_s28 = smov [#allocation22]   ;;  %s8078_s18 = int_to_ptr.hbm [resolvable:$true] %s338_s18 }
  0x9d   :  { %s314_s1 = sshll.u32 %s7770_s28, 4  ;;  %s7285_s12 = sshra.s32 %s8073_s15, 4  ;;  %s315_s1 = int_to_ptr.vmem [resolvable:$true] %s314_s1  ;;  %s7286_s12 = int_to_ptr.hbm [resolvable:$true] %s7285_s12 }
  0x9e   :  { %s7287_s11 = scalar_lea.hbm %s7286_s12, 2  ;;  %s7289_s13 = scalar_lea.hbm %s7967_s25, 2 }
  0x9f   :  { %p7288_p2 = scmp.ne.s32.totalorder %s7286_s12, %s7287_s11  ;;  %p7290_p3 = scmp.lt.s32.totalorder %s7286_s12, %s7967_s25 }
  0xa0   :  { %p7291_p4 = scmp.lt.s32.totalorder %s7289_s13, %s7287_s11 }
  0xa2   :  { %p7292_p5 = por %p7291_p4, %p7290_p3 }
  0xa4   :  { %p7293_p6 = pnand %p7292_p5, %p7288_p2 }
  0xa6   :  { %7296 = shalt.err (!%p7293_p6)
}
  0xa7   :  { %320 = dma.hbm_to_vmem [thread:$0]  %s8073_s15, 32, %s315_s1, [#allocation23], %s7761_s2, %s7761_s2, %s7762_s7  }
  0xa8   :  { %s7771_s16 = smov [#allocation25]   ;;  %s364_s20 = sshll.u32 %s7987_s17, 4  ;;  %s8088_s20 = int_to_ptr.hbm [resolvable:$true] %s364_s20 }
  0xa9   :  { %s340_s30 = sshll.u32 %s7771_s16, 4  ;;  %s7309_s25 = sshra.s32 %s8078_s18, 4  ;;  %s341_s30 = int_to_ptr.vmem [resolvable:$true] %s340_s30  ;;  %s7310_s25 = int_to_ptr.hbm [resolvable:$true] %s7309_s25 }
  0xaa   :  { %s7311_s0 = scalar_lea.hbm %s7310_s25, 2  ;;  %s7313_s10 = scalar_lea.hbm %s7977_s21, 2 }
  0xab   :  { %p7312_p7 = scmp.ne.s32.totalorder %s7310_s25, %s7311_s0  ;;  %p7314_p8 = scmp.lt.s32.totalorder %s7310_s25, %s7977_s21 }
  0xac   :  { %p7315_p9 = scmp.lt.s32.totalorder %s7313_s10, %s7311_s0 }
  0xae   :  { %p7316_p10 = por %p7315_p9, %p7314_p8 }
  0xb0   :  { %p7317_p11 = pnand %p7316_p10, %p7312_p7 }
  0xb2   :  { %7320 = shalt.err (!%p7317_p11)
}
  0xb3   :  { %346 = dma.hbm_to_vmem [thread:$0]  %s8078_s18, 32, %s341_s30, [#allocation26], %s7761_s2, %s7761_s2, %s7762_s7  }
  0xb4   :  { %s392_s15 = sshll.u32 %s8002_s5, 4  ;;  %s7772_s19 = smov [#allocation28]   ;;  %s8098_s15 = int_to_ptr.hbm [resolvable:$true] %s392_s15 }
  0xb5   :  { %s366_s14 = sshll.u32 %s7772_s19, 4  ;;  %s7333_s21 = sshra.s32 %s8088_s20, 4  ;;  %s367_s14 = int_to_ptr.vmem [resolvable:$true] %s366_s14  ;;  %s7334_s21 = int_to_ptr.hbm [resolvable:$true] %s7333_s21 }
  0xb6   :  { %s7335_s23 = scalar_lea.hbm %s7334_s21, 2  ;;  %s7337_s28 = scalar_lea.hbm %s7987_s17, 2 }
  0xb7   :  { %p7336_p12 = scmp.ne.s32.totalorder %s7334_s21, %s7335_s23  ;;  %p7338_p13 = scmp.lt.s32.totalorder %s7334_s21, %s7987_s17 }
  0xb8   :  { %p7339_p0 = scmp.lt.s32.totalorder %s7337_s28, %s7335_s23 }
  0xba   :  { %p7340_p1 = por %p7339_p0, %p7338_p13 }
  0xbc   :  { %p7341_p2 = pnand %p7340_p1, %p7336_p12 }
  0xbe   :  { %7344 = shalt.err (!%p7341_p2)
}
  0xbf   :  { %372 = dma.hbm_to_vmem [thread:$0]  %s8088_s20, 32, %s367_s14, [#allocation29], %s7761_s2, %s7761_s2, %s7762_s7  }
  0xc0   :  { %s7773_s18 = smov [#allocation31]   ;;  %s418_s12 = sshll.u32 %s8012_s29, 4  ;;  %s8108_s12 = int_to_ptr.hbm [resolvable:$true] %s418_s12 }
  0xc1   :  { %s394_s1 = sshll.u32 %s7773_s18, 4  ;;  %s7357_s17 = sshra.s32 %s8098_s15, 4  ;;  %s395_s1 = int_to_ptr.vmem [resolvable:$true] %s394_s1  ;;  %s7358_s17 = int_to_ptr.hbm [resolvable:$true] %s7357_s17 }
  0xc2   :  { %s7359_s11 = scalar_lea.hbm %s7358_s17, 2  ;;  %s7361_s13 = scalar_lea.hbm %s8002_s5, 2 }
  0xc3   :  { %p7360_p3 = scmp.ne.s32.totalorder %s7358_s17, %s7359_s11  ;;  %p7362_p4 = scmp.lt.s32.totalorder %s7358_s17, %s8002_s5 }
  0xc4   :  { %p7363_p5 = scmp.lt.s32.totalorder %s7361_s13, %s7359_s11 }
  0xc6   :  { %p7364_p6 = por %p7363_p5, %p7362_p4 }
  0xc8   :  { %p7365_p7 = pnand %p7364_p6, %p7360_p3 }
  0xca   :  { %7368 = shalt.err (!%p7365_p7)
}
  0xcb   :  { %400 = dma.hbm_to_vmem [thread:$0]  %s8098_s15, 32, %s395_s1, [#allocation32], %s7761_s2, %s7761_s2, %s7762_s7  }
  0xcc   :  { %s135_s16 = sshll.u32 %s7877_s6, 4  ;;  %s7774_s30 = smov [#allocation34]   ;;  %s8118_s16 = int_to_ptr.hbm [resolvable:$true] %s135_s16 }
  0xcd   :  { %s420_s20 = sshll.u32 %s7774_s30, 4  ;;  %s7381_s5 = sshra.s32 %s8108_s12, 4  ;;  %s421_s20 = int_to_ptr.vmem [resolvable:$true] %s420_s20  ;;  %s7382_s5 = int_to_ptr.hbm [resolvable:$true] %s7381_s5 }
  0xce   :  { %s7383_s25 = scalar_lea.hbm %s7382_s5, 32  ;;  %s7385_s0 = scalar_lea.hbm %s8012_s29, 32 }
  0xcf   :  { %p7384_p8 = scmp.ne.s32.totalorder %s7382_s5, %s7383_s25  ;;  %p7386_p9 = scmp.lt.s32.totalorder %s7382_s5, %s8012_s29 }
  0xd0   :  { %p7387_p10 = scmp.lt.s32.totalorder %s7385_s0, %s7383_s25 }
  0xd2   :  { %p7388_p11 = por %p7387_p10, %p7386_p9 }
  0xd4   :  { %p7389_p12 = pnand %p7388_p11, %p7384_p8 }
  0xd6   :  { %7392 = shalt.err (!%p7389_p12)
}
  0xd7   :  { %426 = dma.hbm_to_vmem [thread:$0]  %s8108_s12, 512, %s421_s20, [#allocation35], %s7764_s26, %s7764_s26, %s7765_s22  }
  0xd8   :  { %s7775_s10 = smov [#allocation2]   ;;  %s167_s19 = sshll.u32 %s7902_s9, 4  ;;  %s8128_s19 = int_to_ptr.hbm [resolvable:$true] %s167_s19 }
  0xd9   :  { %s137_s15 = sshll.u32 %s7775_s10, 4  ;;  %s7405_s29 = sshra.s32 %s8118_s16, 4  ;;  %s138_s15 = int_to_ptr.vmem [resolvable:$true] %s137_s15  ;;  %s7406_s29 = int_to_ptr.hbm [resolvable:$true] %s7405_s29 }
  0xda   :  { %s7407_s14 = scalar_lea.hbm %s7406_s29, 2  ;;  %s7409_s21 = scalar_lea.hbm %s7877_s6, 2 }
  0xdb   :  { %p7408_p13 = scmp.ne.s32.totalorder %s7406_s29, %s7407_s14  ;;  %p7410_p0 = scmp.lt.s32.totalorder %s7406_s29, %s7877_s6 }
  0xdc   :  { %p7411_p1 = scmp.lt.s32.totalorder %s7409_s21, %s7407_s14 }
  0xde   :  { %p7412_p2 = por %p7411_p1, %p7410_p0 }
  0xe0   :  { %p7413_p3 = pnand %p7412_p2, %p7408_p13 }
  0xe2   :  { %7416 = shalt.err (!%p7413_p3)
}
  0xe3   :  { %143 = dma.hbm_to_vmem [thread:$0]  %s8118_s16, 32, %s138_s15, [#allocation3], %s7761_s2, %s7761_s2, %s7762_s7  }
  0xe4   :  { %s195_s23 = sshll.u32 %s7917_s4, 4  ;;  %s7776_s28 = smov [#allocation6]   ;;  %s8138_s23 = int_to_ptr.hbm [resolvable:$true] %s195_s23 }
  0xe5   :  { %s169_s18 = sshll.u32 %s7776_s28, 4  ;;  %s7429_s6 = sshra.s32 %s8128_s19, 4  ;;  %s170_s18 = int_to_ptr.vmem [resolvable:$true] %s169_s18  ;;  %s7430_s6 = int_to_ptr.hbm [resolvable:$true] %s7429_s6 }
  0xe6   :  { %s7431_s1 = scalar_lea.hbm %s7430_s6, 32  ;;  %s7433_s12 = scalar_lea.hbm %s7902_s9, 32 }
  0xe7   :  { %p7432_p4 = scmp.ne.s32.totalorder %s7430_s6, %s7431_s1  ;;  %p7434_p5 = scmp.lt.s32.totalorder %s7430_s6, %s7902_s9 }
  0xe8   :  { %p7435_p6 = scmp.lt.s32.totalorder %s7433_s12, %s7431_s1 }
  0xea   :  { %p7436_p7 = por %p7435_p6, %p7434_p5 }
  0xec   :  { %p7437_p8 = pnand %p7436_p7, %p7432_p4 }
  0xee   :  { %7440 = shalt.err (!%p7437_p8)
}
  0xef   :  { %175 = dma.hbm_to_vmem [thread:$0]  %s8128_s19, 512, %s170_s18, [#allocation5], %s7764_s26, %s7764_s26, %s7765_s22  }
  0xf0   :  { %s7777_s17 = smov [#allocation9]   ;;  %s223_s13 = sshll.u32 %s7932_s27, 4  ;;  %s8148_s13 = int_to_ptr.hbm [resolvable:$true] %s223_s13 }
  0xf1   :  { %s197_s11 = sshll.u32 %s7777_s17, 4  ;;  %s7453_s9 = sshra.s32 %s8138_s23, 4  ;;  %s198_s11 = int_to_ptr.vmem [resolvable:$true] %s197_s11  ;;  %s7454_s9 = int_to_ptr.hbm [resolvable:$true] %s7453_s9 }
  0xf2   :  { %s7455_s16 = scalar_lea.hbm %s7454_s9, 2  ;;  %s7457_s30 = scalar_lea.hbm %s7917_s4, 2 }
  0xf3   :  { %p7456_p9 = scmp.ne.s32.totalorder %s7454_s9, %s7455_s16  ;;  %p7458_p10 = scmp.lt.s32.totalorder %s7454_s9, %s7917_s4 }
  0xf4   :  { %p7459_p11 = scmp.lt.s32.totalorder %s7457_s30, %s7455_s16 }
  0xf6   :  { %p7460_p12 = por %p7459_p11, %p7458_p10 }
  0xf8   :  { %p7461_p13 = pnand %p7460_p12, %p7456_p9 }
  0xfa   :  { %7464 = shalt.err (!%p7461_p13)
}
  0xfb   :  { %s9333_s20 = sld [smem:[#allocation67_spill]]  ;;  %s7778_s25 = smov [#allocation12]  }
  0xfc   :  { %203 = dma.hbm_to_vmem [thread:$0]  %s8138_s23, 32, %s198_s11, [#allocation8], %s7761_s2, %s7761_s2, %s7762_s7  }
  0xfd   :  { %s225_s0 = sshll.u32 %s7778_s25, 4  ;;  %s7477_s4 = sshra.s32 %s8148_s13, 4  ;;  %s226_s0 = int_to_ptr.vmem [resolvable:$true] %s225_s0  ;;  %s7478_s4 = int_to_ptr.hbm [resolvable:$true] %s7477_s4 }
  0xfe   :  { %s7479_s10 = scalar_lea.hbm %s7478_s4, 2  ;;  %s7481_s15 = scalar_lea.hbm %s7932_s27, 2 }
  0xff   :  { %p7480_p0 = scmp.ne.s32.totalorder %s7478_s4, %s7479_s10  ;;  %p7482_p1 = scmp.lt.s32.totalorder %s7478_s4, %s7932_s27 }
 0x100   :  { %p7483_p2 = scmp.lt.s32.totalorder %s7481_s15, %s7479_s10 }
 0x101   :  { %s249_s5 = sshll.u32 %s9333_s20, 4  ;;  %s8158_s5 = int_to_ptr.hbm [resolvable:$true] %s249_s5 }
 0x102   :  { %p7484_p3 = por %p7483_p2, %p7482_p1 }
 0x104   :  { %p7485_p4 = pnand %p7484_p3, %p7480_p0 }
 0x106   :  { %7488 = shalt.err (!%p7485_p4)
}
 0x107   :  { %s9334_s19 = sld [smem:[#allocation68_spill]]  ;;  %s7779_s29 = smov [#allocation15]  }
 0x108   :  { %231 = dma.hbm_to_vmem [thread:$0]  %s8148_s13, 32, %s226_s0, [#allocation11], %s7761_s2, %s7761_s2, %s7762_s7  }
 0x109   :  { %s251_s14 = sshll.u32 %s7779_s29, 4  ;;  %s7501_s27 = sshra.s32 %s8158_s5, 4  ;;  %s252_s14 = int_to_ptr.vmem [resolvable:$true] %s251_s14  ;;  %s7502_s27 = int_to_ptr.hbm [resolvable:$true] %s7501_s27 }
 0x10a   :  { %s7503_s23 = scalar_lea.hbm %s7502_s27, 64  ;;  %s7505_s28 = scalar_lea.hbm %s9333_s20, 64 }
 0x10b   :  { %p7504_p5 = scmp.ne.s32.totalorder %s7502_s27, %s7503_s23  ;;  %p7506_p6 = scmp.lt.s32.totalorder %s7502_s27, %s9333_s20 }
 0x10c   :  { %p7507_p7 = scmp.lt.s32.totalorder %s7505_s28, %s7503_s23 }
 0x10d   :  { %s275_s21 = sshll.u32 %s9334_s19, 4  ;;  %s8168_s21 = int_to_ptr.hbm [resolvable:$true] %s275_s21 }
 0x10e   :  { %p7508_p8 = por %p7507_p7, %p7506_p6 }
 0x110   :  { %p7509_p9 = pnand %p7508_p8, %p7504_p5 }
 0x112   :  { %7512 = shalt.err (!%p7509_p9)
}
 0x113   :  { %s9335_s18 = sld [smem:[#allocation69_spill]]  ;;  %s7780_s1 = smov [#allocation18]  }
 0x114   :  { %257 = dma.hbm_to_vmem [thread:$0]  %s8158_s5, 1024, %s252_s14, [#allocation14], %s7764_s26, %s7764_s26, %s7765_s22  }
 0x115   :  { %s277_s12 = sshll.u32 %s7780_s1, 4  ;;  %s7525_s17 = sshra.s32 %s8168_s21, 4  ;;  %s278_s12 = int_to_ptr.vmem [resolvable:$true] %s277_s12  ;;  %s7526_s17 = int_to_ptr.hbm [resolvable:$true] %s7525_s17 }
 0x116   :  { %s7527_s11 = scalar_lea.hbm %s7526_s17, 32  ;;  %s7529_s13 = scalar_lea.hbm %s9334_s19, 32 }
 0x117   :  { %p7528_p10 = scmp.ne.s32.totalorder %s7526_s17, %s7527_s11  ;;  %p7530_p11 = scmp.lt.s32.totalorder %s7526_s17, %s9334_s19 }
 0x118   :  { %p7531_p12 = scmp.lt.s32.totalorder %s7529_s13, %s7527_s11 }
 0x119   :  { %s299_s6 = sshll.u32 %s9335_s18, 4  ;;  %s8178_s6 = int_to_ptr.hbm [resolvable:$true] %s299_s6 }
 0x11a   :  { %p7532_p13 = por %p7531_p12, %p7530_p11 }
 0x11c   :  { %p7533_p0 = pnand %p7532_p13, %p7528_p10 }
 0x11e   :  { %7536 = shalt.err (!%p7533_p0)
}
 0x11f   :  { %s9336_s9 = sld [smem:[#allocation70_spill]]  ;;  %s7781_s16 = smov [#allocation21]  }
 0x120   :  { %283 = dma.hbm_to_vmem [thread:$0]  %s8168_s21, 512, %s278_s12, [#allocation17], %s7764_s26, %s7764_s26, %s7765_s22  }
 0x121   :  { %s301_s30 = sshll.u32 %s7781_s16, 4  ;;  %s7549_s5 = sshra.s32 %s8178_s6, 4  ;;  %s302_s30 = int_to_ptr.vmem [resolvable:$true] %s301_s30  ;;  %s7550_s5 = int_to_ptr.hbm [resolvable:$true] %s7549_s5 }
 0x122   :  { %s7551_s25 = scalar_lea.hbm %s7550_s5, 64  ;;  %s7553_s0 = scalar_lea.hbm %s9335_s18, 64 }
 0x123   :  { %p7552_p1 = scmp.ne.s32.totalorder %s7550_s5, %s7551_s25  ;;  %p7554_p2 = scmp.lt.s32.totalorder %s7550_s5, %s9335_s18 }
 0x124   :  { %p7555_p3 = scmp.lt.s32.totalorder %s7553_s0, %s7551_s25 }
 0x125   :  { %s325_s20 = sshll.u32 %s9336_s9, 4  ;;  %s8188_s20 = int_to_ptr.hbm [resolvable:$true] %s325_s20 }
 0x126   :  { %p7556_p4 = por %p7555_p3, %p7554_p2 }
 0x128   :  { %p7557_p5 = pnand %p7556_p4, %p7552_p1 }
 0x12a   :  { %7560 = shalt.err (!%p7557_p5)
}
 0x12b   :  { %s9337_s4 = sld [smem:[#allocation71_spill]]  ;;  %s7782_s15 = smov [#allocation24]  }
 0x12c   :  { %307 = dma.hbm_to_vmem [thread:$0]  %s8178_s6, 1024, %s302_s30, [#allocation20], %s7764_s26, %s7764_s26, %s7765_s22  }
 0x12d   :  { %s327_s19 = sshll.u32 %s7782_s15, 4  ;;  %s7573_s29 = sshra.s32 %s8188_s20, 4  ;;  %s328_s19 = int_to_ptr.vmem [resolvable:$true] %s327_s19  ;;  %s7574_s29 = int_to_ptr.hbm [resolvable:$true] %s7573_s29 }
 0x12e   :  { %s7575_s14 = scalar_lea.hbm %s7574_s29, 2  ;;  %s7577_s21 = scalar_lea.hbm %s9336_s9, 2 }
 0x12f   :  { %p7576_p6 = scmp.ne.s32.totalorder %s7574_s29, %s7575_s14  ;;  %p7578_p7 = scmp.lt.s32.totalorder %s7574_s29, %s9336_s9 }
 0x130   :  { %p7579_p8 = scmp.lt.s32.totalorder %s7577_s21, %s7575_s14 }
 0x131   :  { %s351_s10 = sshll.u32 %s9337_s4, 4  ;;  %s8198_s10 = int_to_ptr.hbm [resolvable:$true] %s351_s10 }
 0x132   :  { %p7580_p9 = por %p7579_p8, %p7578_p7 }
 0x134   :  { %p7581_p10 = pnand %p7580_p9, %p7576_p6 }
 0x136   :  { %7584 = shalt.err (!%p7581_p10)
}
 0x137   :  { %s9338_s27 = sld [smem:[#allocation73_spill]]  ;;  %s7783_s23 = smov [#allocation27]  }
 0x138   :  { %333 = dma.hbm_to_vmem [thread:$0]  %s8188_s20, 32, %s328_s19, [#allocation23], %s7761_s2, %s7761_s2, %s7762_s7  }
 0x139   :  { %s353_s28 = sshll.u32 %s7783_s23, 4  ;;  %s7597_s6 = sshra.s32 %s8198_s10, 4  ;;  %s354_s28 = int_to_ptr.vmem [resolvable:$true] %s353_s28  ;;  %s7598_s6 = int_to_ptr.hbm [resolvable:$true] %s7597_s6 }
 0x13a   :  { %s7599_s1 = scalar_lea.hbm %s7598_s6, 64  ;;  %s7601_s12 = scalar_lea.hbm %s9337_s4, 64 }
 0x13b   :  { %p7600_p11 = scmp.ne.s32.totalorder %s7598_s6, %s7599_s1  ;;  %p7602_p12 = scmp.lt.s32.totalorder %s7598_s6, %s9337_s4 }
 0x13c   :  { %p7603_p13 = scmp.lt.s32.totalorder %s7601_s12, %s7599_s1 }
 0x13d   :  { %s379_s18 = sshll.u32 %s9338_s27, 4  ;;  %s8208_s18 = int_to_ptr.hbm [resolvable:$true] %s379_s18 }
 0x13e   :  { %p7604_p0 = por %p7603_p13, %p7602_p12 }
 0x140   :  { %p7605_p1 = pnand %p7604_p0, %p7600_p11 }
 0x142   :  { %7608 = shalt.err (!%p7605_p1)
}
 0x143   :  { %s9339_s17 = sld [smem:[#allocation74_spill]]  ;;  %s7784_s13 = smov [#allocation30]  }
 0x144   :  { %359 = dma.hbm_to_vmem [thread:$0]  %s8198_s10, 1024, %s354_s28, [#allocation26], %s7764_s26, %s7764_s26, %s7765_s22  }
 0x145   :  { %s381_s9 = sshll.u32 %s7784_s13, 4  ;;  %s7621_s16 = sshra.s32 %s8208_s18, 4  ;;  %s382_s9 = int_to_ptr.vmem [resolvable:$true] %s381_s9  ;;  %s7622_s16 = int_to_ptr.hbm [resolvable:$true] %s7621_s16 }
 0x146   :  { %s7623_s30 = scalar_lea.hbm %s7622_s16, 2  ;;  %s7625_s20 = scalar_lea.hbm %s9338_s27, 2 }
 0x147   :  { %p7624_p2 = scmp.ne.s32.totalorder %s7622_s16, %s7623_s30  ;;  %p7626_p3 = scmp.lt.s32.totalorder %s7622_s16, %s9338_s27 }
 0x148   :  { %p7627_p4 = scmp.lt.s32.totalorder %s7625_s20, %s7623_s30 }
 0x149   :  { %s405_s11 = sshll.u32 %s9339_s17, 4  ;;  %s8218_s11 = int_to_ptr.hbm [resolvable:$true] %s405_s11 }
 0x14a   :  { %p7628_p5 = por %p7627_p4, %p7626_p3 }
 0x14c   :  { %p7629_p6 = pnand %p7628_p5, %p7624_p2 }
 0x14e   :  { %7632 = shalt.err (!%p7629_p6)
}
 0x14f   :  { %387 = dma.hbm_to_vmem [thread:$0]  %s8208_s18, 32, %s382_s9, [#allocation29], %s7761_s2, %s7761_s2, %s7762_s7  }
 0x150   :  { %s7785_s26 = smov [#allocation33]   ;;  %s432_s25 = sshll.u32 %s8017_s3, 4  ;;  %s433_s25 = int_to_ptr.hbm [resolvable:$true] %s432_s25 }
 0x151   :  { %s407_s5 = sshll.u32 %s7785_s26, 4  ;;  %s7645_s0 = sshra.s32 %s8218_s11, 4  ;;  %s408_s5 = int_to_ptr.vmem [resolvable:$true] %s407_s5  ;;  %s7646_s0 = int_to_ptr.hbm [resolvable:$true] %s7645_s0 }
 0x152   :  { %s7647_s4 = scalar_lea.hbm %s7646_s0, 2  ;;  %s7649_s10 = scalar_lea.hbm %s9339_s17, 2 }
 0x153   :  { %p7648_p7 = scmp.ne.s32.totalorder %s7646_s0, %s7647_s4  ;;  %p7650_p8 = scmp.lt.s32.totalorder %s7646_s0, %s9339_s17 }
 0x154   :  { %p7651_p9 = scmp.lt.s32.totalorder %s7649_s10, %s7647_s4 }
 0x156   :  { %p7652_p10 = por %p7651_p9, %p7650_p8 }
 0x158   :  { %p7653_p11 = pnand %p7652_p10, %p7648_p7 }
 0x15a   :  { %7656 = shalt.err (!%p7653_p11)
}
 0x15b   :  { %413 = dma.hbm_to_vmem [thread:$0]  %s8218_s11, 32, %s408_s5, [#allocation32], %s7761_s2, %s7761_s2, %s7762_s7  }
 0x15c   :  { %s7786_s15 = smov [#allocation36]   ;;  %s7669_s29 = sshra.s32 %s433_s25, 4  ;;  %s7670_s29 = int_to_ptr.hbm [resolvable:$true] %s7669_s29 }
 0x15d   :  { %s434_s19 = sshll.u32 %s7786_s15, 4  ;;  %s7671_s14 = scalar_lea.hbm %s7670_s29, 1  ;;  %s435_s19 = int_to_ptr.vmem [resolvable:$true] %s434_s19 }
 0x15e   :  { %p7672_p12 = scmp.ne.s32.totalorder %s7670_s29, %s7671_s14  ;;  %s7673_s21 = scalar_lea.hbm %s8017_s3, 1 }
 0x15f   :  { %p7674_p13 = scmp.lt.s32.totalorder %s7670_s29, %s8017_s3  ;;  %p7675_p0 = scmp.lt.s32.totalorder %s7673_s21, %s7671_s14 }
 0x161   :  { %p7676_p1 = por %p7675_p0, %p7674_p13 }
 0x163   :  { %p7677_p2 = pnand %p7676_p1, %p7672_p12 }
 0x165   :  { %7680 = shalt.err (!%p7677_p2)
}
 0x166   :  { %437 = dma.hbm_to_vmem [thread:$0]  %s433_s25, 16, %s435_s19, [#allocation35]  }
 0x167   :  { %7693 = dma.done.wait [#allocation3], 32  }
 0x168   :  { %7694 = vsyncadd [#allocation3], 4294967264 }
 0x169   :  { %7695 = dma.done.wait [#allocation5], 544  }
 0x16a   :  { %7696 = vsyncadd [#allocation5], 4294966752 }
 0x16b   :  { %7697 = dma.done.wait [#allocation8], 288  }
 0x16c   :  { %7698 = vsyncadd [#allocation8], 4294967008 }
 0x16d   :  { %7699 = dma.done.wait [#allocation11], 64  }
 0x16e   :  { %7700 = vsyncadd [#allocation11], 4294967232 }
 0x16f   :  { %7701 = dma.done.wait [#allocation14], 1056  }
 0x170   :  { %7702 = vsyncadd [#allocation14], 4294966240 }
 0x171   :  { %7703 = dma.done.wait [#allocation17], 544  }
 0x172   :  { %7704 = vsyncadd [#allocation17], 4294966752 }
 0x173   :  { %7705 = dma.done.wait [#allocation20], 1040  }
 0x174   :  { %7706 = vsyncadd [#allocation20], 4294966256 }
 0x175   :  { %7707 = dma.done.wait [#allocation23], 64  }
 0x176   :  { %7708 = vsyncadd [#allocation23], 4294967232 }
 0x177   :  { %7709 = dma.done.wait [#allocation26], 1056  }
 0x178   :  { %7710 = vsyncadd [#allocation26], 4294966240 }
 0x179   :  { %7711 = dma.done.wait [#allocation29], 64  }
 0x17a   :  { %7712 = vsyncadd [#allocation29], 4294967232 }
 0x17b   :  { %7713 = dma.done.wait [#allocation32], 64  }
 0x17c   :  { %7714 = vsyncadd [#allocation32], 4294967232 }
 0x17d   :  { %7715 = dma.done.wait [#allocation35], 528  }
 0x17e   :  { %7716 = vsyncadd [#allocation35], 4294966768  ;;  %s9340_s3 = sld [smem:[#allocation52_spill]]  ;;  %v7787_v0 = vmov 0   ;;  %v537_v1 = vlaneseq  ;;  %v7788_v15 = vmov -1e+10  }
 0x17f   :  { %s9341_s7 = sld [smem:[#allocation49_spill]]  ;;  %6853 = vset.pattern.permute.xlu0 %v7787_v0  ;;  %6854 = vset.pattern.permute.xlu2 %v7787_v0  ;;  %vm575_vm7 = vcmask 261120   ;;  %v7789_v21 = vmov 0.0   ;;  %s7790_s6 = smov 64   ;;  %vm658_vm10 = vcmask 64512  }
 0x180   :  { %s9342_s27 = sld [smem:[#allocation53_spill]]  ;;  %v538_v2 = vshrl.u32 %v537_v1, 7  ;;  %v8239_v5 = vand.u32 127, %v537_v1  ;;  %s7791_s1 = smov 96  }
 0x181   :  { %s9343_s23 = sld [smem:[#allocation55_spill]]  ;;  %s7792_s17 = smov 88  }
 0x182   :  { %vm541_vm1 = vcmp.le.s32.totalorder %v8239_v5, %v538_v2  ;;  %s9344_s28 = sld [smem:[#allocation54_spill]]  ;;  %s7793_s11 = smov 120  }
 0x183   :  { %s9345_s18 = sld [smem:[#allocation56_spill]]  ;;  %s7794_s13 = smov 56  }
 0x184   :  { %v535_v3 = vld [vmem:[%s9340_s3] sm:$0x3]  ;;  %s9346_s12 = sld [smem:[#allocation51_spill]]  ;;  %s7795_s9 = smov 112  }
 0x185   :  { %v556_v4 = vld [vmem:[%s9341_s7] sm:$0xff]  ;;  %vm536_vm0 = vcmp.ne.s32.totalorder %v535_v3, 0  ;;  %v557_v12 = vld [vmem:[%s9341_s7 + $0x8] sm:$0xff]  ;;  %s9347_s16 = sld [smem:[#allocation57_spill]]  ;;  %s7796_s30 = smov 80  }
 0x186   :  { %564 = vperm.xlu0 %6853, %v556_v4   ;;  %v561_v6 = vld [vmem:[%s9342_s27 + $0x18] sm:$0xff]  ;;  %v560_v7 = vld [vmem:[%s9342_s27 + $0x10] sm:$0xff]  ;;  %v542_v8 = vsel %vm536_vm0, 1, %v7787_v0  ;;  %v559_v11 = vld [vmem:[%s9342_s27 + $0x8] sm:$0xff]  ;;  %s7797_s20 = smov 72   ;;  %s7798_s26 = smov 104  }
 0x187   :  { %594 = vmatpush.msra.mxu0 %v561_v6  ;;  %v543_v9 = vrot.slane %v542_v8, 1  ;;  %v546_v10 = vperm.slane %v542_v8, 0  ;;  %v558_v18 = vld [vmem:[%s9342_s27] sm:$0xff]  ;;  %v612_v19 = vld [vmem:[%s9343_s23 + $0x18] sm:$0xff]  ;;  %v611_v25 = vld [vmem:[%s9343_s23 + $0x10] sm:$0xff]  ;;  %s7799_s5 = smov 48  }
 0x188   :  { %635 = vmatpush.msra.mxu1 %v612_v19  ;;  %v610_v26 = vld [vmem:[%s9343_s23 + $0x8] sm:$0xff]  ;;  %v609_v27 = vld [vmem:[%s9343_s23] sm:$0xff]  ;;  %s7800_s25 = smov 40   ;;  %s9348_s0 = sld [smem:[#allocation58_spill]] }
 0x189   :  { %595 = vmatpush.msra.mxu0 %v560_v7  ;;  %vm544_vm2 = vcmp.ne.s32.totalorder %v543_v9, 0  ;;  %vm548_vm3 = vcmp.eq.s32.totalorder %v546_v10, 1  ;;  %v562_v28 = vld [vmem:[%s9344_s28] sm:$0xff]  ;;  %s9349_s4 = sld [smem:[#allocation61_spill]]  ;;  %s7803_s28 = smov 24  }
 0x18a   :  { %v545_v13 = vsel %vm544_vm2, 1, %v7787_v0  ;;  %vm552_vm4 = vmand %vm548_vm3, %vm541_vm1  ;;  %636 = vmatpush.msra.mxu1 %v611_v25  ;;  %v6865_v35 = vld [vmem:[%s9345_s18] ss:$0 sm:$0xff]  ;;  %s9350_s10 = sld [smem:[#allocation59_spill]] }
 0x18b   :  { %596 = vmatpush.msra.mxu0 %v559_v11  ;;  %v547_v14 = vperm.slane %v545_v13, 0  ;;  %v8248_v16 = vsel %vm552_vm4, 0.0, %v7788_v15  ;;  %v530_v44 = vld [vmem:[%s9346_s12] sm:$0x3]  ;;  %s9351_s15 = sld [smem:[#allocation60_spill]] }
 0x18c   :  { %637 = vmatpush.msra.mxu1 %v610_v26  ;;  %vm531_vm11 = vcmp.ne.s32.totalorder %v530_v44, 0  ;;  %s9352_s19 = sld [smem:[#allocation62_spill]] }
 0x18d   :  { %vm549_vm5 = vcmp.eq.s32.totalorder %v547_v14, 1  ;;  %597 = vmatpush.msra.mxu0 %v558_v18  ;;  %v532_v45 = vsel %vm531_vm11, 0.0, %v7788_v15  ;;  %s9353_s29 = sld [smem:[#allocation63_spill]] }
 0x18e   :  { %567 = vperm.xlu0 %6853, %v557_v12   ;;  %vm553_vm6 = vmand %vm549_vm5, %vm541_vm1  ;;  %638 = vmatpush.msra.mxu1 %v609_v27  ;;  %v8295_v46 = vperm.slane %v532_v45, 0  ;;  %v534_v48 = vrot.slane %v532_v45, 1  ;;  %s9354_s14 = sld [smem:[#allocation64_spill]] }
 0x18f   :  { %v8252_v17 = vsel %vm553_vm6, 0.0, %v7788_v15  ;;  %s9355_s21 = sld [smem:[#allocation50_spill]] }
 0x190   :  { %v8299_v51 = vperm.slane %v534_v48, 0  ;;  %s9356_s3 = sld [smem:[#allocation65_spill]] }
 0x191   :  { %s9357_s7 = sld [smem:[#allocation66_spill]] }
 0x192   :  { %s9362_s27 = sld [smem:[#allocation72_spill]] }
 0x1f8   :  { %v565_v20 = vpop.permute.xlu0 %564 }
 0x1f9   :  { %vm569_vm8 = vcmp.eq.s32.totalorder %v565_v20, %v8239_v5 }
 0x1fa   :  { %v6486_v22 = vsel %vm569_vm8, 1.0, %v7789_v21 }
 0x1fb   :  { %6488 = vmatmul.msk.f32.vlgmr.msra.gmra.mxu0 %vm575_vm7, %v6486_v22 }
 0x200   :  { %v568_v23 = vpop.permute.xlu0 %567 }
 0x201   :  { %vm570_vm9 = vcmp.eq.s32.totalorder %v568_v23, %v8239_v5 }
 0x202   :  { %v6487_v24 = vsel %vm570_vm9, 1.0, %v7789_v21 }
 0x203   :  { %6489 = vmatmul.msk.f32.gmra.mxu0 %vm575_vm7, %v6487_v24 }
 0x278   :  { %v599_v29 = vpop.f32.mrf.mxu0 }
 0x279   :  { %v605_v30 = vmul.f32 5.656854, %v599_v29 }
 0x27b   :  { %v8266_v31 = vadd.f32 %v605_v30, %v562_v28 }
 0x27d   :  { %6490 = vmatmul.msk.f32.vlgmr.msra.gmra.mxu1 %vm575_vm7, %v8266_v31 }
 0x280   :  { %v602_v32 = vpop.f32.mrf.mxu0 }
 0x281   :  { %v606_v33 = vmul.f32 5.656854, %v602_v32 }
 0x283   :  { %v8270_v34 = vadd.f32 %v606_v33, %v562_v28 }
 0x285   :  { %6491 = vmatmul.msk.f32.gmra.mxu1 %vm575_vm7, %v8270_v34 }
 0x2fa   :  { %v640_v36 = vpop.f32.mrf.mxu1 }
 0x2fb   :  { %v8275_v37 = vadd.f32 %v6865_v35, %v640_v36  ;;  %v646_v36 = vld [vmem:[%s9347_s16] sm:$0xff] }
 0x2fd   :  { %758 = vrot.lane.b32.xlu0 %v8275_v37, %s7790_s6  ;;  %656 = vrot.lane.b32.xlu1 %v8275_v37, %s7791_s1 }
 0x302   :  { %v643_v38 = vpop.f32.mrf.mxu1 }
 0x303   :  { %v8281_v39 = vadd.f32 %v6865_v35, %v643_v38 }
 0x305   :  { %684 = vrot.lane.b32.xlu1 %v8281_v39, %s7791_s1 }
 0x30d   :  { %812 = vrot.lane.b32.xlu1 %v8275_v37, %s7792_s17 }
 0x36f   :  { %v657_v40 = vpop.permute.xlu1 %656  ;;  %v759_v41 = vpop.permute.xlu0 %758 }
 0x370   :  { %6492 = vmatpush.xpose.msk.msra.mxu2 %vm658_vm10, %v657_v40 }
 0x373   :  { %6493 = vmatmul.msk.f32.vlgmr.msra.gmra.mxu2 %vm658_vm10, %v8275_v37 }
 0x374   :  { %779 = vmatpush.msrb.mxu2 %v759_v41 }
 0x377   :  { %v685_v42 = vpop.permute.xlu1 %684 }
 0x378   :  { %6494 = vmatpush.xpose.msk.msra.mxu3 %vm658_vm10, %v685_v42 }
 0x37b   :  { %6495 = vmatmul.msk.f32.vlgmr.msra.gmra.mxu3 %vm658_vm10, %v8281_v39 }
 0x37f   :  { %v813_v43 = vpop.permute.xlu1 %812 }
 0x380   :  { %6498 = vmatpush.xpose.msk.msra.mxu2 %vm658_vm10, %v813_v43 }
 0x3f6   :  { %v680_v47 = vpop.f32.mrf.mxu2 }
 0x3f7   :  { %v681_v49 = vadd.f32 %v680_v47, %v8295_v46 }
 0x3f9   :  { %v710_v50 = vsel %vm658_vm10, %v681_v49, -inf }
 0x3fa   :  { %711 = vmax.xlane.f32.xlu2 %v710_v50 }
 0x3fe   :  { %v707_v52 = vpop.f32.mrf.mxu3 }
 0x3ff   :  { %v708_v53 = vadd.f32 %v707_v52, %v8299_v51 }
 0x401   :  { %v713_v54 = vsel %vm658_vm10, %v708_v53, -inf }
 0x402   :  { %714 = vmax.xlane.f32.xlu0 %v713_v54 }
 0x46d   :  { %v712_v55 = vpop.xlane.xlu2 %711 }
 0x46e   :  { %v716_v56 = vsub.f32 %v681_v49, %v712_v55 }
 0x470   :  { %v718_v57 = vmul.f32 1.442695, %v716_v56 }
 0x472   :  { %6907 = vpow2.f32 %v718_v57 }
 0x475   :  { %v715_v58 = vpop.xlane.xlu0 %714 }
 0x476   :  { %v717_v59 = vsub.f32 %v708_v53, %v715_v58 }
 0x478   :  { %v6908_v60 = vpop.eup %6907  ;;  %v720_v61 = vmul.f32 1.442695, %v717_v59 }
 0x479   :  { %v722_v62 = vsel %vm658_vm10, %v6908_v60, 0.0 }
 0x47a   :  { %6909 = vpow2.f32 %v720_v61  ;;  %723 = vadd.xlane.f32.xlu2 %v722_v62 }
 0x480   :  { %v6910_v63 = vpop.eup %6909 }
 0x481   :  { %v725_v0 = vsel %vm658_vm10, %v6910_v63, 0.0 }
 0x482   :  { %726 = vadd.xlane.f32.xlu1 %v725_v0 }
 0x492   :  { %810 = vrot.lane.b32.xlu2 %v8275_v37, %s7793_s11 }
 0x49a   :  { %784 = vrot.lane.b32.xlu2 %v8281_v39, %s7790_s6 }
 0x49b   :  { %914 = vrot.lane.b32.xlu1 %v8275_v37, %s7794_s13 }
 0x4a2   :  { %840 = vrot.lane.b32.xlu2 %v8281_v39, %s7792_s17 }
 0x4a3   :  { %1024 = vrot.lane.b32.xlu1 %v8275_v37, %s7795_s9 }
 0x4aa   :  { %838 = vrot.lane.b32.xlu2 %v8281_v39, %s7793_s11 }
 0x4ed   :  { %v724_v1 = vpop.xlane.xlu2 %723 }
 0x4ee   :  { %6911 = vrcp.f32 %v724_v1  ;;  %v739_v8 = vand.u32 2147483648, %v724_v1  ;;  %v737_v10 = vand.u32 2147483647, %v724_v1  ;;  %vm733_vm13 = vweird.f32 %v724_v1 }
 0x4f0   :  { %v740_v13 = vor.u32 1.1754944e-38, %v739_v8  ;;  %vm738_vm15 = vcmp.eq.f32.partialorder %v737_v10, 8.507059e+37 }
 0x4f4   :  { %v6912_v2 = vpop.eup %6911 }
 0x4f5   :  { %v729_v3 = vmul.f32 %v6912_v2, %v724_v1  ;;  %v811_v4 = vpop.permute.xlu2 %810  ;;  %v727_v6 = vpop.xlane.xlu1 %726  ;;  %vm734_vm12 = vweird.f32 %v6912_v2 }
 0x4f6   :  { %6913 = vrcp.f32 %v727_v6  ;;  %vm735_vm14 = vmor %vm733_vm13, %vm734_vm12  ;;  %v754_v23 = vand.u32 2147483648, %v727_v6  ;;  %v752_v25 = vand.u32 2147483647, %v727_v6  ;;  %vm748_vm1 = vweird.f32 %v727_v6 }
 0x4f7   :  { %v730_v7 = vsub.f32 1.0, %v729_v3 }
 0x4f8   :  { %v755_v27 = vor.u32 1.1754944e-38, %v754_v23  ;;  %vm753_vm3 = vcmp.eq.f32.partialorder %v752_v25, 8.507059e+37 }
 0x4f9   :  { %v731_v9 = vmul.f32 %v6912_v2, %v730_v7 }
 0x4fb   :  { %v732_v11 = vadd.f32 %v6912_v2, %v731_v9 }
 0x4fc   :  { %v6914_v12 = vpop.eup %6913 }
 0x4fd   :  { %v744_v14 = vmul.f32 %v6914_v12, %v727_v6  ;;  %v785_v15 = vpop.permute.xlu2 %784  ;;  %v736_v18 = vsel %vm735_vm14, %v6912_v2, %v732_v11  ;;  %vm749_vm0 = vweird.f32 %v6914_v12 }
 0x4fe   :  { %805 = vmatpush.msrb.mxu3 %v785_v15  ;;  %v741_v19 = vsel %vm738_vm15, %v740_v13, %v736_v18  ;;  %vm750_vm2 = vmor %vm748_vm1, %vm749_vm0  ;;  %v647_v13 = vld [vmem:[%s9347_s16 + $0x8] sm:$0xff] }
 0x4ff   :  { %v745_v20 = vsub.f32 1.0, %v744_v14  ;;  %v742_v22 = vmul.f32 %v6908_v60, %v741_v19 }
 0x501   :  { %v746_v24 = vmul.f32 %v6914_v12, %v745_v20  ;;  %6496 = vmatmul.msk.f32.vlgmr.msrb.gmra.mxu2 %vm658_vm10, %v742_v22 }
 0x502   :  { %987 = vmatpush.msrb.mxu2 %v647_v13 }
 0x503   :  { %v747_v26 = vadd.f32 %v6914_v12, %v746_v24 }
 0x505   :  { %v841_v28 = vpop.permute.xlu2 %840  ;;  %v751_v29 = vsel %vm750_vm2, %v6914_v12, %v747_v26 }
 0x506   :  { %6500 = vmatpush.xpose.msk.msra.mxu3 %vm658_vm10, %v841_v28  ;;  %v756_v30 = vsel %vm753_vm3, %v755_v27, %v751_v29 }
 0x507   :  { %v757_v32 = vmul.f32 %v6910_v63, %v756_v30 }
 0x509   :  { %6497 = vmatmul.msk.f32.vlgmr.msrb.gmra.mxu3 %vm658_vm10, %v757_v32  ;;  %6499 = vmatmul.msk.f32.vlgmr.msra.gmra.mxu2 %vm658_vm10, %v811_v4 }
 0x50a   :  { %1016 = vmatpush.msrb.mxu3 %v646_v36 }
 0x50d   :  { %v915_v33 = vpop.permute.xlu1 %914  ;;  %v839_v35 = vpop.permute.xlu2 %838 }
 0x50e   :  { %935 = vmatpush.msrb.mxu0 %v915_v33 }
 0x511   :  { %6501 = vmatmul.msk.f32.vlgmr.msra.gmra.mxu3 %vm658_vm10, %v839_v35 }
 0x515   :  { %v1025_v6 = vpop.permute.xlu1 %1024 }
 0x584   :  { %v781_v38 = vpop.f32.mrf.mxu2 }
 0x585   :  { %6506 = vmatmul.msk.f32.vlgmr.msrb.gmra.mxu3 %vm658_vm10, %v781_v38 }
 0x58c   :  { %v807_v40 = vpop.f32.mrf.mxu3  ;;  %v835_v41 = vpop.f32.mrf.mxu2 }
 0x58d   :  { %v836_v42 = vadd.f32 %v835_v41, %v8295_v46  ;;  %6507 = vmatmul.msk.f32.gmra.mxu3 %vm658_vm10, %v807_v40 }
 0x58f   :  { %v866_v43 = vsel %vm658_vm10, %v836_v42, -inf }
 0x590   :  { %867 = vmax.xlane.f32.xlu2 %v866_v43 }
 0x594   :  { %v863_v53 = vpop.f32.mrf.mxu3 }
 0x595   :  { %v864_v54 = vadd.f32 %v863_v53, %v8299_v51 }
 0x597   :  { %v869_v55 = vsel %vm658_vm10, %v864_v54, -inf }
 0x5a8   :  { %940 = vrot.lane.b32.xlu2 %v8281_v39, %s7794_s13 }
 0x5b0   :  { %1054 = vrot.lane.b32.xlu2 %v8281_v39, %s7796_s30 }
 0x5b8   :  { %1052 = vrot.lane.b32.xlu2 %v8281_v39, %s7795_s9 }
 0x603   :  { %v868_v44 = vpop.xlane.xlu2 %867 }
 0x604   :  { %v872_v45 = vsub.f32 %v836_v42, %v868_v44 }
 0x606   :  { %v874_v47 = vmul.f32 1.442695, %v872_v45 }
 0x608   :  { %6915 = vpow2.f32 %v874_v47  ;;  %v8363_v47 = vpop.f32.mrf.mxu3 }
 0x60b   :  { %v941_v48 = vpop.permute.xlu2 %940 }
 0x60c   :  { %961 = vmatpush.msrb.mxu1 %v941_v48 }
 0x60e   :  { %v6916_v49 = vpop.eup %6915 }
 0x60f   :  { %v878_v50 = vsel %vm658_vm10, %v6916_v49, 0.0 }
 0x610   :  { %879 = vadd.xlane.f32.xlu0 %v878_v50 }
 0x613   :  { %v1055_v52 = vpop.permute.xlu2 %1054 }
 0x614   :  { %6510 = vmatpush.xpose.msk.msra.mxu1 %vm658_vm10, %v1055_v52 }
 0x61b   :  { %v1053_v36 = vpop.permute.xlu2 %1052 }
 0x624   :  { %1026 = vrot.lane.b32.xlu0 %v8275_v37, %s7796_s30 }
 0x64e   :  { %870 = vmax.xlane.f32.xlu0 %v869_v55 }
 0x662   :  { %1213 = vrot.lane.b32.xlu0 %v8275_v37, %s7797_s20 }
 0x683   :  { %v880_v56 = vpop.xlane.xlu0 %879 }
 0x684   :  { %6917 = vrcp.f32 %v880_v56  ;;  %v895_v60 = vand.u32 2147483648, %v880_v56  ;;  %v893_v62 = vand.u32 2147483647, %v880_v56  ;;  %vm889_vm5 = vweird.f32 %v880_v56 }
 0x686   :  { %v896_v0 = vor.u32 1.1754944e-38, %v895_v60  ;;  %vm894_vm8 = vcmp.eq.f32.partialorder %v893_v62, 8.507059e+37 }
 0x68a   :  { %v6918_v57 = vpop.eup %6917 }
 0x68b   :  { %v885_v58 = vmul.f32 %v6918_v57, %v880_v56  ;;  %vm890_vm4 = vweird.f32 %v6918_v57 }
 0x68c   :  { %vm891_vm6 = vmor %vm889_vm5, %vm890_vm4 }
 0x68d   :  { %v886_v59 = vsub.f32 1.0, %v885_v58 }
 0x68f   :  { %v887_v61 = vmul.f32 %v6918_v57, %v886_v59 }
 0x691   :  { %v888_v63 = vadd.f32 %v6918_v57, %v887_v61 }
 0x693   :  { %v892_v1 = vsel %vm891_vm6, %v6918_v57, %v888_v63 }
 0x694   :  { %v897_v2 = vsel %vm894_vm8, %v896_v0, %v892_v1 }
 0x695   :  { %v898_v3 = vmul.f32 %v6916_v49, %v897_v2  ;;  %v8366_v49 = vpop.f32.mrf.mxu3 }
 0x696   :  { %v1027_v4 = vpop.permute.xlu0 %1026 }
 0x697   :  { %6502 = vmatmul.msk.f32.vlgmr.msrb.gmra.mxu0 %vm658_vm10, %v898_v3 }
 0x698   :  { %6508 = vmatpush.xpose.msk.msra.mxu0 %vm658_vm10, %v1027_v4 }
 0x69f   :  { %6509 = vmatmul.msk.f32.vlgmr.msra.gmra.mxu0 %vm658_vm10, %v1025_v6 }
 0x6c1   :  { %v871_v7 = vpop.xlane.xlu0 %870 }
 0x6c2   :  { %v873_v8 = vsub.f32 %v864_v54, %v871_v7 }
 0x6c4   :  { %v876_v9 = vmul.f32 1.442695, %v873_v8 }
 0x6c6   :  { %6919 = vpow2.f32 %v876_v9 }
 0x6cc   :  { %v6920_v10 = vpop.eup %6919 }
 0x6cd   :  { %v881_v11 = vsel %vm658_vm10, %v6920_v10, 0.0 }
 0x6ce   :  { %882 = vadd.xlane.f32.xlu1 %v881_v11 }
 0x6d4   :  { %v1214_v12 = vpop.permute.xlu0 %1213 }
 0x6d5   :  { %6516 = vmatpush.xpose.msk.msra.mxu3 %vm658_vm10, %v1214_v12 }
 0x6e7   :  { %1211 = vrot.lane.b32.xlu1 %v8275_v37, %s7798_s26 }
 0x6ef   :  { %1128 = vrot.lane.b32.xlu1 %v8275_v37, %s7799_s5 }
 0x6f7   :  { %1241 = vrot.lane.b32.xlu1 %v8281_v39, %s7797_s20 }
 0x6ff   :  { %1239 = vrot.lane.b32.xlu1 %v8281_v39, %s7798_s26 }
 0x714   :  { %v937_v14 = vpop.f32.mrf.mxu0 }
 0x715   :  { %6504 = vmatmul.msk.f32.vlgmr.msrb.gmra.mxu2 %vm658_vm10, %v937_v14 }
 0x71c   :  { %v1049_v15 = vpop.f32.mrf.mxu0 }
 0x71d   :  { %v1050_v18 = vadd.f32 %v1049_v15, %v8295_v46 }
 0x71f   :  { %v1080_v19 = vsel %vm658_vm10, %v1050_v18, -inf }
 0x720   :  { %1081 = vmax.xlane.f32.xlu2 %v1080_v19 }
 0x741   :  { %v883_v20 = vpop.xlane.xlu1 %882 }
 0x742   :  { %6921 = vrcp.f32 %v883_v20  ;;  %v910_v25 = vand.u32 2147483648, %v883_v20  ;;  %v908_v27 = vand.u32 2147483647, %v883_v20  ;;  %vm904_vm11 = vweird.f32 %v883_v20 }
 0x744   :  { %v911_v29 = vor.u32 1.1754944e-38, %v910_v25  ;;  %vm909_vm13 = vcmp.eq.f32.partialorder %v908_v27, 8.507059e+37 }
 0x748   :  { %v6922_v22 = vpop.eup %6921 }
 0x749   :  { %v900_v23 = vmul.f32 %v6922_v22, %v883_v20  ;;  %vm905_vm9 = vweird.f32 %v6922_v22  ;;  %v648_v20 = vld [vmem:[%s9347_s16 + $0x10] sm:$0xff] }
 0x74a   :  { %vm906_vm12 = vmor %vm904_vm11, %vm905_vm9  ;;  %1201 = vmatpush.msra.mxu2 %v648_v20 }
 0x74b   :  { %v901_v24 = vsub.f32 1.0, %v900_v23 }
 0x74d   :  { %v902_v26 = vmul.f32 %v6922_v22, %v901_v24 }
 0x74f   :  { %v903_v28 = vadd.f32 %v6922_v22, %v902_v26 }
 0x751   :  { %v907_v30 = vsel %vm906_vm12, %v6922_v22, %v903_v28 }
 0x752   :  { %v912_v32 = vsel %vm909_vm13, %v911_v29, %v907_v30 }
 0x753   :  { %v913_v33 = vmul.f32 %v6920_v10, %v912_v32 }
 0x755   :  { %6503 = vmatmul.msk.f32.vlgmr.msrb.gmra.mxu1 %vm658_vm10, %v913_v33 }
 0x759   :  { %v1212_v35 = vpop.permute.xlu1 %1211 }
 0x75a   :  { %6517 = vmatmul.msk.f32.vlgmr.msra.gmra.mxu3 %vm658_vm10, %v1212_v35 }
 0x75d   :  { %6511 = vmatmul.msk.f32.vlgmr.msra.gmra.mxu1 %vm658_vm10, %v1053_v36 }
 0x761   :  { %v1129_v38 = vpop.permute.xlu1 %1128 }
 0x762   :  { %1149 = vmatpush.msrb.mxu0 %v1129_v38 }
 0x769   :  { %v1242_v40 = vpop.permute.xlu1 %1241 }
 0x76a   :  { %6518 = vmatpush.xpose.msk.msra.mxu0 %vm658_vm10, %v1242_v40 }
 0x771   :  { %v1240_v6 = vpop.permute.xlu1 %1239 }
 0x793   :  { %v1082_v41 = vpop.xlane.xlu2 %1081 }
 0x794   :  { %v1086_v42 = vsub.f32 %v1050_v18, %v1082_v41 }
 0x796   :  { %v1088_v43 = vmul.f32 1.442695, %v1086_v42 }
 0x798   :  { %6923 = vpow2.f32 %v1088_v43 }
 0x79e   :  { %v6924_v44 = vpop.eup %6923 }
 0x79f   :  { %v1092_v45 = vsel %vm658_vm10, %v6924_v44, 0.0 }
 0x7a0   :  { %1093 = vadd.xlane.f32.xlu0 %v1092_v45 }
 0x7d2   :  { %v963_v48 = vpop.f32.mrf.mxu1 }
 0x7d3   :  { %6505 = vmatmul.msk.f32.gmra.mxu2 %vm658_vm10, %v963_v48 }
 0x7da   :  { %v1077_v50 = vpop.f32.mrf.mxu1 }
 0x7db   :  { %v1078_v52 = vadd.f32 %v1077_v50, %v8299_v51 }
 0x7dd   :  { %v1236_v53 = vpop.f32.mrf.mxu3  ;;  %v1083_v54 = vsel %vm658_vm10, %v1078_v52, -inf }
 0x7de   :  { %v1237_v55 = vadd.f32 %v1236_v53, %v8295_v46  ;;  %1084 = vmax.xlane.f32.xlu2 %v1083_v54 }
 0x7e0   :  { %v1267_v56 = vsel %vm658_vm10, %v1237_v55, -inf }
 0x7e1   :  { %1268 = vmax.xlane.f32.xlu1 %v1267_v56 }
 0x7fa   :  { %1341 = vrot.lane.b32.xlu1 %v8281_v39, %s7800_s25 }
 0x813   :  { %v1094_v57 = vpop.xlane.xlu0 %1093 }
 0x814   :  { %6925 = vrcp.f32 %v1094_v57  ;;  %v1109_v61 = vand.u32 2147483648, %v1094_v57  ;;  %v1107_v63 = vand.u32 2147483647, %v1094_v57  ;;  %vm1103_vm15 = vweird.f32 %v1094_v57 }
 0x816   :  { %v1110_v1 = vor.u32 1.1754944e-38, %v1109_v61  ;;  %vm1108_vm1 = vcmp.eq.f32.partialorder %v1107_v63, 8.507059e+37  ;;  %v649_v63 = vld [vmem:[%s9347_s16 + $0x18] sm:$0xff] }
 0x81a   :  { %v6926_v58 = vpop.eup %6925 }
 0x81b   :  { %v1099_v59 = vmul.f32 %v6926_v58, %v1094_v57  ;;  %vm1104_vm14 = vweird.f32 %v6926_v58 }
 0x81c   :  { %vm1105_vm0 = vmor %vm1103_vm15, %vm1104_vm14 }
 0x81d   :  { %v1100_v60 = vsub.f32 1.0, %v1099_v59 }
 0x81f   :  { %v1101_v62 = vmul.f32 %v6926_v58, %v1100_v60 }
 0x821   :  { %v1102_v0 = vadd.f32 %v6926_v58, %v1101_v62 }
 0x823   :  { %v1106_v2 = vsel %vm1105_vm0, %v6926_v58, %v1102_v0 }
 0x824   :  { %v1111_v3 = vsel %vm1108_vm1, %v1110_v1, %v1106_v2 }
 0x825   :  { %v1112_v4 = vmul.f32 %v6924_v44, %v1111_v3 }
 0x827   :  { %6512 = vmatmul.msk.f32.vlgmr.msrb.gmra.mxu0 %vm658_vm10, %v1112_v4 }
 0x828   :  { %1388 = vmatpush.msrb.mxu0 %v649_v63 }
 0x82f   :  { %6519 = vmatmul.msk.f32.vlgmr.msra.gmra.mxu0 %vm658_vm10, %v1240_v6 }
 0x851   :  { %v1085_v7 = vpop.xlane.xlu2 %1084 }
 0x852   :  { %v1087_v8 = vsub.f32 %v1078_v52, %v1085_v7 }
 0x854   :  { %v1090_v9 = vmul.f32 1.442695, %v1087_v8  ;;  %v1269_v10 = vpop.xlane.xlu1 %1268 }
 0x855   :  { %v1273_v11 = vsub.f32 %v1237_v55, %v1269_v10 }
 0x856   :  { %6927 = vpow2.f32 %v1090_v9 }
 0x857   :  { %v1275_v12 = vmul.f32 1.442695, %v1273_v11 }
 0x859   :  { %6929 = vpow2.f32 %v1275_v12 }
 0x85c   :  { %v6928_v13 = vpop.eup %6927 }
 0x85d   :  { %v1095_v14 = vsel %vm658_vm10, %v6928_v13, 0.0 }
 0x85e   :  { %1096 = vadd.xlane.f32.xlu2 %v1095_v14 }
 0x85f   :  { %v6930_v15 = vpop.eup %6929 }
 0x860   :  { %v1279_v18 = vsel %vm658_vm10, %v6930_v15, 0.0 }
 0x861   :  { %1280 = vadd.xlane.f32.xlu0 %v1279_v18 }
 0x86c   :  { %v1342_v19 = vpop.permute.xlu1 %1341 }
 0x86d   :  { %1362 = vmatpush.msrb.mxu3 %v1342_v19 }
 0x875   :  { %1315 = vrot.lane.b32.xlu0 %v8275_v37, %s7800_s25 }
 0x876   :  { %1154 = vrot.lane.b32.xlu2 %v8281_v39, %s7799_s5 }
 0x8a4   :  { %v1151_v22 = vpop.f32.mrf.mxu0 }
 0x8a5   :  { %6514 = vmatmul.msk.f32.vlgmr.msra.gmra.mxu2 %vm658_vm10, %v1151_v22 }
 0x8ac   :  { %v1264_v23 = vpop.f32.mrf.mxu0 }
 0x8ad   :  { %v1265_v24 = vadd.f32 %v1264_v23, %v8299_v51  ;;  %v6866_v23 = vld [vmem:[%s9348_s0] ss:$0 sm:$0xff] }
 0x8af   :  { %v1270_v25 = vsel %vm658_vm10, %v1265_v24, -inf }
 0x8b0   :  { %1271 = vmax.xlane.f32.xlu0 %v1270_v25 }
 0x8d1   :  { %v1097_v26 = vpop.xlane.xlu2 %1096 }
 0x8d2   :  { %6931 = vrcp.f32 %v1097_v26  ;;  %v1124_v32 = vand.u32 2147483648, %v1097_v26  ;;  %v1122_v36 = vand.u32 2147483647, %v1097_v26  ;;  %vm1118_vm3 = vweird.f32 %v1097_v26 }
 0x8d4   :  { %v1281_v27 = vpop.xlane.xlu0 %1280  ;;  %v1125_v41 = vor.u32 1.1754944e-38, %v1124_v32  ;;  %vm1123_vm5 = vcmp.eq.f32.partialorder %v1122_v36, 8.507059e+37 }
 0x8d5   :  { %6933 = vrcp.f32 %v1281_v27  ;;  %v1296_v45 = vand.u32 2147483648, %v1281_v27  ;;  %vm1290_vm8 = vweird.f32 %v1281_v27  ;;  %v1294_v50 = vand.u32 2147483647, %v1281_v27 }
 0x8d7   :  { %v1297_v54 = vor.u32 1.1754944e-38, %v1296_v45  ;;  %vm1295_vm11 = vcmp.eq.f32.partialorder %v1294_v50, 8.507059e+37 }
 0x8d8   :  { %v6932_v28 = vpop.eup %6931 }
 0x8d9   :  { %v1114_v37 = vmul.f32 %v6932_v28, %v1097_v26  ;;  %v1155_v29 = vpop.permute.xlu2 %1154  ;;  %vm1119_vm2 = vweird.f32 %v6932_v28 }
 0x8da   :  { %1175 = vmatpush.msrb.mxu1 %v1155_v29  ;;  %vm1120_vm4 = vmor %vm1118_vm3, %vm1119_vm2  ;;  %v7801_v29 = vmov 32.0  }
 0x8db   :  { %v6934_v39 = vpop.eup %6933  ;;  %v1115_v30 = vsub.f32 1.0, %v1114_v37 }
 0x8dc   :  { %v1286_v33 = vmul.f32 %v6934_v39, %v1281_v27  ;;  %vm1291_vm6 = vweird.f32 %v6934_v39 }
 0x8dd   :  { %v1116_v35 = vmul.f32 %v6932_v28, %v1115_v30  ;;  %vm1292_vm9 = vmor %vm1290_vm8, %vm1291_vm6 }
 0x8de   :  { %v1287_v38 = vsub.f32 1.0, %v1286_v33 }
 0x8df   :  { %v1117_v40 = vadd.f32 %v6932_v28, %v1116_v35 }
 0x8e0   :  { %v1288_v42 = vmul.f32 %v6934_v39, %v1287_v38 }
 0x8e1   :  { %v1121_v43 = vsel %vm1120_vm4, %v6932_v28, %v1117_v40  ;;  %vm1519_vm4 = vcmask 523264  }
 0x8e2   :  { %v1289_v44 = vadd.f32 %v6934_v39, %v1288_v42  ;;  %v1126_v48 = vsel %vm1123_vm5, %v1125_v41, %v1121_v43 }
 0x8e3   :  { %v1127_v52 = vmul.f32 %v6928_v13, %v1126_v48 }
 0x8e4   :  { %v1293_v53 = vsel %vm1292_vm9, %v6934_v39, %v1289_v44 }
 0x8e5   :  { %6513 = vmatmul.msk.f32.vlgmr.msrb.gmra.mxu1 %vm658_vm10, %v1127_v52  ;;  %v1298_v56 = vsel %vm1295_vm11, %v1297_v54, %v1293_v53  ;;  %v1471_v54 = vld [vmem:[%s9349_s4 + $0x18] sm:$0xff] }
 0x8e6   :  { %v1299_v57 = vmul.f32 %v6930_v15, %v1298_v56  ;;  %v989_v15 = vpop.f32.mrf.mxu2  ;;  %v1469_v56 = vld [vmem:[%s9349_s4 + $0x8] sm:$0xff] }
 0x8e7   :  { %v1316_v55 = vpop.permute.xlu0 %1315  ;;  %v1019_v20 = vadd.f32 %v8363_v47, %v989_v15 }
 0x8e8   :  { %1336 = vmatpush.msra.mxu1 %v1316_v55  ;;  %v1470_v55 = vld [vmem:[%s9349_s4 + $0x10] sm:$0xff] }
 0x8ea   :  { %1503 = vmatpush.msrb.mxu1 %v1471_v54 }
 0x8ec   :  { %1504 = vmatpush.msrb.mxu1 %v1470_v55 }
 0x8ed   :  { %6520 = vmatmul.msk.f32.vlgmr.msra.gmra.mxu1 %vm658_vm10, %v1299_v57  ;;  %v1468_v57 = vld [vmem:[%s9349_s4] sm:$0xff] }
 0x8ee   :  { %v992_v18 = vpop.f32.mrf.mxu2  ;;  %1505 = vmatpush.msrb.mxu1 %v1469_v56 }
 0x8ef   :  { %v1022_v43 = vadd.f32 %v8366_v49, %v992_v18 }
 0x8f0   :  { %1506 = vmatpush.msrb.mxu1 %v1468_v57 }
 0x923   :  { %v1272_v58 = vpop.xlane.xlu0 %1271 }
 0x924   :  { %v1274_v59 = vsub.f32 %v1265_v24, %v1272_v58 }
 0x926   :  { %v1277_v60 = vmul.f32 1.442695, %v1274_v59 }
 0x928   :  { %6935 = vpow2.f32 %v1277_v60  ;;  %v1203_v19 = vpop.f32.mrf.mxu2 }
 0x929   :  { %v1209_v22 = vadd.f32 %v1203_v19, %v1019_v20  ;;  %v1475_v20 = vld [vmem:[%s9352_s19 + $0x10] sm:$0xff] }
 0x92e   :  { %v6936_v61 = vpop.eup %6935 }
 0x92f   :  { %v1282_v62 = vsel %vm658_vm10, %v6936_v61, 0.0 }
 0x930   :  { %1283 = vadd.xlane.f32.xlu2 %v1282_v62 }
 0x962   :  { %v1177_v0 = vpop.f32.mrf.mxu1 }
 0x963   :  { %6515 = vmatmul.msk.f32.gmra.mxu2 %vm658_vm10, %v1177_v0 }
 0x96a   :  { %v1338_v1 = vpop.f32.mrf.mxu1 }
 0x96b   :  { %6522 = vmatmul.msk.f32.vlgmr.msrb.gmra.mxu0 %vm658_vm10, %v1338_v1  ;;  %v6867_v1 = vld [vmem:[%s9350_s10] ss:$0 sm:$0xff] }
 0x9a3   :  { %v1284_v2 = vpop.xlane.xlu2 %1283 }
 0x9a4   :  { %6937 = vrcp.f32 %v1284_v2  ;;  %v1311_v7 = vand.u32 2147483648, %v1284_v2  ;;  %v1309_v9 = vand.u32 2147483647, %v1284_v2  ;;  %vm1305_vm13 = vweird.f32 %v1284_v2 }
 0x9a5   :  { %6939 = vrcp.f32 %v7801_v29 }
 0x9a6   :  { %v1312_v11 = vor.u32 1.1754944e-38, %v1311_v7  ;;  %vm1310_vm15 = vcmp.eq.f32.partialorder %v1309_v9, 8.507059e+37  ;;  %v1479_v9 = vld [vmem:[%s9352_s19 + $0x30] sm:$0xff] }
 0x9aa   :  { %v6938_v3 = vpop.eup %6937 }
 0x9ab   :  { %v1301_v4 = vmul.f32 %v6938_v3, %v1284_v2  ;;  %vm1306_vm12 = vweird.f32 %v6938_v3  ;;  %v6940_v39 = vpop.eup %6939 }
 0x9ac   :  { %vm1307_vm14 = vmor %vm1305_vm13, %vm1306_vm12  ;;  %v1414_v30 = vmul.f32 32.0, %v6940_v39  ;;  %vm1418_vm0 = vweird.f32 %v6940_v39 }
 0x9ad   :  { %v1302_v6 = vsub.f32 1.0, %v1301_v4  ;;  %v6868_v4 = vld [vmem:[%s9351_s15] ss:$0 sm:$0xff] }
 0x9ae   :  { %v1415_v32 = vsub.f32 1.0, %v1414_v30 }
 0x9af   :  { %v1303_v8 = vmul.f32 %v6938_v3, %v1302_v6 }
 0x9b0   :  { %v1416_v33 = vmul.f32 %v6940_v39, %v1415_v32 }
 0x9b1   :  { %v1304_v10 = vadd.f32 %v6938_v3, %v1303_v8  ;;  %v1480_v8 = vld [vmem:[%s9352_s19 + $0x38] sm:$0xff] }
 0x9b2   :  { %v1417_v47 = vadd.f32 %v6940_v39, %v1416_v33  ;;  %1534 = vmatpush.msrb.mxu2 %v1480_v8 }
 0x9b3   :  { %v1308_v12 = vsel %vm1307_vm14, %v6938_v3, %v1304_v10  ;;  %v1478_v10 = vld [vmem:[%s9352_s19 + $0x28] sm:$0xff] }
 0x9b4   :  { %v1313_v13 = vsel %vm1310_vm15, %v1312_v11, %v1308_v12  ;;  %v8398_v35 = vsel %vm1418_vm0, %v6940_v39, %v1417_v47  ;;  %1535 = vmatpush.msrb.mxu2 %v1479_v9  ;;  %v1477_v11 = vld [vmem:[%s9352_s19 + $0x20] sm:$0xff]  ;;  %v1476_v12 = vld [vmem:[%s9352_s19 + $0x18] sm:$0xff] }
 0x9b5   :  { %v1314_v14 = vmul.f32 %v6936_v61, %v1313_v13 }
 0x9b6   :  { %1536 = vmatpush.msrb.mxu2 %v1478_v10 }
 0x9b7   :  { %6521 = vmatmul.msk.f32.vlgmr.msrb.gmra.mxu3 %vm658_vm10, %v1314_v14 }
 0x9b8   :  { %1537 = vmatpush.msrb.mxu2 %v1477_v11  ;;  %v6871_v11 = vld [vmem:[%s9353_s29] ss:$0 sm:$0xff] }
 0x9ba   :  { %1538 = vmatpush.msrb.mxu2 %v1476_v12 }
 0x9bc   :  { %1539 = vmatpush.msrb.mxu2 %v1475_v20 }
 0x9e6   :  { %v1206_v42 = vpop.f32.mrf.mxu2 }
 0x9e7   :  { %v1210_v44 = vadd.f32 %v1206_v42, %v1022_v43  ;;  %v6870_v42 = vld [vmem:[#allocation4] ss:$0 sm:$0xff] }
 0x9e8   :  { %v1390_v24 = vpop.f32.mrf.mxu0 }
 0x9e9   :  { %v1396_v25 = vadd.f32 %v1390_v24, %v1209_v22  ;;  %v1474_v22 = vld [vmem:[%s9352_s19 + $0x8] sm:$0xff]  ;;  %v6869_v24 = vld [vmem:[#allocation2] ss:$0 sm:$0xff] }
 0x9ea   :  { %1540 = vmatpush.msrb.mxu2 %v1474_v22 }
 0x9eb   :  { %v1401_v26 = vadd.f32 %v6866_v23, %v1396_v25 }
 0x9ed   :  { %v1403_v27 = vadd.f32 %v1401_v26, %v8266_v31 }
 0x9ef   :  { %v1407_v28 = vsel %vm575_vm7, %v1403_v27, 0.0 }
 0x9f0   :  { %1408 = vadd.xlane.f32.xlu1 %v1407_v28 }
 0xa3a   :  { %v1364_v37 = vpop.f32.mrf.mxu3 }
 0xa3b   :  { %6523 = vmatmul.msk.f32.gmra.mxu0 %vm658_vm10, %v1364_v37 }
 0xa63   :  { %v1409_v36 = vpop.xlane.xlu1 %1408 }
 0xa64   :  { %v1420_v31 = vmul.f32 %v8398_v35, %v1409_v36 }
 0xa66   :  { %v1422_v38 = vsub.f32 %v1403_v27, %v1420_v31 }
 0xa68   :  { %v1424_v40 = vmul.f32 %v1422_v38, %v1422_v38 }
 0xa6a   :  { %v1426_v41 = vsel %vm575_vm7, %v1424_v40, 0.0 }
 0xa6b   :  { %1427 = vadd.xlane.f32.xlu2 %v1426_v41 }
 0xab8   :  { %v1393_v45 = vpop.f32.mrf.mxu0 }
 0xab9   :  { %v1397_v48 = vadd.f32 %v1393_v45, %v1210_v44 }
 0xabb   :  { %v1402_v50 = vadd.f32 %v6866_v23, %v1397_v48  ;;  %v1473_v23 = vld [vmem:[%s9352_s19] sm:$0xff] }
 0xabc   :  { %1541 = vmatpush.msrb.mxu2 %v1473_v23 }
 0xabd   :  { %v1404_v52 = vadd.f32 %v1402_v50, %v8270_v34 }
 0xabf   :  { %v1410_v53 = vsel %vm575_vm7, %v1404_v52, 0.0 }
 0xac0   :  { %1411 = vadd.xlane.f32.xlu0 %v1410_v53 }
 0xade   :  { %v1428_v58 = vpop.xlane.xlu2 %1427 }
 0xadf   :  { %v1432_v49 = vmul.f32 %v1428_v58, %v8398_v35 }
 0xae1   :  { %v1434_v59 = vadd.f32 1e-05, %v1432_v49 }
 0xae3   :  { %6941 = vrsqrt.f32 %v1434_v59  ;;  %vm1442_vm2 = vweird.f32 %v1434_v59 }
 0xae9   :  { %v6942_v60 = vpop.eup %6941 }
 0xaea   :  { %v1437_v34 = vmul.f32 %v6942_v60, %v1434_v59  ;;  %vm1443_vm1 = vweird.f32 %v6942_v60 }
 0xaeb   :  { %vm1444_vm3 = vmor %vm1442_vm2, %vm1443_vm1 }
 0xaec   :  { %v1438_v61 = vmul.f32 %v6942_v60, %v1437_v34 }
 0xaee   :  { %v1439_v62 = vmul.f32 0.5, %v1438_v61  ;;  %v6531_v61 = vld [vmem:[%s9343_s23 + $0x38] sm:$0xff] }
 0xaef   :  { %1635 = vmatpush.msra.mxu3 %v6531_v61 }
 0xaf0   :  { %v1440_v63 = vsub.f32 1.5, %v1439_v62  ;;  %v6530_v62 = vld [vmem:[%s9343_s23 + $0x30] sm:$0xff] }
 0xaf1   :  { %1636 = vmatpush.msra.mxu3 %v6530_v62 }
 0xaf2   :  { %v1441_v0 = vmul.f32 %v6942_v60, %v1440_v63  ;;  %v6529_v63 = vld [vmem:[%s9343_s23 + $0x28] sm:$0xff] }
 0xaf3   :  { %1637 = vmatpush.msra.mxu3 %v6529_v63 }
 0xaf4   :  { %v1445_v2 = vsel %vm1444_vm3, %v6942_v60, %v1441_v0  ;;  %v6528_v0 = vld [vmem:[%s9343_s23 + $0x20] sm:$0xff]  ;;  %s7802_s23 = smov 32  }
 0xaf5   :  { %v1456_v3 = vmul.f32 %v1445_v2, %v1422_v38  ;;  %1638 = vmatpush.msra.mxu3 %v6528_v0 }
 0xaf7   :  { %v1461_v6 = vmul.f32 %v6867_v1, %v1456_v3 }
 0xaf9   :  { %v1466_v7 = vadd.f32 %v6868_v4, %v1461_v6 }
 0xafb   :  { %6524 = vmatmul.msk.f32.vlgmr.msrb.gmra.mxu1 %vm575_vm7, %v1466_v7 }
 0xb33   :  { %v1412_v13 = vpop.xlane.xlu0 %1411 }
 0xb34   :  { %v1421_v14 = vmul.f32 %v8398_v35, %v1412_v13 }
 0xb36   :  { %v1423_v15 = vsub.f32 %v1404_v52, %v1421_v14  ;;  %v6872_v14 = vld [vmem:[%s9354_s14] ss:$0 sm:$0xff] }
 0xb38   :  { %v1425_v18 = vmul.f32 %v1423_v15, %v1423_v15 }
 0xb3a   :  { %v1429_v19 = vsel %vm575_vm7, %v1425_v18, 0.0 }
 0xb3b   :  { %1430 = vadd.xlane.f32.xlu2 %v1429_v19 }
 0xb78   :  { %v1508_v25 = vpop.f32.mrf.mxu1 }
 0xb79   :  { %v1509_v26 = vadd.f32 %v6869_v24, %v1508_v25  ;;  %v6873_v25 = vld [vmem:[%s9345_s18 + $0x1] ss:$0 sm:$0xff] }
 0xb7b   :  { %v1514_v27 = vmax.f32 %v1509_v26, 0.0 }
 0xb7d   :  { %6526 = vmatmul.msk.f32.vlgmr.msrb.gmra.mxu2 %vm1519_vm4, %v1514_v27 }
 0xbae   :  { %v1431_v28 = vpop.xlane.xlu2 %1430 }
 0xbaf   :  { %v1433_v37 = vmul.f32 %v1431_v28, %v8398_v35 }
 0xbb1   :  { %v1435_v29 = vadd.f32 1e-05, %v1433_v37 }
 0xbb3   :  { %6943 = vrsqrt.f32 %v1435_v29  ;;  %vm1452_vm6 = vweird.f32 %v1435_v29 }
 0xbb9   :  { %v6944_v39 = vpop.eup %6943 }
 0xbba   :  { %v1447_v30 = vmul.f32 %v6944_v39, %v1435_v29  ;;  %vm1453_vm5 = vweird.f32 %v6944_v39 }
 0xbbb   :  { %vm1454_vm8 = vmor %vm1452_vm6, %vm1453_vm5 }
 0xbbc   :  { %v1448_v32 = vmul.f32 %v6944_v39, %v1447_v30 }
 0xbbe   :  { %v1449_v33 = vmul.f32 0.5, %v1448_v32 }
 0xbc0   :  { %v1450_v47 = vsub.f32 1.5, %v1449_v33 }
 0xbc2   :  { %v1451_v36 = vmul.f32 %v6944_v39, %v1450_v47 }
 0xbc4   :  { %v1455_v31 = vsel %vm1454_vm8, %v6944_v39, %v1451_v36 }
 0xbc5   :  { %v1457_v38 = vmul.f32 %v1455_v31, %v1423_v15 }
 0xbc7   :  { %v1462_v40 = vmul.f32 %v6867_v1, %v1457_v38 }
 0xbc9   :  { %v1467_v41 = vadd.f32 %v6868_v4, %v1462_v40 }
 0xbcb   :  { %6525 = vmatmul.msk.f32.gmra.mxu1 %vm575_vm7, %v1467_v41 }
 0xc00   :  { %v1543_v43 = vpop.f32.mrf.mxu2 }
 0xc01   :  { %v1544_v44 = vadd.f32 %v6870_v42, %v1543_v43 }
 0xc03   :  { %v1549_v45 = vadd.f32 %v1544_v44, %v1466_v7 }
 0xc05   :  { %v1553_v48 = vsel %vm575_vm7, %v1549_v45, 0.0 }
 0xc06   :  { %1554 = vadd.xlane.f32.xlu0 %v1553_v48 }
 0xc48   :  { %v1511_v50 = vpop.f32.mrf.mxu1 }
 0xc49   :  { %v1512_v52 = vadd.f32 %v6869_v24, %v1511_v50 }
 0xc4b   :  { %v1515_v53 = vmax.f32 %v1512_v52, 0.0 }
 0xc4d   :  { %6527 = vmatmul.msk.f32.gmra.mxu2 %vm1519_vm4, %v1515_v53 }
 0xc79   :  { %v1555_v54 = vpop.xlane.xlu0 %1554 }
 0xc7a   :  { %v1559_v55 = vmul.f32 %v1555_v54, %v8398_v35 }
 0xc7c   :  { %v1561_v56 = vsub.f32 %v1549_v45, %v1559_v55 }
 0xc7e   :  { %v1563_v57 = vmul.f32 %v1561_v56, %v1561_v56 }
 0xc80   :  { %v1565_v58 = vsel %vm575_vm7, %v1563_v57, 0.0 }
 0xc81   :  { %1566 = vadd.xlane.f32.xlu2 %v1565_v58 }
 0xcd0   :  { %v1546_v49 = vpop.f32.mrf.mxu2 }
 0xcd1   :  { %v1547_v59 = vadd.f32 %v6870_v42, %v1546_v49 }
 0xcd3   :  { %v1550_v60 = vadd.f32 %v1547_v59, %v1467_v41 }
 0xcd5   :  { %v1556_v34 = vsel %vm575_vm7, %v1550_v60, 0.0 }
 0xcd6   :  { %1557 = vadd.xlane.f32.xlu0 %v1556_v34 }
 0xcf4   :  { %v1567_v1 = vpop.xlane.xlu2 %1566 }
 0xcf5   :  { %v1571_v2 = vmul.f32 %v1567_v1, %v8398_v35 }
 0xcf7   :  { %v1573_v3 = vadd.f32 1e-05, %v1571_v2 }
 0xcf9   :  { %6945 = vrsqrt.f32 %v1573_v3  ;;  %vm1581_vm11 = vweird.f32 %v1573_v3 }
 0xcff   :  { %v6946_v4 = vpop.eup %6945 }
 0xd00   :  { %v1576_v6 = vmul.f32 %v6946_v4, %v1573_v3  ;;  %vm1582_vm9 = vweird.f32 %v6946_v4 }
 0xd01   :  { %vm1583_vm12 = vmor %vm1581_vm11, %vm1582_vm9 }
 0xd02   :  { %v1577_v7 = vmul.f32 %v6946_v4, %v1576_v6 }
 0xd04   :  { %v1578_v8 = vmul.f32 0.5, %v1577_v7 }
 0xd06   :  { %v1579_v9 = vsub.f32 1.5, %v1578_v8 }
 0xd08   :  { %v1580_v10 = vmul.f32 %v6946_v4, %v1579_v9 }
 0xd0a   :  { %v1584_v12 = vsel %vm1583_vm12, %v6946_v4, %v1580_v10 }
 0xd0b   :  { %v1595_v13 = vmul.f32 %v1584_v12, %v1561_v56 }
 0xd0d   :  { %v1600_v15 = vmul.f32 %v6871_v11, %v1595_v13 }
 0xd0f   :  { %v8438_v18 = vadd.f32 %v6872_v14, %v1600_v15 }
 0xd11   :  { %6533 = vmatmul.msk.f32.vlgmr.msra.gmra.mxu3 %vm575_vm7, %v8438_v18 }
 0xd49   :  { %v1558_v19 = vpop.xlane.xlu0 %1557 }
 0xd4a   :  { %v1560_v20 = vmul.f32 %v1558_v19, %v8398_v35 }
 0xd4c   :  { %v1562_v22 = vsub.f32 %v1550_v60, %v1560_v20 }
 0xd4e   :  { %v1564_v23 = vmul.f32 %v1562_v22, %v1562_v22 }
 0xd50   :  { %v1568_v24 = vsel %vm575_vm7, %v1564_v23, 0.0 }
 0xd51   :  { %1569 = vadd.xlane.f32.xlu2 %v1568_v24 }
 0xd94   :  { %v1640_v26 = vpop.f32.mrf.mxu3 }
 0xd95   :  { %v8445_v27 = vadd.f32 %v6873_v25, %v1640_v26 }
 0xd97   :  { %1807 = vrot.lane.b32.xlu2 %v8445_v27, %s7793_s11  ;;  %1809 = vrot.lane.b32.xlu1 %v8445_v27, %s7792_s17 }
 0xd98   :  { %1654 = vrot.lane.b32.xlu0 %v8445_v27, %s7791_s1 }
 0xdc4   :  { %v1570_v28 = vpop.xlane.xlu2 %1569 }
 0xdc5   :  { %v1572_v37 = vmul.f32 %v1570_v28, %v8398_v35 }
 0xdc7   :  { %v1574_v29 = vadd.f32 1e-05, %v1572_v37 }
 0xdc9   :  { %6947 = vrsqrt.f32 %v1574_v29  ;;  %vm1591_vm14 = vweird.f32 %v1574_v29 }
 0xdcf   :  { %v6948_v39 = vpop.eup %6947 }
 0xdd0   :  { %v1586_v30 = vmul.f32 %v6948_v39, %v1574_v29  ;;  %vm1592_vm13 = vweird.f32 %v6948_v39 }
 0xdd1   :  { %vm1593_vm15 = vmor %vm1591_vm14, %vm1592_vm13 }
 0xdd2   :  { %v1587_v32 = vmul.f32 %v6948_v39, %v1586_v30 }
 0xdd4   :  { %v1588_v33 = vmul.f32 0.5, %v1587_v32 }
 0xdd6   :  { %v1589_v47 = vsub.f32 1.5, %v1588_v33 }
 0xdd8   :  { %v1590_v36 = vmul.f32 %v6948_v39, %v1589_v47 }
 0xdda   :  { %v1594_v31 = vsel %vm1593_vm15, %v6948_v39, %v1590_v36 }
 0xddb   :  { %v1596_v38 = vmul.f32 %v1594_v31, %v1562_v22 }
 0xddd   :  { %v1601_v40 = vmul.f32 %v6871_v11, %v1596_v38 }
 0xddf   :  { %v8454_v41 = vadd.f32 %v6872_v14, %v1601_v40 }
 0xde1   :  { %6534 = vmatmul.msk.f32.gmra.mxu3 %vm575_vm7, %v8454_v41 }
 0xdf1   :  { %v1808_v44 = vpop.permute.xlu2 %1807 }
 0xe09   :  { %v1810_v42 = vpop.permute.xlu1 %1809 }
 0xe0a   :  { %v1655_v43 = vpop.permute.xlu0 %1654 }
 0xe0b   :  { %6540 = vmatpush.xpose.msk.msra.mxu0 %vm658_vm10, %v1655_v43 }
 0xe0e   :  { %6541 = vmatmul.msk.f32.vlgmr.msra.gmra.mxu0 %vm658_vm10, %v8445_v27 }
 0xe0f   :  { %6546 = vmatpush.xpose.msk.msrb.mxu0 %vm658_vm10, %v1810_v42 }
 0xe16   :  { %6547 = vmatmul.msk.f32.vlgmr.msrb.gmra.mxu0 %vm658_vm10, %v1808_v44 }
 0xe64   :  { %v1643_v45 = vpop.f32.mrf.mxu3 }
 0xe65   :  { %v8463_v48 = vadd.f32 %v6873_v25, %v1643_v45 }
 0xe67   :  { %1681 = vrot.lane.b32.xlu0 %v8463_v48, %s7791_s1 }
 0xe8b   :  { %v1677_v50 = vpop.f32.mrf.mxu0 }
 0xe8c   :  { %v1678_v52 = vadd.f32 %v1677_v50, %v8295_v46 }
 0xe8e   :  { %v1707_v53 = vsel %vm658_vm10, %v1678_v52, -inf }
 0xe91   :  { %1708 = vmax.xlane.f32.xlu0 %v1707_v53 }
 0xe93   :  { %v1832_v54 = vpop.f32.mrf.mxu0 }
 0xe94   :  { %v1833_v55 = vadd.f32 %v1832_v54, %v8295_v46  ;;  %v6535_v54 = vld [vmem:[%s9347_s16 + $0x20] sm:$0xff] }
 0xe96   :  { %v1863_v56 = vsel %vm658_vm10, %v1833_v55, -inf }
 0xe97   :  { %1864 = vmax.xlane.f32.xlu2 %v1863_v56 }
 0xeaf   :  { %1837 = vrot.lane.b32.xlu2 %v8463_v48, %s7792_s17 }
 0xeb7   :  { %1911 = vrot.lane.b32.xlu2 %v8445_v27, %s7794_s13 }
 0xed9   :  { %v1682_v57 = vpop.permute.xlu0 %1681 }
 0xeda   :  { %6542 = vmatpush.xpose.msk.msra.mxu1 %vm658_vm10, %v1682_v57 }
 0xedd   :  { %6543 = vmatmul.msk.f32.vlgmr.msra.gmra.mxu1 %vm658_vm10, %v8463_v48 }
 0xf04   :  { %v1709_v58 = vpop.xlane.xlu0 %1708 }
 0xf05   :  { %v1713_v49 = vsub.f32 %v1678_v52, %v1709_v58 }
 0xf07   :  { %v1715_v59 = vmul.f32 1.442695, %v1713_v49 }
 0xf09   :  { %6949 = vpow2.f32 %v1715_v59 }
 0xf0a   :  { %v1865_v60 = vpop.xlane.xlu2 %1864 }
 0xf0b   :  { %v1869_v34 = vsub.f32 %v1833_v55, %v1865_v60  ;;  %v6536_v55 = vld [vmem:[%s9347_s16 + $0x28] sm:$0xff] }
 0xf0c   :  { %1984 = vmatpush.msra.mxu0 %v6536_v55 }
 0xf0d   :  { %v1871_v61 = vmul.f32 1.442695, %v1869_v34 }
 0xf0f   :  { %v6950_v62 = vpop.eup %6949  ;;  %6951 = vpow2.f32 %v1871_v61 }
 0xf10   :  { %v1719_v63 = vsel %vm658_vm10, %v6950_v62, 0.0 }
 0xf11   :  { %1720 = vadd.xlane.f32.xlu1 %v1719_v63 }
 0xf12   :  { %v1838_v0 = vpop.permute.xlu2 %1837 }
 0xf13   :  { %6548 = vmatpush.xpose.msk.msrb.mxu1 %vm658_vm10, %v1838_v0 }
 0xf15   :  { %v6952_v1 = vpop.eup %6951 }
 0xf16   :  { %v1875_v2 = vsel %vm658_vm10, %v6952_v1, 0.0 }
 0xf17   :  { %1876 = vadd.xlane.f32.xlu0 %v1875_v2  ;;  %2013 = vmatpush.msra.mxu1 %v6535_v54 }
 0xf1a   :  { %v1912_v33 = vpop.permute.xlu2 %1911 }
 0xf2a   :  { %1755 = vrot.lane.b32.xlu1 %v8445_v27, %s7790_s6 }
 0xf2b   :  { %1835 = vrot.lane.b32.xlu0 %v8463_v48, %s7793_s11 }
 0xf32   :  { %2021 = vrot.lane.b32.xlu1 %v8445_v27, %s7795_s9 }
 0xf33   :  { %2023 = vrot.lane.b32.xlu0 %v8445_v27, %s7796_s30 }
 0xf3a   :  { %1781 = vrot.lane.b32.xlu1 %v8463_v48, %s7790_s6 }
 0xf5a   :  { %v1704_v3 = vpop.f32.mrf.mxu1 }
 0xf5b   :  { %v1705_v4 = vadd.f32 %v1704_v3, %v8299_v51 }
 0xf5d   :  { %v1710_v6 = vsel %vm658_vm10, %v1705_v4, -inf }
 0xf5e   :  { %1711 = vmax.xlane.f32.xlu2 %v1710_v6 }
 0xf84   :  { %v1721_v7 = vpop.xlane.xlu1 %1720 }
 0xf85   :  { %6953 = vrcp.f32 %v1721_v7  ;;  %v1736_v19 = vand.u32 2147483648, %v1721_v7  ;;  %vm1730_vm1 = vweird.f32 %v1721_v7  ;;  %v1734_v20 = vand.u32 2147483647, %v1721_v7 }
 0xf87   :  { %v1737_v24 = vor.u32 1.1754944e-38, %v1736_v19  ;;  %vm1735_vm3 = vcmp.eq.f32.partialorder %v1734_v20, 8.507059e+37 }
 0xf8a   :  { %v1877_v8 = vpop.xlane.xlu0 %1876 }
 0xf8b   :  { %v6954_v9 = vpop.eup %6953  ;;  %6955 = vrcp.f32 %v1877_v8  ;;  %v1892_v37 = vand.u32 2147483648, %v1877_v8  ;;  %vm1886_vm6 = vweird.f32 %v1877_v8  ;;  %v1890_v30 = vand.u32 2147483647, %v1877_v8 }
 0xf8c   :  { %v1726_v10 = vmul.f32 %v6954_v9, %v1721_v7  ;;  %vm1731_vm0 = vweird.f32 %v6954_v9 }
 0xf8d   :  { %vm1732_vm2 = vmor %vm1730_vm1, %vm1731_vm0  ;;  %v1893_v36 = vor.u32 1.1754944e-38, %v1892_v37  ;;  %vm1891_vm9 = vcmp.eq.f32.partialorder %v1890_v30, 8.507059e+37 }
 0xf8e   :  { %v1727_v11 = vsub.f32 1.0, %v1726_v10 }
 0xf90   :  { %v1728_v12 = vmul.f32 %v6954_v9, %v1727_v11 }
 0xf91   :  { %v6956_v13 = vpop.eup %6955 }
 0xf92   :  { %v1729_v14 = vadd.f32 %v6954_v9, %v1728_v12  ;;  %v1882_v15 = vmul.f32 %v6956_v13, %v1877_v8  ;;  %vm1887_vm5 = vweird.f32 %v6956_v13 }
 0xf93   :  { %vm1888_vm8 = vmor %vm1886_vm6, %vm1887_vm5 }
 0xf94   :  { %v1883_v22 = vsub.f32 1.0, %v1882_v15  ;;  %v1733_v23 = vsel %vm1732_vm2, %v6954_v9, %v1729_v14 }
 0xf95   :  { %v1738_v26 = vsel %vm1735_vm3, %v1737_v24, %v1733_v23 }
 0xf96   :  { %v1884_v25 = vmul.f32 %v6956_v13, %v1883_v22  ;;  %v1739_v39 = vmul.f32 %v6950_v62, %v1738_v26 }
 0xf98   :  { %v1885_v28 = vadd.f32 %v6956_v13, %v1884_v25 }
 0xf9a   :  { %v1889_v47 = vsel %vm1888_vm8, %v6956_v13, %v1885_v28 }
 0xf9b   :  { %v1894_v31 = vsel %vm1891_vm9, %v1893_v36, %v1889_v47 }
 0xf9c   :  { %v1756_v29 = vpop.permute.xlu1 %1755  ;;  %v1895_v42 = vmul.f32 %v6952_v1, %v1894_v31 }
 0xf9d   :  { %v1836_v32 = vpop.permute.xlu0 %1835  ;;  %1776 = vmatpush.msra.mxu2 %v1756_v29 }
 0xf9e   :  { %6549 = vmatmul.msk.f32.vlgmr.msrb.gmra.mxu1 %vm658_vm10, %v1836_v32  ;;  %6544 = vmatmul.msk.f32.vlgmr.msra.gmra.mxu2 %vm658_vm10, %v1739_v39 }
 0xf9f   :  { %1932 = vmatpush.msrb.mxu2 %v1912_v33 }
 0xfa4   :  { %v2022_v38 = vpop.permute.xlu1 %2021 }
 0xfa5   :  { %v2024_v40 = vpop.permute.xlu0 %2023 }
 0xfa6   :  { %6556 = vmatpush.xpose.msk.msra.mxu2 %vm658_vm10, %v2024_v40 }
 0xfa7   :  { %6550 = vmatmul.msk.f32.vlgmr.msrb.gmra.mxu2 %vm658_vm10, %v1895_v42 }
 0xfac   :  { %v1782_v43 = vpop.permute.xlu1 %1781 }
 0xfad   :  { %1802 = vmatpush.msrb.mxu3 %v1782_v43 }
 0xfaf   :  { %6557 = vmatmul.msk.f32.vlgmr.msra.gmra.mxu2 %vm658_vm10, %v2022_v38 }
 0xfd1   :  { %v1712_v44 = vpop.xlane.xlu2 %1711 }
 0xfd2   :  { %v1714_v45 = vsub.f32 %v1705_v4, %v1712_v44 }
 0xfd4   :  { %v1717_v50 = vmul.f32 1.442695, %v1714_v45 }
 0xfd6   :  { %6957 = vpow2.f32 %v1717_v50 }
 0xfdc   :  { %v6958_v52 = vpop.eup %6957 }
 0xfdd   :  { %v1722_v53 = vsel %vm658_vm10, %v6958_v52, 0.0 }
 0xfde   :  { %1723 = vadd.xlane.f32.xlu0 %v1722_v53 }
 0xff2   :  { %2049 = vrot.lane.b32.xlu0 %v8463_v48, %s7795_s9 }
0x101b   :  { %v1860_v56 = vpop.f32.mrf.mxu1 }
0x101c   :  { %v1861_v57 = vadd.f32 %v1860_v56, %v8299_v51 }
0x101e   :  { %v1866_v58 = vsel %vm658_vm10, %v1861_v57, -inf }
0x101f   :  { %1867 = vmax.xlane.f32.xlu1 %v1866_v58 }
0x1021   :  { %v1778_v49 = vpop.f32.mrf.mxu2 }
0x1022   :  { %6554 = vmatmul.msk.f32.vlgmr.msra.gmra.mxu1 %vm658_vm10, %v1778_v49 }
0x102a   :  { %v1934_v59 = vpop.f32.mrf.mxu2 }
0x102b   :  { %6552 = vmatmul.msk.f32.vlgmr.msra.gmra.mxu0 %vm658_vm10, %v1934_v59 }
0x1032   :  { %v2046_v60 = vpop.f32.mrf.mxu2 }
0x1033   :  { %v2047_v34 = vadd.f32 %v2046_v60, %v8295_v46 }
0x1035   :  { %v2077_v61 = vsel %vm658_vm10, %v2047_v34, -inf }
0x1036   :  { %2078 = vmax.xlane.f32.xlu2 %v2077_v61 }
0x1038   :  { %2051 = vrot.lane.b32.xlu1 %v8463_v48, %s7796_s30 }
0x1040   :  { %2125 = vrot.lane.b32.xlu1 %v8445_v27, %s7799_s5 }
0x1048   :  { %2236 = vrot.lane.b32.xlu1 %v8463_v48, %s7798_s26 }
0x104e   :  { %1937 = vrot.lane.b32.xlu2 %v8463_v48, %s7794_s13 }
0x1051   :  { %v1724_v62 = vpop.xlane.xlu0 %1723 }
0x1052   :  { %6959 = vrcp.f32 %v1724_v62  ;;  %v1751_v2 = vand.u32 2147483648, %v1724_v62  ;;  %v1749_v4 = vand.u32 2147483647, %v1724_v62  ;;  %vm1745_vm12 = vweird.f32 %v1724_v62 }
0x1054   :  { %v1752_v7 = vor.u32 1.1754944e-38, %v1751_v2  ;;  %vm1750_vm14 = vcmp.eq.f32.partialorder %v1749_v4, 8.507059e+37 }
0x1056   :  { %2210 = vrot.lane.b32.xlu2 %v8445_v27, %s7797_s20 }
0x1058   :  { %v6960_v63 = vpop.eup %6959 }
0x1059   :  { %v1741_v0 = vmul.f32 %v6960_v63, %v1724_v62  ;;  %vm1746_vm11 = vweird.f32 %v6960_v63 }
0x105a   :  { %vm1747_vm13 = vmor %vm1745_vm12, %vm1746_vm11 }
0x105b   :  { %v1742_v1 = vsub.f32 1.0, %v1741_v0  ;;  %v6537_v0 = vld [vmem:[%s9347_s16 + $0x30] sm:$0xff] }
0x105c   :  { %2198 = vmatpush.msrb.mxu0 %v6537_v0 }
0x105d   :  { %v1743_v3 = vmul.f32 %v6960_v63, %v1742_v1 }
0x105e   :  { %2238 = vrot.lane.b32.xlu2 %v8463_v48, %s7797_s20 }
0x105f   :  { %v1744_v6 = vadd.f32 %v6960_v63, %v1743_v3 }
0x1061   :  { %v1748_v8 = vsel %vm1747_vm13, %v6960_v63, %v1744_v6 }
0x1062   :  { %v1753_v9 = vsel %vm1750_vm14, %v1752_v7, %v1748_v8 }
0x1063   :  { %v1754_v10 = vmul.f32 %v6958_v52, %v1753_v9 }
0x1064   :  { %v2050_v30 = vpop.permute.xlu0 %2049 }
0x1065   :  { %6545 = vmatmul.msk.f32.vlgmr.msrb.gmra.mxu3 %vm658_vm10, %v1754_v10 }
0x1092   :  { %v1868_v11 = vpop.xlane.xlu1 %1867 }
0x1093   :  { %v1870_v12 = vsub.f32 %v1861_v57, %v1868_v11 }
0x1095   :  { %v1873_v13 = vmul.f32 1.442695, %v1870_v12 }
0x1097   :  { %6961 = vpow2.f32 %v1873_v13 }
0x109d   :  { %v6962_v14 = vpop.eup %6961 }
0x109e   :  { %v1878_v15 = vsel %vm658_vm10, %v6962_v14, 0.0 }
0x109f   :  { %1879 = vadd.xlane.f32.xlu0 %v1878_v15  ;;  %v8536_v2 = vpop.f32.mrf.mxu1 }
0x10a9   :  { %v2079_v19 = vpop.xlane.xlu2 %2078 }
0x10aa   :  { %v2083_v20 = vsub.f32 %v2047_v34, %v2079_v19  ;;  %v2052_v22 = vpop.permute.xlu1 %2051 }
0x10ac   :  { %v2085_v23 = vmul.f32 1.442695, %v2083_v20 }
0x10ae   :  { %6963 = vpow2.f32 %v2085_v23 }
0x10b1   :  { %v1938_v24 = vpop.permute.xlu2 %1937 }
0x10b2   :  { %v2126_v25 = vpop.permute.xlu1 %2125  ;;  %1958 = vmatpush.msra.mxu3 %v1938_v24 }
0x10b3   :  { %2146 = vmatpush.msrb.mxu2 %v2126_v25 }
0x10b4   :  { %6558 = vmatpush.xpose.msk.msrb.mxu3 %vm658_vm10, %v2052_v22  ;;  %v6964_v26 = vpop.eup %6963 }
0x10b5   :  { %v2089_v28 = vsel %vm658_vm10, %v6964_v26, 0.0 }
0x10b6   :  { %2090 = vadd.xlane.f32.xlu0 %v2089_v28 }
0x10b9   :  { %v2211_v37 = vpop.permute.xlu2 %2210 }
0x10ba   :  { %6564 = vmatpush.xpose.msk.msrb.mxu1 %vm658_vm10, %v2211_v37  ;;  %v2237_v63 = vpop.permute.xlu1 %2236 }
0x10c1   :  { %v2239_v29 = vpop.permute.xlu2 %2238 }
0x10c2   :  { %6566 = vmatpush.xpose.msk.msra.mxu2 %vm658_vm10, %v2239_v29 }
0x10ca   :  { %2208 = vrot.lane.b32.xlu0 %v8445_v27, %s7798_s26 }
0x10e8   :  { %v1804_v39 = vpop.f32.mrf.mxu3 }
0x10e9   :  { %6555 = vmatmul.msk.f32.gmra.mxu1 %vm658_vm10, %v1804_v39 }
0x1112   :  { %v1880_v32 = vpop.xlane.xlu0 %1879 }
0x1113   :  { %6965 = vrcp.f32 %v1880_v32  ;;  %v1907_v31 = vand.u32 2147483648, %v1880_v32  ;;  %v1905_v40 = vand.u32 2147483647, %v1880_v32  ;;  %vm1901_vm0 = vweird.f32 %v1880_v32 }
0x1115   :  { %v1908_v43 = vor.u32 1.1754944e-38, %v1907_v31  ;;  %vm1906_vm2 = vcmp.eq.f32.partialorder %v1905_v40, 8.507059e+37 }
0x1119   :  { %v6966_v33 = vpop.eup %6965 }
0x111a   :  { %v1897_v47 = vmul.f32 %v6966_v33, %v1880_v32  ;;  %vm1902_vm15 = vweird.f32 %v6966_v33 }
0x111b   :  { %vm1903_vm1 = vmor %vm1901_vm0, %vm1902_vm15 }
0x111c   :  { %v1898_v36 = vsub.f32 1.0, %v1897_v47 }
0x111e   :  { %v1899_v38 = vmul.f32 %v6966_v33, %v1898_v36 }
0x1120   :  { %v1900_v42 = vadd.f32 %v6966_v33, %v1899_v38 }
0x1122   :  { %v1904_v44 = vsel %vm1903_vm1, %v6966_v33, %v1900_v42 }
0x1123   :  { %v1909_v45 = vsel %vm1906_vm2, %v1908_v43, %v1904_v44 }
0x1124   :  { %v1910_v50 = vmul.f32 %v6962_v14, %v1909_v45 }
0x1126   :  { %6551 = vmatmul.msk.f32.vlgmr.msra.gmra.mxu3 %vm658_vm10, %v1910_v50 }
0x1129   :  { %v2091_v52 = vpop.xlane.xlu0 %2090 }
0x112a   :  { %6967 = vrcp.f32 %v2091_v52  ;;  %v2106_v56 = vand.u32 2147483648, %v2091_v52  ;;  %v2104_v58 = vand.u32 2147483647, %v2091_v52  ;;  %vm2100_vm5 = vweird.f32 %v2091_v52 }
0x112c   :  { %v2107_v59 = vor.u32 1.1754944e-38, %v2106_v56  ;;  %vm2105_vm8 = vcmp.eq.f32.partialorder %v2104_v58, 8.507059e+37 }
0x112e   :  { %6559 = vmatmul.msk.f32.vlgmr.msrb.gmra.mxu3 %vm658_vm10, %v2050_v30 }
0x1130   :  { %v6968_v53 = vpop.eup %6967 }
0x1131   :  { %v2096_v54 = vmul.f32 %v6968_v53, %v2091_v52  ;;  %vm2101_vm3 = vweird.f32 %v6968_v53 }
0x1132   :  { %vm2102_vm6 = vmor %vm2100_vm5, %vm2101_vm3 }
0x1133   :  { %v2097_v55 = vsub.f32 1.0, %v2096_v54 }
0x1135   :  { %v2098_v57 = vmul.f32 %v6968_v53, %v2097_v55 }
0x1137   :  { %v2099_v49 = vadd.f32 %v6968_v53, %v2098_v57 }
0x1139   :  { %v2103_v60 = vsel %vm2102_vm6, %v6968_v53, %v2099_v49 }
0x113a   :  { %v2108_v34 = vsel %vm2105_vm8, %v2107_v59, %v2103_v60 }
0x113b   :  { %v2109_v61 = vmul.f32 %v6964_v26, %v2108_v34 }
0x113c   :  { %v2209_v62 = vpop.permute.xlu0 %2208 }
0x113d   :  { %6560 = vmatmul.msk.f32.vlgmr.msrb.gmra.mxu2 %vm658_vm10, %v2109_v61  ;;  %6565 = vmatmul.msk.f32.vlgmr.msrb.gmra.mxu1 %vm658_vm10, %v2209_v62 }
0x1145   :  { %6567 = vmatmul.msk.f32.vlgmr.msra.gmra.mxu2 %vm658_vm10, %v2237_v63 }
0x1166   :  { %v8539_v4 = vpop.f32.mrf.mxu1 }
0x11a9   :  { %v1960_v1 = vpop.f32.mrf.mxu3 }
0x11aa   :  { %6553 = vmatmul.msk.f32.gmra.mxu0 %vm658_vm10, %v1960_v1 }
0x11b1   :  { %v2074_v3 = vpop.f32.mrf.mxu3 }
0x11b2   :  { %v2075_v6 = vadd.f32 %v2074_v3, %v8299_v51 }
0x11b4   :  { %v2080_v7 = vsel %vm658_vm10, %v2075_v6, -inf }
0x11b5   :  { %2081 = vmax.xlane.f32.xlu0 %v2080_v7 }
0x11ba   :  { %v2233_v8 = vpop.f32.mrf.mxu1 }
0x11bb   :  { %v2234_v9 = vadd.f32 %v2233_v8, %v8295_v46 }
0x11bd   :  { %v2264_v10 = vsel %vm658_vm10, %v2234_v9, -inf }
0x11be   :  { %2265 = vmax.xlane.f32.xlu2 %v2264_v10 }
0x11c0   :  { %v2148_v11 = vpop.f32.mrf.mxu2 }
0x11c1   :  { %6562 = vmatmul.msk.f32.vlgmr.msrb.gmra.mxu0 %vm658_vm10, %v2148_v11 }
0x11c8   :  { %v2261_v12 = vpop.f32.mrf.mxu2 }
0x11c9   :  { %v2262_v13 = vadd.f32 %v2261_v12, %v8299_v51 }
0x11cb   :  { %v2267_v14 = vsel %vm658_vm10, %v2262_v13, -inf }
0x11cc   :  { %2268 = vmax.xlane.f32.xlu1 %v2267_v14 }
0x11e5   :  { %2151 = vrot.lane.b32.xlu1 %v8463_v48, %s7799_s5 }
0x1228   :  { %v2082_v15 = vpop.xlane.xlu0 %2081 }
0x1229   :  { %v2084_v19 = vsub.f32 %v2075_v6, %v2082_v15 }
0x122b   :  { %v2087_v20 = vmul.f32 1.442695, %v2084_v19  ;;  %v6538_v19 = vld [vmem:[%s9347_s16 + $0x38] sm:$0xff] }
0x122c   :  { %2385 = vmatpush.msrb.mxu2 %v6538_v19 }
0x122d   :  { %6969 = vpow2.f32 %v2087_v20 }
0x1231   :  { %v2266_v22 = vpop.xlane.xlu2 %2265 }
0x1232   :  { %v2270_v23 = vsub.f32 %v2234_v9, %v2266_v22 }
0x1233   :  { %v6970_v24 = vpop.eup %6969 }
0x1234   :  { %v2272_v25 = vmul.f32 1.442695, %v2270_v23  ;;  %v2092_v26 = vsel %vm658_vm10, %v6970_v24, 0.0 }
0x1235   :  { %2093 = vadd.xlane.f32.xlu0 %v2092_v26 }
0x1236   :  { %6971 = vpow2.f32 %v2272_v25 }
0x123c   :  { %v6972_v28 = vpop.eup %6971 }
0x123d   :  { %v2276_v37 = vsel %vm658_vm10, %v6972_v28, 0.0 }
0x123e   :  { %2277 = vadd.xlane.f32.xlu2 %v2276_v37 }
0x123f   :  { %v2269_v29 = vpop.xlane.xlu1 %2268 }
0x1240   :  { %v2271_v39 = vsub.f32 %v2262_v13, %v2269_v29  ;;  %v6874_v29 = vld [vmem:[%s9348_s0 + $0x1] ss:$0 sm:$0xff] }
0x1242   :  { %v2274_v30 = vmul.f32 1.442695, %v2271_v39 }
0x1244   :  { %6973 = vpow2.f32 %v2274_v30 }
0x124a   :  { %v6974_v32 = vpop.eup %6973 }
0x124b   :  { %v2279_v33 = vsel %vm658_vm10, %v6974_v32, 0.0 }
0x124c   :  { %2280 = vadd.xlane.f32.xlu0 %v2279_v33 }
0x1256   :  { %2312 = vrot.lane.b32.xlu2 %v8445_v27, %s7800_s25 }
0x1257   :  { %v2152_v47 = vpop.permute.xlu1 %2151 }
0x1258   :  { %2172 = vmatpush.msra.mxu3 %v2152_v47 }
0x1260   :  { %2338 = vrot.lane.b32.xlu0 %v8463_v48, %s7800_s25 }
0x12a8   :  { %v2094_v36 = vpop.xlane.xlu0 %2093 }
0x12a9   :  { %6975 = vrcp.f32 %v2094_v36  ;;  %v2121_v43 = vand.u32 2147483648, %v2094_v36  ;;  %v2119_v45 = vand.u32 2147483647, %v2094_v36  ;;  %vm2115_vm11 = vweird.f32 %v2094_v36 }
0x12ab   :  { %v2122_v27 = vor.u32 1.1754944e-38, %v2121_v43  ;;  %vm2120_vm13 = vcmp.eq.f32.partialorder %v2119_v45, 8.507059e+37  ;;  %v2641_v45 = vld [vmem:[%s9355_s21] sm:$0xff] }
0x12af   :  { %v6976_v31 = vpop.eup %6975 }
0x12b0   :  { %v2111_v38 = vmul.f32 %v6976_v31, %v2094_v36  ;;  %vm2116_vm9 = vweird.f32 %v6976_v31 }
0x12b1   :  { %v2278_v40 = vpop.xlane.xlu2 %2277  ;;  %vm2117_vm12 = vmor %vm2115_vm11, %vm2116_vm9 }
0x12b2   :  { %v2112_v42 = vsub.f32 1.0, %v2111_v38  ;;  %6977 = vrcp.f32 %v2278_v40  ;;  %v2293_v58 = vand.u32 2147483648, %v2278_v40  ;;  %v2291_v59 = vand.u32 2147483647, %v2278_v40 }
0x12b3   :  { %vm2287_vm15 = vweird.f32 %v2278_v40 }
0x12b4   :  { %v2113_v44 = vmul.f32 %v6976_v31, %v2112_v42  ;;  %v2294_v61 = vor.u32 1.1754944e-38, %v2293_v58  ;;  %vm2292_vm1 = vcmp.eq.f32.partialorder %v2291_v59, 8.507059e+37 }
0x12b6   :  { %v2114_v50 = vadd.f32 %v6976_v31, %v2113_v44 }
0x12b8   :  { %v6978_v52 = vpop.eup %6977  ;;  %v2118_v53 = vsel %vm2117_vm12, %v6976_v31, %v2114_v50  ;;  %v2646_v50 = vld [vmem:[#allocation6 + $0x18] sm:$0xff] }
0x12b9   :  { %v2283_v54 = vmul.f32 %v6978_v52, %v2278_v40  ;;  %v2313_v48 = vpop.permute.xlu2 %2312  ;;  %v2123_v55 = vsel %vm2120_vm13, %v2122_v27, %v2118_v53  ;;  %vm2288_vm14 = vweird.f32 %v6978_v52  ;;  %v2645_v27 = vld [vmem:[#allocation6 + $0x10] sm:$0xff]  ;;  %2678 = vmatpush.msra.mxu2 %v2646_v50  ;;  %v2647_v50 = vld [vmem:[#allocation7] sm:$0xff] }
0x12ba   :  { %2333 = vmatpush.msrb.mxu3 %v2313_v48  ;;  %v2124_v56 = vmul.f32 %v6970_v24, %v2123_v55  ;;  %vm2289_vm0 = vmor %vm2287_vm15, %vm2288_vm14  ;;  %v1986_v24 = vpop.f32.mrf.mxu0 }
0x12bb   :  { %v2284_v57 = vsub.f32 1.0, %v2283_v54  ;;  %2679 = vmatpush.msra.mxu2 %v2645_v27 }
0x12bc   :  { %6561 = vmatmul.msk.f32.vlgmr.msra.gmra.mxu3 %vm658_vm10, %v2124_v56 }
0x12bd   :  { %v2285_v49 = vmul.f32 %v6978_v52, %v2284_v57 }
0x12bf   :  { %v2286_v60 = vadd.f32 %v6978_v52, %v2285_v49  ;;  %v2281_v34 = vpop.xlane.xlu0 %2280 }
0x12c0   :  { %6979 = vrcp.f32 %v2281_v34  ;;  %v2308_v7 = vand.u32 2147483648, %v2281_v34  ;;  %v2306_v9 = vand.u32 2147483647, %v2281_v34  ;;  %vm2302_vm3 = vweird.f32 %v2281_v34 }
0x12c1   :  { %v2290_v62 = vsel %vm2289_vm0, %v6978_v52, %v2286_v60 }
0x12c2   :  { %v2295_v63 = vsel %vm2292_vm1, %v2294_v61, %v2290_v62  ;;  %v2309_v11 = vor.u32 1.1754944e-38, %v2308_v7  ;;  %vm2307_vm6 = vcmp.eq.f32.partialorder %v2306_v9, 8.507059e+37  ;;  %v1989_v25 = vpop.f32.mrf.mxu0  ;;  %v6577_v61 = vld [vmem:[%s9349_s4 + $0x38] sm:$0xff]  ;;  %v6576_v62 = vld [vmem:[%s9349_s4 + $0x30] sm:$0xff]  ;;  %v2694_v9 = vld [vmem:[%s9356_s3 + $0x8] sm:$0xff] }
0x12c3   :  { %v2296_v0 = vmul.f32 %v6972_v28, %v2295_v63  ;;  %v2016_v28 = vadd.f32 %v8536_v2, %v1986_v24  ;;  %v2019_v36 = vadd.f32 %v8539_v4, %v1989_v25  ;;  %v2643_v4 = vld [vmem:[#allocation6] sm:$0xff]  ;;  %2499 = vmatpush.msra.mxu3 %v6577_v61  ;;  %v2696_v7 = vld [vmem:[%s9356_s3 + $0x18] sm:$0xff] }
0x12c4   :  { %v6575_v63 = vld [vmem:[%s9349_s4 + $0x28] sm:$0xff] }
0x12c5   :  { %6568 = vmatmul.msk.f32.vlgmr.msrb.gmra.mxu3 %vm658_vm10, %v2296_v0  ;;  %v6574_v0 = vld [vmem:[%s9349_s4 + $0x20] sm:$0xff] }
0x12c6   :  { %v6980_v1 = vpop.eup %6979  ;;  %2500 = vmatpush.msra.mxu3 %v6576_v62  ;;  %v6878_v62 = vld [vmem:[#allocation9] ss:$0 sm:$0xff] }
0x12c7   :  { %v2298_v3 = vmul.f32 %v6980_v1, %v2281_v34  ;;  %vm2303_vm2 = vweird.f32 %v6980_v1  ;;  %v2642_v34 = vld [vmem:[%s9355_s21 + $0x8] sm:$0xff] }
0x12c8   :  { %vm2304_vm5 = vmor %vm2302_vm3, %vm2303_vm2  ;;  %2501 = vmatpush.msra.mxu3 %v6575_v63 }
0x12c9   :  { %v2299_v6 = vsub.f32 1.0, %v2298_v3 }
0x12ca   :  { %v2200_v26 = vpop.f32.mrf.mxu0  ;;  %2502 = vmatpush.msra.mxu3 %v6574_v0 }
0x12cb   :  { %v2300_v8 = vmul.f32 %v6980_v1, %v2299_v6  ;;  %v2206_v37 = vadd.f32 %v2200_v26, %v2016_v28 }
0x12cc   :  { %2719 = vmatpush.msrb.mxu3 %v2696_v7 }
0x12cd   :  { %v2301_v10 = vadd.f32 %v6980_v1, %v2300_v8  ;;  %v2695_v8 = vld [vmem:[%s9356_s3 + $0x10] sm:$0xff] }
0x12ce   :  { %2720 = vmatpush.msrb.mxu3 %v2695_v8 }
0x12cf   :  { %v2305_v12 = vsel %vm2304_vm5, %v6980_v1, %v2301_v10 }
0x12d0   :  { %v2310_v13 = vsel %vm2307_vm6, %v2309_v11, %v2305_v12  ;;  %v2693_v12 = vld [vmem:[%s9356_s3] sm:$0xff]  ;;  %2721 = vmatpush.msrb.mxu3 %v2694_v9 }
0x12d1   :  { %v2311_v14 = vmul.f32 %v6974_v32, %v2310_v13 }
0x12d2   :  { %v2339_v15 = vpop.permute.xlu0 %2338  ;;  %2722 = vmatpush.msrb.mxu3 %v2693_v12 }
0x12d3   :  { %2359 = vmatpush.msra.mxu1 %v2339_v15 }
0x12d4   :  { %6569 = vmatmul.msk.f32.vlgmr.msra.gmra.mxu1 %vm658_vm10, %v2311_v14 }
0x133f   :  { %v2174_v20 = vpop.f32.mrf.mxu3 }
0x1340   :  { %6563 = vmatmul.msk.f32.gmra.mxu0 %vm658_vm10, %v2174_v20  ;;  %v6585_v20 = vld [vmem:[%s9352_s19 + $0x78] sm:$0xff] }
0x1341   :  { %2529 = vmatpush.msra.mxu0 %v6585_v20 }
0x1348   :  { %v2335_v22 = vpop.f32.mrf.mxu3 }
0x1349   :  { %6570 = vmatmul.msk.f32.vlgmr.msrb.gmra.mxu2 %vm658_vm10, %v2335_v22  ;;  %v6584_v22 = vld [vmem:[%s9352_s19 + $0x70] sm:$0xff] }
0x134a   :  { %2530 = vmatpush.msra.mxu0 %v6584_v22 }
0x1351   :  { %v2361_v23 = vpop.f32.mrf.mxu1 }
0x1352   :  { %6571 = vmatmul.msk.f32.gmra.mxu2 %vm658_vm10, %v2361_v23 }
0x13bd   :  { %v2203_v33 = vpop.f32.mrf.mxu0 }
0x13be   :  { %v2207_v38 = vadd.f32 %v2203_v33, %v2019_v36 }
0x13cc   :  { %v2387_v39 = vpop.f32.mrf.mxu2 }
0x13cd   :  { %v2393_v30 = vadd.f32 %v2387_v39, %v2206_v37  ;;  %v6875_v37 = vld [vmem:[%s9350_s10 + $0x1] ss:$0 sm:$0xff] }
0x13cf   :  { %v2398_v32 = vadd.f32 %v6874_v29, %v2393_v30 }
0x13d1   :  { %v2400_v47 = vadd.f32 %v2398_v32, %v8438_v18  ;;  %v2644_v18 = vld [vmem:[#allocation6 + $0x8] sm:$0xff] }
0x13d2   :  { %2680 = vmatpush.msra.mxu2 %v2644_v18  ;;  %v6583_v18 = vld [vmem:[%s9352_s19 + $0x68] sm:$0xff] }
0x13d3   :  { %v2406_v31 = vsel %vm575_vm7, %v2400_v47, 0.0  ;;  %2531 = vmatpush.msra.mxu0 %v6583_v18 }
0x13d4   :  { %2407 = vadd.xlane.f32.xlu1 %v2406_v31  ;;  %2681 = vmatpush.msra.mxu2 %v2643_v4  ;;  %v6582_v4 = vld [vmem:[%s9352_s19 + $0x60] sm:$0xff] }
0x13d5   :  { %v2390_v40 = vpop.f32.mrf.mxu2  ;;  %2532 = vmatpush.msra.mxu0 %v6582_v4 }
0x13d6   :  { %v2394_v42 = vadd.f32 %v2390_v40, %v2207_v38 }
0x13d8   :  { %v2399_v43 = vadd.f32 %v6874_v29, %v2394_v42 }
0x13da   :  { %v2401_v2 = vadd.f32 %v2399_v43, %v8454_v41 }
0x13dc   :  { %v2409_v44 = vsel %vm575_vm7, %v2401_v2, 0.0 }
0x13dd   :  { %2410 = vadd.xlane.f32.xlu2 %v2409_v44 }
0x13f5   :  { %2649 = vperm.xlu2 %6854, %v2641_v45  }
0x1447   :  { %v2408_v52 = vpop.xlane.xlu1 %2407 }
0x1448   :  { %v2412_v53 = vmul.f32 %v2408_v52, %v8398_v35  ;;  %v6581_v52 = vld [vmem:[%s9352_s19 + $0x58] sm:$0xff] }
0x1449   :  { %2533 = vmatpush.msra.mxu0 %v6581_v52 }
0x144a   :  { %v2414_v54 = vsub.f32 %v2400_v47, %v2412_v53  ;;  %v6876_v47 = vld [vmem:[%s9351_s15 + $0x1] ss:$0 sm:$0xff]  ;;  %v6580_v53 = vld [vmem:[%s9352_s19 + $0x50] sm:$0xff] }
0x144b   :  { %2534 = vmatpush.msra.mxu0 %v6580_v53 }
0x144c   :  { %v2416_v41 = vmul.f32 %v2414_v54, %v2414_v54 }
0x144e   :  { %v2418_v48 = vsel %vm575_vm7, %v2416_v41, 0.0  ;;  %v6578_v41 = vld [vmem:[%s9352_s19 + $0x40] sm:$0xff] }
0x144f   :  { %2419 = vadd.xlane.f32.xlu0 %v2418_v48 }
0x1450   :  { %v2411_v55 = vpop.xlane.xlu2 %2410 }
0x1451   :  { %v2413_v56 = vmul.f32 %v2411_v55, %v8398_v35 }
0x1453   :  { %v8575_v57 = vsub.f32 %v2401_v2, %v2413_v56 }
0x1455   :  { %v2417_v58 = vmul.f32 %v8575_v57, %v8575_v57 }
0x1457   :  { %v2421_v49 = vsel %vm575_vm7, %v2417_v58, 0.0 }
0x1458   :  { %2422 = vadd.xlane.f32.xlu1 %v2421_v49  ;;  %v2650_v59 = vpop.permute.xlu2 %2649 }
0x1459   :  { %vm2654_vm8 = vcmp.eq.s32.totalorder %v2650_v59, %v8239_v5 }
0x145a   :  { %v6594_v60 = vsel %vm2654_vm8, 1.0, %v7789_v21 }
0x145b   :  { %6596 = vmatmul.msk.f32.vlgmr.msra.gmra.mxu2 %vm575_vm7, %v6594_v60 }
0x1463   :  { %2652 = vperm.xlu0 %6853, %v2642_v34  }
0x14c2   :  { %v2420_v1 = vpop.xlane.xlu0 %2419 }
0x14c3   :  { %v2424_v3 = vmul.f32 %v2420_v1, %v8398_v35  ;;  %v6879_v1 = vld [vmem:[#allocation4 + $0x1] ss:$0 sm:$0xff] }
0x14c5   :  { %v2426_v6 = vadd.f32 1e-05, %v2424_v3 }
0x14c7   :  { %6981 = vrsqrt.f32 %v2426_v6  ;;  %vm2434_vm11 = vweird.f32 %v2426_v6 }
0x14cb   :  { %v2423_v10 = vpop.xlane.xlu1 %2422 }
0x14cc   :  { %v2425_v11 = vmul.f32 %v2423_v10, %v8398_v35 }
0x14cd   :  { %v6982_v13 = vpop.eup %6981 }
0x14ce   :  { %v2429_v14 = vmul.f32 %v6982_v13, %v2426_v6  ;;  %v2427_v15 = vadd.f32 1e-05, %v2425_v11  ;;  %vm2435_vm9 = vweird.f32 %v6982_v13 }
0x14cf   :  { %vm2436_vm13 = vmor %vm2434_vm11, %vm2435_vm9 }
0x14d0   :  { %v2430_v19 = vmul.f32 %v6982_v13, %v2429_v14  ;;  %6983 = vrsqrt.f32 %v2427_v15  ;;  %vm2444_vm15 = vweird.f32 %v2427_v15 }
0x14d2   :  { %v2431_v23 = vmul.f32 0.5, %v2430_v19 }
0x14d4   :  { %v2432_v24 = vsub.f32 1.5, %v2431_v23 }
0x14d5   :  { %v2653_v25 = vpop.permute.xlu0 %2652 }
0x14d6   :  { %v6984_v26 = vpop.eup %6983  ;;  %v2433_v28 = vmul.f32 %v6982_v13, %v2432_v24  ;;  %vm2655_vm12 = vcmp.eq.s32.totalorder %v2653_v25, %v8239_v5 }
0x14d7   :  { %v2439_v29 = vmul.f32 %v6984_v26, %v2427_v15  ;;  %v6595_v39 = vsel %vm2655_vm12, 1.0, %v7789_v21  ;;  %vm2445_vm14 = vweird.f32 %v6984_v26 }
0x14d8   :  { %v2437_v30 = vsel %vm2436_vm13, %v6982_v13, %v2433_v28  ;;  %6597 = vmatmul.msk.f32.gmra.mxu2 %vm575_vm7, %v6595_v39  ;;  %vm2446_vm0 = vmor %vm2444_vm15, %vm2445_vm14 }
0x14d9   :  { %v2448_v32 = vmul.f32 %v2437_v30, %v2414_v54  ;;  %v2440_v33 = vmul.f32 %v6984_v26, %v2439_v29  ;;  %v6579_v54 = vld [vmem:[%s9352_s19 + $0x48] sm:$0xff] }
0x14da   :  { %2535 = vmatpush.msra.mxu0 %v6579_v54 }
0x14db   :  { %v2453_v36 = vmul.f32 %v6875_v37, %v2448_v32  ;;  %v2441_v31 = vmul.f32 0.5, %v2440_v33 }
0x14dc   :  { %2536 = vmatpush.msra.mxu0 %v6578_v41 }
0x14dd   :  { %v2442_v38 = vsub.f32 1.5, %v2441_v31  ;;  %v2458_v40 = vadd.f32 %v6876_v47, %v2453_v36 }
0x14de   :  { %v2683_v2 = vpop.f32.mrf.mxu2 }
0x14df   :  { %v2443_v42 = vmul.f32 %v6984_v26, %v2442_v38  ;;  %6586 = vmatmul.msk.f32.vlgmr.msra.gmra.mxu3 %vm575_vm7, %v2458_v40  ;;  %v2689_v45 = vmul.f32 5.656854, %v2683_v2  ;;  %v2604_v2 = vld [vmem:[#allocation18] sm:$0xff] }
0x14e1   :  { %v2447_v5 = vsel %vm2446_vm0, %v6984_v26, %v2443_v42  ;;  %v8604_v27 = vadd.f32 %v2689_v45, %v2647_v50 }
0x14e2   :  { %v2449_v21 = vmul.f32 %v2447_v5, %v8575_v57  ;;  %v6877_v57 = vld [vmem:[#allocation2 + $0x1] ss:$0 sm:$0xff]  ;;  %v2607_v5 = vld [vmem:[#allocation18 + $0x18] sm:$0xff] }
0x14e3   :  { %2630 = vmatpush.msrb.mxu1 %v2607_v5 }
0x14e4   :  { %v2454_v43 = vmul.f32 %v6875_v37, %v2449_v21  ;;  %v2606_v21 = vld [vmem:[#allocation18 + $0x10] sm:$0xff] }
0x14e5   :  { %2631 = vmatpush.msrb.mxu1 %v2606_v21 }
0x14e6   :  { %v2459_v44 = vadd.f32 %v6876_v47, %v2454_v43  ;;  %v2605_v43 = vld [vmem:[#allocation18 + $0x8] sm:$0xff] }
0x14e7   :  { %2632 = vmatpush.msrb.mxu1 %v2605_v43 }
0x14e8   :  { %6587 = vmatmul.msk.f32.gmra.mxu3 %vm575_vm7, %v2459_v44 }
0x14e9   :  { %2633 = vmatpush.msrb.mxu1 %v2604_v2 }
0x14f0   :  { %6598 = vmatmul.msk.f32.vlgmr.msrb.gmra.mxu3 %vm575_vm7, %v8604_v27 }
0x155b   :  { %v2686_v48 = vpop.f32.mrf.mxu2 }
0x155c   :  { %v2690_v55 = vmul.f32 5.656854, %v2686_v48 }
0x155e   :  { %v8614_v56 = vadd.f32 %v2690_v55, %v2647_v50 }
0x1560   :  { %6599 = vmatmul.msk.f32.gmra.mxu3 %vm575_vm7, %v8614_v56 }
0x1562   :  { %v2504_v58 = vpop.f32.mrf.mxu3 }
0x1563   :  { %v2505_v49 = vadd.f32 %v6877_v57, %v2504_v58 }
0x1565   :  { %v2510_v59 = vmax.f32 %v2505_v49, 0.0  ;;  %v6880_v49 = vld [vmem:[%s9353_s29 + $0x1] ss:$0 sm:$0xff] }
0x1567   :  { %6588 = vmatmul.msk.f32.vlgmr.msra.gmra.mxu0 %vm1519_vm4, %v2510_v59 }
0x156b   :  { %v2507_v60 = vpop.f32.mrf.mxu3 }
0x156c   :  { %v2508_v34 = vadd.f32 %v6877_v57, %v2507_v60 }
0x156e   :  { %v2511_v61 = vmax.f32 %v2508_v34, 0.0 }
0x1570   :  { %6589 = vmatmul.msk.f32.gmra.mxu0 %vm1519_vm4, %v2511_v61 }
0x1573   :  { %v2724_v63 = vpop.f32.mrf.mxu3 }
0x1574   :  { %v8620_v0 = vadd.f32 %v6878_v62, %v2724_v63 }
0x1576   :  { %2736 = vrot.lane.b32.xlu0 %v8620_v0, %s7791_s1 }
0x157e   :  { %2891 = vrot.lane.b32.xlu0 %v8620_v0, %s7792_s17 }
0x1586   :  { %2889 = vrot.lane.b32.xlu0 %v8620_v0, %s7793_s11 }
0x15e3   :  { %v2727_v3 = vpop.f32.mrf.mxu3 }
0x15e4   :  { %v8628_v6 = vadd.f32 %v6878_v62, %v2727_v3  ;;  %v2538_v7 = vpop.f32.mrf.mxu0  ;;  %v6881_v62 = vld [vmem:[%s9354_s14 + $0x1] ss:$0 sm:$0xff] }
0x15e5   :  { %v2539_v8 = vadd.f32 %v6879_v1, %v2538_v7 }
0x15e6   :  { %2919 = vrot.lane.b32.xlu0 %v8628_v6, %s7792_s17 }
0x15e7   :  { %v2544_v9 = vadd.f32 %v2539_v8, %v2458_v40 }
0x15e8   :  { %v2737_v10 = vpop.permute.xlu0 %2736 }
0x15e9   :  { %v2550_v11 = vsel %vm575_vm7, %v2544_v9, 0.0  ;;  %6600 = vmatpush.xpose.msk.msrb.mxu0 %vm658_vm10, %v2737_v10 }
0x15ea   :  { %2551 = vadd.xlane.f32.xlu1 %v2550_v11 }
0x15ec   :  { %6601 = vmatmul.msk.f32.vlgmr.msrb.gmra.mxu0 %vm658_vm10, %v8620_v0 }
0x15ed   :  { %v2541_v12 = vpop.f32.mrf.mxu0 }
0x15ee   :  { %v2542_v13 = vadd.f32 %v6879_v1, %v2541_v12  ;;  %2917 = vrot.lane.b32.xlu0 %v8628_v6, %s7793_s11 }
0x15f0   :  { %v2892_v14 = vpop.permute.xlu0 %2891  ;;  %v2545_v15 = vadd.f32 %v2542_v13, %v2459_v44 }
0x15f1   :  { %6606 = vmatpush.xpose.msk.msrb.mxu2 %vm658_vm10, %v2892_v14 }
0x15f2   :  { %v2553_v19 = vsel %vm575_vm7, %v2545_v15, 0.0 }
0x15f3   :  { %2554 = vadd.xlane.f32.xlu1 %v2553_v19 }
0x15f8   :  { %v2890_v20 = vpop.permute.xlu0 %2889 }
0x15f9   :  { %6607 = vmatmul.msk.f32.vlgmr.msrb.gmra.mxu2 %vm658_vm10, %v2890_v20 }
0x1658   :  { %v2920_v22 = vpop.permute.xlu0 %2919 }
0x1659   :  { %6608 = vmatpush.xpose.msk.msra.mxu3 %vm658_vm10, %v2920_v22 }
0x165d   :  { %v2552_v23 = vpop.xlane.xlu1 %2551 }
0x165e   :  { %v2556_v24 = vmul.f32 %v2552_v23, %v8398_v35 }
0x1660   :  { %v2558_v25 = vsub.f32 %v2544_v9, %v2556_v24  ;;  %v2918_v26 = vpop.permute.xlu0 %2917 }
0x1661   :  { %6609 = vmatmul.msk.f32.vlgmr.msra.gmra.mxu3 %vm658_vm10, %v2918_v26 }
0x1662   :  { %v2560_v28 = vmul.f32 %v2558_v25, %v2558_v25 }
0x1664   :  { %v2562_v37 = vsel %vm575_vm7, %v2560_v28, 0.0 }
0x1665   :  { %2563 = vadd.xlane.f32.xlu1 %v2562_v37 }
0x1666   :  { %v2555_v29 = vpop.xlane.xlu1 %2554 }
0x1667   :  { %v2557_v39 = vmul.f32 %v2555_v29, %v8398_v35 }
0x1669   :  { %v2559_v30 = vsub.f32 %v2545_v15, %v2557_v39  ;;  %v2759_v38 = vpop.f32.mrf.mxu0 }
0x166a   :  { %v2760_v40 = vadd.f32 %v2759_v38, %v8248_v16 }
0x166b   :  { %v2561_v32 = vmul.f32 %v2559_v30, %v2559_v30 }
0x166c   :  { %v2789_v42 = vsel %vm658_vm10, %v2760_v40, -inf }
0x166d   :  { %v2565_v33 = vsel %vm575_vm7, %v2561_v32, 0.0  ;;  %v2730_v32 = vld [vmem:[%s9357_s7] sm:$0xff] }
0x166e   :  { %2566 = vadd.xlane.f32.xlu2 %v2565_v33  ;;  %3095 = vmatpush.msrb.mxu3 %v2730_v32 }
0x167c   :  { %v2914_v47 = vpop.f32.mrf.mxu2 }
0x167d   :  { %v2915_v36 = vadd.f32 %v2914_v47, %v8248_v16 }
0x167e   :  { %2763 = vrot.lane.b32.xlu1 %v8628_v6, %s7791_s1 }
0x167f   :  { %v2945_v31 = vsel %vm658_vm10, %v2915_v36, -inf }
0x1680   :  { %2946 = vmax.xlane.f32.xlu2 %v2945_v31 }
0x16a8   :  { %2790 = vmax.xlane.f32.xlu1 %v2789_v42 }
0x16d8   :  { %v2564_v44 = vpop.xlane.xlu1 %2563 }
0x16d9   :  { %v2568_v45 = vmul.f32 %v2564_v44, %v8398_v35  ;;  %v6855_v44 = vpack.i.bf16 %v8628_v6, %v8620_v0 }
0x16db   :  { %v2570_v50 = vadd.f32 1e-05, %v2568_v45 }
0x16dd   :  { %6985 = vrsqrt.f32 %v2570_v50  ;;  %vm2578_vm2 = vweird.f32 %v2570_v50 }
0x16e1   :  { %v2567_v18 = vpop.xlane.xlu2 %2566 }
0x16e2   :  { %v2569_v4 = vmul.f32 %v2567_v18, %v8398_v35 }
0x16e3   :  { %v6986_v52 = vpop.eup %6985 }
0x16e4   :  { %v2573_v53 = vmul.f32 %v6986_v52, %v2570_v50  ;;  %v2571_v54 = vadd.f32 1e-05, %v2569_v4  ;;  %vm2579_vm1 = vweird.f32 %v6986_v52  ;;  %v2942_v45 = vpop.f32.mrf.mxu3 }
0x16e5   :  { %vm2580_vm3 = vmor %vm2578_vm2, %vm2579_vm1  ;;  %v8708_v50 = vadd.f32 %v2942_v45, %v8252_v17 }
0x16e6   :  { %v2574_v41 = vmul.f32 %v6986_v52, %v2573_v53  ;;  %6987 = vrsqrt.f32 %v2571_v54  ;;  %vm2588_vm6 = vweird.f32 %v2571_v54 }
0x16e7   :  { %v2948_v18 = vsel %vm658_vm10, %v8708_v50, -inf }
0x16e8   :  { %v2575_v48 = vmul.f32 0.5, %v2574_v41 }
0x16ea   :  { %v2576_v55 = vsub.f32 1.5, %v2575_v48 }
0x16ec   :  { %v6988_v57 = vpop.eup %6987  ;;  %v2577_v58 = vmul.f32 %v6986_v52, %v2576_v55 }
0x16ed   :  { %v2583_v59 = vmul.f32 %v6988_v57, %v2571_v54  ;;  %vm2589_vm5 = vweird.f32 %v6988_v57 }
0x16ee   :  { %v2581_v60 = vsel %vm2580_vm3, %v6986_v52, %v2577_v58  ;;  %vm2590_vm8 = vmor %vm2588_vm6, %vm2589_vm5 }
0x16ef   :  { %v2592_v34 = vmul.f32 %v2581_v60, %v2558_v25  ;;  %v2584_v61 = vmul.f32 %v6988_v57, %v2583_v59 }
0x16f0   :  { %v2764_v63 = vpop.permute.xlu1 %2763 }
0x16f1   :  { %v2597_v1 = vmul.f32 %v6880_v49, %v2592_v34  ;;  %v2585_v3 = vmul.f32 0.5, %v2584_v61  ;;  %6602 = vmatpush.xpose.msk.msra.mxu1 %vm658_vm10, %v2764_v63 }
0x16f3   :  { %v2586_v7 = vsub.f32 1.5, %v2585_v3  ;;  %v2947_v8 = vpop.xlane.xlu2 %2946  ;;  %v2602_v9 = vadd.f32 %v6881_v62, %v2597_v1 }
0x16f4   :  { %v2951_v10 = vsub.f32 %v2915_v36, %v2947_v8 }
0x16f5   :  { %v2587_v11 = vmul.f32 %v6988_v57, %v2586_v7  ;;  %6592 = vmatmul.msk.f32.vlgmr.msrb.gmra.mxu1 %vm575_vm7, %v2602_v9 }
0x16f6   :  { %v2953_v12 = vmul.f32 1.442695, %v2951_v10 }
0x16f7   :  { %v2591_v13 = vsel %vm2590_vm8, %v6988_v57, %v2587_v11 }
0x16f8   :  { %6989 = vpow2.f32 %v2953_v12  ;;  %v2593_v14 = vmul.f32 %v2591_v13, %v2559_v30 }
0x16fa   :  { %v2598_v15 = vmul.f32 %v6880_v49, %v2593_v14 }
0x16fc   :  { %v2603_v19 = vadd.f32 %v6881_v62, %v2598_v15 }
0x16fe   :  { %v8659_v20 = vpop.eup %6989  ;;  %6593 = vmatmul.msk.f32.gmra.mxu1 %vm575_vm7, %v2603_v19 }
0x16ff   :  { %v2957_v22 = vsel %vm658_vm10, %v8659_v20, 0.0 }
0x1700   :  { %2958 = vadd.xlane.f32.xlu1 %v2957_v22 }
0x1706   :  { %6603 = vmatmul.msk.f32.vlgmr.msra.gmra.mxu1 %vm658_vm10, %v8628_v6 }
0x1719   :  { %3105 = vrot.lane.b32.xlu1 %v8620_v0, %s7796_s30 }
0x171b   :  { %v2791_v23 = vpop.xlane.xlu1 %2790 }
0x171c   :  { %v2795_v24 = vsub.f32 %v2760_v40, %v2791_v23 }
0x171e   :  { %v2797_v25 = vmul.f32 1.442695, %v2795_v24 }
0x1720   :  { %6991 = vpow2.f32 %v2797_v25 }
0x1721   :  { %3019 = vrot.lane.b32.xlu1 %v8628_v6, %s7794_s13 }
0x1726   :  { %v8670_v26 = vpop.eup %6991 }
0x1727   :  { %v2801_v28 = vsel %vm658_vm10, %v8670_v26, 0.0 }
0x1728   :  { %2802 = vadd.xlane.f32.xlu2 %v2801_v28 }
0x1729   :  { %3133 = vrot.lane.b32.xlu1 %v8628_v6, %s7796_s30 }
0x1731   :  { %3292 = vrot.lane.b32.xlu1 %v8620_v0, %s7797_s20 }
0x1739   :  { %3131 = vrot.lane.b32.xlu1 %v8628_v6, %s7795_s9 }
0x1772   :  { %v8680_v37 = vpop.f32.mrf.mxu1 }
0x1773   :  { %v8684_v39 = vpop.xlane.xlu1 %2958 }
0x1774   :  { %vm2968_vm13 = vweird.f32 %v8684_v39  ;;  %v2972_v1 = vand.u32 2147483647, %v8684_v39  ;;  %v2974_v3 = vand.u32 2147483648, %v8684_v39 }
0x1776   :  { %vm8728_vm1 = vcmp.eq.f32.partialorder %v2972_v1, 8.507059e+37  ;;  %v2975_v22 = vor.u32 1.1754944e-38, %v2974_v3 }
0x177b   :  { %v8682_v29 = vpop.f32.mrf.mxu1 }
0x1783   :  { %v2786_v30 = vpop.f32.mrf.mxu1 }
0x1784   :  { %v2787_v33 = vadd.f32 %v2786_v30, %v8252_v17 }
0x1786   :  { %v2792_v47 = vsel %vm658_vm10, %v2787_v33, -inf }
0x1787   :  { %2793 = vmax.xlane.f32.xlu0 %v2792_v47 }
0x178b   :  { %v8689_v36 = vpop.permute.xlu1 %3105 }
0x1793   :  { %v8691_v31 = vpop.permute.xlu1 %3019 }
0x179b   :  { %2993 = vrot.lane.b32.xlu0 %v8620_v0, %s7794_s13  ;;  %v8695_v38 = vpop.permute.xlu1 %3133  ;;  %v2803_v4 = vpop.xlane.xlu2 %2802 }
0x179c   :  { %v2818_v59 = vand.u32 2147483648, %v2803_v4  ;;  %vm2812_vm11 = vweird.f32 %v2803_v4  ;;  %v2816_v60 = vand.u32 2147483647, %v2803_v4 }
0x179e   :  { %v2819_v62 = vor.u32 1.1754944e-38, %v2818_v59  ;;  %vm2817_vm15 = vcmp.eq.f32.partialorder %v2816_v60, 8.507059e+37 }
0x17a3   :  { %v3293_v40 = vpop.permute.xlu1 %3292 }
0x17a4   :  { %6624 = vmatpush.xpose.msk.msra.mxu3 %vm658_vm10, %v3293_v40 }
0x17ab   :  { %v3132_v1 = vpop.permute.xlu1 %3131 }
0x17fa   :  { %v2794_v42 = vpop.xlane.xlu0 %2793 }
0x17fb   :  { %v2796_v5 = vsub.f32 %v2787_v33, %v2794_v42 }
0x17fd   :  { %v2799_v21 = vmul.f32 1.442695, %v2796_v5 }
0x17ff   :  { %6993 = vpow2.f32 %v2799_v21 }
0x1800   :  { %6995 = vrcp.f32 %v2803_v4 }
0x1801   :  { %6997 = vrcp.f32 %v8684_v39 }
0x1805   :  { %v8698_v43 = vpop.eup %6993 }
0x1806   :  { %v2804_v2 = vsel %vm658_vm10, %v8698_v43, 0.0  ;;  %v6996_v52 = vpop.eup %6995 }
0x1807   :  { %2805 = vadd.xlane.f32.xlu2 %v2804_v2  ;;  %v2808_v53 = vmul.f32 %v6996_v52, %v2803_v4  ;;  %v6998_v41 = vpop.eup %6997  ;;  %vm2813_vm9 = vweird.f32 %v6996_v52 }
0x1808   :  { %v2964_v48 = vmul.f32 %v6998_v41, %v8684_v39  ;;  %vm2814_vm12 = vmor %vm2812_vm11, %vm2813_vm9  ;;  %vm2969_vm14 = vweird.f32 %v6998_v41 }
0x1809   :  { %v2809_v54 = vsub.f32 1.0, %v2808_v53  ;;  %vm8723_vm0 = vmor %vm2968_vm13, %vm2969_vm14 }
0x180a   :  { %v2965_v57 = vsub.f32 1.0, %v2964_v48 }
0x180b   :  { %v2810_v55 = vmul.f32 %v6996_v52, %v2809_v54 }
0x180c   :  { %v2966_v34 = vmul.f32 %v6998_v41, %v2965_v57 }
0x180d   :  { %v2811_v58 = vadd.f32 %v6996_v52, %v2810_v55  ;;  %v2994_v25 = vpop.permute.xlu0 %2993 }
0x180e   :  { %v2967_v8 = vadd.f32 %v6998_v41, %v2966_v34 }
0x180f   :  { %v2815_v61 = vsel %vm2814_vm12, %v6996_v52, %v2811_v58 }
0x1810   :  { %v2820_v7 = vsel %vm2817_vm15, %v2819_v62, %v2815_v61  ;;  %v2971_v24 = vsel %vm8723_vm0, %v6998_v41, %v2967_v8 }
0x1811   :  { %v2821_v15 = vmul.f32 %v8670_v26, %v2820_v7  ;;  %v2976_v32 = vsel %vm8728_vm1, %v2975_v22, %v2971_v24 }
0x181f   :  { %6856 = vrot.lane.b32.xlu2 %v6855_v44, %s7790_s6  ;;  %v2732_v44 = vld [vmem:[%s9357_s7 + $0x10] sm:$0xff] }
0x1827   :  { %3103 = vrot.lane.b32.xlu2 %v8620_v0, %s7795_s9 }
0x1850   :  { %2949 = vmax.xlane.f32.xlu2 %v2948_v18 }
0x1868   :  { %3290 = vrot.lane.b32.xlu2 %v8620_v0, %s7798_s26 }
0x1870   :  { %3320 = vrot.lane.b32.xlu2 %v8628_v6, %s7797_s20 }
0x1878   :  { %3318 = vrot.lane.b32.xlu2 %v8628_v6, %s7798_s26 }
0x187a   :  { %v2806_v49 = vpop.xlane.xlu2 %2805 }
0x187b   :  { %6999 = vrcp.f32 %v2806_v49  ;;  %v2833_v23 = vand.u32 2147483648, %v2806_v49  ;;  %v2831_v39 = vand.u32 2147483647, %v2806_v49  ;;  %vm2827_vm3 = vweird.f32 %v2806_v49 }
0x187d   :  { %v2834_v30 = vor.u32 1.1754944e-38, %v2833_v23  ;;  %vm2832_vm6 = vcmp.eq.f32.partialorder %v2831_v39, 8.507059e+37 }
0x1881   :  { %v7000_v63 = vpop.eup %6999 }
0x1882   :  { %v2823_v9 = vmul.f32 %v7000_v63, %v2806_v49  ;;  %v6857_v10 = vpop.permute.xlu2 %6856  ;;  %vm2828_vm2 = vweird.f32 %v7000_v63 }
0x1883   :  { %v6859_v12 = vunpack.i.h.bf16 %v6857_v10  ;;  %v6858_v13 = vunpack.i.l.bf16 %v6857_v10  ;;  %vm2829_vm5 = vmor %vm2827_vm3, %vm2828_vm2 }
0x1884   :  { %v2824_v14 = vsub.f32 1.0, %v2823_v9 }
0x1885   :  { %2858 = vmatpush.msra.mxu0 %v6858_v13  ;;  %2884 = vmatpush.msrb.mxu1 %v6859_v12 }
0x1886   :  { %v2825_v28 = vmul.f32 %v7000_v63, %v2824_v14  ;;  %6604 = vmatmul.msk.f32.vlgmr.msra.gmra.mxu0 %vm658_vm10, %v2821_v15 }
0x1887   :  { %3040 = vmatpush.msra.mxu1 %v8691_v31  ;;  %3014 = vmatpush.msrb.mxu0 %v2994_v25  ;;  %v2977_v31 = vmul.f32 %v8659_v20, %v2976_v32  ;;  %v2731_v20 = vld [vmem:[%s9357_s7 + $0x8] sm:$0xff] }
0x1888   :  { %v2826_v26 = vadd.f32 %v7000_v63, %v2825_v28  ;;  %3066 = vmatpush.msra.mxu2 %v2731_v20 }
0x1889   :  { %6616 = vmatpush.xpose.msk.msra.mxu0 %vm658_vm10, %v8689_v36 }
0x188a   :  { %v2830_v33 = vsel %vm2829_vm5, %v7000_v63, %v2826_v26  ;;  %v3104_v36 = vpop.permute.xlu2 %3103  ;;  %3280 = vmatpush.msrb.mxu2 %v2732_v44 }
0x188b   :  { %v2835_v47 = vsel %vm2832_vm6, %v2834_v30, %v2830_v33 }
0x188c   :  { %v2836_v40 = vmul.f32 %v8698_v43, %v2835_v47 }
0x188e   :  { %6605 = vmatmul.msk.f32.vlgmr.msrb.gmra.mxu1 %vm658_vm10, %v2836_v40  ;;  %6610 = vmatmul.msk.f32.vlgmr.msrb.gmra.mxu0 %vm658_vm10, %v2977_v31 }
0x188f   :  { %6618 = vmatpush.xpose.msk.msrb.mxu1 %vm658_vm10, %v8695_v38  ;;  %v8752_v38 = vld [vmem:[#allocation19] ss:$0 sm:$0xff] }
0x1890   :  { %v8756_v18 = vadd.f32 %v8752_v38, %v8680_v37 }
0x1896   :  { %6617 = vmatmul.msk.f32.vlgmr.msra.gmra.mxu0 %vm658_vm10, %v3104_v36 }
0x18c3   :  { %v2950_v42 = vpop.xlane.xlu2 %2949 }
0x18c4   :  { %v2952_v5 = vsub.f32 %v8708_v50, %v2950_v42 }
0x18c6   :  { %v2955_v21 = vmul.f32 1.442695, %v2952_v5 }
0x18c8   :  { %7001 = vpow2.f32 %v2955_v21 }
0x18cb   :  { %v3291_v52 = vpop.permute.xlu2 %3290 }
0x18ce   :  { %v7002_v2 = vpop.eup %7001 }
0x18cf   :  { %v2960_v43 = vsel %vm658_vm10, %v7002_v2, 0.0 }
0x18d0   :  { %2961 = vadd.xlane.f32.xlu0 %v2960_v43 }
0x18d3   :  { %v3321_v42 = vpop.permute.xlu2 %3320 }
0x1903   :  { %v2860_v45 = vpop.f32.mrf.mxu0 }
0x1904   :  { %6614 = vmatmul.msk.f32.vlgmr.msrb.gmra.mxu3 %vm658_vm10, %v2860_v45 }
0x190b   :  { %v2886_v50 = vpop.f32.mrf.mxu1  ;;  %v3016_v4 = vpop.f32.mrf.mxu0 }
0x190c   :  { %6612 = vmatmul.msk.f32.vlgmr.msra.gmra.mxu2 %vm658_vm10, %v3016_v4  ;;  %6615 = vmatmul.msk.f32.gmra.mxu3 %vm658_vm10, %v2886_v50 }
0x190d   :  { %6634 = vmatpush.xpose.msk.msra.mxu2 %vm658_vm10, %v8756_v18 }
0x1913   :  { %v3128_v53 = vpop.f32.mrf.mxu0 }
0x1914   :  { %v3129_v54 = vadd.f32 %v3128_v53, %v8248_v16  ;;  %6625 = vmatmul.msk.f32.vlgmr.msra.gmra.mxu3 %vm658_vm10, %v3291_v52 }
0x1916   :  { %v3159_v41 = vsel %vm658_vm10, %v3129_v54, -inf }
0x1917   :  { %3160 = vmax.xlane.f32.xlu1 %v3159_v41 }
0x1943   :  { %v2962_v37 = vpop.xlane.xlu0 %2961 }
0x1944   :  { %7003 = vrcp.f32 %v2962_v37  ;;  %v2989_v58 = vand.u32 2147483648, %v2962_v37  ;;  %v2987_v59 = vand.u32 2147483647, %v2962_v37  ;;  %vm2983_vm9 = vweird.f32 %v2962_v37 }
0x1946   :  { %v2990_v34 = vor.u32 1.1754944e-38, %v2989_v58  ;;  %vm2988_vm12 = vcmp.eq.f32.partialorder %v2987_v59, 8.507059e+37 }
0x194a   :  { %v7004_v48 = vpop.eup %7003 }
0x194b   :  { %v2979_v55 = vmul.f32 %v7004_v48, %v2962_v37  ;;  %vm2984_vm8 = vweird.f32 %v7004_v48 }
0x194c   :  { %vm2985_vm11 = vmor %vm2983_vm9, %vm2984_vm8 }
0x194d   :  { %v2980_v57 = vsub.f32 1.0, %v2979_v55 }
0x194f   :  { %v2981_v49 = vmul.f32 %v7004_v48, %v2980_v57 }
0x1951   :  { %v2982_v60 = vadd.f32 %v7004_v48, %v2981_v49 }
0x1953   :  { %v2986_v61 = vsel %vm2985_vm11, %v7004_v48, %v2982_v60 }
0x1954   :  { %v2991_v62 = vsel %vm2988_vm12, %v2990_v34, %v2986_v61 }
0x1955   :  { %v2992_v63 = vmul.f32 %v7002_v2, %v2991_v62 }
0x1957   :  { %6611 = vmatmul.msk.f32.vlgmr.msra.gmra.mxu1 %vm658_vm10, %v2992_v63 }
0x195f   :  { %6619 = vmatmul.msk.f32.vlgmr.msrb.gmra.mxu1 %vm658_vm10, %v3132_v1 }
0x1987   :  { %v8767_v3 = vpop.f32.mrf.mxu3 }
0x198a   :  { %v3161_v7 = vpop.xlane.xlu1 %3160 }
0x198b   :  { %v3165_v8 = vsub.f32 %v3129_v54, %v3161_v7 }
0x198d   :  { %v3167_v9 = vmul.f32 1.442695, %v3165_v8 }
0x198f   :  { %7005 = vpow2.f32 %v3167_v9  ;;  %v8769_v10 = vpop.f32.mrf.mxu3 }
0x1995   :  { %v7006_v11 = vpop.eup %7005 }
0x1996   :  { %v3171_v12 = vsel %vm658_vm10, %v7006_v11, 0.0 }
0x1997   :  { %v3315_v13 = vpop.f32.mrf.mxu3  ;;  %3172 = vadd.xlane.f32.xlu0 %v3171_v12 }
0x1998   :  { %v3316_v14 = vadd.f32 %v3315_v13, %v8248_v16 }
0x199a   :  { %v3346_v15 = vsel %vm658_vm10, %v3316_v14, -inf }
0x199b   :  { %3347 = vmax.xlane.f32.xlu2 %v3346_v15 }
0x19ab   :  { %3207 = vrot.lane.b32.xlu0 %v8620_v0, %s7799_s5 }
0x19d4   :  { %v3042_v19 = vpop.f32.mrf.mxu1 }
0x19d5   :  { %6613 = vmatmul.msk.f32.gmra.mxu2 %vm658_vm10, %v3042_v19 }
0x19dc   :  { %v3156_v22 = vpop.f32.mrf.mxu1 }
0x19dd   :  { %v3157_v23 = vadd.f32 %v3156_v22, %v8252_v17 }
0x19df   :  { %v3162_v24 = vsel %vm658_vm10, %v3157_v23, -inf }
0x19e0   :  { %3163 = vmax.xlane.f32.xlu0 %v3162_v24 }
0x19f4   :  { %3394 = vrot.lane.b32.xlu0 %v8620_v0, %s7800_s25  ;;  %v3319_v0 = vpop.permute.xlu2 %3318 }
0x1a0a   :  { %v3173_v25 = vpop.xlane.xlu0 %3172 }
0x1a0b   :  { %7007 = vrcp.f32 %v3173_v25  ;;  %v3188_v30 = vand.u32 2147483648, %v3173_v25  ;;  %v3186_v33 = vand.u32 2147483647, %v3173_v25  ;;  %vm3182_vm14 = vweird.f32 %v3173_v25 }
0x1a0d   :  { %v3189_v40 = vor.u32 1.1754944e-38, %v3188_v30  ;;  %vm3187_vm0 = vcmp.eq.f32.partialorder %v3186_v33, 8.507059e+37  ;;  %v8797_v33 = vadd.f32 %v8752_v38, %v8682_v29 }
0x1a0e   :  { %v3348_v2 = vpop.xlane.xlu2 %3347 }
0x1a0f   :  { %v3352_v44 = vsub.f32 %v3316_v14, %v3348_v2 }
0x1a11   :  { %v7008_v28 = vpop.eup %7007  ;;  %v3354_v50 = vmul.f32 1.442695, %v3352_v44 }
0x1a12   :  { %v3178_v39 = vmul.f32 %v7008_v28, %v3173_v25  ;;  %vm3183_vm13 = vweird.f32 %v7008_v28 }
0x1a13   :  { %vm3184_vm15 = vmor %vm3182_vm14, %vm3183_vm13 }
0x1a14   :  { %v3179_v26 = vsub.f32 1.0, %v3178_v39 }
0x1a16   :  { %v3180_v32 = vmul.f32 %v7008_v28, %v3179_v26 }
0x1a18   :  { %v3181_v47 = vadd.f32 %v7008_v28, %v3180_v32 }
0x1a1a   :  { %v3185_v31 = vsel %vm3184_vm15, %v7008_v28, %v3181_v47 }
0x1a1b   :  { %v3190_v36 = vsel %vm3187_vm0, %v3189_v40, %v3185_v31 }
0x1a1c   :  { %v3191_v5 = vmul.f32 %v7006_v11, %v3190_v36  ;;  %v2733_v36 = vld [vmem:[%s9357_s7 + $0x18] sm:$0xff] }
0x1a1d   :  { %v3208_v21 = vpop.permute.xlu0 %3207 }
0x1a1e   :  { %3228 = vmatpush.msrb.mxu0 %v3208_v21 }
0x1a1f   :  { %6620 = vmatmul.msk.f32.vlgmr.msrb.gmra.mxu0 %vm658_vm10, %v3191_v5 }
0x1a20   :  { %6626 = vmatpush.xpose.msk.msra.mxu0 %vm658_vm10, %v3321_v42 }
0x1a24   :  { %3467 = vmatpush.msrb.mxu0 %v2733_v36  ;;  %v6885_v36 = vld [vmem:[#allocation13] ss:$0 sm:$0xff] }
0x1a27   :  { %6627 = vmatmul.msk.f32.vlgmr.msra.gmra.mxu0 %vm658_vm10, %v3319_v0 }
0x1a53   :  { %v3164_v43 = vpop.xlane.xlu0 %3163 }
0x1a54   :  { %v3166_v20 = vsub.f32 %v3157_v23, %v3164_v43 }
0x1a56   :  { %v3169_v45 = vmul.f32 1.442695, %v3166_v20 }
0x1a58   :  { %7009 = vpow2.f32 %v3169_v45 }
0x1a59   :  { %7011 = vpow2.f32 %v3354_v50 }
0x1a5e   :  { %v7010_v4 = vpop.eup %7009 }
0x1a5f   :  { %v3174_v52 = vsel %vm658_vm10, %v7010_v4, 0.0  ;;  %v7012_v53 = vpop.eup %7011 }
0x1a60   :  { %3175 = vadd.xlane.f32.xlu1 %v3174_v52  ;;  %v3358_v54 = vsel %vm658_vm10, %v7012_v53, 0.0 }
0x1a66   :  { %v3395_v23 = vpop.permute.xlu0 %3394 }
0x1a68   :  { %3359 = vadd.xlane.f32.xlu1 %v3358_v54 }
0x1a81   :  { %3233 = vrot.lane.b32.xlu1 %v8628_v6, %s7799_s5 }
0x1a9c   :  { %v3230_v41 = vpop.f32.mrf.mxu0 }
0x1a9d   :  { %6622 = vmatmul.msk.f32.vlgmr.msrb.gmra.mxu2 %vm658_vm10, %v3230_v41 }
0x1aa4   :  { %v3343_v37 = vpop.f32.mrf.mxu0 }
0x1aa5   :  { %v3344_v48 = vadd.f32 %v3343_v37, %v8252_v17 }
0x1aa7   :  { %v3349_v55 = vsel %vm658_vm10, %v3344_v48, -inf }
0x1aa8   :  { %3350 = vmax.xlane.f32.xlu2 %v3349_v55  ;;  %v6883_v55 = vld [vmem:[#allocation10] ss:$0 sm:$0xff] }
0x1ac0   :  { %3420 = vrot.lane.b32.xlu2 %v8628_v6, %s7800_s25 }
0x1ad3   :  { %v3176_v57 = vpop.xlane.xlu1 %3175 }
0x1ad4   :  { %7013 = vrcp.f32 %v3176_v57  ;;  %v3203_v7 = vand.u32 2147483648, %v3176_v57  ;;  %vm3197_vm2 = vweird.f32 %v3176_v57  ;;  %v3201_v8 = vand.u32 2147483647, %v3176_v57 }
0x1ad6   :  { %v3204_v6 = vor.u32 1.1754944e-38, %v3203_v7  ;;  %vm3202_vm5 = vcmp.eq.f32.partialorder %v3201_v8, 8.507059e+37 }
0x1ada   :  { %v7014_v58 = vpop.eup %7013 }
0x1adb   :  { %v3360_v49 = vpop.xlane.xlu1 %3359  ;;  %v3193_v59 = vmul.f32 %v7014_v58, %v3176_v57  ;;  %vm3198_vm1 = vweird.f32 %v7014_v58 }
0x1adc   :  { %7015 = vrcp.f32 %v3360_v49  ;;  %vm3199_vm3 = vmor %vm3197_vm2, %vm3198_vm1  ;;  %v3375_v14 = vand.u32 2147483648, %v3360_v49  ;;  %vm3369_vm8 = vweird.f32 %v3360_v49  ;;  %v3373_v15 = vand.u32 2147483647, %v3360_v49 }
0x1add   :  { %v3194_v60 = vsub.f32 1.0, %v3193_v59 }
0x1ade   :  { %v3376_v25 = vor.u32 1.1754944e-38, %v3375_v14  ;;  %vm3374_vm11 = vcmp.eq.f32.partialorder %v3373_v15, 8.507059e+37  ;;  %v3543_v15 = vld [vmem:[#allocation15 + $0x18] sm:$0xff] }
0x1adf   :  { %v3195_v61 = vmul.f32 %v7014_v58, %v3194_v60 }
0x1ae1   :  { %v3196_v63 = vadd.f32 %v7014_v58, %v3195_v61 }
0x1ae2   :  { %v7016_v34 = vpop.eup %7015 }
0x1ae3   :  { %v3365_v62 = vmul.f32 %v7016_v34, %v3360_v49  ;;  %v3200_v9 = vsel %vm3199_vm3, %v7014_v58, %v3196_v63  ;;  %vm3370_vm6 = vweird.f32 %v7016_v34 }
0x1ae4   :  { %v3205_v12 = vsel %vm3202_vm5, %v3204_v6, %v3200_v9  ;;  %vm3371_vm9 = vmor %vm3369_vm8, %vm3370_vm6 }
0x1ae5   :  { %v3366_v1 = vsub.f32 1.0, %v3365_v62  ;;  %v3206_v22 = vmul.f32 %v7010_v4, %v3205_v12 }
0x1ae7   :  { %v3367_v11 = vmul.f32 %v7016_v34, %v3366_v1 }
0x1ae9   :  { %v3368_v13 = vadd.f32 %v7016_v34, %v3367_v11 }
0x1aeb   :  { %v3372_v24 = vsel %vm3371_vm9, %v7016_v34, %v3368_v13 }
0x1aec   :  { %v3377_v28 = vsel %vm3374_vm11, %v3376_v25, %v3372_v24 }
0x1aed   :  { %v3378_v39 = vmul.f32 %v7012_v53, %v3377_v28  ;;  %v3068_v53 = vpop.f32.mrf.mxu2 }
0x1aee   :  { %v3098_v37 = vadd.f32 %v8767_v3, %v3068_v53 }
0x1af3   :  { %v3234_v19 = vpop.permute.xlu1 %3233 }
0x1af4   :  { %3254 = vmatpush.msra.mxu1 %v3234_v19  ;;  %v3542_v19 = vld [vmem:[#allocation15 + $0x10] sm:$0xff] }
0x1af5   :  { %6621 = vmatmul.msk.f32.vlgmr.msra.gmra.mxu1 %vm658_vm10, %v3206_v22  ;;  %v3071_v54 = vpop.f32.mrf.mxu2  ;;  %v3541_v22 = vld [vmem:[#allocation15 + $0x8] sm:$0xff] }
0x1af6   :  { %3415 = vmatpush.msrb.mxu1 %v3395_v23  ;;  %v3101_v8 = vadd.f32 %v8769_v10, %v3071_v54  ;;  %v3540_v23 = vld [vmem:[#allocation15] sm:$0xff] }
0x1af8   :  { %3566 = vmatpush.msra.mxu1 %v3543_v15 }
0x1afa   :  { %3567 = vmatpush.msra.mxu1 %v3542_v19 }
0x1afc   :  { %3568 = vmatpush.msra.mxu1 %v3541_v22 }
0x1afd   :  { %6628 = vmatmul.msk.f32.vlgmr.msrb.gmra.mxu1 %vm658_vm10, %v3378_v39 }
0x1afe   :  { %3569 = vmatpush.msra.mxu1 %v3540_v23 }
0x1b1b   :  { %v3351_v26 = vpop.xlane.xlu2 %3350 }
0x1b1c   :  { %v3353_v30 = vsub.f32 %v3344_v48, %v3351_v26 }
0x1b1e   :  { %v3356_v32 = vmul.f32 1.442695, %v3353_v30 }
0x1b20   :  { %7017 = vpow2.f32 %v3356_v32  ;;  %v3282_v41 = vpop.f32.mrf.mxu2 }
0x1b21   :  { %v3288_v48 = vadd.f32 %v3282_v41, %v3098_v37 }
0x1b23   :  { %v3421_v47 = vpop.permute.xlu2 %3420 }
0x1b24   :  { %3441 = vmatpush.msrb.mxu3 %v3421_v47  ;;  %v6884_v47 = vld [vmem:[#allocation12] ss:$0 sm:$0xff] }
0x1b26   :  { %6636 = vmatpush.xpose.msk.msra.mxu3 %vm658_vm10, %v8797_v33  ;;  %v7018_v40 = vpop.eup %7017 }
0x1b27   :  { %v3361_v31 = vsel %vm658_vm10, %v7018_v40, 0.0 }
0x1b28   :  { %3362 = vadd.xlane.f32.xlu1 %v3361_v31 }
0x1b72   :  { %v3256_v42 = vpop.f32.mrf.mxu1 }
0x1b73   :  { %6623 = vmatmul.msk.f32.gmra.mxu2 %vm658_vm10, %v3256_v42 }
0x1b7a   :  { %v3417_v5 = vpop.f32.mrf.mxu1 }
0x1b7b   :  { %6630 = vmatmul.msk.f32.vlgmr.msrb.gmra.mxu0 %vm658_vm10, %v3417_v5 }
0x1b9b   :  { %v3363_v21 = vpop.xlane.xlu1 %3362 }
0x1b9c   :  { %7019 = vrcp.f32 %v3363_v21  ;;  %v3390_v2 = vand.u32 2147483648, %v3363_v21  ;;  %v3388_v20 = vand.u32 2147483647, %v3363_v21  ;;  %vm3384_vm13 = vweird.f32 %v3363_v21 }
0x1b9e   :  { %v3391_v45 = vor.u32 1.1754944e-38, %v3390_v2  ;;  %vm3389_vm15 = vcmp.eq.f32.partialorder %v3388_v20, 8.507059e+37 }
0x1ba2   :  { %v7020_v29 = vpop.eup %7019 }
0x1ba3   :  { %v3380_v38 = vmul.f32 %v7020_v29, %v3363_v21  ;;  %vm3385_vm12 = vweird.f32 %v7020_v29 }
0x1ba4   :  { %vm3386_vm14 = vmor %vm3384_vm13, %vm3385_vm12 }
0x1ba5   :  { %v3381_v0 = vsub.f32 1.0, %v3380_v38 }
0x1ba7   :  { %v3382_v43 = vmul.f32 %v7020_v29, %v3381_v0 }
0x1ba9   :  { %v3383_v44 = vadd.f32 %v7020_v29, %v3382_v43  ;;  %v6886_v43 = vld [vmem:[#allocation16] ss:$0 sm:$0xff] }
0x1bab   :  { %v3387_v50 = vsel %vm3386_vm14, %v7020_v29, %v3383_v44 }
0x1bac   :  { %v3392_v4 = vsel %vm3389_vm15, %v3391_v45, %v3387_v50 }
0x1bad   :  { %v3393_v52 = vmul.f32 %v7018_v40, %v3392_v4 }
0x1baf   :  { %6629 = vmatmul.msk.f32.vlgmr.msrb.gmra.mxu3 %vm658_vm10, %v3393_v52 }
0x1bf8   :  { %v3469_v57 = vpop.f32.mrf.mxu0 }
0x1bf9   :  { %v3475_v58 = vadd.f32 %v3469_v57, %v3288_v48 }
0x1bfb   :  { %v3480_v49 = vadd.f32 %v6883_v55, %v3475_v58 }
0x1bfd   :  { %v3482_v59 = vadd.f32 %v3480_v49, %v8604_v27  ;;  %v3285_v27 = vpop.f32.mrf.mxu2 }
0x1bfe   :  { %v3289_v9 = vadd.f32 %v3285_v27, %v3101_v8 }
0x1bff   :  { %v3486_v60 = vsel %vm575_vm7, %v3482_v59, 0.0 }
0x1c00   :  { %3487 = vadd.xlane.f32.xlu0 %v3486_v60 }
0x1c14   :  { %3736 = vrot.lane.b32.xlu0 %v8756_v18, %s7793_s11 }
0x1c32   :  { %v3443_v34 = vpop.f32.mrf.mxu3 }
0x1c33   :  { %6631 = vmatmul.msk.f32.gmra.mxu0 %vm658_vm10, %v3443_v34 }
0x1c73   :  { %v3488_v61 = vpop.xlane.xlu0 %3487 }
0x1c74   :  { %v3492_v62 = vmul.f32 %v3488_v61, %v8398_v35 }
0x1c76   :  { %v3494_v3 = vsub.f32 %v3482_v59, %v3492_v62 }
0x1c78   :  { %v3496_v63 = vmul.f32 %v3494_v3, %v3494_v3 }
0x1c7a   :  { %v3498_v1 = vsel %vm575_vm7, %v3496_v63, 0.0 }
0x1c7b   :  { %3499 = vadd.xlane.f32.xlu2 %v3498_v1 }
0x1c86   :  { %v3737_v7 = vpop.permute.xlu0 %3736 }
0x1c87   :  { %6640 = vmatpush.xpose.msk.msra.mxu0 %vm658_vm10, %v3737_v7 }
0x1cb0   :  { %v3472_v11 = vpop.f32.mrf.mxu0 }
0x1cb1   :  { %v3476_v6 = vadd.f32 %v3472_v11, %v3289_v9 }
0x1cb3   :  { %v3481_v12 = vadd.f32 %v6883_v55, %v3476_v6 }
0x1cb5   :  { %v3483_v13 = vadd.f32 %v3481_v12, %v8614_v56 }
0x1cb7   :  { %v3489_v14 = vsel %vm575_vm7, %v3483_v13, 0.0 }
0x1cb8   :  { %3490 = vadd.xlane.f32.xlu1 %v3489_v14 }
0x1cee   :  { %v3500_v24 = vpop.xlane.xlu2 %3499 }
0x1cef   :  { %v3504_v10 = vmul.f32 %v3500_v24, %v8398_v35 }
0x1cf1   :  { %v3506_v25 = vadd.f32 1e-05, %v3504_v10 }
0x1cf3   :  { %7021 = vrsqrt.f32 %v3506_v25  ;;  %vm3514_vm1 = vweird.f32 %v3506_v25 }
0x1cf9   :  { %v7022_v28 = vpop.eup %7021 }
0x1cfa   :  { %v3509_v39 = vmul.f32 %v7022_v28, %v3506_v25  ;;  %vm3515_vm0 = vweird.f32 %v7022_v28 }
0x1cfb   :  { %vm3516_vm2 = vmor %vm3514_vm1, %vm3515_vm0 }
0x1cfc   :  { %v3510_v26 = vmul.f32 %v7022_v28, %v3509_v39 }
0x1cfe   :  { %v3511_v56 = vmul.f32 0.5, %v3510_v26 }
0x1d00   :  { %v3512_v30 = vsub.f32 1.5, %v3511_v56 }
0x1d02   :  { %v3513_v32 = vmul.f32 %v7022_v28, %v3512_v30 }
0x1d04   :  { %v3517_v40 = vsel %vm3516_vm2, %v7022_v28, %v3513_v32 }
0x1d05   :  { %v3528_v31 = vmul.f32 %v3517_v40, %v3494_v3 }
0x1d07   :  { %v3533_v42 = vmul.f32 %v6884_v47, %v3528_v31 }
0x1d09   :  { %v8819_v5 = vadd.f32 %v6885_v36, %v3533_v42 }
0x1d0b   :  { %6632 = vmatmul.msk.f32.vlgmr.msra.gmra.mxu1 %vm575_vm7, %v8819_v5 }
0x1d2b   :  { %v3491_v21 = vpop.xlane.xlu1 %3490 }
0x1d2c   :  { %v3493_v29 = vmul.f32 %v3491_v21, %v8398_v35 }
0x1d2e   :  { %v3495_v38 = vsub.f32 %v3483_v13, %v3493_v29 }
0x1d30   :  { %v3497_v0 = vmul.f32 %v3495_v38, %v3495_v38 }
0x1d32   :  { %v3501_v2 = vsel %vm575_vm7, %v3497_v0, 0.0 }
0x1d33   :  { %3502 = vadd.xlane.f32.xlu1 %v3501_v2 }
0x1d88   :  { %v3571_v20 = vpop.f32.mrf.mxu1 }
0x1d89   :  { %v8825_v44 = vadd.f32 %v6886_v43, %v3571_v20 }
0x1d8b   :  { %6635 = vmatmul.msk.f32.vlgmr.msra.gmra.mxu2 %vm658_vm10, %v8825_v44  ;;  %3734 = vrot.lane.b32.xlu1 %v8825_v44, %s7793_s11 }
0x1da6   :  { %v3503_v45 = vpop.xlane.xlu1 %3502 }
0x1da7   :  { %v3505_v50 = vmul.f32 %v3503_v45, %v8398_v35 }
0x1da9   :  { %v3507_v4 = vadd.f32 1e-05, %v3505_v50 }
0x1dab   :  { %7023 = vrsqrt.f32 %v3507_v4  ;;  %vm3524_vm5 = vweird.f32 %v3507_v4 }
0x1db1   :  { %v7024_v52 = vpop.eup %7023 }
0x1db2   :  { %v3519_v53 = vmul.f32 %v7024_v52, %v3507_v4  ;;  %vm3525_vm3 = vweird.f32 %v7024_v52 }
0x1db3   :  { %vm3526_vm6 = vmor %vm3524_vm5, %vm3525_vm3 }
0x1db4   :  { %v3520_v54 = vmul.f32 %v7024_v52, %v3519_v53 }
0x1db6   :  { %v3521_v41 = vmul.f32 0.5, %v3520_v54 }
0x1db8   :  { %v3522_v37 = vsub.f32 1.5, %v3521_v41  ;;  %v3577_v41 = vld [vmem:[#allocation21] sm:$0xff] }
0x1dba   :  { %v3523_v48 = vmul.f32 %v7024_v52, %v3522_v37 }
0x1dbc   :  { %v3527_v55 = vsel %vm3526_vm6, %v7024_v52, %v3523_v48 }
0x1dbd   :  { %v3529_v57 = vmul.f32 %v3527_v55, %v3495_v38 }
0x1dbf   :  { %v3534_v58 = vmul.f32 %v6884_v47, %v3529_v57 }
0x1dc1   :  { %v8832_v49 = vadd.f32 %v6885_v36, %v3534_v58 }
0x1dc3   :  { %6633 = vmatmul.msk.f32.gmra.mxu1 %vm575_vm7, %v8832_v49 }
0x1dfd   :  { %v3735_v59 = vpop.permute.xlu1 %3734 }
0x1dfe   :  { %6641 = vmatmul.msk.f32.vlgmr.msra.gmra.mxu0 %vm658_vm10, %v3735_v59 }
0x1e0e   :  { %v3605_v60 = vpop.f32.mrf.mxu2 }
0x1e0f   :  { %v3606_v34 = vadd.f32 %v3605_v60, %v8295_v46 }
0x1e11   :  { %v3634_v61 = vsel %vm658_vm10, %v3606_v34, -inf }
0x1e12   :  { %3635 = vmax.xlane.f32.xlu2 %v3634_v61 }
0x1e2a   :  { %3764 = vrot.lane.b32.xlu2 %v8797_v33, %s7793_s11 }
0x1e32   :  { %3682 = vrot.lane.b32.xlu2 %v8756_v18, %s7791_s1 }
0x1e3a   :  { %3838 = vrot.lane.b32.xlu2 %v8756_v18, %s7792_s17 }
0x1e40   :  { %v3574_v62 = vpop.f32.mrf.mxu1 }
0x1e41   :  { %v8845_v3 = vadd.f32 %v6886_v43, %v3574_v62 }
0x1e43   :  { %6637 = vmatmul.msk.f32.vlgmr.msra.gmra.mxu3 %vm658_vm10, %v8845_v3 }
0x1e7b   :  { %v3759_v63 = vpop.f32.mrf.mxu0 }
0x1e7c   :  { %v3760_v1 = vadd.f32 %v3759_v63, %v8295_v46 }
0x1e7e   :  { %v3790_v7 = vsel %vm658_vm10, %v3760_v1, -inf }
0x1e7f   :  { %3791 = vmax.xlane.f32.xlu0 %v3790_v7 }
0x1e85   :  { %v3636_v27 = vpop.xlane.xlu2 %3635 }
0x1e86   :  { %v3640_v8 = vsub.f32 %v3606_v34, %v3636_v27 }
0x1e88   :  { %v3642_v9 = vmul.f32 1.442695, %v3640_v8 }
0x1e8a   :  { %7025 = vpow2.f32 %v3642_v9 }
0x1e8d   :  { %v3765_v11 = vpop.permute.xlu2 %3764 }
0x1e8e   :  { %6642 = vmatpush.xpose.msk.msrb.mxu1 %vm658_vm10, %v3765_v11 }
0x1e90   :  { %v7026_v6 = vpop.eup %7025 }
0x1e91   :  { %v3646_v12 = vsel %vm658_vm10, %v7026_v6, 0.0 }
0x1e92   :  { %3647 = vadd.xlane.f32.xlu2 %v3646_v12  ;;  %3940 = vmatpush.msra.mxu1 %v3577_v41 }
0x1e93   :  { %3762 = vrot.lane.b32.xlu0 %v8845_v3, %s7793_s11 }
0x1e95   :  { %v3683_v13 = vpop.permute.xlu2 %3682 }
0x1e96   :  { %3703 = vmatpush.msrb.mxu2 %v3683_v13 }
0x1e9d   :  { %v3839_v14 = vpop.permute.xlu2 %3838 }
0x1e9e   :  { %3859 = vmatpush.msra.mxu2 %v3839_v14 }
0x1eaa   :  { %3948 = vrot.lane.b32.xlu2 %v8825_v44, %s7795_s9 }
0x1ec6   :  { %v3631_v15 = vpop.f32.mrf.mxu3 }
0x1ec7   :  { %v3632_v19 = vadd.f32 %v3631_v15, %v8299_v51 }
0x1ec9   :  { %v3637_v22 = vsel %vm658_vm10, %v3632_v19, -inf }
0x1ed3   :  { %3638 = vmax.xlane.f32.xlu2 %v3637_v22 }
0x1ef2   :  { %v3792_v23 = vpop.xlane.xlu0 %3791 }
0x1ef3   :  { %v3796_v24 = vsub.f32 %v3760_v1, %v3792_v23 }
0x1ef5   :  { %v3798_v10 = vmul.f32 1.442695, %v3796_v24 }
0x1ef7   :  { %7027 = vpow2.f32 %v3798_v10  ;;  %v3578_v10 = vld [vmem:[#allocation21 + $0x8] sm:$0xff] }
0x1ef8   :  { %3911 = vmatpush.msrb.mxu0 %v3578_v10 }
0x1efd   :  { %v7028_v25 = vpop.eup %7027 }
0x1efe   :  { %v3802_v28 = vsel %vm658_vm10, %v7028_v25, 0.0 }
0x1eff   :  { %3803 = vadd.xlane.f32.xlu1 %v3802_v28 }
0x1f05   :  { %v3648_v39 = vpop.xlane.xlu2 %3647  ;;  %v3763_v26 = vpop.permute.xlu0 %3762 }
0x1f06   :  { %7029 = vrcp.f32 %v3648_v39  ;;  %6643 = vmatmul.msk.f32.vlgmr.msrb.gmra.mxu1 %vm658_vm10, %v3763_v26  ;;  %v3663_v47 = vand.u32 2147483648, %v3648_v39  ;;  %v3661_v31 = vand.u32 2147483647, %v3648_v39  ;;  %vm3657_vm9 = vweird.f32 %v3648_v39 }
0x1f08   :  { %v3664_v42 = vor.u32 1.1754944e-38, %v3663_v47  ;;  %vm3662_vm12 = vcmp.eq.f32.partialorder %v3661_v31, 8.507059e+37 }
0x1f0c   :  { %v7030_v56 = vpop.eup %7029 }
0x1f0d   :  { %v3653_v30 = vmul.f32 %v7030_v56, %v3648_v39  ;;  %vm3658_vm8 = vweird.f32 %v7030_v56  ;;  %v3949_v0 = vpop.permute.xlu2 %3948 }
0x1f0e   :  { %vm3659_vm11 = vmor %vm3657_vm9, %vm3658_vm8 }
0x1f0f   :  { %v3654_v32 = vsub.f32 1.0, %v3653_v30 }
0x1f11   :  { %v3655_v40 = vmul.f32 %v7030_v56, %v3654_v32 }
0x1f13   :  { %v3656_v36 = vadd.f32 %v7030_v56, %v3655_v40 }
0x1f15   :  { %v3660_v21 = vsel %vm3659_vm11, %v7030_v56, %v3656_v36 }
0x1f16   :  { %v3665_v29 = vsel %vm3662_vm12, %v3664_v42, %v3660_v21 }
0x1f17   :  { %v3666_v38 = vmul.f32 %v7026_v6, %v3665_v29 }
0x1f18   :  { %3950 = vrot.lane.b32.xlu1 %v8756_v18, %s7795_s9 }
0x1f19   :  { %6638 = vmatmul.msk.f32.vlgmr.msrb.gmra.mxu2 %vm658_vm10, %v3666_v38 }
0x1f20   :  { %3708 = vrot.lane.b32.xlu1 %v8797_v33, %s7791_s1 }
0x1f46   :  { %v3639_v2 = vpop.xlane.xlu2 %3638 }
0x1f47   :  { %v3641_v43 = vsub.f32 %v3632_v19, %v3639_v2 }
0x1f49   :  { %v3644_v20 = vmul.f32 1.442695, %v3641_v43 }
0x1f4b   :  { %7031 = vpow2.f32 %v3644_v20 }
0x1f51   :  { %v7032_v45 = vpop.eup %7031 }
0x1f52   :  { %v3649_v50 = vsel %vm658_vm10, %v7032_v45, 0.0 }
0x1f53   :  { %3650 = vadd.xlane.f32.xlu0 %v3649_v50 }
0x1f72   :  { %v3804_v4 = vpop.xlane.xlu1 %3803 }
0x1f73   :  { %7033 = vrcp.f32 %v3804_v4  ;;  %v3819_v37 = vand.u32 2147483648, %v3804_v4  ;;  %v3817_v55 = vand.u32 2147483647, %v3804_v4  ;;  %vm3813_vm14 = vweird.f32 %v3804_v4 }
0x1f75   :  { %v3820_v58 = vor.u32 1.1754944e-38, %v3819_v37  ;;  %vm3818_vm0 = vcmp.eq.f32.partialorder %v3817_v55, 8.507059e+37 }
0x1f79   :  { %v7034_v52 = vpop.eup %7033 }
0x1f7a   :  { %v3809_v53 = vmul.f32 %v7034_v52, %v3804_v4  ;;  %vm3814_vm13 = vweird.f32 %v7034_v52 }
0x1f7b   :  { %vm3815_vm15 = vmor %vm3813_vm14, %vm3814_vm13 }
0x1f7c   :  { %v3810_v54 = vsub.f32 1.0, %v3809_v53 }
0x1f7e   :  { %v3811_v48 = vmul.f32 %v7034_v52, %v3810_v54 }
0x1f80   :  { %v3812_v57 = vadd.f32 %v7034_v52, %v3811_v48 }
0x1f82   :  { %v3816_v59 = vsel %vm3815_vm15, %v7034_v52, %v3812_v57 }
0x1f83   :  { %v3821_v60 = vsel %vm3818_vm0, %v3820_v58, %v3816_v59  ;;  %v3787_v34 = vpop.f32.mrf.mxu1 }
0x1f84   :  { %v3822_v61 = vmul.f32 %v7028_v25, %v3821_v60  ;;  %v3788_v62 = vadd.f32 %v3787_v34, %v8299_v51 }
0x1f86   :  { %6644 = vmatmul.msk.f32.vlgmr.msra.gmra.mxu2 %vm658_vm10, %v3822_v61  ;;  %v3793_v63 = vsel %vm658_vm10, %v3788_v62, -inf }
0x1f87   :  { %3794 = vmax.xlane.f32.xlu1 %v3793_v63 }
0x1f8a   :  { %v3951_v1 = vpop.permute.xlu1 %3950 }
0x1f8b   :  { %6650 = vmatpush.xpose.msk.msrb.mxu2 %vm658_vm10, %v3951_v1 }
0x1f8e   :  { %6651 = vmatmul.msk.f32.vlgmr.msrb.gmra.mxu2 %vm658_vm10, %v3949_v0 }
0x1f92   :  { %v3709_v7 = vpop.permute.xlu1 %3708 }
0x1f93   :  { %3729 = vmatpush.msrb.mxu3 %v3709_v7 }
0x1f9c   :  { %v3705_v27 = vpop.f32.mrf.mxu2 }
0x1f9d   :  { %6648 = vmatmul.msk.f32.vlgmr.msra.gmra.mxu1 %vm658_vm10, %v3705_v27 }
0x1fa0   :  { %3976 = vrot.lane.b32.xlu1 %v8845_v3, %s7795_s9 }
0x1fc6   :  { %v3651_v8 = vpop.xlane.xlu0 %3650 }
0x1fc7   :  { %7035 = vrcp.f32 %v3651_v8  ;;  %v3678_v12 = vand.u32 2147483648, %v3651_v8  ;;  %v3676_v14 = vand.u32 2147483647, %v3651_v8  ;;  %vm3672_vm2 = vweird.f32 %v3651_v8 }
0x1fc9   :  { %v3679_v19 = vor.u32 1.1754944e-38, %v3678_v12  ;;  %vm3677_vm5 = vcmp.eq.f32.partialorder %v3676_v14, 8.507059e+37 }
0x1fcd   :  { %v7036_v9 = vpop.eup %7035 }
0x1fce   :  { %v3668_v11 = vmul.f32 %v7036_v9, %v3651_v8  ;;  %vm3673_vm1 = vweird.f32 %v7036_v9 }
0x1fcf   :  { %vm3674_vm3 = vmor %vm3672_vm2, %vm3673_vm1 }
0x1fd0   :  { %v3669_v6 = vsub.f32 1.0, %v3668_v11 }
0x1fd2   :  { %v3670_v13 = vmul.f32 %v7036_v9, %v3669_v6 }
0x1fd4   :  { %v3671_v15 = vadd.f32 %v7036_v9, %v3670_v13 }
0x1fd6   :  { %v3675_v22 = vsel %vm3674_vm3, %v7036_v9, %v3671_v15 }
0x1fd7   :  { %v3680_v23 = vsel %vm3677_vm5, %v3679_v19, %v3675_v22 }
0x1fd8   :  { %v3681_v24 = vmul.f32 %v7032_v45, %v3680_v23 }
0x1fda   :  { %6639 = vmatmul.msk.f32.vlgmr.msrb.gmra.mxu3 %vm658_vm10, %v3681_v24 }
0x1ffa   :  { %v3795_v25 = vpop.xlane.xlu1 %3794 }
0x1ffb   :  { %v3797_v28 = vsub.f32 %v3788_v62, %v3795_v25 }
0x1ffd   :  { %v3800_v39 = vmul.f32 1.442695, %v3797_v28  ;;  %v3579_v28 = vld [vmem:[#allocation21 + $0x10] sm:$0xff] }
0x1ffe   :  { %4125 = vmatpush.msra.mxu0 %v3579_v28 }
0x1fff   :  { %7037 = vpow2.f32 %v3800_v39 }
0x2005   :  { %v7038_v26 = vpop.eup %7037 }
0x2006   :  { %v3805_v56 = vsel %vm658_vm10, %v7038_v26, 0.0 }
0x2007   :  { %3806 = vadd.xlane.f32.xlu0 %v3805_v56 }
0x2009   :  { %v3861_v30 = vpop.f32.mrf.mxu2 }
0x200a   :  { %6646 = vmatmul.msk.f32.vlgmr.msrb.gmra.mxu0 %vm658_vm10, %v3861_v30 }
0x2011   :  { %v3973_v32 = vpop.f32.mrf.mxu2 }
0x2012   :  { %v3974_v47 = vadd.f32 %v3973_v32, %v8295_v46  ;;  %v3977_v57 = vpop.permute.xlu1 %3976 }
0x2014   :  { %v4004_v40 = vsel %vm658_vm10, %v3974_v47, -inf }
0x2015   :  { %4005 = vmax.xlane.f32.xlu2 %v4004_v40 }
0x201a   :  { %v8901_v60 = vpop.f32.mrf.mxu1 }
0x201b   :  { %3978 = vrot.lane.b32.xlu0 %v8797_v33, %s7795_s9 }
0x2023   :  { %4052 = vrot.lane.b32.xlu0 %v8756_v18, %s7796_s30 }
0x202d   :  { %3864 = vrot.lane.b32.xlu2 %v8797_v33, %s7792_s17 }
0x2035   :  { %4137 = vrot.lane.b32.xlu2 %v8756_v18, %s7798_s26 }
0x203d   :  { %4135 = vrot.lane.b32.xlu2 %v8825_v44, %s7798_s26 }
0x2045   :  { %4163 = vrot.lane.b32.xlu2 %v8845_v3, %s7798_s26 }
0x205d   :  { %v3731_v31 = vpop.f32.mrf.mxu3 }
0x205e   :  { %6649 = vmatmul.msk.f32.gmra.mxu1 %vm658_vm10, %v3731_v31 }
0x207a   :  { %v3807_v36 = vpop.xlane.xlu0 %3806 }
0x207b   :  { %7039 = vrcp.f32 %v3807_v36  ;;  %v3834_v0 = vand.u32 2147483648, %v3807_v36  ;;  %vm3828_vm8 = vweird.f32 %v3807_v36  ;;  %v3832_v43 = vand.u32 2147483647, %v3807_v36 }
0x207d   :  { %v3835_v50 = vor.u32 1.1754944e-38, %v3834_v0  ;;  %vm3833_vm11 = vcmp.eq.f32.partialorder %v3832_v43, 8.507059e+37 }
0x2081   :  { %v7040_v42 = vpop.eup %7039 }
0x2082   :  { %v3824_v21 = vmul.f32 %v7040_v42, %v3807_v36  ;;  %vm3829_vm6 = vweird.f32 %v7040_v42 }
0x2083   :  { %vm3830_vm9 = vmor %vm3828_vm8, %vm3829_vm6 }
0x2084   :  { %v3825_v29 = vsub.f32 1.0, %v3824_v21 }
0x2086   :  { %v3826_v38 = vmul.f32 %v7040_v42, %v3825_v29 }
0x2088   :  { %v3827_v2 = vadd.f32 %v7040_v42, %v3826_v38  ;;  %v4006_v20 = vpop.xlane.xlu2 %4005 }
0x2089   :  { %v4010_v44 = vsub.f32 %v3974_v47, %v4006_v20 }
0x208a   :  { %v3831_v45 = vsel %vm3830_vm9, %v7040_v42, %v3827_v2 }
0x208b   :  { %v4012_v3 = vmul.f32 1.442695, %v4010_v44  ;;  %v3836_v4 = vsel %vm3833_vm11, %v3835_v50, %v3831_v45 }
0x208c   :  { %v3837_v53 = vmul.f32 %v7038_v26, %v3836_v4 }
0x208d   :  { %7041 = vpow2.f32 %v4012_v3  ;;  %v3979_v52 = vpop.permute.xlu0 %3978 }
0x2090   :  { %v3865_v54 = vpop.permute.xlu2 %3864 }
0x2091   :  { %3885 = vmatpush.msra.mxu3 %v3865_v54 }
0x2092   :  { %6645 = vmatmul.msk.f32.vlgmr.msra.gmra.mxu3 %vm658_vm10, %v3837_v53 }
0x2093   :  { %v7042_v41 = vpop.eup %7041  ;;  %6652 = vmatpush.xpose.msk.msrb.mxu3 %vm658_vm10, %v3979_v52 }
0x2094   :  { %v4016_v37 = vsel %vm658_vm10, %v7042_v41, 0.0 }
0x2095   :  { %4017 = vadd.xlane.f32.xlu0 %v4016_v37  ;;  %v4053_v48 = vpop.permute.xlu0 %4052 }
0x2096   :  { %4073 = vmatpush.msra.mxu2 %v4053_v48 }
0x2098   :  { %v4138_v55 = vpop.permute.xlu2 %4137 }
0x2099   :  { %6658 = vmatpush.xpose.msk.msrb.mxu1 %vm658_vm10, %v4138_v55 }
0x209a   :  { %6653 = vmatmul.msk.f32.vlgmr.msrb.gmra.mxu3 %vm658_vm10, %v3977_v57 }
0x20a0   :  { %v4136_v58 = vpop.permute.xlu2 %4135 }
0x20a1   :  { %6659 = vmatmul.msk.f32.vlgmr.msrb.gmra.mxu1 %vm658_vm10, %v4136_v58 }
0x20a8   :  { %v4164_v25 = vpop.permute.xlu2 %4163 }
0x20a9   :  { %4165 = vrot.lane.b32.xlu0 %v8797_v33, %s7798_s26 }
0x20db   :  { %v8903_v8 = vpop.f32.mrf.mxu1 }
0x2108   :  { %v4018_v59 = vpop.xlane.xlu0 %4017 }
0x2109   :  { %7043 = vrcp.f32 %v4018_v59  ;;  %v4033_v63 = vand.u32 2147483648, %v4018_v59  ;;  %v4031_v7 = vand.u32 2147483647, %v4018_v59  ;;  %vm4027_vm13 = vweird.f32 %v4018_v59 }
0x210b   :  { %v4034_v11 = vor.u32 1.1754944e-38, %v4033_v63  ;;  %vm4032_vm15 = vcmp.eq.f32.partialorder %v4031_v7, 8.507059e+37 }
0x210f   :  { %v7044_v34 = vpop.eup %7043 }
0x2110   :  { %v4023_v61 = vmul.f32 %v7044_v34, %v4018_v59  ;;  %vm4028_vm12 = vweird.f32 %v7044_v34 }
0x2111   :  { %vm4029_vm14 = vmor %vm4027_vm13, %vm4028_vm12 }
0x2112   :  { %v4024_v62 = vsub.f32 1.0, %v4023_v61 }
0x2114   :  { %v4025_v1 = vmul.f32 %v7044_v34, %v4024_v62 }
0x2115   :  { %v3887_v27 = vpop.f32.mrf.mxu3 }
0x2116   :  { %v4026_v9 = vadd.f32 %v7044_v34, %v4025_v1  ;;  %6647 = vmatmul.msk.f32.gmra.mxu0 %vm658_vm10, %v3887_v27 }
0x2118   :  { %v4030_v6 = vsel %vm4029_vm14, %v7044_v34, %v4026_v9 }
0x2119   :  { %v4035_v12 = vsel %vm4032_vm15, %v4034_v11, %v4030_v6 }
0x211a   :  { %v4036_v13 = vmul.f32 %v7042_v41, %v4035_v12 }
0x211b   :  { %v4166_v14 = vpop.permute.xlu0 %4165 }
0x211c   :  { %6654 = vmatmul.msk.f32.vlgmr.msra.gmra.mxu2 %vm658_vm10, %v4036_v13 }
0x211d   :  { %6660 = vmatpush.xpose.msk.msrb.mxu2 %vm658_vm10, %v4166_v14  ;;  %v4001_v15 = vpop.f32.mrf.mxu3 }
0x211e   :  { %v4002_v19 = vadd.f32 %v4001_v15, %v8299_v51  ;;  %v4160_v22 = vpop.f32.mrf.mxu1  ;;  %v3580_v15 = vld [vmem:[#allocation21 + $0x18] sm:$0xff] }
0x211f   :  { %v4161_v23 = vadd.f32 %v4160_v22, %v8295_v46 }
0x2120   :  { %v4007_v24 = vsel %vm658_vm10, %v4002_v19, -inf }
0x2121   :  { %4008 = vmax.xlane.f32.xlu1 %v4007_v24  ;;  %v4191_v10 = vsel %vm658_vm10, %v4161_v23, -inf  ;;  %4312 = vmatpush.msra.mxu2 %v3580_v15 }
0x2122   :  { %4192 = vmax.xlane.f32.xlu0 %v4191_v10 }
0x2124   :  { %6661 = vmatmul.msk.f32.vlgmr.msrb.gmra.mxu2 %vm658_vm10, %v4164_v25 }
0x2136   :  { %4078 = vrot.lane.b32.xlu0 %v8797_v33, %s7796_s30 }
0x2194   :  { %v4009_v39 = vpop.xlane.xlu1 %4008 }
0x2195   :  { %v4011_v26 = vsub.f32 %v4002_v19, %v4009_v39  ;;  %v4193_v30 = vpop.xlane.xlu0 %4192 }
0x2196   :  { %v4197_v31 = vsub.f32 %v4161_v23, %v4193_v30 }
0x2197   :  { %v4014_v56 = vmul.f32 1.442695, %v4011_v26 }
0x2198   :  { %v4199_v36 = vmul.f32 1.442695, %v4197_v31 }
0x2199   :  { %7045 = vpow2.f32 %v4014_v56 }
0x219a   :  { %7047 = vpow2.f32 %v4199_v36  ;;  %v3913_v36 = vpop.f32.mrf.mxu0 }
0x219f   :  { %v7046_v32 = vpop.eup %7045  ;;  %v4075_v47 = vpop.f32.mrf.mxu2 }
0x21a0   :  { %6656 = vmatmul.msk.f32.vlgmr.msra.gmra.mxu0 %vm658_vm10, %v4075_v47  ;;  %v4019_v40 = vsel %vm658_vm10, %v7046_v32, 0.0  ;;  %v7048_v0 = vpop.eup %7047 }
0x21a1   :  { %4020 = vadd.xlane.f32.xlu1 %v4019_v40  ;;  %v4203_v2 = vsel %vm658_vm10, %v7048_v0, 0.0 }
0x21a7   :  { %v4188_v42 = vpop.f32.mrf.mxu2 }
0x21a8   :  { %v4189_v21 = vadd.f32 %v4188_v42, %v8299_v51  ;;  %v4079_v29 = vpop.permute.xlu0 %4078  ;;  %v3916_v42 = vpop.f32.mrf.mxu0 }
0x21a9   :  { %4099 = vmatpush.msra.mxu3 %v4079_v29 }
0x21aa   :  { %v4194_v38 = vsel %vm658_vm10, %v4189_v21, -inf }
0x21ab   :  { %4195 = vmax.xlane.f32.xlu2 %v4194_v38  ;;  %v3943_v38 = vadd.f32 %v8901_v60, %v3913_v36  ;;  %v4392_v36 = vld [vmem:[%s9362_s27 + $0x10] sm:$0xff] }
0x21b3   :  { %4204 = vadd.xlane.f32.xlu2 %v4203_v2  ;;  %v6887_v2 = vld [vmem:[#allocation22] ss:$0 sm:$0xff] }
0x21cb   :  { %4239 = vrot.lane.b32.xlu2 %v8756_v18, %s7797_s20 }
0x2214   :  { %v4021_v43 = vpop.xlane.xlu1 %4020 }
0x2215   :  { %7049 = vrcp.f32 %v4021_v43  ;;  %v4048_v3 = vand.u32 2147483648, %v4021_v43  ;;  %v4046_v53 = vand.u32 2147483647, %v4021_v43  ;;  %vm4042_vm1 = vweird.f32 %v4021_v43 }
0x2217   :  { %v4049_v37 = vor.u32 1.1754944e-38, %v4048_v3  ;;  %vm4047_vm3 = vcmp.eq.f32.partialorder %v4046_v53, 8.507059e+37 }
0x221b   :  { %v7050_v20 = vpop.eup %7049 }
0x221c   :  { %v4038_v44 = vmul.f32 %v7050_v20, %v4021_v43  ;;  %vm4043_vm0 = vweird.f32 %v7050_v20 }
0x221d   :  { %vm4044_vm2 = vmor %vm4042_vm1, %vm4043_vm0  ;;  %v4127_v29 = vpop.f32.mrf.mxu0 }
0x221e   :  { %v4039_v45 = vsub.f32 1.0, %v4038_v44  ;;  %v4196_v50 = vpop.xlane.xlu2 %4195 }
0x221f   :  { %v4198_v4 = vsub.f32 %v4189_v21, %v4196_v50 }
0x2220   :  { %v4040_v52 = vmul.f32 %v7050_v20, %v4039_v45 }
0x2221   :  { %v4201_v54 = vmul.f32 1.442695, %v4198_v4  ;;  %v3946_v4 = vadd.f32 %v8903_v8, %v3916_v42  ;;  %v4387_v8 = vld [vmem:[#allocation27 + $0x10] sm:$0xff]  ;;  %v4391_v42 = vld [vmem:[%s9362_s27 + $0x8] sm:$0xff] }
0x2222   :  { %v4041_v41 = vadd.f32 %v7050_v20, %v4040_v52 }
0x2223   :  { %7051 = vpow2.f32 %v4201_v54 }
0x2224   :  { %v4045_v48 = vsel %vm4044_vm2, %v7050_v20, %v4041_v41 }
0x2225   :  { %v4050_v55 = vsel %vm4047_vm3, %v4049_v37, %v4045_v48 }
0x2226   :  { %v4051_v57 = vmul.f32 %v7046_v32, %v4050_v55  ;;  %v4205_v58 = vpop.xlane.xlu2 %4204 }
0x2227   :  { %7053 = vrcp.f32 %v4205_v58  ;;  %v4220_v7 = vand.u32 2147483648, %v4205_v58  ;;  %v4218_v9 = vand.u32 2147483647, %v4205_v58  ;;  %vm4214_vm6 = vweird.f32 %v4205_v58 }
0x2228   :  { %6655 = vmatmul.msk.f32.vlgmr.msra.gmra.mxu3 %vm658_vm10, %v4051_v57 }
0x2229   :  { %v7052_v59 = vpop.eup %7051  ;;  %v4221_v6 = vor.u32 1.1754944e-38, %v4220_v7  ;;  %vm4219_vm9 = vcmp.eq.f32.partialorder %v4218_v9, 8.507059e+37 }
0x222a   :  { %v4206_v34 = vsel %vm658_vm10, %v7052_v59, 0.0 }
0x222b   :  { %4207 = vadd.xlane.f32.xlu1 %v4206_v34  ;;  %v4386_v34 = vld [vmem:[#allocation27 + $0x8] sm:$0xff] }
0x222d   :  { %v7054_v61 = vpop.eup %7053 }
0x222e   :  { %v4210_v62 = vmul.f32 %v7054_v61, %v4205_v58  ;;  %v4240_v63 = vpop.permute.xlu2 %4239  ;;  %vm4215_vm5 = vweird.f32 %v7054_v61 }
0x222f   :  { %4260 = vmatpush.msrb.mxu3 %v4240_v63  ;;  %vm4216_vm8 = vmor %vm4214_vm6, %vm4215_vm5 }
0x2230   :  { %v4211_v1 = vsub.f32 1.0, %v4210_v62 }
0x2232   :  { %v4212_v27 = vmul.f32 %v7054_v61, %v4211_v1 }
0x2234   :  { %v4213_v11 = vadd.f32 %v7054_v61, %v4212_v27 }
0x2236   :  { %v4217_v12 = vsel %vm4216_vm8, %v7054_v61, %v4213_v11  ;;  %v4385_v61 = vld [vmem:[#allocation27] sm:$0xff] }
0x2237   :  { %v4222_v13 = vsel %vm4219_vm9, %v4221_v6, %v4217_v12 }
0x2238   :  { %v4223_v14 = vmul.f32 %v7048_v0, %v4222_v13  ;;  %v4133_v0 = vadd.f32 %v4127_v29, %v3943_v38  ;;  %v4390_v29 = vld [vmem:[%s9362_s27] sm:$0xff] }
0x223a   :  { %6662 = vmatmul.msk.f32.vlgmr.msrb.gmra.mxu3 %vm658_vm10, %v4223_v14 }
0x2244   :  { %4265 = vrot.lane.b32.xlu1 %v8797_v33, %s7797_s20 }
0x229e   :  { %v4208_v19 = vpop.xlane.xlu1 %4207 }
0x229f   :  { %7055 = vrcp.f32 %v4208_v19  ;;  %v4235_v39 = vand.u32 2147483648, %v4208_v19  ;;  %vm4229_vm12 = vweird.f32 %v4208_v19  ;;  %v4233_v26 = vand.u32 2147483647, %v4208_v19 }
0x22a1   :  { %v4236_v30 = vor.u32 1.1754944e-38, %v4235_v39  ;;  %vm4234_vm14 = vcmp.eq.f32.partialorder %v4233_v26, 8.507059e+37  ;;  %v4397_v39 = vld [vmem:[%s9362_s27 + $0x38] sm:$0xff]  ;;  %v4396_v26 = vld [vmem:[%s9362_s27 + $0x30] sm:$0xff] }
0x22a2   :  { %4450 = vmatpush.msrb.mxu0 %v4397_v39 }
0x22a4   :  { %4451 = vmatpush.msrb.mxu0 %v4396_v26 }
0x22a5   :  { %v7056_v22 = vpop.eup %7055 }
0x22a6   :  { %v4225_v23 = vmul.f32 %v7056_v22, %v4208_v19  ;;  %vm4230_vm11 = vweird.f32 %v7056_v22 }
0x22a7   :  { %vm4231_vm13 = vmor %vm4229_vm12, %vm4230_vm11 }
0x22a8   :  { %v4226_v24 = vsub.f32 1.0, %v4225_v23 }
0x22aa   :  { %v4227_v10 = vmul.f32 %v7056_v22, %v4226_v24  ;;  %v6889_v24 = vld [vmem:[#allocation25] ss:$0 sm:$0xff] }
0x22ab   :  { %v4101_v25 = vpop.f32.mrf.mxu3 }
0x22ac   :  { %v4228_v28 = vadd.f32 %v7056_v22, %v4227_v10  ;;  %6657 = vmatmul.msk.f32.gmra.mxu0 %vm658_vm10, %v4101_v25 }
0x22ae   :  { %v4232_v56 = vsel %vm4231_vm13, %v7056_v22, %v4228_v28  ;;  %v6888_v22 = vld [vmem:[#allocation24] ss:$0 sm:$0xff] }
0x22af   :  { %v4237_v32 = vsel %vm4234_vm14, %v4236_v30, %v4232_v56  ;;  %v4395_v56 = vld [vmem:[%s9362_s27 + $0x28] sm:$0xff] }
0x22b0   :  { %v4238_v47 = vmul.f32 %v7052_v59, %v4237_v32  ;;  %v4388_v59 = vld [vmem:[#allocation27 + $0x18] sm:$0xff]  ;;  %4452 = vmatpush.msrb.mxu0 %v4395_v56 }
0x22b1   :  { %4420 = vmatpush.msra.mxu3 %v4388_v59 }
0x22b3   :  { %4421 = vmatpush.msra.mxu3 %v4387_v8 }
0x22b5   :  { %4422 = vmatpush.msra.mxu3 %v4386_v34 }
0x22b6   :  { %v4266_v40 = vpop.permute.xlu1 %4265 }
0x22b7   :  { %4286 = vmatpush.msra.mxu1 %v4266_v40  ;;  %4423 = vmatpush.msra.mxu3 %v4385_v61 }
0x22b8   :  { %6663 = vmatmul.msk.f32.vlgmr.msra.gmra.mxu1 %vm658_vm10, %v4238_v47  ;;  %v4394_v47 = vld [vmem:[%s9362_s27 + $0x20] sm:$0xff] }
0x22b9   :  { %4453 = vmatpush.msrb.mxu0 %v4394_v47  ;;  %v6893_v47 = vld [vmem:[#allocation33] ss:$0 sm:$0xff] }
0x22bd   :  { %v4262_v31 = vpop.f32.mrf.mxu3 }
0x22be   :  { %6664 = vmatmul.msk.f32.vlgmr.msra.gmra.mxu2 %vm658_vm10, %v4262_v31  ;;  %v4393_v31 = vld [vmem:[%s9362_s27 + $0x18] sm:$0xff] }
0x22bf   :  { %4454 = vmatpush.msrb.mxu0 %v4393_v31 }
0x22c1   :  { %4455 = vmatpush.msrb.mxu0 %v4392_v36 }
0x22c3   :  { %4456 = vmatpush.msrb.mxu0 %v4391_v42 }
0x22c5   :  { %4457 = vmatpush.msrb.mxu0 %v4390_v29 }
0x2329   :  { %v4130_v3 = vpop.f32.mrf.mxu0 }
0x232a   :  { %v4134_v52 = vadd.f32 %v4130_v3, %v3946_v4  ;;  %v6890_v4 = vld [vmem:[#allocation28] ss:$0 sm:$0xff] }
0x2335   :  { %v4288_v21 = vpop.f32.mrf.mxu1 }
0x2336   :  { %6665 = vmatmul.msk.f32.gmra.mxu2 %vm658_vm10, %v4288_v21 }
0x2341   :  { %v4314_v43 = vpop.f32.mrf.mxu2 }
0x2342   :  { %v4320_v20 = vadd.f32 %v4314_v43, %v4133_v0 }
0x2344   :  { %v4325_v44 = vadd.f32 %v6887_v2, %v4320_v20 }
0x2346   :  { %v4327_v45 = vadd.f32 %v4325_v44, %v8819_v5 }
0x2348   :  { %v4331_v50 = vsel %vm575_vm7, %v4327_v45, 0.0 }
0x2349   :  { %4332 = vadd.xlane.f32.xlu0 %v4331_v50 }
0x23b9   :  { %v4317_v53 = vpop.f32.mrf.mxu2 }
0x23ba   :  { %v4321_v54 = vadd.f32 %v4317_v53, %v4134_v52 }
0x23bc   :  { %v4326_v41 = vadd.f32 %v6887_v2, %v4321_v54  ;;  %v4333_v37 = vpop.xlane.xlu0 %4332 }
0x23bd   :  { %v4337_v60 = vmul.f32 %v4333_v37, %v8398_v35 }
0x23be   :  { %v4328_v48 = vadd.f32 %v4326_v41, %v8832_v49 }
0x23bf   :  { %v4339_v55 = vsub.f32 %v4327_v45, %v4337_v60 }
0x23c0   :  { %v4334_v57 = vsel %vm575_vm7, %v4328_v48, 0.0 }
0x23c1   :  { %4335 = vadd.xlane.f32.xlu2 %v4334_v57  ;;  %v4341_v5 = vmul.f32 %v4339_v55, %v4339_v55 }
0x23c3   :  { %v4343_v58 = vsel %vm575_vm7, %v4341_v5, 0.0 }
0x23c4   :  { %4344 = vadd.xlane.f32.xlu1 %v4343_v58 }
0x2434   :  { %v4336_v62 = vpop.xlane.xlu2 %4335 }
0x2435   :  { %v4338_v63 = vmul.f32 %v4336_v62, %v8398_v35 }
0x2437   :  { %v4340_v49 = vsub.f32 %v4328_v48, %v4338_v63  ;;  %v4345_v1 = vpop.xlane.xlu1 %4344  ;;  %v6891_v48 = vld [vmem:[#allocation30] ss:$0 sm:$0xff] }
0x2438   :  { %v4349_v7 = vmul.f32 %v4345_v1, %v8398_v35 }
0x2439   :  { %v4342_v27 = vmul.f32 %v4340_v49, %v4340_v49 }
0x243a   :  { %v4351_v9 = vadd.f32 1e-05, %v4349_v7 }
0x243b   :  { %v4346_v11 = vsel %vm575_vm7, %v4342_v27, 0.0  ;;  %v6673_v27 = vld [vmem:[%s9356_s3 + $0x38] sm:$0xff] }
0x243c   :  { %7057 = vrsqrt.f32 %v4351_v9  ;;  %4347 = vadd.xlane.f32.xlu0 %v4346_v11  ;;  %vm4359_vm0 = vweird.f32 %v4351_v9  ;;  %4551 = vmatpush.msrb.mxu1 %v6673_v27  ;;  %v6671_v11 = vld [vmem:[%s9356_s3 + $0x28] sm:$0xff] }
0x2442   :  { %v7058_v6 = vpop.eup %7057 }
0x2443   :  { %v4354_v12 = vmul.f32 %v7058_v6, %v4351_v9  ;;  %vm4360_vm15 = vweird.f32 %v7058_v6  ;;  %v6672_v9 = vld [vmem:[%s9356_s3 + $0x30] sm:$0xff] }
0x2444   :  { %vm4361_vm1 = vmor %vm4359_vm0, %vm4360_vm15  ;;  %4552 = vmatpush.msrb.mxu1 %v6672_v9 }
0x2445   :  { %v4355_v13 = vmul.f32 %v7058_v6, %v4354_v12 }
0x2446   :  { %4553 = vmatpush.msrb.mxu1 %v6671_v11 }
0x2447   :  { %v4356_v14 = vmul.f32 0.5, %v4355_v13 }
0x2449   :  { %v4357_v15 = vsub.f32 1.5, %v4356_v14 }
0x244b   :  { %v4358_v19 = vmul.f32 %v7058_v6, %v4357_v15 }
0x244d   :  { %v4362_v23 = vsel %vm4361_vm1, %v7058_v6, %v4358_v19  ;;  %v6670_v6 = vld [vmem:[%s9356_s3 + $0x20] sm:$0xff] }
0x244e   :  { %v4373_v10 = vmul.f32 %v4362_v23, %v4339_v55  ;;  %4554 = vmatpush.msrb.mxu1 %v6670_v6 }
0x2450   :  { %v4378_v25 = vmul.f32 %v6888_v22, %v4373_v10 }
0x2452   :  { %v4383_v28 = vadd.f32 %v6889_v24, %v4378_v25 }
0x2454   :  { %6666 = vmatmul.msk.f32.vlgmr.msra.gmra.mxu3 %vm575_vm7, %v4383_v28 }
0x24af   :  { %v4348_v30 = vpop.xlane.xlu0 %4347 }
0x24b0   :  { %v4350_v32 = vmul.f32 %v4348_v30, %v8398_v35  ;;  %v6892_v30 = vld [vmem:[#allocation31] ss:$0 sm:$0xff] }
0x24b2   :  { %v4352_v40 = vadd.f32 1e-05, %v4350_v32 }
0x24b4   :  { %7059 = vrsqrt.f32 %v4352_v40  ;;  %vm4369_vm3 = vweird.f32 %v4352_v40 }
0x24ba   :  { %v7060_v21 = vpop.eup %7059 }
0x24bb   :  { %v4364_v38 = vmul.f32 %v7060_v21, %v4352_v40  ;;  %vm4370_vm2 = vweird.f32 %v7060_v21 }
0x24bc   :  { %vm4371_vm5 = vmor %vm4369_vm3, %vm4370_vm2 }
0x24bd   :  { %v4365_v0 = vmul.f32 %v7060_v21, %v4364_v38 }
0x24bf   :  { %v4366_v2 = vmul.f32 0.5, %v4365_v0 }
0x24c1   :  { %v4367_v43 = vsub.f32 1.5, %v4366_v2 }
0x24c3   :  { %v4368_v20 = vmul.f32 %v7060_v21, %v4367_v43 }
0x24c5   :  { %v4372_v44 = vsel %vm4371_vm5, %v7060_v21, %v4368_v20 }
0x24c6   :  { %v4374_v45 = vmul.f32 %v4372_v44, %v4340_v49 }
0x24c8   :  { %v4379_v50 = vmul.f32 %v6888_v22, %v4374_v45 }
0x24ca   :  { %v4384_v3 = vadd.f32 %v6889_v24, %v4379_v50 }
0x24cc   :  { %6667 = vmatmul.msk.f32.gmra.mxu3 %vm575_vm7, %v4384_v3 }
0x24d7   :  { %v4425_v52 = vpop.f32.mrf.mxu3 }
0x24d8   :  { %v4426_v53 = vadd.f32 %v6890_v4, %v4425_v52  ;;  %v6894_v52 = vld [vmem:[#allocation9 + $0x1] ss:$0 sm:$0xff] }
0x24da   :  { %v4431_v54 = vmax.f32 %v4426_v53, 0.0 }
0x24dc   :  { %6668 = vmatmul.msk.f32.vlgmr.msrb.gmra.mxu0 %vm1519_vm4, %v4431_v54 }
0x254f   :  { %v4428_v41 = vpop.f32.mrf.mxu3 }
0x2550   :  { %v4429_v37 = vadd.f32 %v6890_v4, %v4428_v41 }
0x2552   :  { %v4432_v60 = vmax.f32 %v4429_v37, 0.0 }
0x2554   :  { %6669 = vmatmul.msk.f32.gmra.mxu0 %vm1519_vm4, %v4432_v60 }
0x2559   :  { %v4459_v55 = vpop.f32.mrf.mxu0 }
0x255a   :  { %v4460_v57 = vadd.f32 %v6891_v48, %v4459_v55 }
0x255c   :  { %v4465_v5 = vadd.f32 %v4460_v57, %v4383_v28 }
0x255e   :  { %v4469_v58 = vsel %vm575_vm7, %v4465_v5, 0.0 }
0x255f   :  { %4470 = vadd.xlane.f32.xlu0 %v4469_v58 }
0x25d1   :  { %v4462_v59 = vpop.f32.mrf.mxu0 }
0x25d2   :  { %v4463_v8 = vadd.f32 %v6891_v48, %v4462_v59  ;;  %v4471_v34 = vpop.xlane.xlu0 %4470 }
0x25d3   :  { %v4475_v61 = vmul.f32 %v4471_v34, %v8398_v35 }
0x25d4   :  { %v4466_v62 = vadd.f32 %v4463_v8, %v4384_v3 }
0x25d5   :  { %v4477_v63 = vsub.f32 %v4465_v5, %v4475_v61 }
0x25d6   :  { %v4472_v49 = vsel %vm575_vm7, %v4466_v62, 0.0 }
0x25d7   :  { %4473 = vadd.xlane.f32.xlu2 %v4472_v49  ;;  %v4479_v1 = vmul.f32 %v4477_v63, %v4477_v63 }
0x25d9   :  { %v4481_v7 = vsel %vm575_vm7, %v4479_v1, 0.0 }
0x25da   :  { %4482 = vadd.xlane.f32.xlu0 %v4481_v7 }
0x264a   :  { %v4474_v12 = vpop.xlane.xlu2 %4473 }
0x264b   :  { %v4476_v13 = vmul.f32 %v4474_v12, %v8398_v35 }
0x264d   :  { %v4478_v14 = vsub.f32 %v4466_v62, %v4476_v13  ;;  %v4483_v15 = vpop.xlane.xlu0 %4482 }
0x264e   :  { %v4487_v19 = vmul.f32 %v4483_v15, %v8398_v35 }
0x264f   :  { %v4480_v22 = vmul.f32 %v4478_v14, %v4478_v14 }
0x2650   :  { %v4489_v23 = vadd.f32 1e-05, %v4487_v19 }
0x2651   :  { %v4484_v24 = vsel %vm575_vm7, %v4480_v22, 0.0 }
0x2652   :  { %7061 = vrsqrt.f32 %v4489_v23  ;;  %4485 = vadd.xlane.f32.xlu1 %v4484_v24  ;;  %vm4497_vm8 = vweird.f32 %v4489_v23 }
0x2658   :  { %v7062_v10 = vpop.eup %7061 }
0x2659   :  { %v4492_v25 = vmul.f32 %v7062_v10, %v4489_v23  ;;  %vm4498_vm6 = vweird.f32 %v7062_v10 }
0x265a   :  { %vm4499_vm9 = vmor %vm4497_vm8, %vm4498_vm6 }
0x265b   :  { %v4493_v28 = vmul.f32 %v7062_v10, %v4492_v25 }
0x265d   :  { %v4494_v39 = vmul.f32 0.5, %v4493_v28 }
0x265f   :  { %v4495_v26 = vsub.f32 1.5, %v4494_v39 }
0x2661   :  { %v4496_v56 = vmul.f32 %v7062_v10, %v4495_v26 }
0x2663   :  { %v4500_v32 = vsel %vm4499_vm9, %v7062_v10, %v4496_v56 }
0x2664   :  { %v4511_v40 = vmul.f32 %v4500_v32, %v4477_v63 }
0x2666   :  { %v4516_v31 = vmul.f32 %v6892_v30, %v4511_v40 }
0x2668   :  { %v8966_v36 = vadd.f32 %v6893_v47, %v4516_v31 }
0x266a   :  { %6674 = vmatmul.msk.f32.vlgmr.msrb.gmra.mxu1 %vm575_vm7, %v8966_v36 }
0x26c5   :  { %v4486_v42 = vpop.xlane.xlu1 %4485 }
0x26c6   :  { %v4488_v21 = vmul.f32 %v4486_v42, %v8398_v35 }
0x26c8   :  { %v4490_v29 = vadd.f32 1e-05, %v4488_v21 }
0x26ca   :  { %7063 = vrsqrt.f32 %v4490_v29  ;;  %vm4507_vm12 = vweird.f32 %v4490_v29 }
0x26d0   :  { %v7064_v38 = vpop.eup %7063 }
0x26d1   :  { %v4502_v0 = vmul.f32 %v7064_v38, %v4490_v29  ;;  %vm4508_vm11 = vweird.f32 %v7064_v38 }
0x26d2   :  { %vm4509_vm13 = vmor %vm4507_vm12, %vm4508_vm11 }
0x26d3   :  { %v4503_v2 = vmul.f32 %v7064_v38, %v4502_v0 }
0x26d5   :  { %v4504_v43 = vmul.f32 0.5, %v4503_v2 }
0x26d7   :  { %v4505_v20 = vsub.f32 1.5, %v4504_v43 }
0x26d9   :  { %v4506_v44 = vmul.f32 %v7064_v38, %v4505_v20  ;;  %v6676_v20 = vld [vmem:[%s9357_s7 + $0x20] sm:$0xff] }
0x26db   :  { %v4510_v45 = vsel %vm4509_vm13, %v7064_v38, %v4506_v44 }
0x26dc   :  { %v4512_v50 = vmul.f32 %v4510_v45, %v4478_v14 }
0x26de   :  { %v4517_v3 = vmul.f32 %v6892_v30, %v4512_v50 }
0x26e0   :  { %v8971_v4 = vadd.f32 %v6893_v47, %v4517_v3 }
0x26e2   :  { %6675 = vmatmul.msk.f32.gmra.mxu1 %vm575_vm7, %v8971_v4 }
0x26e7   :  { %v4556_v53 = vpop.f32.mrf.mxu1 }
0x26e8   :  { %v8975_v54 = vadd.f32 %v6894_v52, %v4556_v53 }
0x26ea   :  { %4725 = vrot.lane.b32.xlu1 %v8975_v54, %s7792_s17  ;;  %4570 = vrot.lane.b32.xlu2 %v8975_v54, %s7791_s1 }
0x26f2   :  { %4723 = vrot.lane.b32.xlu2 %v8975_v54, %s7793_s11 }
0x2744   :  { %v4571_v41 = vpop.permute.xlu2 %4570 }
0x2745   :  { %6680 = vmatpush.xpose.msk.msrb.mxu2 %vm658_vm10, %v4571_v41 }
0x2748   :  { %6681 = vmatmul.msk.f32.vlgmr.msrb.gmra.mxu2 %vm658_vm10, %v8975_v54 }
0x274c   :  { %v4724_v60 = vpop.permute.xlu2 %4723 }
0x275c   :  { %v4726_v37 = vpop.permute.xlu1 %4725 }
0x275d   :  { %6686 = vmatpush.xpose.msk.msra.mxu2 %vm658_vm10, %v4726_v37 }
0x275f   :  { %v4559_v48 = vpop.f32.mrf.mxu1 }
0x2760   :  { %v8987_v55 = vadd.f32 %v6894_v52, %v4559_v48  ;;  %6687 = vmatmul.msk.f32.vlgmr.msra.gmra.mxu2 %vm658_vm10, %v4724_v60 }
0x2762   :  { %4597 = vrot.lane.b32.xlu0 %v8987_v55, %s7791_s1  ;;  %4751 = vrot.lane.b32.xlu1 %v8987_v55, %s7793_s11  ;;  %v6860_v49 = vpack.i.bf16 %v8987_v55, %v8975_v54 }
0x276a   :  { %4753 = vrot.lane.b32.xlu0 %v8987_v55, %s7792_s17 }
0x27cb   :  { %v4593_v57 = vpop.f32.mrf.mxu2 }
0x27cc   :  { %v4594_v5 = vadd.f32 %v4593_v57, %v8248_v16 }
0x27ce   :  { %v4623_v58 = vsel %vm658_vm10, %v4594_v5, -inf }
0x27cf   :  { %4624 = vmax.xlane.f32.xlu2 %v4623_v58 }
0x27d4   :  { %v4598_v59 = vpop.permute.xlu0 %4597  ;;  %v4752_v34 = vpop.permute.xlu1 %4751 }
0x27d5   :  { %6682 = vmatpush.xpose.msk.msrb.mxu3 %vm658_vm10, %v4598_v59 }
0x27d8   :  { %6683 = vmatmul.msk.f32.vlgmr.msrb.gmra.mxu3 %vm658_vm10, %v8987_v55 }
0x27dc   :  { %v4754_v8 = vpop.permute.xlu0 %4753 }
0x27dd   :  { %6688 = vmatpush.xpose.msk.msra.mxu3 %vm658_vm10, %v4754_v8 }
0x27e0   :  { %6689 = vmatmul.msk.f32.vlgmr.msra.gmra.mxu3 %vm658_vm10, %v4752_v34 }
0x27e1   :  { %4929 = vmatpush.msrb.mxu3 %v6676_v20 }
0x27e3   :  { %v4748_v61 = vpop.f32.mrf.mxu2 }
0x27e4   :  { %v4749_v62 = vadd.f32 %v4748_v61, %v8248_v16 }
0x27e6   :  { %v4779_v63 = vsel %vm658_vm10, %v4749_v62, -inf }
0x27e7   :  { %4780 = vmax.xlane.f32.xlu1 %v4779_v63 }
0x2800   :  { %6861 = vrot.lane.b32.xlu1 %v6860_v49, %s7790_s6 }
0x2842   :  { %v4625_v1 = vpop.xlane.xlu2 %4624 }
0x2843   :  { %v4629_v7 = vsub.f32 %v4594_v5, %v4625_v1 }
0x2845   :  { %v4631_v27 = vmul.f32 1.442695, %v4629_v7 }
0x2847   :  { %7065 = vpow2.f32 %v4631_v27 }
0x284d   :  { %v7066_v9 = vpop.eup %7065 }
0x284e   :  { %v4635_v11 = vsel %vm658_vm10, %v7066_v9, 0.0 }
0x284f   :  { %4636 = vadd.xlane.f32.xlu2 %v4635_v11 }
0x285a   :  { %v4781_v6 = vpop.xlane.xlu1 %4780 }
0x285b   :  { %v4785_v12 = vsub.f32 %v4749_v62, %v4781_v6  ;;  %v4620_v13 = vpop.f32.mrf.mxu3 }
0x285c   :  { %v4621_v14 = vadd.f32 %v4620_v13, %v8252_v17 }
0x285d   :  { %v4787_v15 = vmul.f32 1.442695, %v4785_v12 }
0x285e   :  { %v4626_v19 = vsel %vm658_vm10, %v4621_v14, -inf }
0x285f   :  { %7067 = vpow2.f32 %v4787_v15  ;;  %4627 = vmax.xlane.f32.xlu0 %v4626_v19 }
0x2863   :  { %v4776_v22 = vpop.f32.mrf.mxu3 }
0x2864   :  { %v4777_v23 = vadd.f32 %v4776_v22, %v8252_v17 }
0x2865   :  { %v9012_v24 = vpop.eup %7067 }
0x2866   :  { %v4782_v10 = vsel %vm658_vm10, %v4777_v23, -inf  ;;  %v4791_v25 = vsel %vm658_vm10, %v9012_v24, 0.0 }
0x2867   :  { %4783 = vmax.xlane.f32.xlu1 %v4782_v10  ;;  %4792 = vadd.xlane.f32.xlu2 %v4791_v25 }
0x2872   :  { %v6862_v28 = vpop.permute.xlu1 %6861 }
0x2873   :  { %v6864_v39 = vunpack.i.h.bf16 %v6862_v28  ;;  %v6863_v26 = vunpack.i.l.bf16 %v6862_v28 }
0x2875   :  { %4692 = vmatpush.msra.mxu0 %v6863_v26  ;;  %4718 = vmatpush.msra.mxu1 %v6864_v39 }
0x287f   :  { %4939 = vrot.lane.b32.xlu2 %v8975_v54, %s7796_s30 }
0x2887   :  { %4853 = vrot.lane.b32.xlu2 %v8987_v55, %s7794_s13 }
0x288f   :  { %4967 = vrot.lane.b32.xlu2 %v8987_v55, %s7796_s30 }
0x2897   :  { %5126 = vrot.lane.b32.xlu2 %v8975_v54, %s7797_s20 }
0x289f   :  { %4965 = vrot.lane.b32.xlu2 %v8987_v55, %s7795_s9 }
0x28a7   :  { %5124 = vrot.lane.b32.xlu2 %v8975_v54, %s7798_s26 }
0x28c2   :  { %v4637_v56 = vpop.xlane.xlu2 %4636 }
0x28c3   :  { %7069 = vrcp.f32 %v4637_v56  ;;  %v4652_v40 = vand.u32 2147483648, %v4637_v56  ;;  %v4650_v42 = vand.u32 2147483647, %v4637_v56  ;;  %vm4646_vm15 = vweird.f32 %v4637_v56 }
0x28c5   :  { %v4653_v29 = vor.u32 1.1754944e-38, %v4652_v40  ;;  %vm4651_vm1 = vcmp.eq.f32.partialorder %v4650_v42, 8.507059e+37 }
0x28c9   :  { %v7070_v30 = vpop.eup %7069 }
0x28ca   :  { %v4642_v32 = vmul.f32 %v7070_v30, %v4637_v56  ;;  %vm4647_vm14 = vweird.f32 %v7070_v30 }
0x28cb   :  { %vm4648_vm0 = vmor %vm4646_vm15, %vm4647_vm14 }
0x28cc   :  { %v4643_v47 = vsub.f32 1.0, %v4642_v32 }
0x28ce   :  { %v4644_v31 = vmul.f32 %v7070_v30, %v4643_v47 }
0x28d0   :  { %v4645_v21 = vadd.f32 %v7070_v30, %v4644_v31 }
0x28d2   :  { %v4649_v38 = vsel %vm4648_vm0, %v7070_v30, %v4645_v21  ;;  %v4628_v0 = vpop.xlane.xlu0 %4627 }
0x28d3   :  { %v4654_v2 = vsel %vm4651_vm1, %v4653_v29, %v4649_v38  ;;  %v4630_v43 = vsub.f32 %v4621_v14, %v4628_v0 }
0x28d4   :  { %v4655_v44 = vmul.f32 %v7066_v9, %v4654_v2 }
0x28d5   :  { %v4633_v45 = vmul.f32 1.442695, %v4630_v43 }
0x28d6   :  { %6684 = vmatmul.msk.f32.vlgmr.msra.gmra.mxu0 %vm658_vm10, %v4655_v44 }
0x28d7   :  { %7071 = vpow2.f32 %v4633_v45  ;;  %v6677_v45 = vld [vmem:[%s9357_s7 + $0x28] sm:$0xff] }
0x28d8   :  { %4900 = vmatpush.msrb.mxu2 %v6677_v45 }
0x28da   :  { %v4793_v50 = vpop.xlane.xlu2 %4792  ;;  %v4784_v48 = vpop.xlane.xlu1 %4783 }
0x28db   :  { %v4786_v57 = vsub.f32 %v4777_v23, %v4784_v48  ;;  %v4808_v9 = vand.u32 2147483648, %v4793_v50  ;;  %vm4802_vm3 = vweird.f32 %v4793_v50  ;;  %v4806_v6 = vand.u32 2147483647, %v4793_v50 }
0x28dd   :  { %v7072_v3 = vpop.eup %7071  ;;  %v4789_v5 = vmul.f32 1.442695, %v4786_v57  ;;  %v4809_v19 = vor.u32 1.1754944e-38, %v4808_v9  ;;  %vm4807_vm9 = vcmp.eq.f32.partialorder %v4806_v6, 8.507059e+37 }
0x28de   :  { %v4638_v52 = vsel %vm658_vm10, %v7072_v3, 0.0 }
0x28df   :  { %4639 = vadd.xlane.f32.xlu0 %v4638_v52  ;;  %7073 = vpow2.f32 %v4789_v5 }
0x28e0   :  { %7075 = vrcp.f32 %v4793_v50 }
0x28e2   :  { %v4940_v53 = vpop.permute.xlu2 %4939 }
0x28e5   :  { %v9037_v58 = vpop.eup %7073 }
0x28e6   :  { %v4794_v59 = vsel %vm658_vm10, %v9037_v58, 0.0  ;;  %v7076_v8 = vpop.eup %7075 }
0x28e7   :  { %v4798_v34 = vmul.f32 %v7076_v8, %v4793_v50  ;;  %vm4803_vm2 = vweird.f32 %v7076_v8 }
0x28e8   :  { %vm4804_vm5 = vmor %vm4802_vm3, %vm4803_vm2 }
0x28e9   :  { %v4799_v62 = vsub.f32 1.0, %v4798_v34 }
0x28ea   :  { %v4854_v41 = vpop.permute.xlu2 %4853 }
0x28eb   :  { %4874 = vmatpush.msrb.mxu1 %v4854_v41  ;;  %v4800_v49 = vmul.f32 %v7076_v8, %v4799_v62 }
0x28ed   :  { %v4801_v27 = vadd.f32 %v7076_v8, %v4800_v49 }
0x28ef   :  { %v4805_v15 = vsel %vm4804_vm5, %v7076_v8, %v4801_v27 }
0x28f0   :  { %v4810_v10 = vsel %vm4807_vm9, %v4809_v19, %v4805_v15 }
0x28f1   :  { %v4811_v26 = vmul.f32 %v9012_v24, %v4810_v10 }
0x28f2   :  { %v4968_v37 = vpop.permute.xlu2 %4967 }
0x28f3   :  { %4827 = vrot.lane.b32.xlu0 %v8975_v54, %s7794_s13 }
0x28fa   :  { %v5127_v60 = vpop.permute.xlu2 %5126 }
0x28fb   :  { %4937 = vrot.lane.b32.xlu0 %v8975_v54, %s7795_s9  ;;  %6704 = vmatpush.xpose.msk.msra.mxu3 %vm658_vm10, %v5127_v60 }
0x2902   :  { %v4966_v44 = vpop.permute.xlu2 %4965 }
0x290a   :  { %v5125_v52 = vpop.permute.xlu2 %5124 }
0x2925   :  { %4795 = vadd.xlane.f32.xlu0 %v4794_v59 }
0x2939   :  { %5041 = vrot.lane.b32.xlu0 %v8975_v54, %s7799_s5 }
0x2941   :  { %5152 = vrot.lane.b32.xlu0 %v8987_v55, %s7798_s26 }
0x2952   :  { %v4640_v61 = vpop.xlane.xlu0 %4639 }
0x2953   :  { %7077 = vrcp.f32 %v4640_v61  ;;  %v4694_v63 = vpop.f32.mrf.mxu0  ;;  %v4667_v12 = vand.u32 2147483648, %v4640_v61  ;;  %v4665_v14 = vand.u32 2147483647, %v4640_v61  ;;  %vm4661_vm8 = vweird.f32 %v4640_v61 }
0x2954   :  { %6694 = vmatmul.msk.f32.vlgmr.msrb.gmra.mxu3 %vm658_vm10, %v4694_v63 }
0x2955   :  { %v4668_v23 = vor.u32 1.1754944e-38, %v4667_v12  ;;  %vm4666_vm12 = vcmp.eq.f32.partialorder %v4665_v14, 8.507059e+37 }
0x2959   :  { %v7078_v1 = vpop.eup %7077 }
0x295a   :  { %v4657_v7 = vmul.f32 %v7078_v1, %v4640_v61  ;;  %vm4662_vm6 = vweird.f32 %v7078_v1 }
0x295b   :  { %vm4663_vm11 = vmor %vm4661_vm8, %vm4662_vm6 }
0x295c   :  { %v4658_v11 = vsub.f32 1.0, %v4657_v7 }
0x295e   :  { %v4659_v13 = vmul.f32 %v7078_v1, %v4658_v11 }
0x2960   :  { %v4660_v22 = vadd.f32 %v7078_v1, %v4659_v13 }
0x2962   :  { %v4664_v25 = vsel %vm4663_vm11, %v7078_v1, %v4660_v22 }
0x2963   :  { %v4669_v28 = vsel %vm4666_vm12, %v4668_v23, %v4664_v25 }
0x2964   :  { %v4670_v39 = vmul.f32 %v7072_v3, %v4669_v28 }
0x2965   :  { %v4828_v56 = vpop.permute.xlu0 %4827 }
0x2966   :  { %6685 = vmatmul.msk.f32.vlgmr.msra.gmra.mxu1 %vm658_vm10, %v4670_v39  ;;  %4848 = vmatpush.msrb.mxu0 %v4828_v56 }
0x2967   :  { %6698 = vmatpush.xpose.msk.msra.mxu1 %vm658_vm10, %v4968_v37  ;;  %6690 = vmatmul.msk.f32.vlgmr.msrb.gmra.mxu0 %vm658_vm10, %v4811_v26 }
0x2968   :  { %6696 = vmatpush.xpose.msk.msra.mxu0 %vm658_vm10, %v4940_v53 }
0x296d   :  { %v4938_v30 = vpop.permute.xlu0 %4937 }
0x296f   :  { %6697 = vmatmul.msk.f32.vlgmr.msra.gmra.mxu0 %vm658_vm10, %v4938_v30 }
0x2998   :  { %v4796_v32 = vpop.xlane.xlu0 %4795 }
0x2999   :  { %7079 = vrcp.f32 %v4796_v32  ;;  %v4823_v42 = vand.u32 2147483648, %v4796_v32  ;;  %v4821_v21 = vand.u32 2147483647, %v4796_v32  ;;  %vm4817_vm14 = vweird.f32 %v4796_v32 }
0x299b   :  { %v4824_v38 = vor.u32 1.1754944e-38, %v4823_v42  ;;  %vm4822_vm0 = vcmp.eq.f32.partialorder %v4821_v21, 8.507059e+37 }
0x299f   :  { %v7080_v47 = vpop.eup %7079 }
0x29a0   :  { %v4813_v40 = vmul.f32 %v7080_v47, %v4796_v32  ;;  %vm4818_vm13 = vweird.f32 %v7080_v47 }
0x29a1   :  { %vm4819_vm15 = vmor %vm4817_vm14, %vm4818_vm13 }
0x29a2   :  { %v4814_v31 = vsub.f32 1.0, %v4813_v40 }
0x29a4   :  { %v4815_v24 = vmul.f32 %v7080_v47, %v4814_v31 }
0x29a6   :  { %v4816_v29 = vadd.f32 %v7080_v47, %v4815_v24  ;;  %v6678_v24 = vld [vmem:[%s9357_s7 + $0x30] sm:$0xff] }
0x29a7   :  { %5114 = vmatpush.msra.mxu2 %v6678_v24 }
0x29a8   :  { %v4820_v0 = vsel %vm4819_vm15, %v7080_v47, %v4816_v29 }
0x29a9   :  { %v4825_v2 = vsel %vm4822_vm0, %v4824_v38, %v4820_v0 }
0x29aa   :  { %v4826_v43 = vmul.f32 %v9037_v58, %v4825_v2 }
0x29ab   :  { %v5042_v20 = vpop.permute.xlu0 %5041 }
0x29ac   :  { %6691 = vmatmul.msk.f32.vlgmr.msrb.gmra.mxu1 %vm658_vm10, %v4826_v43  ;;  %5062 = vmatpush.msrb.mxu0 %v5042_v20 }
0x29b3   :  { %v5153_v13 = vpop.permute.xlu0 %5152 }
0x29b4   :  { %6699 = vmatmul.msk.f32.vlgmr.msra.gmra.mxu1 %vm658_vm10, %v4966_v44 }
0x29d7   :  { %v9068_v58 = vpop.f32.mrf.mxu3 }
0x29e3   :  { %v4720_v50 = vpop.f32.mrf.mxu1 }
0x29e4   :  { %v4850_v3 = vpop.f32.mrf.mxu0  ;;  %6695 = vmatmul.msk.f32.gmra.mxu3 %vm658_vm10, %v4720_v50 }
0x29e5   :  { %6692 = vmatmul.msk.f32.vlgmr.msrb.gmra.mxu2 %vm658_vm10, %v4850_v3 }
0x29ec   :  { %v4962_v53 = vpop.f32.mrf.mxu0  ;;  %6705 = vmatmul.msk.f32.vlgmr.msra.gmra.mxu3 %vm658_vm10, %v5125_v52 }
0x29ed   :  { %v4963_v41 = vadd.f32 %v4962_v53, %v8248_v16 }
0x29ef   :  { %v4993_v37 = vsel %vm658_vm10, %v4963_v41, -inf }
0x29f0   :  { %4994 = vmax.xlane.f32.xlu1 %v4993_v37 }
0x2a09   :  { %5154 = vrot.lane.b32.xlu1 %v8987_v55, %s7797_s20 }
0x2a29   :  { %v4876_v60 = vpop.f32.mrf.mxu1 }
0x2a2a   :  { %6693 = vmatmul.msk.f32.gmra.mxu2 %vm658_vm10, %v4876_v60 }
0x2a31   :  { %v4990_v48 = vpop.f32.mrf.mxu1 }
0x2a32   :  { %v4991_v57 = vadd.f32 %v4990_v48, %v8252_v17 }
0x2a34   :  { %v4996_v5 = vsel %vm658_vm10, %v4991_v57, -inf }
0x2a35   :  { %4997 = vmax.xlane.f32.xlu1 %v4996_v5 }
0x2a4e   :  { %5228 = vrot.lane.b32.xlu1 %v8975_v54, %s7800_s25 }
0x2a63   :  { %v4995_v59 = vpop.xlane.xlu1 %4994 }
0x2a64   :  { %v4999_v8 = vsub.f32 %v4963_v41, %v4995_v59 }
0x2a66   :  { %v5001_v34 = vmul.f32 1.442695, %v4999_v8 }
0x2a67   :  { %v9070_v61 = vpop.f32.mrf.mxu3 }
0x2a68   :  { %7081 = vpow2.f32 %v5001_v34 }
0x2a6e   :  { %v7082_v62 = vpop.eup %7081 }
0x2a6f   :  { %v5149_v63 = vpop.f32.mrf.mxu3  ;;  %v5005_v49 = vsel %vm658_vm10, %v7082_v62, 0.0 }
0x2a70   :  { %v5150_v1 = vadd.f32 %v5149_v63, %v8248_v16  ;;  %5006 = vadd.xlane.f32.xlu2 %v5005_v49 }
0x2a72   :  { %v5180_v7 = vsel %vm658_vm10, %v5150_v1, -inf }
0x2a73   :  { %5181 = vmax.xlane.f32.xlu0 %v5180_v7 }
0x2a7b   :  { %v5155_v27 = vpop.permute.xlu1 %5154 }
0x2a7c   :  { %6706 = vmatpush.xpose.msk.msra.mxu0 %vm658_vm10, %v5155_v27 }
0x2aa8   :  { %v4998_v54 = vpop.xlane.xlu1 %4997 }
0x2aa9   :  { %v5000_v9 = vsub.f32 %v4991_v57, %v4998_v54 }
0x2aab   :  { %v5003_v11 = vmul.f32 1.442695, %v5000_v9  ;;  %v6679_v9 = vld [vmem:[%s9357_s7 + $0x38] sm:$0xff] }
0x2aad   :  { %7083 = vpow2.f32 %v5003_v11 }
0x2ab3   :  { %v7084_v6 = vpop.eup %7083 }
0x2ab4   :  { %v5008_v12 = vsel %vm658_vm10, %v7084_v6, 0.0 }
0x2ab5   :  { %5009 = vadd.xlane.f32.xlu2 %v5008_v12 }
0x2ac0   :  { %v5229_v37 = vpop.permute.xlu1 %5228 }
0x2ae3   :  { %v5007_v14 = vpop.xlane.xlu2 %5006 }
0x2ae4   :  { %7085 = vrcp.f32 %v5007_v14  ;;  %v5022_v25 = vand.u32 2147483648, %v5007_v14  ;;  %v5020_v39 = vand.u32 2147483647, %v5007_v14  ;;  %vm5016_vm2 = vweird.f32 %v5007_v14 }
0x2ae6   :  { %v5182_v15 = vpop.xlane.xlu0 %5181  ;;  %v5023_v30 = vor.u32 1.1754944e-38, %v5022_v25  ;;  %vm5021_vm5 = vcmp.eq.f32.partialorder %v5020_v39, 8.507059e+37 }
0x2ae7   :  { %v5186_v16 = vsub.f32 %v5150_v1, %v5182_v15 }
0x2ae9   :  { %v5188_v19 = vmul.f32 1.442695, %v5186_v16 }
0x2aea   :  { %v7086_v22 = vpop.eup %7085 }
0x2aeb   :  { %v5012_v23 = vmul.f32 %v7086_v22, %v5007_v14  ;;  %7087 = vpow2.f32 %v5188_v19  ;;  %vm5017_vm1 = vweird.f32 %v7086_v22 }
0x2aec   :  { %vm5018_vm3 = vmor %vm5016_vm2, %vm5017_vm1 }
0x2aed   :  { %v5013_v10 = vsub.f32 1.0, %v5012_v23 }
0x2aef   :  { %v5014_v28 = vmul.f32 %v7086_v22, %v5013_v10 }
0x2af1   :  { %v7088_v26 = vpop.eup %7087  ;;  %v5015_v56 = vadd.f32 %v7086_v22, %v5014_v28  ;;  %v9097_v28 = vld [vmem:[#allocation10 + $0x1] ss:$0 sm:$0xff] }
0x2af2   :  { %v5192_v32 = vsel %vm658_vm10, %v7088_v26, 0.0 }
0x2af3   :  { %v5019_v47 = vsel %vm5018_vm3, %v7086_v22, %v5015_v56  ;;  %5193 = vadd.xlane.f32.xlu2 %v5192_v32 }
0x2af4   :  { %v5024_v40 = vsel %vm5021_vm5, %v5023_v30, %v5019_v47 }
0x2af5   :  { %v5025_v31 = vmul.f32 %v7082_v62, %v5024_v40 }
0x2af7   :  { %6700 = vmatmul.msk.f32.vlgmr.msrb.gmra.mxu0 %vm658_vm10, %v5025_v31 }
0x2af8   :  { %5301 = vmatpush.msrb.mxu0 %v6679_v9 }
0x2aff   :  { %6707 = vmatmul.msk.f32.vlgmr.msra.gmra.mxu0 %vm658_vm10, %v5153_v13 }
0x2b0b   :  { %5067 = vrot.lane.b32.xlu2 %v8987_v55, %s7799_s5 }
0x2b13   :  { %5254 = vrot.lane.b32.xlu2 %v8987_v55, %s7800_s25 }
0x2b28   :  { %v5010_v42 = vpop.xlane.xlu2 %5009 }
0x2b29   :  { %7089 = vrcp.f32 %v5010_v42  ;;  %v5037_v43 = vand.u32 2147483648, %v5010_v42  ;;  %vm5031_vm8 = vweird.f32 %v5010_v42  ;;  %v5035_v20 = vand.u32 2147483647, %v5010_v42 }
0x2b2b   :  { %v5038_v50 = vor.u32 1.1754944e-38, %v5037_v43  ;;  %vm5036_vm11 = vcmp.eq.f32.partialorder %v5035_v20, 8.507059e+37 }
0x2b2f   :  { %v7090_v21 = vpop.eup %7089 }
0x2b30   :  { %v5027_v29 = vmul.f32 %v7090_v21, %v5010_v42  ;;  %vm5032_vm6 = vweird.f32 %v7090_v21 }
0x2b31   :  { %vm5033_vm9 = vmor %vm5031_vm8, %vm5032_vm6 }
0x2b32   :  { %v5028_v38 = vsub.f32 1.0, %v5027_v29 }
0x2b34   :  { %v5029_v0 = vmul.f32 %v7090_v21, %v5028_v38 }
0x2b36   :  { %v5030_v2 = vadd.f32 %v7090_v21, %v5029_v0 }
0x2b38   :  { %v5034_v45 = vsel %vm5033_vm9, %v7090_v21, %v5030_v2 }
0x2b39   :  { %v5039_v55 = vsel %vm5036_vm11, %v5038_v50, %v5034_v45 }
0x2b3a   :  { %v5040_v52 = vmul.f32 %v7084_v6, %v5039_v55  ;;  %v5380_v55 = vld [vmem:[#allocation15 + $0x38] sm:$0xff] }
0x2b66   :  { %v5194_v44 = vpop.xlane.xlu2 %5193 }
0x2b67   :  { %7091 = vrcp.f32 %v5194_v44  ;;  %v5209_v48 = vand.u32 2147483648, %v5194_v44  ;;  %v5207_v5 = vand.u32 2147483647, %v5194_v44  ;;  %vm5203_vm13 = vweird.f32 %v5194_v44 }
0x2b69   :  { %v5210_v34 = vor.u32 1.1754944e-38, %v5209_v48  ;;  %vm5208_vm15 = vcmp.eq.f32.partialorder %v5207_v5, 8.507059e+37 }
0x2b6d   :  { %v7092_v3 = vpop.eup %7091 }
0x2b6e   :  { %v5199_v53 = vmul.f32 %v7092_v3, %v5194_v44  ;;  %v5068_v41 = vpop.permute.xlu2 %5067  ;;  %vm5204_vm12 = vweird.f32 %v7092_v3 }
0x2b6f   :  { %5088 = vmatpush.msrb.mxu1 %v5068_v41  ;;  %vm5205_vm14 = vmor %vm5203_vm13, %vm5204_vm12 }
0x2b70   :  { %v5200_v60 = vsub.f32 1.0, %v5199_v53  ;;  %6701 = vmatmul.msk.f32.vlgmr.msrb.gmra.mxu1 %vm658_vm10, %v5040_v52  ;;  %v5378_v52 = vld [vmem:[#allocation15 + $0x28] sm:$0xff]  ;;  %v5377_v53 = vld [vmem:[#allocation15 + $0x20] sm:$0xff] }
0x2b71   :  { %5249 = vmatpush.msra.mxu1 %v5229_v37 }
0x2b72   :  { %v5201_v57 = vmul.f32 %v7092_v3, %v5200_v60 }
0x2b73   :  { %5404 = vmatpush.msrb.mxu1 %v5380_v55 }
0x2b74   :  { %v5202_v59 = vadd.f32 %v7092_v3, %v5201_v57  ;;  %v5064_v8 = vpop.f32.mrf.mxu0 }
0x2b75   :  { %6702 = vmatmul.msk.f32.vlgmr.msra.gmra.mxu2 %vm658_vm10, %v5064_v8 }
0x2b76   :  { %v5206_v62 = vsel %vm5205_vm14, %v7092_v3, %v5202_v59  ;;  %v5255_v63 = vpop.permute.xlu2 %5254  ;;  %v5379_v3 = vld [vmem:[#allocation15 + $0x30] sm:$0xff] }
0x2b77   :  { %v5211_v49 = vsel %vm5208_vm15, %v5210_v34, %v5206_v62  ;;  %5275 = vmatpush.msrb.mxu3 %v5255_v63  ;;  %5405 = vmatpush.msrb.mxu1 %v5379_v3  ;;  %v6896_v62 = vld [vmem:[#allocation12 + $0x1] ss:$0 sm:$0xff] }
0x2b78   :  { %v5212_v1 = vmul.f32 %v7088_v26, %v5211_v49  ;;  %v6897_v49 = vld [vmem:[#allocation13 + $0x1] ss:$0 sm:$0xff] }
0x2b79   :  { %5406 = vmatpush.msrb.mxu1 %v5378_v52 }
0x2b7a   :  { %6708 = vmatmul.msk.f32.vlgmr.msra.gmra.mxu1 %vm658_vm10, %v5212_v1 }
0x2b7b   :  { %5407 = vmatpush.msrb.mxu1 %v5377_v53 }
0x2b7c   :  { %v5177_v7 = vpop.f32.mrf.mxu0 }
0x2b7d   :  { %v5178_v27 = vadd.f32 %v5177_v7, %v8252_v17  ;;  %v4902_v17 = vpop.f32.mrf.mxu2 }
0x2b7e   :  { %v4932_v23 = vadd.f32 %v9068_v58, %v4902_v17 }
0x2b7f   :  { %v5183_v54 = vsel %vm658_vm10, %v5178_v27, -inf }
0x2b80   :  { %5184 = vmax.xlane.f32.xlu0 %v5183_v54 }
0x2b85   :  { %v9094_v19 = vpop.f32.mrf.mxu2 }
0x2b86   :  { %v4935_v54 = vadd.f32 %v9070_v61, %v9094_v19  ;;  %v6898_v61 = vld [vmem:[#allocation16 + $0x1] ss:$0 sm:$0xff] }
0x2bed   :  { %v5090_v11 = vpop.f32.mrf.mxu1 }
0x2bee   :  { %6703 = vmatmul.msk.f32.gmra.mxu2 %vm658_vm10, %v5090_v11 }
0x2bf3   :  { %v5185_v6 = vpop.xlane.xlu0 %5184 }
0x2bf4   :  { %v5187_v12 = vsub.f32 %v5178_v27, %v5185_v6 }
0x2bf6   :  { %v5190_v13 = vmul.f32 1.442695, %v5187_v12 }
0x2bf7   :  { %v5251_v14 = vpop.f32.mrf.mxu1 }
0x2bf8   :  { %7093 = vpow2.f32 %v5190_v13  ;;  %6710 = vmatmul.msk.f32.vlgmr.msrb.gmra.mxu0 %vm658_vm10, %v5251_v14  ;;  %v5116_v22 = vpop.f32.mrf.mxu2 }
0x2bf9   :  { %v5122_v25 = vadd.f32 %v5116_v22, %v4932_v23 }
0x2bfe   :  { %v7094_v15 = vpop.eup %7093 }
0x2bff   :  { %v5195_v16 = vsel %vm658_vm10, %v7094_v15, 0.0 }
0x2c00   :  { %5196 = vadd.xlane.f32.xlu0 %v5195_v16 }
0x2c71   :  { %v5119_v7 = vpop.f32.mrf.mxu2 }
0x2c72   :  { %v5123_v11 = vadd.f32 %v5119_v7, %v4935_v54 }
0x2c73   :  { %v5197_v10 = vpop.xlane.xlu0 %5196 }
0x2c74   :  { %7095 = vrcp.f32 %v5197_v10  ;;  %v5224_v42 = vand.u32 2147483648, %v5197_v10  ;;  %v5222_v58 = vand.u32 2147483647, %v5197_v10  ;;  %vm5218_vm1 = vweird.f32 %v5197_v10 }
0x2c75   :  { %v5303_v39 = vpop.f32.mrf.mxu0 }
0x2c76   :  { %v5309_v26 = vadd.f32 %v5303_v39, %v5122_v25  ;;  %v5225_v29 = vor.u32 1.1754944e-38, %v5224_v42  ;;  %vm5223_vm3 = vcmp.eq.f32.partialorder %v5222_v58, 8.507059e+37 }
0x2c78   :  { %v5314_v56 = vadd.f32 %v9097_v28, %v5309_v26 }
0x2c7a   :  { %v7096_v30 = vpop.eup %7095  ;;  %v5316_v32 = vadd.f32 %v5314_v56, %v8966_v36 }
0x2c7b   :  { %v5214_v47 = vmul.f32 %v7096_v30, %v5197_v10  ;;  %vm5219_vm0 = vweird.f32 %v7096_v30 }
0x2c7c   :  { %v5322_v40 = vsel %vm575_vm7, %v5316_v32, 0.0  ;;  %vm5220_vm2 = vmor %vm5218_vm1, %vm5219_vm0 }
0x2c7d   :  { %v5215_v31 = vsub.f32 1.0, %v5214_v47  ;;  %5323 = vadd.xlane.f32.xlu0 %v5322_v40 }
0x2c7f   :  { %v5216_v24 = vmul.f32 %v7096_v30, %v5215_v31 }
0x2c81   :  { %v5217_v21 = vadd.f32 %v7096_v30, %v5216_v24 }
0x2c83   :  { %v5221_v38 = vsel %vm5220_vm2, %v7096_v30, %v5217_v21 }
0x2c84   :  { %v5226_v0 = vsel %vm5223_vm3, %v5225_v29, %v5221_v38 }
0x2c85   :  { %v5227_v2 = vmul.f32 %v7094_v15, %v5226_v0 }
0x2c87   :  { %6709 = vmatmul.msk.f32.vlgmr.msrb.gmra.mxu3 %vm658_vm10, %v5227_v2 }
0x2cf0   :  { %v5324_v36 = vpop.xlane.xlu0 %5323 }
0x2cf1   :  { %v5328_v43 = vmul.f32 %v5324_v36, %v8398_v35 }
0x2cf3   :  { %v5330_v20 = vsub.f32 %v5316_v32, %v5328_v43 }
0x2cf5   :  { %v5332_v44 = vmul.f32 %v5330_v20, %v5330_v20 }
0x2cf7   :  { %v5334_v45 = vsel %vm575_vm7, %v5332_v44, 0.0 }
0x2cf8   :  { %5335 = vadd.xlane.f32.xlu2 %v5334_v45 }
0x2d0a   :  { %v5277_v50 = vpop.f32.mrf.mxu3 }
0x2d0b   :  { %6711 = vmatmul.msk.f32.gmra.mxu0 %vm658_vm10, %v5277_v50 }
0x2d6b   :  { %v5336_v41 = vpop.xlane.xlu2 %5335 }
0x2d6c   :  { %v5340_v37 = vmul.f32 %v5336_v41, %v8398_v35 }
0x2d6e   :  { %v5342_v60 = vadd.f32 1e-05, %v5340_v37 }
0x2d70   :  { %7097 = vrsqrt.f32 %v5342_v60  ;;  %vm5350_vm6 = vweird.f32 %v5342_v60 }
0x2d76   :  { %v7098_v48 = vpop.eup %7097 }
0x2d77   :  { %v5345_v57 = vmul.f32 %v7098_v48, %v5342_v60  ;;  %vm5351_vm5 = vweird.f32 %v7098_v48 }
0x2d78   :  { %vm5352_vm8 = vmor %vm5350_vm6, %vm5351_vm5 }
0x2d79   :  { %v5346_v5 = vmul.f32 %v7098_v48, %v5345_v57 }
0x2d7b   :  { %v5347_v59 = vmul.f32 0.5, %v5346_v5 }
0x2d7d   :  { %v5348_v8 = vsub.f32 1.5, %v5347_v59 }
0x2d7f   :  { %v5349_v34 = vmul.f32 %v7098_v48, %v5348_v8 }
0x2d81   :  { %v5353_v63 = vsel %vm5352_vm8, %v7098_v48, %v5349_v34 }
0x2d82   :  { %v5364_v1 = vmul.f32 %v5353_v63, %v5330_v20 }
0x2d84   :  { %v5369_v27 = vmul.f32 %v6896_v62, %v5364_v1 }
0x2d86   :  { %v9109_v9 = vadd.f32 %v6897_v49, %v5369_v27 }
0x2d88   :  { %v5306_v6 = vpop.f32.mrf.mxu0  ;;  %6712 = vmatmul.msk.f32.vlgmr.msrb.gmra.mxu1 %vm575_vm7, %v9109_v9 }
0x2d89   :  { %v5310_v12 = vadd.f32 %v5306_v6, %v5123_v11 }
0x2d8b   :  { %v5315_v13 = vadd.f32 %v9097_v28, %v5310_v12 }
0x2d8d   :  { %v5317_v14 = vadd.f32 %v5315_v13, %v8971_v4 }
0x2d8f   :  { %v5325_v15 = vsel %vm575_vm7, %v5317_v14, 0.0 }
0x2d90   :  { %5326 = vadd.xlane.f32.xlu0 %v5325_v15 }
0x2da4   :  { %5422 = vrot.lane.b32.xlu0 %v8756_v18, %s7790_s6 }
0x2dac   :  { %5578 = vrot.lane.b32.xlu0 %v8756_v18, %s7794_s13 }
0x2db4   :  { %5449 = vrot.lane.b32.xlu0 %v8797_v33, %s7790_s6 }
0x2e03   :  { %v5327_v16 = vpop.xlane.xlu0 %5326 }
0x2e04   :  { %v5329_v17 = vmul.f32 %v5327_v16, %v8398_v35 }
0x2e05   :  { %v5409_v19 = vpop.f32.mrf.mxu1 }
0x2e06   :  { %v5331_v22 = vsub.f32 %v5317_v14, %v5329_v17  ;;  %v9123_v23 = vadd.f32 %v6898_v61, %v5409_v19 }
0x2e08   :  { %5576 = vrot.lane.b32.xlu2 %v9123_v23, %s7793_s11  ;;  %v5333_v4 = vmul.f32 %v5331_v22, %v5331_v22 }
0x2e0a   :  { %v5337_v10 = vsel %vm575_vm7, %v5333_v4, 0.0 }
0x2e0b   :  { %5338 = vadd.xlane.f32.xlu1 %v5337_v10 }
0x2e10   :  { %5606 = vrot.lane.b32.xlu2 %v8797_v33, %s7794_s13 }
0x2e16   :  { %v5423_v25 = vpop.permute.xlu0 %5422 }
0x2e17   :  { %6714 = vmatpush.xpose.msk.msrb.mxu2 %vm658_vm10, %v5423_v25 }
0x2e1a   :  { %6715 = vmatmul.msk.f32.vlgmr.msrb.gmra.mxu2 %vm658_vm10, %v9123_v23 }
0x2e1e   :  { %v5579_v28 = vpop.permute.xlu0 %5578 }
0x2e1f   :  { %6720 = vmatpush.xpose.msk.msra.mxu0 %vm658_vm10, %v5579_v28 }
0x2e26   :  { %v5450_v39 = vpop.permute.xlu0 %5449 }
0x2e27   :  { %6716 = vmatpush.xpose.msk.msra.mxu3 %vm658_vm10, %v5450_v39 }
0x2e62   :  { %v5577_v26 = vpop.permute.xlu2 %5576 }
0x2e63   :  { %6721 = vmatmul.msk.f32.vlgmr.msra.gmra.mxu0 %vm658_vm10, %v5577_v26 }
0x2e6a   :  { %v5607_v56 = vpop.permute.xlu2 %5606 }
0x2e6b   :  { %6722 = vmatpush.xpose.msk.msra.mxu1 %vm658_vm10, %v5607_v56 }
0x2e7e   :  { %v5339_v30 = vpop.xlane.xlu1 %5338 }
0x2e7f   :  { %v5341_v32 = vmul.f32 %v5339_v30, %v8398_v35 }
0x2e81   :  { %v5343_v47 = vadd.f32 1e-05, %v5341_v32 }
0x2e83   :  { %7099 = vrsqrt.f32 %v5343_v47  ;;  %vm5360_vm11 = vweird.f32 %v5343_v47 }
0x2e89   :  { %v7100_v40 = vpop.eup %7099 }
0x2e8a   :  { %v5355_v31 = vmul.f32 %v7100_v40, %v5343_v47  ;;  %vm5361_vm9 = vweird.f32 %v7100_v40 }
0x2e8b   :  { %vm5362_vm12 = vmor %vm5360_vm11, %vm5361_vm9 }
0x2e8c   :  { %v5356_v42 = vmul.f32 %v7100_v40, %v5355_v31 }
0x2e8e   :  { %v5357_v24 = vmul.f32 0.5, %v5356_v42 }
0x2e90   :  { %v5358_v58 = vsub.f32 1.5, %v5357_v24 }
0x2e92   :  { %v5359_v21 = vmul.f32 %v7100_v40, %v5358_v58 }
0x2e94   :  { %v5363_v29 = vsel %vm5362_vm12, %v7100_v40, %v5359_v21 }
0x2e95   :  { %v5365_v38 = vmul.f32 %v5363_v29, %v5331_v22 }
0x2e97   :  { %v5370_v0 = vmul.f32 %v6896_v62, %v5365_v38 }
0x2e99   :  { %v9138_v2 = vadd.f32 %v6897_v49, %v5370_v0 }
0x2e9b   :  { %6713 = vmatmul.msk.f32.gmra.mxu1 %vm575_vm7, %v9138_v2 }
0x2e9d   :  { %v5446_v36 = vpop.f32.mrf.mxu2 }
0x2e9e   :  { %v5447_v43 = vadd.f32 %v5446_v36, %v8295_v46 }
0x2ea0   :  { %v5476_v20 = vsel %vm658_vm10, %v5447_v43, -inf }
0x2ea1   :  { %5477 = vmax.xlane.f32.xlu1 %v5476_v20 }
0x2ee0   :  { %v5601_v44 = vpop.f32.mrf.mxu0 }
0x2ee1   :  { %v5602_v45 = vadd.f32 %v5601_v44, %v8295_v46  ;;  %v5416_v44 = vld [vmem:[#allocation21 + $0x20] sm:$0xff] }
0x2ee2   :  { %5782 = vmatpush.msrb.mxu1 %v5416_v44 }
0x2ee3   :  { %v5632_v50 = vsel %vm658_vm10, %v5602_v45, -inf }
0x2ee4   :  { %5633 = vmax.xlane.f32.xlu0 %v5632_v50 }
0x2ef8   :  { %5790 = vrot.lane.b32.xlu0 %v9123_v23, %s7795_s9 }
0x2f00   :  { %5550 = vrot.lane.b32.xlu0 %v8797_v33, %s7802_s23 }
0x2f14   :  { %v5478_v55 = vpop.xlane.xlu1 %5477 }
0x2f15   :  { %v5482_v3 = vsub.f32 %v5447_v43, %v5478_v55 }
0x2f17   :  { %v5484_v52 = vmul.f32 1.442695, %v5482_v3 }
0x2f18   :  { %v5412_v53 = vpop.f32.mrf.mxu1 }
0x2f19   :  { %7101 = vpow2.f32 %v5484_v52  ;;  %v9149_v41 = vadd.f32 %v6898_v61, %v5412_v53 }
0x2f1b   :  { %6717 = vmatmul.msk.f32.vlgmr.msra.gmra.mxu3 %vm658_vm10, %v9149_v41  ;;  %5604 = vrot.lane.b32.xlu2 %v9149_v41, %s7793_s11 }
0x2f1f   :  { %v7102_v37 = vpop.eup %7101 }
0x2f20   :  { %v5488_v60 = vsel %vm658_vm10, %v7102_v37, 0.0 }
0x2f21   :  { %5489 = vadd.xlane.f32.xlu1 %v5488_v60 }
0x2f23   :  { %5680 = vrot.lane.b32.xlu2 %v8756_v18, %s7803_s28 }
0x2f2b   :  { %5792 = vrot.lane.b32.xlu2 %v8756_v18, %s7799_s5 }
0x2f57   :  { %v5634_v48 = vpop.xlane.xlu0 %5633 }
0x2f58   :  { %v5638_v57 = vsub.f32 %v5602_v45, %v5634_v48  ;;  %v5417_v45 = vld [vmem:[#allocation21 + $0x28] sm:$0xff] }
0x2f59   :  { %5753 = vmatpush.msrb.mxu0 %v5417_v45 }
0x2f5a   :  { %v5640_v5 = vmul.f32 1.442695, %v5638_v57 }
0x2f5c   :  { %7103 = vpow2.f32 %v5640_v5 }
0x2f62   :  { %v7104_v59 = vpop.eup %7103 }
0x2f63   :  { %v5644_v8 = vsel %vm658_vm10, %v7104_v59, 0.0 }
0x2f64   :  { %5645 = vadd.xlane.f32.xlu1 %v5644_v8 }
0x2f6a   :  { %v5791_v34 = vpop.permute.xlu0 %5790 }
0x2f72   :  { %v5551_v62 = vpop.permute.xlu0 %5550 }
0x2f73   :  { %5571 = vmatpush.msrb.mxu3 %v5551_v62 }
0x2f75   :  { %v5605_v63 = vpop.permute.xlu2 %5604 }
0x2f76   :  { %6723 = vmatmul.msk.f32.vlgmr.msra.gmra.mxu1 %vm658_vm10, %v5605_v63 }
0x2f7d   :  { %5524 = vrot.lane.b32.xlu1 %v8756_v18, %s7802_s23  ;;  %v5681_v47 = vpop.permute.xlu2 %5680 }
0x2f85   :  { %v5793_v24 = vpop.permute.xlu2 %5792 }
0x2f94   :  { %v5490_v49 = vpop.xlane.xlu1 %5489 }
0x2f95   :  { %7105 = vrcp.f32 %v5490_v49  ;;  %v5505_v54 = vand.u32 2147483648, %v5490_v49  ;;  %v5503_v12 = vand.u32 2147483647, %v5490_v49  ;;  %vm5499_vm14 = vweird.f32 %v5490_v49 }
0x2f97   :  { %v5506_v15 = vor.u32 1.1754944e-38, %v5505_v54  ;;  %vm5504_vm0 = vcmp.eq.f32.partialorder %v5503_v12, 8.507059e+37 }
0x2f9b   :  { %v7106_v1 = vpop.eup %7105 }
0x2f9c   :  { %v5495_v7 = vmul.f32 %v7106_v1, %v5490_v49  ;;  %vm5500_vm13 = vweird.f32 %v7106_v1 }
0x2f9d   :  { %vm5501_vm15 = vmor %vm5499_vm14, %vm5500_vm13 }
0x2f9e   :  { %v5496_v27 = vsub.f32 1.0, %v5495_v7  ;;  %v5473_v11 = vpop.f32.mrf.mxu3 }
0x2f9f   :  { %v5474_v14 = vadd.f32 %v5473_v11, %v8299_v51 }
0x2fa0   :  { %v5497_v6 = vmul.f32 %v7106_v1, %v5496_v27 }
0x2fa1   :  { %v5479_v19 = vsel %vm658_vm10, %v5474_v14, -inf }
0x2fa2   :  { %v5498_v13 = vadd.f32 %v7106_v1, %v5497_v6 }
0x2fa4   :  { %v5502_v61 = vsel %vm5501_vm15, %v7106_v1, %v5498_v13 }
0x2fa5   :  { %v5507_v16 = vsel %vm5504_vm0, %v5506_v15, %v5502_v61 }
0x2fa6   :  { %v5508_v17 = vmul.f32 %v7102_v37, %v5507_v16 }
0x2fa7   :  { %5480 = vmax.xlane.f32.xlu1 %v5479_v19 }
0x2fa8   :  { %6412 = vst.msk [vmem:[%s8027_s8] sm:$0xff] %vm658_vm10, %v5508_v17 }
0x2fd7   :  { %v5646_v22 = vpop.xlane.xlu1 %5645 }
0x2fd8   :  { %7107 = vrcp.f32 %v5646_v22  ;;  %v5661_v28 = vand.u32 2147483648, %v5646_v22  ;;  %v5659_v26 = vand.u32 2147483647, %v5646_v22  ;;  %vm5655_vm2 = vweird.f32 %v5646_v22 }
0x2fda   :  { %v5662_v30 = vor.u32 1.1754944e-38, %v5661_v28  ;;  %vm5660_vm5 = vcmp.eq.f32.partialorder %v5659_v26, 8.507059e+37 }
0x2fde   :  { %v7108_v4 = vpop.eup %7107 }
0x2fdf   :  { %v5651_v10 = vmul.f32 %v7108_v4, %v5646_v22  ;;  %vm5656_vm1 = vweird.f32 %v7108_v4 }
0x2fe0   :  { %vm5657_vm3 = vmor %vm5655_vm2, %vm5656_vm1 }
0x2fe1   :  { %v5652_v25 = vsub.f32 1.0, %v5651_v10 }
0x2fe3   :  { %v5653_v39 = vmul.f32 %v7108_v4, %v5652_v25 }
0x2fe5   :  { %v5654_v56 = vadd.f32 %v7108_v4, %v5653_v39 }
0x2fe7   :  { %v5658_v32 = vsel %vm5657_vm3, %v7108_v4, %v5654_v56 }
0x2fe8   :  { %v5663_v40 = vsel %vm5660_vm5, %v5662_v30, %v5658_v32 }
0x2fe9   :  { %v5664_v31 = vmul.f32 %v7104_v59, %v5663_v40 }
0x2feb   :  { %6760 = vst.msk [vmem:[%s8027_s8 + $0x10] sm:$0xff] %vm658_vm10, %v5664_v31 }
0x2fef   :  { %v5525_v42 = vpop.permute.xlu1 %5524 }
0x2ff0   :  { %5545 = vmatpush.msra.mxu2 %v5525_v42 }
0x2ff1   :  { %6718 = vmatmul.msk.f32.vlgmr.msra.gmra.mxu2 %vm658_vm10, %v5508_v17 }
0x2ff2   :  { %5701 = vmatpush.msrb.mxu2 %v5681_v47 }
0x2ff3   :  { %v5629_v58 = vpop.f32.mrf.mxu1 }
0x2ff4   :  { %6730 = vmatpush.xpose.msk.msra.mxu2 %vm658_vm10, %v5793_v24  ;;  %v5630_v21 = vadd.f32 %v5629_v58, %v8299_v51 }
0x2ff6   :  { %v5635_v29 = vsel %vm658_vm10, %v5630_v21, -inf }
0x2ff7   :  { %5636 = vmax.xlane.f32.xlu0 %v5635_v29 }
0x2ff9   :  { %6724 = vmatmul.msk.f32.vlgmr.msrb.gmra.mxu2 %vm658_vm10, %v5664_v31 }
0x3001   :  { %6731 = vmatmul.msk.f32.vlgmr.msra.gmra.mxu2 %vm658_vm10, %v5791_v34 }
0x300b   :  { %5818 = vrot.lane.b32.xlu0 %v9149_v41, %s7795_s9 }
0x3013   :  { %6007 = vrot.lane.b32.xlu0 %v8797_v33, %s7800_s25 }
0x301a   :  { %v5481_v38 = vpop.xlane.xlu1 %5480 }
0x301b   :  { %v5483_v0 = vsub.f32 %v5474_v14, %v5481_v38 }
0x301d   :  { %v5486_v36 = vmul.f32 1.442695, %v5483_v0 }
0x301f   :  { %7109 = vpow2.f32 %v5486_v36 }
0x3025   :  { %v7110_v43 = vpop.eup %7109 }
0x3026   :  { %v5491_v20 = vsel %vm658_vm10, %v7110_v43, 0.0 }
0x3027   :  { %5492 = vadd.xlane.f32.xlu2 %v5491_v20 }
0x306a   :  { %v5637_v50 = vpop.xlane.xlu0 %5636 }
0x306b   :  { %v5639_v55 = vsub.f32 %v5630_v21, %v5637_v50 }
0x306d   :  { %v5642_v3 = vmul.f32 1.442695, %v5639_v55 }
0x306f   :  { %7111 = vpow2.f32 %v5642_v3 }
0x3074   :  { %v5547_v52 = vpop.f32.mrf.mxu2 }
0x3075   :  { %v7112_v53 = vpop.eup %7111  ;;  %6728 = vmatmul.msk.f32.vlgmr.msrb.gmra.mxu1 %vm658_vm10, %v5547_v52 }
0x3076   :  { %v5647_v37 = vsel %vm658_vm10, %v7112_v53, 0.0 }
0x3077   :  { %5648 = vadd.xlane.f32.xlu1 %v5647_v37 }
0x307c   :  { %v5703_v60 = vpop.f32.mrf.mxu2 }
0x307d   :  { %6726 = vmatmul.msk.f32.vlgmr.msrb.gmra.mxu0 %vm658_vm10, %v5703_v60  ;;  %v5819_v47 = vpop.permute.xlu0 %5818 }
0x3084   :  { %v5815_v48 = vpop.f32.mrf.mxu2 }
0x3085   :  { %v5816_v57 = vadd.f32 %v5815_v48, %v8295_v46  ;;  %v6008_v42 = vpop.permute.xlu0 %6007  ;;  %v5418_v48 = vld [vmem:[#allocation21 + $0x30] sm:$0xff] }
0x3086   :  { %5967 = vmatpush.msra.mxu0 %v5418_v48 }
0x3087   :  { %v5846_v5 = vsel %vm658_vm10, %v5816_v57, -inf }
0x3088   :  { %5847 = vmax.xlane.f32.xlu2 %v5846_v5 }
0x3090   :  { %5820 = vrot.lane.b32.xlu1 %v8797_v33, %s7799_s5 }
0x309a   :  { %v5493_v59 = vpop.xlane.xlu2 %5492 }
0x309b   :  { %7113 = vrcp.f32 %v5493_v59  ;;  %v5520_v63 = vand.u32 2147483648, %v5493_v59  ;;  %v5518_v1 = vand.u32 2147483647, %v5493_v59  ;;  %vm5514_vm8 = vweird.f32 %v5493_v59 }
0x309d   :  { %v5521_v27 = vor.u32 1.1754944e-38, %v5520_v63  ;;  %vm5519_vm11 = vcmp.eq.f32.partialorder %v5518_v1, 8.507059e+37 }
0x30a0   :  { %5706 = vrot.lane.b32.xlu2 %v8797_v33, %s7803_s28 }
0x30a1   :  { %v7114_v8 = vpop.eup %7113 }
0x30a2   :  { %v5510_v34 = vmul.f32 %v7114_v8, %v5493_v59  ;;  %vm5515_vm6 = vweird.f32 %v7114_v8 }
0x30a3   :  { %vm5516_vm9 = vmor %vm5514_vm8, %vm5515_vm6 }
0x30a4   :  { %v5511_v62 = vsub.f32 1.0, %v5510_v34 }
0x30a6   :  { %v5512_v49 = vmul.f32 %v7114_v8, %v5511_v62 }
0x30a8   :  { %v5513_v7 = vadd.f32 %v7114_v8, %v5512_v49  ;;  %5979 = vrot.lane.b32.xlu2 %v8756_v18, %s7800_s25 }
0x30aa   :  { %v5517_v54 = vsel %vm5516_vm9, %v7114_v8, %v5513_v7 }
0x30ab   :  { %v5522_v11 = vsel %vm5519_vm11, %v5521_v27, %v5517_v54 }
0x30ac   :  { %v5523_v6 = vmul.f32 %v7110_v43, %v5522_v11 }
0x30ae   :  { %6413 = vst.msk [vmem:[%s8027_s8 + $0x8] sm:$0xff] %vm658_vm10, %v5523_v6  ;;  %6719 = vmatmul.msk.f32.vlgmr.msrb.gmra.mxu3 %vm658_vm10, %v5523_v6 }
0x30b0   :  { %5894 = vrot.lane.b32.xlu2 %v8756_v18, %s7761_s2 }
0x30b8   :  { %6005 = vrot.lane.b32.xlu2 %v9149_v41, %s7798_s26 }
0x30ea   :  { %v5649_v12 = vpop.xlane.xlu1 %5648 }
0x30eb   :  { %7115 = vrcp.f32 %v5649_v12  ;;  %v5676_v61 = vand.u32 2147483648, %v5649_v12  ;;  %v5674_v17 = vand.u32 2147483647, %v5649_v12  ;;  %vm5670_vm13 = vweird.f32 %v5649_v12 }
0x30ed   :  { %v5677_v22 = vor.u32 1.1754944e-38, %v5676_v61  ;;  %vm5675_vm15 = vcmp.eq.f32.partialorder %v5674_v17, 8.507059e+37 }
0x30f1   :  { %v7116_v13 = vpop.eup %7115 }
0x30f2   :  { %v5666_v14 = vmul.f32 %v7116_v13, %v5649_v12  ;;  %vm5671_vm12 = vweird.f32 %v7116_v13 }
0x30f3   :  { %vm5672_vm14 = vmor %vm5670_vm13, %vm5671_vm12 }
0x30f4   :  { %v5667_v15 = vsub.f32 1.0, %v5666_v14 }
0x30f6   :  { %v5668_v16 = vmul.f32 %v7116_v13, %v5667_v15 }
0x30f8   :  { %v5669_v19 = vadd.f32 %v7116_v13, %v5668_v16 }
0x30fa   :  { %v5673_v4 = vsel %vm5672_vm14, %v7116_v13, %v5669_v19 }
0x30fb   :  { %v5678_v10 = vsel %vm5675_vm15, %v5677_v22, %v5673_v4  ;;  %v5848_v25 = vpop.xlane.xlu2 %5847 }
0x30fc   :  { %v5679_v28 = vmul.f32 %v7112_v53, %v5678_v10  ;;  %v5852_v41 = vsub.f32 %v5816_v57, %v5848_v25  ;;  %v9217_v57 = vpop.f32.mrf.mxu1 }
0x30fe   :  { %6761 = vst.msk [vmem:[%s8027_s8 + $0x18] sm:$0xff] %vm658_vm10, %v5679_v28  ;;  %v5854_v39 = vmul.f32 1.442695, %v5852_v41 }
0x3100   :  { %7117 = vpow2.f32 %v5854_v39 }
0x3102   :  { %v5821_v56 = vpop.permute.xlu1 %5820 }
0x3103   :  { %v5707_v26 = vpop.permute.xlu2 %5706 }
0x3104   :  { %5727 = vmatpush.msra.mxu3 %v5707_v26 }
0x3105   :  { %6725 = vmatmul.msk.f32.vlgmr.msra.gmra.mxu3 %vm658_vm10, %v5679_v28 }
0x3106   :  { %v7118_v30 = vpop.eup %7117  ;;  %6732 = vmatpush.xpose.msk.msrb.mxu3 %vm658_vm10, %v5821_v56 }
0x3107   :  { %v5858_v32 = vsel %vm658_vm10, %v7118_v30, 0.0 }
0x3108   :  { %5859 = vadd.xlane.f32.xlu1 %v5858_v32 }
0x310b   :  { %v5980_v40 = vpop.permute.xlu2 %5979 }
0x310c   :  { %6738 = vmatpush.xpose.msk.msra.mxu1 %vm658_vm10, %v5980_v40 }
0x310d   :  { %6733 = vmatmul.msk.f32.vlgmr.msrb.gmra.mxu3 %vm658_vm10, %v5819_v47 }
0x3113   :  { %v5895_v31 = vpop.permute.xlu2 %5894 }
0x3114   :  { %5915 = vmatpush.msrb.mxu2 %v5895_v31 }
0x3116   :  { %6740 = vmatpush.xpose.msk.msra.mxu2 %vm658_vm10, %v6008_v42 }
0x311b   :  { %v6006_v60 = vpop.permute.xlu2 %6005 }
0x3121   :  { %5977 = vrot.lane.b32.xlu1 %v9123_v23, %s7798_s26 }
0x3131   :  { %v5573_v24 = vpop.f32.mrf.mxu3 }
0x3132   :  { %6729 = vmatmul.msk.f32.gmra.mxu1 %vm658_vm10, %v5573_v24 }
0x317b   :  { %v5860_v58 = vpop.xlane.xlu1 %5859 }
0x317c   :  { %7119 = vrcp.f32 %v5860_v58  ;;  %v5875_v0 = vand.u32 2147483648, %v5860_v58  ;;  %v5873_v43 = vand.u32 2147483647, %v5860_v58  ;;  %vm5869_vm1 = vweird.f32 %v5860_v58 }
0x317e   :  { %v5876_v23 = vor.u32 1.1754944e-38, %v5875_v0  ;;  %vm5874_vm3 = vcmp.eq.f32.partialorder %v5873_v43, 8.507059e+37 }
0x3182   :  { %v7120_v21 = vpop.eup %7119 }
0x3183   :  { %v5865_v29 = vmul.f32 %v7120_v21, %v5860_v58  ;;  %vm5870_vm0 = vweird.f32 %v7120_v21 }
0x3184   :  { %vm5871_vm2 = vmor %vm5869_vm1, %vm5870_vm0 }
0x3185   :  { %v5866_v38 = vsub.f32 1.0, %v5865_v29 }
0x3187   :  { %v5867_v36 = vmul.f32 %v7120_v21, %v5866_v38 }
0x3188   :  { %v5729_v20 = vpop.f32.mrf.mxu3 }
0x3189   :  { %v5868_v44 = vadd.f32 %v7120_v21, %v5867_v36  ;;  %6727 = vmatmul.msk.f32.gmra.mxu0 %vm658_vm10, %v5729_v20 }
0x318b   :  { %v5872_v45 = vsel %vm5871_vm2, %v7120_v21, %v5868_v44 }
0x318c   :  { %v5877_v50 = vsel %vm5874_vm3, %v5876_v23, %v5872_v45 }
0x318d   :  { %v5878_v55 = vmul.f32 %v7118_v30, %v5877_v50 }
0x318f   :  { %6762 = vst.msk [vmem:[%s8027_s8 + $0x20] sm:$0xff] %vm658_vm10, %v5878_v55  ;;  %6734 = vmatmul.msk.f32.vlgmr.msrb.gmra.mxu2 %vm658_vm10, %v5878_v55 }
0x3190   :  { %v5843_v3 = vpop.f32.mrf.mxu3 }
0x3191   :  { %v5844_v52 = vadd.f32 %v5843_v3, %v8299_v51 }
0x3193   :  { %v5978_v53 = vpop.permute.xlu1 %5977  ;;  %v5849_v37 = vsel %vm658_vm10, %v5844_v52, -inf }
0x3194   :  { %5850 = vmax.xlane.f32.xlu1 %v5849_v37  ;;  %6739 = vmatmul.msk.f32.vlgmr.msra.gmra.mxu1 %vm658_vm10, %v5978_v53 }
0x3197   :  { %6741 = vmatmul.msk.f32.vlgmr.msra.gmra.mxu2 %vm658_vm10, %v6006_v60 }
0x31af   :  { %v9219_v8 = vpop.f32.mrf.mxu1 }
0x3207   :  { %v5851_v5 = vpop.xlane.xlu1 %5850 }
0x3208   :  { %v5853_v59 = vsub.f32 %v5844_v52, %v5851_v5 }
0x320a   :  { %v5856_v34 = vmul.f32 1.442695, %v5853_v59 }
0x320c   :  { %7121 = vpow2.f32 %v5856_v34 }
0x3211   :  { %v6002_v62 = vpop.f32.mrf.mxu1 }
0x3212   :  { %v7122_v63 = vpop.eup %7121  ;;  %v6003_v49 = vadd.f32 %v6002_v62, %v8295_v46  ;;  %v5917_v1 = vpop.f32.mrf.mxu2  ;;  %v5419_v62 = vld [vmem:[#allocation21 + $0x38] sm:$0xff] }
0x3213   :  { %6736 = vmatmul.msk.f32.vlgmr.msra.gmra.mxu0 %vm658_vm10, %v5917_v1  ;;  %v5861_v7 = vsel %vm658_vm10, %v7122_v63, 0.0  ;;  %6154 = vmatpush.msrb.mxu2 %v5419_v62  ;;  %v5755_v1 = vpop.f32.mrf.mxu0 }
0x3214   :  { %5862 = vadd.xlane.f32.xlu1 %v5861_v7  ;;  %v6033_v27 = vsel %vm658_vm10, %v6003_v49, -inf }
0x3215   :  { %6034 = vmax.xlane.f32.xlu0 %v6033_v27 }
0x321a   :  { %v6030_v54 = vpop.f32.mrf.mxu2 }
0x321b   :  { %v6031_v11 = vadd.f32 %v6030_v54, %v8299_v51  ;;  %v5758_v7 = vpop.f32.mrf.mxu0  ;;  %v5785_v54 = vadd.f32 %v9217_v57, %v5755_v1 }
0x321d   :  { %v6036_v6 = vsel %vm658_vm10, %v6031_v11, -inf }
0x321e   :  { %6037 = vmax.xlane.f32.xlu2 %v6036_v6  ;;  %v6899_v6 = vld [vmem:[#allocation22 + $0x1] ss:$0 sm:$0xff] }
0x3236   :  { %5920 = vrot.lane.b32.xlu2 %v8797_v33, %s7761_s2 }
0x3287   :  { %v5863_v12 = vpop.xlane.xlu1 %5862 }
0x3288   :  { %7123 = vrcp.f32 %v5863_v12  ;;  %v6035_v46 = vpop.xlane.xlu0 %6034  ;;  %v5890_v19 = vand.u32 2147483648, %v5863_v12  ;;  %v5888_v10 = vand.u32 2147483647, %v5863_v12  ;;  %vm5884_vm6 = vweird.f32 %v5863_v12 }
0x3289   :  { %v6039_v13 = vsub.f32 %v6003_v49, %v6035_v46 }
0x328a   :  { %v5891_v39 = vor.u32 1.1754944e-38, %v5890_v19  ;;  %vm5889_vm9 = vcmp.eq.f32.partialorder %v5888_v10, 8.507059e+37 }
0x328b   :  { %v6041_v14 = vmul.f32 1.442695, %v6039_v13 }
0x328d   :  { %7125 = vpow2.f32 %v6041_v14 }
0x328e   :  { %v7124_v15 = vpop.eup %7123 }
0x328f   :  { %v5880_v61 = vmul.f32 %v7124_v15, %v5863_v12  ;;  %vm5885_vm5 = vweird.f32 %v7124_v15 }
0x3290   :  { %vm5886_vm8 = vmor %vm5884_vm6, %vm5885_vm5  ;;  %v5969_v27 = vpop.f32.mrf.mxu0 }
0x3291   :  { %v5881_v16 = vsub.f32 1.0, %v5880_v61  ;;  %v6038_v17 = vpop.xlane.xlu2 %6037 }
0x3292   :  { %v6040_v22 = vsub.f32 %v6031_v11, %v6038_v17  ;;  %v5975_v11 = vadd.f32 %v5969_v27, %v5785_v54  ;;  %v6748_v54 = vld [vmem:[%s9362_s27 + $0x50] sm:$0xff] }
0x3293   :  { %v7126_v4 = vpop.eup %7125  ;;  %v5882_v51 = vmul.f32 %v7124_v15, %v5881_v16 }
0x3294   :  { %v6043_v25 = vmul.f32 1.442695, %v6040_v22  ;;  %v6045_v28 = vsel %vm658_vm10, %v7126_v4, 0.0 }
0x3295   :  { %v5883_v41 = vadd.f32 %v7124_v15, %v5882_v51  ;;  %6046 = vadd.xlane.f32.xlu0 %v6045_v28 }
0x3296   :  { %7127 = vpow2.f32 %v6043_v25 }
0x3297   :  { %v5887_v26 = vsel %vm5886_vm8, %v7124_v15, %v5883_v41  ;;  %v5788_v15 = vadd.f32 %v9219_v8, %v5758_v7 }
0x3298   :  { %v5892_v56 = vsel %vm5889_vm9, %v5891_v39, %v5887_v26 }
0x3299   :  { %v5893_v30 = vmul.f32 %v7122_v63, %v5892_v56  ;;  %v5921_v32 = vpop.permute.xlu2 %5920 }
0x329a   :  { %5941 = vmatpush.msra.mxu3 %v5921_v32  ;;  %v6232_v32 = vld [vmem:[#allocation27 + $0x30] sm:$0xff] }
0x329b   :  { %6763 = vst.msk [vmem:[%s8027_s8 + $0x28] sm:$0xff] %vm658_vm10, %v5893_v30  ;;  %6735 = vmatmul.msk.f32.vlgmr.msra.gmra.mxu3 %vm658_vm10, %v5893_v30  ;;  %v6233_v30 = vld [vmem:[#allocation27 + $0x38] sm:$0xff] }
0x329c   :  { %v7128_v47 = vpop.eup %7127 }
0x329d   :  { %v6048_v40 = vsel %vm658_vm10, %v7128_v47, 0.0 }
0x329e   :  { %6049 = vadd.xlane.f32.xlu1 %v6048_v40  ;;  %v6230_v40 = vld [vmem:[#allocation27 + $0x20] sm:$0xff] }
0x32a9   :  { %6081 = vrot.lane.b32.xlu0 %v8756_v18, %s7765_s22 }
0x32b7   :  { %6107 = vrot.lane.b32.xlu1 %v8797_v33, %s7765_s22 }
0x3308   :  { %v6047_v31 = vpop.xlane.xlu0 %6046 }
0x3309   :  { %7129 = vrcp.f32 %v6047_v31  ;;  %v6062_v29 = vand.u32 2147483648, %v6047_v31  ;;  %v6060_v0 = vand.u32 2147483647, %v6047_v31  ;;  %vm6056_vm12 = vweird.f32 %v6047_v31 }
0x330b   :  { %v6063_v43 = vor.u32 1.1754944e-38, %v6062_v29  ;;  %vm6061_vm14 = vcmp.eq.f32.partialorder %v6060_v0, 8.507059e+37  ;;  %v6751_v29 = vld [vmem:[%s9362_s27 + $0x68] sm:$0xff] }
0x330f   :  { %v7130_v42 = vpop.eup %7129 }
0x3310   :  { %v6052_v24 = vmul.f32 %v7130_v42, %v6047_v31  ;;  %vm6057_vm11 = vweird.f32 %v7130_v42 }
0x3311   :  { %v6050_v58 = vpop.xlane.xlu1 %6049  ;;  %vm6058_vm13 = vmor %vm6056_vm12, %vm6057_vm11 }
0x3312   :  { %v6053_v21 = vsub.f32 1.0, %v6052_v24  ;;  %7131 = vrcp.f32 %v6050_v58  ;;  %v6077_v55 = vand.u32 2147483648, %v6050_v58  ;;  %v6075_v52 = vand.u32 2147483647, %v6050_v58 }
0x3313   :  { %vm6071_vm0 = vweird.f32 %v6050_v58 }
0x3314   :  { %v6054_v38 = vmul.f32 %v7130_v42, %v6053_v21  ;;  %v6078_v60 = vor.u32 1.1754944e-38, %v6077_v55  ;;  %vm6076_vm2 = vcmp.eq.f32.partialorder %v6075_v52, 8.507059e+37  ;;  %v6752_v21 = vld [vmem:[%s9362_s27 + $0x70] sm:$0xff]  ;;  %v6900_v52 = vld [vmem:[#allocation24 + $0x1] ss:$0 sm:$0xff] }
0x3316   :  { %v6055_v36 = vadd.f32 %v7130_v42, %v6054_v38 }
0x3318   :  { %v7132_v18 = vpop.eup %7131  ;;  %v6059_v20 = vsel %vm6058_vm13, %v7130_v42, %v6055_v36  ;;  %v6750_v36 = vld [vmem:[%s9362_s27 + $0x60] sm:$0xff] }
0x3319   :  { %v6064_v33 = vsel %vm6061_vm14, %v6063_v43, %v6059_v20  ;;  %v6067_v44 = vmul.f32 %v7132_v18, %v6050_v58  ;;  %vm6072_vm15 = vweird.f32 %v7132_v18  ;;  %v6753_v58 = vld [vmem:[%s9362_s27 + $0x78] sm:$0xff] }
0x331a   :  { %v6065_v23 = vmul.f32 %v7126_v4, %v6064_v33  ;;  %vm6073_vm1 = vmor %vm6071_vm0, %vm6072_vm15  ;;  %6298 = vmatpush.msrb.mxu0 %v6753_v58  ;;  %v6749_v20 = vld [vmem:[%s9362_s27 + $0x58] sm:$0xff] }
0x331b   :  { %v6068_v45 = vsub.f32 1.0, %v6067_v44  ;;  %v6082_v50 = vpop.permute.xlu0 %6081 }
0x331c   :  { %6764 = vst.msk [vmem:[%s8027_s8 + $0x30] sm:$0xff] %vm658_vm10, %v6065_v23  ;;  %6102 = vmatpush.msrb.mxu3 %v6082_v50  ;;  %6299 = vmatpush.msrb.mxu0 %v6752_v21 }
0x331d   :  { %v6069_v3 = vmul.f32 %v7132_v18, %v6068_v45  ;;  %6742 = vmatmul.msk.f32.vlgmr.msrb.gmra.mxu3 %vm658_vm10, %v6065_v23 }
0x331e   :  { %v5943_v53 = vpop.f32.mrf.mxu3  ;;  %6268 = vmatpush.msra.mxu3 %v6233_v30  ;;  %6300 = vmatpush.msrb.mxu0 %v6751_v29 }
0x331f   :  { %v6070_v37 = vadd.f32 %v7132_v18, %v6069_v3  ;;  %6737 = vmatmul.msk.f32.gmra.mxu0 %vm658_vm10, %v5943_v53 }
0x3320   :  { %6269 = vmatpush.msra.mxu3 %v6232_v32  ;;  %6301 = vmatpush.msrb.mxu0 %v6750_v36 }
0x3321   :  { %v6074_v48 = vsel %vm6073_vm1, %v7132_v18, %v6070_v37 }
0x3322   :  { %v6079_v5 = vsel %vm6076_vm2, %v6078_v60, %v6074_v48  ;;  %6302 = vmatpush.msrb.mxu0 %v6749_v20  ;;  %v6901_v60 = vld [vmem:[#allocation25 + $0x1] ss:$0 sm:$0xff] }
0x3323   :  { %v6080_v59 = vmul.f32 %v7128_v47, %v6079_v5  ;;  %v6231_v47 = vld [vmem:[#allocation27 + $0x28] sm:$0xff] }
0x3324   :  { %6270 = vmatpush.msra.mxu3 %v6231_v47  ;;  %6303 = vmatpush.msrb.mxu0 %v6748_v54 }
0x3325   :  { %6765 = vst.msk [vmem:[%s8027_s8 + $0x38] sm:$0xff] %vm658_vm10, %v6080_v59 }
0x3326   :  { %6271 = vmatpush.msra.mxu3 %v6230_v40  ;;  %v6376_v40 = vld [vmem:[#allocation34 + $0x18] sm:$0xff] }
0x3329   :  { %v6108_v34 = vpop.permute.xlu1 %6107 }
0x332a   :  { %6128 = vmatpush.msrb.mxu1 %v6108_v34 }
0x332b   :  { %6743 = vmatmul.msk.f32.vlgmr.msrb.gmra.mxu1 %vm658_vm10, %v6080_v59 }
0x332c   :  { %6399 = vmatpush.msra.mxu1 %v6376_v40 }
0x339c   :  { %v5972_v14 = vpop.f32.mrf.mxu0 }
0x339d   :  { %v5976_v16 = vadd.f32 %v5972_v14, %v5788_v15 }
0x33a0   :  { %v6104_v63 = vpop.f32.mrf.mxu3 }
0x33a1   :  { %6744 = vmatmul.msk.f32.vlgmr.msrb.gmra.mxu2 %vm658_vm10, %v6104_v63 }
0x33a8   :  { %v6130_v49 = vpop.f32.mrf.mxu1 }
0x33a9   :  { %6745 = vmatmul.msk.f32.gmra.mxu2 %vm658_vm10, %v6130_v49 }
0x3424   :  { %v6156_v12 = vpop.f32.mrf.mxu2 }
0x3425   :  { %v6162_v46 = vadd.f32 %v6156_v12, %v5975_v11  ;;  %v6747_v11 = vld [vmem:[%s9362_s27 + $0x48] sm:$0xff]  ;;  %v6902_v12 = vld [vmem:[#allocation28 + $0x1] ss:$0 sm:$0xff] }
0x3426   :  { %6304 = vmatpush.msrb.mxu0 %v6747_v11 }
0x3427   :  { %v6167_v13 = vadd.f32 %v6899_v6, %v6162_v46 }
0x3429   :  { %v6169_v61 = vadd.f32 %v6167_v13, %v9109_v9 }
0x342b   :  { %v6175_v17 = vsel %vm575_vm7, %v6169_v61, 0.0 }
0x342c   :  { %6176 = vadd.xlane.f32.xlu2 %v6175_v17  ;;  %v6159_v19 = vpop.f32.mrf.mxu2  ;;  %v6903_v17 = vld [vmem:[#allocation30 + $0x1] ss:$0 sm:$0xff] }
0x342d   :  { %v6163_v22 = vadd.f32 %v6159_v19, %v5976_v16 }
0x342f   :  { %v6168_v4 = vadd.f32 %v6899_v6, %v6163_v22  ;;  %v6746_v6 = vld [vmem:[%s9362_s27 + $0x40] sm:$0xff] }
0x3430   :  { %6305 = vmatpush.msrb.mxu0 %v6746_v6 }
0x3431   :  { %v6170_v51 = vadd.f32 %v6168_v4, %v9138_v2 }
0x3433   :  { %v6178_v57 = vsel %vm575_vm7, %v6170_v51, 0.0 }
0x3434   :  { %6179 = vadd.xlane.f32.xlu0 %v6178_v57 }
0x349f   :  { %v6177_v10 = vpop.xlane.xlu2 %6176 }
0x34a0   :  { %v6181_v25 = vmul.f32 %v6177_v10, %v8398_v35 }
0x34a2   :  { %v6183_v28 = vsub.f32 %v6169_v61, %v6181_v25 }
0x34a4   :  { %v6185_v41 = vmul.f32 %v6183_v28, %v6183_v28 }
0x34a6   :  { %v6187_v8 = vsel %vm575_vm7, %v6185_v41, 0.0 }
0x34a7   :  { %6188 = vadd.xlane.f32.xlu1 %v6187_v8  ;;  %v6180_v9 = vpop.xlane.xlu0 %6179 }
0x34a8   :  { %v6182_v39 = vmul.f32 %v6180_v9, %v8398_v35 }
0x34aa   :  { %v6184_v26 = vsub.f32 %v6170_v51, %v6182_v39 }
0x34ac   :  { %v6186_v56 = vmul.f32 %v6184_v26, %v6184_v26 }
0x34ae   :  { %v6190_v2 = vsel %vm575_vm7, %v6186_v56, 0.0 }
0x34af   :  { %6191 = vadd.xlane.f32.xlu2 %v6190_v2 }
0x351a   :  { %v6189_v31 = vpop.xlane.xlu1 %6188 }
0x351b   :  { %v6193_v42 = vmul.f32 %v6189_v31, %v8398_v35  ;;  %v6375_v31 = vld [vmem:[#allocation34 + $0x10] sm:$0xff] }
0x351c   :  { %6400 = vmatpush.msra.mxu1 %v6375_v31 }
0x351d   :  { %v6195_v24 = vadd.f32 1e-05, %v6193_v42  ;;  %v6374_v42 = vld [vmem:[#allocation34 + $0x8] sm:$0xff] }
0x351e   :  { %6401 = vmatpush.msra.mxu1 %v6374_v42 }
0x351f   :  { %7133 = vrsqrt.f32 %v6195_v24  ;;  %vm6203_vm3 = vweird.f32 %v6195_v24 }
0x3522   :  { %v6192_v38 = vpop.xlane.xlu2 %6191 }
0x3523   :  { %v6194_v0 = vmul.f32 %v6192_v38, %v8398_v35 }
0x3525   :  { %v7134_v43 = vpop.eup %7133  ;;  %v6196_v18 = vadd.f32 1e-05, %v6194_v0 }
0x3526   :  { %v6198_v33 = vmul.f32 %v7134_v43, %v6195_v24  ;;  %vm6204_vm10 = vweird.f32 %v7134_v43  ;;  %v6373_v24 = vld [vmem:[#allocation34] sm:$0xff] }
0x3527   :  { %7135 = vrsqrt.f32 %v6196_v18  ;;  %vm6205_vm5 = vmor %vm6203_vm3, %vm6204_vm10  ;;  %vm6213_vm8 = vweird.f32 %v6196_v18  ;;  %6402 = vmatpush.msra.mxu1 %v6373_v24 }
0x3528   :  { %v6199_v44 = vmul.f32 %v7134_v43, %v6198_v33 }
0x352a   :  { %v6200_v23 = vmul.f32 0.5, %v6199_v44 }
0x352c   :  { %v6201_v45 = vsub.f32 1.5, %v6200_v23 }
0x352d   :  { %v7136_v50 = vpop.eup %7135 }
0x352e   :  { %v6202_v55 = vmul.f32 %v7134_v43, %v6201_v45  ;;  %v6208_v3 = vmul.f32 %v7136_v50, %v6196_v18  ;;  %vm6214_vm6 = vweird.f32 %v7136_v50 }
0x352f   :  { %vm6215_vm9 = vmor %vm6213_vm8, %vm6214_vm6 }
0x3530   :  { %v6206_v53 = vsel %vm6205_vm5, %v7134_v43, %v6202_v55  ;;  %v6209_v37 = vmul.f32 %v7136_v50, %v6208_v3  ;;  %v6904_v55 = vld [vmem:[#allocation31 + $0x1] ss:$0 sm:$0xff] }
0x3531   :  { %v6217_v48 = vmul.f32 %v6206_v53, %v6183_v28  ;;  %v6905_v53 = vld [vmem:[#allocation33 + $0x1] ss:$0 sm:$0xff] }
0x3532   :  { %v6210_v5 = vmul.f32 0.5, %v6209_v37 }
0x3533   :  { %v6222_v59 = vmul.f32 %v6900_v52, %v6217_v48 }
0x3534   :  { %v6211_v34 = vsub.f32 1.5, %v6210_v5 }
0x3535   :  { %v6227_v62 = vadd.f32 %v6901_v60, %v6222_v59 }
0x3536   :  { %v6212_v63 = vmul.f32 %v7136_v50, %v6211_v34 }
0x3537   :  { %6754 = vmatmul.msk.f32.vlgmr.msra.gmra.mxu3 %vm575_vm7, %v6227_v62 }
0x3538   :  { %v6216_v49 = vsel %vm6215_vm9, %v7136_v50, %v6212_v63 }
0x3539   :  { %v6218_v1 = vmul.f32 %v6216_v49, %v6184_v26 }
0x353b   :  { %v6223_v7 = vmul.f32 %v6900_v52, %v6218_v1  ;;  %v6906_v1 = vld [vmem:[#allocation36] ss:$0 sm:$0xff] }
0x353d   :  { %v6228_v27 = vadd.f32 %v6901_v60, %v6223_v7 }
0x353f   :  { %6755 = vmatmul.msk.f32.gmra.mxu3 %vm575_vm7, %v6228_v27 }
0x35ba   :  { %v6273_v46 = vpop.f32.mrf.mxu3 }
0x35bb   :  { %v6274_v13 = vadd.f32 %v6902_v12, %v6273_v46 }
0x35bd   :  { %v6279_v14 = vmax.f32 %v6274_v13, 0.0 }
0x35bf   :  { %6756 = vmatmul.msk.f32.vlgmr.msrb.gmra.mxu0 %vm1519_vm4, %v6279_v14 }
0x35c2   :  { %v6276_v15 = vpop.f32.mrf.mxu3 }
0x35c3   :  { %v6277_v61 = vadd.f32 %v6902_v12, %v6276_v15 }
0x35c5   :  { %v6280_v16 = vmax.f32 %v6277_v61, 0.0 }
0x35c7   :  { %6757 = vmatmul.msk.f32.gmra.mxu0 %vm1519_vm4, %v6280_v16 }
0x363c   :  { %v6307_v19 = vpop.f32.mrf.mxu0 }
0x363d   :  { %v6308_v22 = vadd.f32 %v6903_v17, %v6307_v19 }
0x363f   :  { %v6313_v4 = vadd.f32 %v6308_v22, %v6227_v62 }
0x3641   :  { %v6319_v51 = vsel %vm575_vm7, %v6313_v4, 0.0 }
0x3642   :  { %6320 = vadd.xlane.f32.xlu0 %v6319_v51 }
0x3644   :  { %v6310_v57 = vpop.f32.mrf.mxu0 }
0x3645   :  { %v6311_v10 = vadd.f32 %v6903_v17, %v6310_v57 }
0x3647   :  { %v6314_v25 = vadd.f32 %v6311_v10, %v6228_v27 }
0x3649   :  { %v6322_v28 = vsel %vm575_vm7, %v6314_v25, 0.0 }
0x364a   :  { %6323 = vadd.xlane.f32.xlu2 %v6322_v28 }
0x36b5   :  { %v6321_v41 = vpop.xlane.xlu0 %6320 }
0x36b6   :  { %v6325_v8 = vmul.f32 %v6321_v41, %v8398_v35 }
0x36b8   :  { %v6327_v9 = vsub.f32 %v6313_v4, %v6325_v8 }
0x36ba   :  { %v6329_v39 = vmul.f32 %v6327_v9, %v6327_v9 }
0x36bc   :  { %v6331_v26 = vsel %vm575_vm7, %v6329_v39, 0.0 }
0x36bd   :  { %v6324_v56 = vpop.xlane.xlu2 %6323  ;;  %6332 = vadd.xlane.f32.xlu0 %v6331_v26 }
0x36be   :  { %v6326_v2 = vmul.f32 %v6324_v56, %v8398_v35 }
0x36c0   :  { %v6328_v30 = vsub.f32 %v6314_v25, %v6326_v2 }
0x36c2   :  { %v6330_v32 = vmul.f32 %v6328_v30, %v6328_v30 }
0x36c4   :  { %v6334_v47 = vsel %vm575_vm7, %v6330_v32, 0.0 }
0x36c5   :  { %6335 = vadd.xlane.f32.xlu1 %v6334_v47 }
0x3730   :  { %v6333_v58 = vpop.xlane.xlu0 %6332 }
0x3731   :  { %v6337_v21 = vmul.f32 %v6333_v58, %v8398_v35 }
0x3733   :  { %v6339_v29 = vadd.f32 1e-05, %v6337_v21 }
0x3735   :  { %7137 = vrsqrt.f32 %v6339_v29  ;;  %vm6347_vm11 = vweird.f32 %v6339_v29 }
0x3738   :  { %v6336_v38 = vpop.xlane.xlu1 %6335 }
0x3739   :  { %v6338_v0 = vmul.f32 %v6336_v38, %v8398_v35 }
0x373b   :  { %v7138_v36 = vpop.eup %7137  ;;  %v6340_v43 = vadd.f32 1e-05, %v6338_v0 }
0x373c   :  { %v6342_v18 = vmul.f32 %v7138_v36, %v6339_v29  ;;  %vm6348_vm4 = vweird.f32 %v7138_v36 }
0x373d   :  { %7139 = vrsqrt.f32 %v6340_v43  ;;  %vm6349_vm12 = vmor %vm6347_vm11, %vm6348_vm4  ;;  %vm6357_vm14 = vweird.f32 %v6340_v43 }
0x373e   :  { %v6343_v20 = vmul.f32 %v7138_v36, %v6342_v18 }
0x3740   :  { %v6344_v33 = vmul.f32 0.5, %v6343_v20 }
0x3742   :  { %v6345_v44 = vsub.f32 1.5, %v6344_v33 }
0x3743   :  { %v7140_v23 = vpop.eup %7139 }
0x3744   :  { %v6346_v45 = vmul.f32 %v7138_v36, %v6345_v44  ;;  %v6352_v50 = vmul.f32 %v7140_v23, %v6340_v43  ;;  %vm6358_vm13 = vweird.f32 %v7140_v23 }
0x3745   :  { %vm6359_vm15 = vmor %vm6357_vm14, %vm6358_vm13 }
0x3746   :  { %v6350_v3 = vsel %vm6349_vm12, %v7138_v36, %v6346_v45  ;;  %v6353_v52 = vmul.f32 %v7140_v23, %v6352_v50 }
0x3747   :  { %v6361_v37 = vmul.f32 %v6350_v3, %v6327_v9 }
0x3748   :  { %v6354_v60 = vmul.f32 0.5, %v6353_v52 }
0x3749   :  { %v6366_v35 = vmul.f32 %v6904_v55, %v6361_v37 }
0x374a   :  { %v6355_v48 = vsub.f32 1.5, %v6354_v60 }
0x374b   :  { %v6371_v5 = vadd.f32 %v6905_v53, %v6366_v35 }
0x374c   :  { %v6356_v59 = vmul.f32 %v7140_v23, %v6355_v48 }
0x374d   :  { %6758 = vmatmul.msk.f32.vlgmr.msra.gmra.mxu1 %vm575_vm7, %v6371_v5 }
0x374e   :  { %v6360_v34 = vsel %vm6359_vm15, %v7140_v23, %v6356_v59 }
0x374f   :  { %v6362_v62 = vmul.f32 %v6360_v34, %v6328_v30 }
0x3751   :  { %v6367_v63 = vmul.f32 %v6904_v55, %v6362_v62 }
0x3753   :  { %v6372_v49 = vadd.f32 %v6905_v53, %v6367_v63 }
0x3755   :  { %6759 = vmatmul.msk.f32.gmra.mxu1 %vm575_vm7, %v6372_v49 }
0x37ca   :  { %v6404_v7 = vpop.f32.mrf.mxu1 }
0x37cb   :  { %v6405_v27 = vadd.f32 %v6906_v1, %v6404_v7 }
0x37cd   :  { %6410 = vst [vmem:[%s8022_s24] sm:$0xff] %v6405_v27 }
0x37d2   :  { %v6407_v54 = vpop.f32.mrf.mxu1 }
0x37d3   :  { %v6408_v11 = vadd.f32 %v6906_v1, %v6407_v54 }
0x37d5   :  { %6411 = vst [vmem:[%s8022_s24 + $0x8] sm:$0xff] %v6408_v11 }
0x37d6   :  { %6431 = vsyncpa [#allocation3], 1 }
0x37d7   :  { %6432 = vsyncpa [#allocation5], 1 }
0x37d8   :  { %6433 = vsyncpa [#allocation8], 1 }
0x37d9   :  { %6434 = vsyncpa [#allocation11], 1 }
0x37da   :  { %6435 = vsyncpa [#allocation14], 1 }
0x37db   :  { %6436 = vsyncpa [#allocation17], 1 }
0x37dc   :  { %6437 = vsyncpa [#allocation20], 1 }
0x37dd   :  { %6438 = vsyncpa [#allocation23], 1 }
0x37de   :  { %6439 = vsyncpa [#allocation26], 1 }
0x37df   :  { %6440 = vsyncpa [#allocation29], 1 }
0x37e0   :  { %6441 = vsyncpa [#allocation32], 1 }
0x37e1   :  { %6442 = vsyncpa [#allocation35], 1 }

</bundles_post_ra>
